<compile_context>
chip_gen: v7x
topology: tpu7x:2x2x1
jax: 0.10.0
libtpu: 0.0.40
codegen_flags: <defaults>
</compile_context>

<pallas_src>
import functools
import math

import jax
import jax.numpy as jnp
from jax import lax
from jax.experimental import pallas as pl
from jax.experimental.pallas import tpu as pltpu


def _conv_kernel(x_ref, w_ref, b_ref, o_ref, *, kh, kw, ho, wo, stride):
    """One padded NHWC image -> one flattened-spatial output image.

    x_ref: (1, Hp, Wp, Cin)     zero-padded input (channels on the lane axis)
    w_ref: (kh, kw, Cin, Cout)  pre-scaled weights
    b_ref: (1, Cout)            bias row
    o_ref: (1, Ho*Wo, Cout)     output (lane axis = Cout)
    """
    cin = x_ref.shape[-1]
    cout = o_ref.shape[-1]

    acc = jnp.zeros((ho * wo, cout), jnp.float32)
    for i in range(kh):
        for j in range(kw):
            if stride == 1:
                patch = x_ref[0, i:i + ho, j:j + wo, :]
            else:
                patch = x_ref[0, pl.ds(i, ho, stride), pl.ds(j, wo, stride), :]
            patch2 = patch.reshape(ho * wo, cin).astype(jnp.float32)
            acc = acc + jnp.dot(
                patch2,
                w_ref[i, j, :, :].astype(jnp.float32),
                preferred_element_type=jnp.float32,
                precision=lax.Precision.HIGHEST,
            )
    acc = acc + b_ref[...].astype(jnp.float32)   # (1, Cout) broadcasts over rows
    o_ref[0, :, :] = acc.astype(o_ref.dtype)


def equal_conv2d(x, weight, bias=None, stride=1, padding=0):
    """EqualConv2d forward. x: (N, Cin, H, W) NCHW, weight: (Cout, Cin, kh, kw)."""
    n, cin, h, w = x.shape
    cout, cin_w, kh, kw = weight.shape
    assert cin == cin_w
    scale = 1.0 / math.sqrt(cin * kh * kw)

    ho = (h + 2 * padding - kh) // stride + 1
    wo = (w + 2 * padding - kw) // stride + 1
    hp, wp = h + 2 * padding, w + 2 * padding

    # Glue (layout only): NCHW -> NHWC so channels are lane-dense, plus zero pad.
    xh = jnp.transpose(x, (0, 2, 3, 1))
    xp = jnp.pad(xh, ((0, 0), (padding, padding), (padding, padding), (0, 0)))

    # Fold the equalized-LR scale into the weights once; layout (kh, kw, Cin, Cout).
    wk = jnp.transpose(weight.astype(jnp.float32) * scale, (2, 3, 1, 0))

    if bias is None:
        b = jnp.zeros((1, cout), jnp.float32)
    else:
        b = bias.reshape(1, cout).astype(jnp.float32)

    kernel = functools.partial(
        _conv_kernel, kh=kh, kw=kw, ho=ho, wo=wo, stride=stride)

    out = pl.pallas_call(
        kernel,
        out_shape=jax.ShapeDtypeStruct((n, ho * wo, cout), x.dtype),
        grid=(n,),
        in_specs=[
            pl.BlockSpec((1, hp, wp, cin), lambda bi: (bi, 0, 0, 0)),
            pl.BlockSpec((kh, kw, cin, cout), lambda bi: (0, 0, 0, 0)),
            pl.BlockSpec((1, cout), lambda bi: (0, 0)),
        ],
        out_specs=pl.BlockSpec((1, ho * wo, cout), lambda bi: (bi, 0, 0)),
        compiler_params=pltpu.CompilerParams(
            dimension_semantics=("parallel",),
        ),
    )(xp, wk, b)

    # Layout back: (N, Ho*Wo, Cout) -> NCHW.
    out = out.reshape(n, ho, wo, cout)
    return jnp.transpose(out, (0, 3, 1, 2))


def equal_conv2d_reference(x, weight, bias, stride, padding):
    """Pure-JAX reference via lax.conv_general_dilated."""
    _, cin, _, _ = x.shape
    _, _, kh, kw = weight.shape
    scale = 1.0 / math.sqrt(cin * kh * kw)
    out = lax.conv_general_dilated(
        x, weight * scale,
        window_strides=(stride, stride),
        padding=((padding, padding), (padding, padding)),
        dimension_numbers=("NCHW", "OIHW", "NCHW"),
        precision=lax.Precision.HIGHEST)
    if bias is not None:
        out = out + bias[None, :, None, None]
    return out


if __name__ == "__main__":
    key = jax.random.PRNGKey(0)
    kx, kw_, kb = jax.random.split(key, 3)

    N, Cin, H, W = 2, 4, 16, 16
    Cout, ksize, stride, padding = 8, 3, 1, 1

    x = jax.random.normal(kx, (N, Cin, H, W), dtype=jnp.float32)
    weight = jax.random.normal(kw_, (Cout, Cin, ksize, ksize), dtype=jnp.float32)
    bias = jax.random.normal(kb, (Cout,), dtype=jnp.float32)

    out = equal_conv2d(x, weight, bias, stride=stride, padding=padding)
    out = jax.block_until_ready(out)

    assert out.shape == (N, Cout, H, W), out.shape

    ref = equal_conv2d_reference(x, weight, bias, stride, padding)
    err = float(jnp.max(jnp.abs(out - ref)))
    assert jnp.allclose(out, ref, atol=2e-3, rtol=2e-3), f"mismatch vs reference, max err {err}"

    print("KERNEL_OK")
</pallas_src>

<mosaic_0001>
module attributes {stable_mosaic.version = 11 : i64} {
  func.func @_conv_kernel(%arg0: i32, %arg1: memref<1x18x18x4xf32, #tpu.memory_space<vmem>>, %arg2: memref<3x3x4x8xf32, #tpu.memory_space<vmem>>, %arg3: memref<1x8xf32, #tpu.memory_space<vmem>>, %arg4: memref<1x256x8xf32, #tpu.memory_space<vmem>>) attributes {dimension_semantics = [#tpu.dimension_semantics<parallel>], iteration_bounds = array<i64: 2>, scalar_prefetch = 0 : i64, scratch_operands = 0 : i64, tpu.core_type = #tpu.core_type<tc>, window_params = [{transform_indices = @transform_0, window_bounds = array<i64: 1, 18, 18, 4>}, {pipeline_mode = #tpu.pipeline_mode<synchronous>, transform_indices = @transform_1, window_bounds = array<i64: 3, 3, 4, 8>}, {pipeline_mode = #tpu.pipeline_mode<synchronous>, transform_indices = @transform_2, window_bounds = array<i64: 1, 8>}, {transform_indices = @transform_3, window_bounds = array<i64: 1, 256, 8>}]} {
    %cst = arith.constant 0.000000e+00 : f32
    %0 = vector.broadcast %cst : f32 to vector<256x8xf32>
    %c0 = arith.constant 0 : index
    %c0_0 = arith.constant 0 : index
    %c0_1 = arith.constant 0 : index
    %c0_2 = arith.constant 0 : index
    %1 = vector.load %arg1[%c0, %c0_0, %c0_1, %c0_2] : memref<1x18x18x4xf32, #tpu.memory_space<vmem>>, vector<1x16x16x4xf32>
    %2 = vector.shape_cast %1 : vector<1x16x16x4xf32> to vector<16x16x4xf32>
    %3 = vector.shape_cast %2 : vector<16x16x4xf32> to vector<256x4xf32>
    %c0_3 = arith.constant 0 : index
    %c0_4 = arith.constant 0 : index
    %c0_5 = arith.constant 0 : index
    %c0_6 = arith.constant 0 : index
    %4 = vector.load %arg2[%c0_3, %c0_4, %c0_5, %c0_6] : memref<3x3x4x8xf32, #tpu.memory_space<vmem>>, vector<1x1x4x8xf32>
    %5 = vector.shape_cast %4 : vector<1x1x4x8xf32> to vector<4x8xf32>
    %cst_7 = arith.constant dense<0.000000e+00> : vector<256x8xf32>
    %6 = tpu.matmul %3, %5, %cst_7 {dimension_numbers = #tpu.dot_dimension_numbers<[1], [0], [0], [1], [0, 0, 1, 1], [], []>, precision = #tpu.contract_precision<fp32>} : vector<256x4xf32>, vector<4x8xf32>, vector<256x8xf32> -> vector<256x8xf32>
    %7 = arith.addf %0, %6 : vector<256x8xf32>
    %c0_8 = arith.constant 0 : index
    %c0_9 = arith.constant 0 : index
    %c1 = arith.constant 1 : index
    %c0_10 = arith.constant 0 : index
    %8 = vector.load %arg1[%c0_8, %c0_9, %c1, %c0_10] : memref<1x18x18x4xf32, #tpu.memory_space<vmem>>, vector<1x16x16x4xf32>
    %9 = vector.shape_cast %8 : vector<1x16x16x4xf32> to vector<16x16x4xf32>
    %10 = vector.shape_cast %9 : vector<16x16x4xf32> to vector<256x4xf32>
    %c0_11 = arith.constant 0 : index
    %c1_12 = arith.constant 1 : index
    %c0_13 = arith.constant 0 : index
    %c0_14 = arith.constant 0 : index
    %11 = vector.load %arg2[%c0_11, %c1_12, %c0_13, %c0_14] : memref<3x3x4x8xf32, #tpu.memory_space<vmem>>, vector<1x1x4x8xf32>
    %12 = vector.shape_cast %11 : vector<1x1x4x8xf32> to vector<4x8xf32>
    %cst_15 = arith.constant dense<0.000000e+00> : vector<256x8xf32>
    %13 = tpu.matmul %10, %12, %cst_15 {dimension_numbers = #tpu.dot_dimension_numbers<[1], [0], [0], [1], [0, 0, 1, 1], [], []>, precision = #tpu.contract_precision<fp32>} : vector<256x4xf32>, vector<4x8xf32>, vector<256x8xf32> -> vector<256x8xf32>
    %14 = arith.addf %7, %13 : vector<256x8xf32>
    %c0_16 = arith.constant 0 : index
    %c0_17 = arith.constant 0 : index
    %c2 = arith.constant 2 : index
    %c0_18 = arith.constant 0 : index
    %15 = vector.load %arg1[%c0_16, %c0_17, %c2, %c0_18] : memref<1x18x18x4xf32, #tpu.memory_space<vmem>>, vector<1x16x16x4xf32>
    %16 = vector.shape_cast %15 : vector<1x16x16x4xf32> to vector<16x16x4xf32>
    %17 = vector.shape_cast %16 : vector<16x16x4xf32> to vector<256x4xf32>
    %c0_19 = arith.constant 0 : index
    %c2_20 = arith.constant 2 : index
    %c0_21 = arith.constant 0 : index
    %c0_22 = arith.constant 0 : index
    %18 = vector.load %arg2[%c0_19, %c2_20, %c0_21, %c0_22] : memref<3x3x4x8xf32, #tpu.memory_space<vmem>>, vector<1x1x4x8xf32>
    %19 = vector.shape_cast %18 : vector<1x1x4x8xf32> to vector<4x8xf32>
    %cst_23 = arith.constant dense<0.000000e+00> : vector<256x8xf32>
    %20 = tpu.matmul %17, %19, %cst_23 {dimension_numbers = #tpu.dot_dimension_numbers<[1], [0], [0], [1], [0, 0, 1, 1], [], []>, precision = #tpu.contract_precision<fp32>} : vector<256x4xf32>, vector<4x8xf32>, vector<256x8xf32> -> vector<256x8xf32>
    %21 = arith.addf %14, %20 : vector<256x8xf32>
    %c0_24 = arith.constant 0 : index
    %c1_25 = arith.constant 1 : index
    %c0_26 = arith.constant 0 : index
    %c0_27 = arith.constant 0 : index
    %22 = vector.load %arg1[%c0_24, %c1_25, %c0_26, %c0_27] : memref<1x18x18x4xf32, #tpu.memory_space<vmem>>, vector<1x16x16x4xf32>
    %23 = vector.shape_cast %22 : vector<1x16x16x4xf32> to vector<16x16x4xf32>
    %24 = vector.shape_cast %23 : vector<16x16x4xf32> to vector<256x4xf32>
    %c1_28 = arith.constant 1 : index
    %c0_29 = arith.constant 0 : index
    %c0_30 = arith.constant 0 : index
    %c0_31 = arith.constant 0 : index
    %25 = vector.load %arg2[%c1_28, %c0_29, %c0_30, %c0_31] : memref<3x3x4x8xf32, #tpu.memory_space<vmem>>, vector<1x1x4x8xf32>
    %26 = vector.shape_cast %25 : vector<1x1x4x8xf32> to vector<4x8xf32>
    %cst_32 = arith.constant dense<0.000000e+00> : vector<256x8xf32>
    %27 = tpu.matmul %24, %26, %cst_32 {dimension_numbers = #tpu.dot_dimension_numbers<[1], [0], [0], [1], [0, 0, 1, 1], [], []>, precision = #tpu.contract_precision<fp32>} : vector<256x4xf32>, vector<4x8xf32>, vector<256x8xf32> -> vector<256x8xf32>
    %28 = arith.addf %21, %27 : vector<256x8xf32>
    %c0_33 = arith.constant 0 : index
    %c1_34 = arith.constant 1 : index
    %c1_35 = arith.constant 1 : index
    %c0_36 = arith.constant 0 : index
    %29 = vector.load %arg1[%c0_33, %c1_34, %c1_35, %c0_36] : memref<1x18x18x4xf32, #tpu.memory_space<vmem>>, vector<1x16x16x4xf32>
    %30 = vector.shape_cast %29 : vector<1x16x16x4xf32> to vector<16x16x4xf32>
    %31 = vector.shape_cast %30 : vector<16x16x4xf32> to vector<256x4xf32>
    %c1_37 = arith.constant 1 : index
    %c1_38 = arith.constant 1 : index
    %c0_39 = arith.constant 0 : index
    %c0_40 = arith.constant 0 : index
    %32 = vector.load %arg2[%c1_37, %c1_38, %c0_39, %c0_40] : memref<3x3x4x8xf32, #tpu.memory_space<vmem>>, vector<1x1x4x8xf32>
    %33 = vector.shape_cast %32 : vector<1x1x4x8xf32> to vector<4x8xf32>
    %cst_41 = arith.constant dense<0.000000e+00> : vector<256x8xf32>
    %34 = tpu.matmul %31, %33, %cst_41 {dimension_numbers = #tpu.dot_dimension_numbers<[1], [0], [0], [1], [0, 0, 1, 1], [], []>, precision = #tpu.contract_precision<fp32>} : vector<256x4xf32>, vector<4x8xf32>, vector<256x8xf32> -> vector<256x8xf32>
    %35 = arith.addf %28, %34 : vector<256x8xf32>
    %c0_42 = arith.constant 0 : index
    %c1_43 = arith.constant 1 : index
    %c2_44 = arith.constant 2 : index
    %c0_45 = arith.constant 0 : index
    %36 = vector.load %arg1[%c0_42, %c1_43, %c2_44, %c0_45] : memref<1x18x18x4xf32, #tpu.memory_space<vmem>>, vector<1x16x16x4xf32>
    %37 = vector.shape_cast %36 : vector<1x16x16x4xf32> to vector<16x16x4xf32>
    %38 = vector.shape_cast %37 : vector<16x16x4xf32> to vector<256x4xf32>
    %c1_46 = arith.constant 1 : index
    %c2_47 = arith.constant 2 : index
    %c0_48 = arith.constant 0 : index
    %c0_49 = arith.constant 0 : index
    %39 = vector.load %arg2[%c1_46, %c2_47, %c0_48, %c0_49] : memref<3x3x4x8xf32, #tpu.memory_space<vmem>>, vector<1x1x4x8xf32>
    %40 = vector.shape_cast %39 : vector<1x1x4x8xf32> to vector<4x8xf32>
    %cst_50 = arith.constant dense<0.000000e+00> : vector<256x8xf32>
    %41 = tpu.matmul %38, %40, %cst_50 {dimension_numbers = #tpu.dot_dimension_numbers<[1], [0], [0], [1], [0, 0, 1, 1], [], []>, precision = #tpu.contract_precision<fp32>} : vector<256x4xf32>, vector<4x8xf32>, vector<256x8xf32> -> vector<256x8xf32>
    %42 = arith.addf %35, %41 : vector<256x8xf32>
    %c0_51 = arith.constant 0 : index
    %c2_52 = arith.constant 2 : index
    %c0_53 = arith.constant 0 : index
    %c0_54 = arith.constant 0 : index
    %43 = vector.load %arg1[%c0_51, %c2_52, %c0_53, %c0_54] : memref<1x18x18x4xf32, #tpu.memory_space<vmem>>, vector<1x16x16x4xf32>
    %44 = vector.shape_cast %43 : vector<1x16x16x4xf32> to vector<16x16x4xf32>
    %45 = vector.shape_cast %44 : vector<16x16x4xf32> to vector<256x4xf32>
    %c2_55 = arith.constant 2 : index
    %c0_56 = arith.constant 0 : index
    %c0_57 = arith.constant 0 : index
    %c0_58 = arith.constant 0 : index
    %46 = vector.load %arg2[%c2_55, %c0_56, %c0_57, %c0_58] : memref<3x3x4x8xf32, #tpu.memory_space<vmem>>, vector<1x1x4x8xf32>
    %47 = vector.shape_cast %46 : vector<1x1x4x8xf32> to vector<4x8xf32>
    %cst_59 = arith.constant dense<0.000000e+00> : vector<256x8xf32>
    %48 = tpu.matmul %45, %47, %cst_59 {dimension_numbers = #tpu.dot_dimension_numbers<[1], [0], [0], [1], [0, 0, 1, 1], [], []>, precision = #tpu.contract_precision<fp32>} : vector<256x4xf32>, vector<4x8xf32>, vector<256x8xf32> -> vector<256x8xf32>
    %49 = arith.addf %42, %48 : vector<256x8xf32>
    %c0_60 = arith.constant 0 : index
    %c2_61 = arith.constant 2 : index
    %c1_62 = arith.constant 1 : index
    %c0_63 = arith.constant 0 : index
    %50 = vector.load %arg1[%c0_60, %c2_61, %c1_62, %c0_63] : memref<1x18x18x4xf32, #tpu.memory_space<vmem>>, vector<1x16x16x4xf32>
    %51 = vector.shape_cast %50 : vector<1x16x16x4xf32> to vector<16x16x4xf32>
    %52 = vector.shape_cast %51 : vector<16x16x4xf32> to vector<256x4xf32>
    %c2_64 = arith.constant 2 : index
    %c1_65 = arith.constant 1 : index
    %c0_66 = arith.constant 0 : index
    %c0_67 = arith.constant 0 : index
    %53 = vector.load %arg2[%c2_64, %c1_65, %c0_66, %c0_67] : memref<3x3x4x8xf32, #tpu.memory_space<vmem>>, vector<1x1x4x8xf32>
    %54 = vector.shape_cast %53 : vector<1x1x4x8xf32> to vector<4x8xf32>
    %cst_68 = arith.constant dense<0.000000e+00> : vector<256x8xf32>
    %55 = tpu.matmul %52, %54, %cst_68 {dimension_numbers = #tpu.dot_dimension_numbers<[1], [0], [0], [1], [0, 0, 1, 1], [], []>, precision = #tpu.contract_precision<fp32>} : vector<256x4xf32>, vector<4x8xf32>, vector<256x8xf32> -> vector<256x8xf32>
    %56 = arith.addf %49, %55 : vector<256x8xf32>
    %c0_69 = arith.constant 0 : index
    %c2_70 = arith.constant 2 : index
    %c2_71 = arith.constant 2 : index
    %c0_72 = arith.constant 0 : index
    %57 = vector.load %arg1[%c0_69, %c2_70, %c2_71, %c0_72] : memref<1x18x18x4xf32, #tpu.memory_space<vmem>>, vector<1x16x16x4xf32>
    %58 = vector.shape_cast %57 : vector<1x16x16x4xf32> to vector<16x16x4xf32>
    %59 = vector.shape_cast %58 : vector<16x16x4xf32> to vector<256x4xf32>
    %c2_73 = arith.constant 2 : index
    %c2_74 = arith.constant 2 : index
    %c0_75 = arith.constant 0 : index
    %c0_76 = arith.constant 0 : index
    %60 = vector.load %arg2[%c2_73, %c2_74, %c0_75, %c0_76] : memref<3x3x4x8xf32, #tpu.memory_space<vmem>>, vector<1x1x4x8xf32>
    %61 = vector.shape_cast %60 : vector<1x1x4x8xf32> to vector<4x8xf32>
    %cst_77 = arith.constant dense<0.000000e+00> : vector<256x8xf32>
    %62 = tpu.matmul %59, %61, %cst_77 {dimension_numbers = #tpu.dot_dimension_numbers<[1], [0], [0], [1], [0, 0, 1, 1], [], []>, precision = #tpu.contract_precision<fp32>} : vector<256x4xf32>, vector<4x8xf32>, vector<256x8xf32> -> vector<256x8xf32>
    %63 = arith.addf %56, %62 : vector<256x8xf32>
    %c0_78 = arith.constant 0 : index
    %c0_79 = arith.constant 0 : index
    %64 = vector.load %arg3[%c0_78, %c0_79] : memref<1x8xf32, #tpu.memory_space<vmem>>, vector<1x8xf32>
    %65 = vector.broadcast %64 : vector<1x8xf32> to vector<256x8xf32>
    %66 = arith.addf %63, %65 : vector<256x8xf32>
    %c0_80 = arith.constant 0 : index
    %c0_81 = arith.constant 0 : index
    %c0_82 = arith.constant 0 : index
    %67 = vector.load %arg4[%c0_80, %c0_81, %c0_82] : memref<1x256x8xf32, #tpu.memory_space<vmem>>, vector<1x256x8xf32>
    %68 = vector.shape_cast %67 : vector<1x256x8xf32> to vector<256x8xf32>
    %69 = vector.shape_cast %66 : vector<256x8xf32> to vector<1x256x8xf32>
    tpu.vector_store %arg4[%c0_80, %c0_81, %c0_82], %69 {strides = array<i32>} : memref<1x256x8xf32, #tpu.memory_space<vmem>>, vector<1x256x8xf32>,
    return
  }
  func.func @transform_0(%arg0: i32) -> (i32, i32, i32, i32) {
    %c0_i32 = arith.constant 0 : i32
    %c0_i32_0 = arith.constant 0 : i32
    %c0_i32_1 = arith.constant 0 : i32
    %c0_i32_2 = arith.constant 0 : i32
    return %arg0, %c0_i32, %c0_i32_0, %c0_i32_1 : i32, i32, i32, i32
  }
  func.func @transform_1(%arg0: i32) -> (i32, i32, i32, i32) {
    %c0_i32 = arith.constant 0 : i32
    %c0_i32_0 = arith.constant 0 : i32
    %c0_i32_1 = arith.constant 0 : i32
    %c0_i32_2 = arith.constant 0 : i32
    %c0_i32_3 = arith.constant 0 : i32
    return %c0_i32, %c0_i32_0, %c0_i32_1, %c0_i32_2 : i32, i32, i32, i32
  }
  func.func @transform_2(%arg0: i32) -> (i32, i32) {
    %c0_i32 = arith.constant 0 : i32
    %c0_i32_0 = arith.constant 0 : i32
    %c0_i32_1 = arith.constant 0 : i32
    return %c0_i32, %c0_i32_0 : i32, i32
  }
  func.func @transform_3(%arg0: i32) -> (i32, i32, i32) {
    %c0_i32 = arith.constant 0 : i32
    %c0_i32_0 = arith.constant 0 : i32
    %c0_i32_1 = arith.constant 0 : i32
    return %arg0, %c0_i32, %c0_i32_0 : i32, i32, i32
  }
}

</mosaic_0001>

<bundles_post_ra>
// kernel: tpu_custom_call.1
= control target key start
LH: loop header
LB: loop body
LE: loop exit
PB: predicated region body
PF: predicated region fallthrough
CT: control target
= control target key end

     0   :  { %s24160_s12 = smov 0   ;;  %s28966_s0 = inlined_call_operand.vmem [shape: f32[2,18,18,4], index: 0, kind: input, shape index: {}]   ;;  %s28967_s1 = inlined_call_operand.vmem [shape: f32[3,3,4,8], index: 1, kind: input, shape index: {}]   ;;  %s28968_s2 = inlined_call_operand.vmem [shape: f32[1,8], index: 2, kind: input, shape index: {}]   ;;  %s28969_s3 = inlined_call_operand.vmem [shape: f32[2,256,8], index: 3, kind: output, shape index: {}]  }
   0x1 LB: > { %s17733_s13 = sadd.s32 4294967295, %s24138_s12   ;;  %p17737_p0 = scmp.ge.s32.totalorder %s24138_s12, 1  ;;  %s24138_s12 = sphi %s24160_s12, %s13_s12  }
   0x2   : > { %p137_p1 = scmp.lt.s32.totalorder %s24138_s12, 3 }
   0x4   : > { %p138_p2 = pnand %p17737_p0, %p137_p1 }
   0x6   : > { %141 = sbr.rel (%p138_p2) target bundleno = 1976 (0x7b8), region = 32 }
   0xd   : > { %vm335_vm0 = vcmask 1043456   ;;  %v17808_v0 = vld [vmem:[%s28967_s1 + $0x10] sm:$0xf]  ;;  %p161_p3 = scmp.lt.s32.totalorder %s17733_s13, 1  ;;  %v17741_v2 = vld [vmem:[%s28967_s1 + $0x4] sm:$0xf] }
   0xe   : > { %v8016_v1 = vsel %vm335_vm0, %v17808_v0, 0  ;;  %v337_v4 = vsel %vm335_vm0, %v17741_v2, 0  ;;  %vm238_vm1 = vcmask 31744   ;;  %vm17645_vm2 = vcmask 64512  }
   0xf   : > { %v24175_v3 = vand.u32 4294901760, %v8016_v1  ;;  %s31411_s13 = smov (!%p161_p3, %s17733_s13), 1  ;;  %v24180_v5 = vand.u32 4294901760, %v337_v4 }
  0x10   : > { %s24123_s18 = smul.u32 432, %s31411_s13  ;;  %s17944_s9 = sshll.u32 %s31411_s13, 8 }
  0x11   : > { %29962 = vst [vmem:[#allocation2_spill] sm:$0xff] %v24175_v3  ;;  %21077 = vmatprep.subr.mxu0 %v24175_v3  ;;  %v24185_v6 = vsub.f32 %v8016_v1, %v24175_v3  ;;  %19727 = vmatprep.subr.mxu1 %v24180_v5  ;;  %v24190_v7 = vsub.f32 %v337_v4, %v24180_v5  ;;  %s28865_s16 = scalar_lea.vmem %s28969_s3, %s17944_s9 }
  0x12   : > { %21078 = vmatpush3.msra.mxu0 %v24175_v3  ;;  %s24195_s21 = scalar_lea.vmem %s28966_s0, %s24123_s18  ;;  %19728 = vmatpush3.msra.mxu1 %v24180_v5 }
  0x13   : > { %29963 = vst [vmem:[#allocation3_spill] sm:$0xff] %v24185_v6  ;;  %v24199_v8 = vand.u32 4294901760, %v24185_v6  ;;  %v17776_v9 = vld [vmem:[%s24195_s21 + $0x19] sm:$0xff]  ;;  %v17777_v10 = vld [vmem:[%s24195_s21 + $0x21] sm:$0xff]  ;;  %v24205_v12 = vand.u32 4294901760, %v24190_v7  ;;  %v17778_v16 = vld [vmem:[%s24195_s21 + $0x31] sm:$0xff] }
  0x14   : > { %v204_v11 = vld [vmem:[%s24195_s21 + $0x1] sm:$0xff]  ;;  %v7920_v13 = vsel %vm238_vm1, %v17776_v9, 0  ;;  %v7923_v14 = vsel %vm238_vm1, %v17777_v10, 0  ;;  %v205_v17 = vld [vmem:[%s24195_s21 + $0x9] sm:$0xff]  ;;  %v17779_v18 = vld [vmem:[%s24195_s21 + $0x39] sm:$0xff]  ;;  %v7926_v24 = vsel %vm238_vm1, %v17778_v16, 0 }
  0x15   : > { %29964 = vst [vmem:[#allocation4_spill] sm:$0xff] %v24199_v8  ;;  %v240_v15 = vsel %vm238_vm1, %v204_v11, 0  ;;  %21127 = vmatprep.subr.mxu0 %v24199_v8  ;;  %v24214_v19 = vand.u32 4294901760, %v7920_v13  ;;  %v24216_v20 = vand.u32 4294901760, %v7923_v14  ;;  %v729_v22 = vsub.f32 %v24190_v7, %v24205_v12  ;;  %v17780_v23 = vld [vmem:[%s24195_s21 + $0x49] sm:$0xff]  ;;  %v17781_v28 = vld [vmem:[%s24195_s21 + $0x51] sm:$0xff] }
  0x16   : > { %v24218_v21 = vand.u32 4294901760, %v240_v15  ;;  %v243_v25 = vsel %vm238_vm1, %v205_v17, 0  ;;  %v7929_v26 = vsel %vm238_vm1, %v17779_v18, 0  ;;  %v7932_v27 = vsel %vm238_vm1, %v17780_v23, 0  ;;  %v17782_v48 = vld [vmem:[%s24195_s21 + $0x61] sm:$0xff]  ;;  %v17783_v53 = vld [vmem:[%s24195_s21 + $0x69] sm:$0xff] }
  0x17   : > { %29965 = vst [vmem:[#allocation5_spill] sm:$0xff] %v24214_v19  ;;  %29966 = vst [vmem:[#allocation6_spill] sm:$0xff] %v24216_v20  ;;  %v24229_v29 = vsub.f32 %v7920_v13, %v24214_v19  ;;  %v24232_v30 = vsub.f32 %v7923_v14, %v24216_v20  ;;  %v730_v32 = vand.u32 4294901760, %v729_v22  ;;  %v24237_v33 = vand.u32 4294901760, %v7926_v24  ;;  %v17784_v59 = vld [vmem:[%s24195_s21 + $0x79] sm:$0xff]  ;;  %v17785_v0 = vld [vmem:[%s24195_s21 + $0x81] sm:$0xff] }
  0x18   : > { %v24235_v31 = vsub.f32 %v240_v15, %v24218_v21  ;;  %v24239_v34 = vand.u32 4294901760, %v243_v25  ;;  %v24241_v35 = vand.u32 4294901760, %v7929_v26  ;;  %v24243_v36 = vand.u32 4294901760, %v7932_v27  ;;  %v17786_v1 = vld [vmem:[%s24195_s21 + $0x91] sm:$0xff]  ;;  %v17787_v16 = vld [vmem:[%s24195_s21 + $0x99] sm:$0xff]  ;;  %v17788_v17 = vld [vmem:[%s24195_s21 + $0xa9] sm:$0xff] }
  0x19   : > { %29967 = vst [vmem:[#allocation7_spill] sm:$0xff] %v24229_v29  ;;  %29968 = vst [vmem:[#allocation8_spill] sm:$0xff] %v24232_v30  ;;  %v24246_v37 = vand.u32 4294901760, %v24229_v29  ;;  %v24249_v38 = vand.u32 4294901760, %v24232_v30  ;;  %19777 = vmatprep.subr.mxu1 %v730_v32  ;;  %v7935_v40 = vsel %vm238_vm1, %v17781_v28, 0  ;;  %v24254_v41 = vsub.f32 %v7926_v24, %v24237_v33 }
  0x1a   : > { %29969 = vst [vmem:[#allocation9_spill] sm:$0xff] %v24237_v33  ;;  %29970 = vst [vmem:[#allocation10_spill] sm:$0xff] %v24241_v35  ;;  %v28971_v39 = vand.u32 4294901760, %v24235_v31  ;;  %v24257_v42 = vsub.f32 %v243_v25, %v24239_v34  ;;  %v24260_v43 = vsub.f32 %v7929_v26, %v24241_v35  ;;  %v24263_v44 = vsub.f32 %v7932_v27, %v24243_v36 }
  0x1b   : > { %29971 = vst [vmem:[#allocation11_spill] sm:$0xff] %v24243_v36  ;;  %29972 = vst [vmem:[#allocation12_spill] sm:$0xff] %v24246_v37  ;;  %v8087_v45 = vsub.f32 %v24229_v29, %v24246_v37  ;;  %21079 = vmatprep.mubr.f32.mxu0 %v24246_v37  ;;  %v24271_v47 = vand.u32 4294901760, %v7935_v40  ;;  %v8097_v49 = vsub.f32 %v24232_v30, %v24249_v38  ;;  %v24278_v50 = vand.u32 4294901760, %v24254_v41  ;;  %v17798_v37 = vld [vmem:[%s24195_s21 + $0x121] sm:$0xff] }
  0x1c   : > { %29973 = vst [vmem:[#allocation13_spill] sm:$0xff] %v24249_v38  ;;  %29974 = vst [vmem:[#allocation14_spill] sm:$0xff] %v24254_v41  ;;  %v408_v46 = vsub.f32 %v24235_v31, %v28971_v39  ;;  %21080 = vmatmul.mubr.f32.vlgmr.msra.gmra.mrb[0].mxu0 %v24249_v38  ;;  %v28970_v51 = vand.u32 4294901760, %v24257_v42  ;;  %v24282_v52 = vand.u32 4294901760, %v24260_v43  ;;  %v24287_v55 = vand.u32 4294901760, %v24263_v44  ;;  %v17792_v39 = vld [vmem:[%s24195_s21 + $0xd9] sm:$0xff] }
  0x1d   : > { %29975 = vst [vmem:[#allocation15_spill] sm:$0xff] %v24260_v43  ;;  %29976 = vst [vmem:[#allocation16_spill] sm:$0xff] %v24263_v44  ;;  %21128 = vmatpush3.msra.mxu0 %v24199_v8  ;;  %v24290_v56 = vsub.f32 %v7935_v40, %v24271_v47  ;;  %21082 = vmatprep.mubr.f32.mxu0 %v24278_v50  ;;  %v7938_v58 = vsel %vm238_vm1, %v17782_v48, 0  ;;  %v24299_v60 = vand.u32 4294901760, %v8087_v45  ;;  %v7941_v63 = vsel %vm238_vm1, %v17783_v53, 0  ;;  %v17789_v40 = vld [vmem:[%s24195_s21 + $0xb1] sm:$0xff] }
  0x1e   : > { %29977 = vst [vmem:[#allocation17_spill] sm:$0xff] %v24271_v47  ;;  %29978 = vst [vmem:[#allocation18_spill] sm:$0xff] %v24278_v50  ;;  %v409_v54 = vand.u32 4294901760, %v408_v46  ;;  %v418_v57 = vsub.f32 %v24257_v42, %v28970_v51  ;;  %21177 = vmatprep.subr.mxu0 %v24175_v3  ;;  %v448_v61 = vsub.f32 %v24254_v41, %v24278_v50  ;;  %v24303_v62 = vand.u32 4294901760, %v7938_v58  ;;  %v17797_v50 = vld [vmem:[%s24195_s21 + $0x111] sm:$0xff] }
  0x1f   : > { %29979 = vst [vmem:[#allocation19_spill] sm:$0xff] %v24282_v52  ;;  %29980 = vst [vmem:[#allocation20_spill] sm:$0xff] %v24287_v55  ;;  %v24308_v2 = vand.u32 4294901760, %v8097_v49  ;;  %v24312_v9 = vand.u32 4294901760, %v24290_v56  ;;  %v24314_v10 = vand.u32 4294901760, %v7941_v63  ;;  %v458_v13 = vsub.f32 %v24260_v43, %v24282_v52  ;;  %v17806_v43 = vld [vmem:[%s24195_s21 + $0x181] sm:$0xff] }
  0x20   : > { %29981 = vst [vmem:[#allocation21_spill] sm:$0xff] %v24290_v56  ;;  %19729 = vmatprep.mubr.f32.mxu1 %v409_v54  ;;  %29982 = vst [vmem:[#allocation22_spill] sm:$0xff] %v24299_v60  ;;  %v419_v4 = vand.u32 4294901760, %v418_v57  ;;  %21083 = vmatmul.mubr.f32.gmra.mrb[2].mxu0 %v24282_v52  ;;  %v24318_v11 = vsub.f32 %v7938_v58, %v24303_v62  ;;  %v468_v14 = vsub.f32 %v24263_v44, %v24287_v55 }
  0x21   : > { %29983 = vst [vmem:[#allocation23_spill] sm:$0xff] %v24303_v62  ;;  %29984 = vst [vmem:[#allocation24_spill] sm:$0xff] %v24308_v2  ;;  %21085 = vmatprep.mubr.f32.mxu0 %v24287_v55  ;;  %v7944_v15 = vsel %vm238_vm1, %v17784_v59, 0  ;;  %v24328_v18 = vsub.f32 %v7941_v63, %v24314_v10  ;;  %v7947_v23 = vsel %vm238_vm1, %v17785_v0, 0  ;;  %v7950_v24 = vsel %vm238_vm1, %v17786_v1, 0  ;;  %v17790_v0 = vld [vmem:[%s24195_s21 + $0xc1] sm:$0xff] }
  0x22   : > { %29985 = vst [vmem:[#allocation25_spill] sm:$0xff] %v24312_v9  ;;  %29986 = vst [vmem:[#allocation26_spill] sm:$0xff] %v24314_v10  ;;  %19730 = vmatmul.mubr.f32.vlgmr.msra.gmra.mrb[0].mxu1 %v419_v4  ;;  %v24330_v22 = vand.u32 4294901760, %v7944_v15  ;;  %v24335_v25 = vand.u32 4294901760, %v448_v61  ;;  %v24338_v26 = vand.u32 4294901760, %v24318_v11  ;;  %v24340_v27 = vand.u32 4294901760, %v7947_v23 }
  0x23   : > { %29987 = vst [vmem:[#allocation27_spill] sm:$0xff] %v24318_v11  ;;  %29988 = vst [vmem:[#allocation28_spill] sm:$0xff] %v24328_v18  ;;  %19778 = vmatpush3.msra.mxu1 %v730_v32  ;;  %19732 = vmatprep.mubr.f32.mxu1 %v24299_v60  ;;  %v24342_v28 = vand.u32 4294901760, %v7950_v24  ;;  %v24347_v45 = vand.u32 4294901760, %v24328_v18  ;;  %v7953_v46 = vsel %vm238_vm1, %v17787_v16, 0  ;;  %v7956_v48 = vsel %vm238_vm1, %v17788_v17, 0 }
  0x24   : > { %29989 = vst [vmem:[#allocation29_spill] sm:$0xff] %v24330_v22  ;;  %29990 = vst [vmem:[#allocation30_spill] sm:$0xff] %v24335_v25  ;;  %21086 = vmatmul.mubr.f32.gmra.mrb[4].mxu0 %v24312_v9  ;;  %v24350_v32 = vsub.f32 %v7944_v15, %v24330_v22  ;;  %19827 = vmatprep.subr.mxu1 %v24190_v7  ;;  %v24356_v49 = vand.u32 4294901760, %v458_v13  ;;  %v24359_v53 = vsub.f32 %v7947_v23, %v24340_v27  ;;  %v17791_v17 = vld [vmem:[%s24195_s21 + $0xc9] sm:$0xff] }
  0x25   : > { %29991 = vst [vmem:[#allocation31_spill] sm:$0xff] %v24338_v26  ;;  %29992 = vst [vmem:[#allocation32_spill] sm:$0xff] %v24340_v27  ;;  %21088 = vmatprep.mubr.f32.mxu0 %v24338_v26  ;;  %v24362_v54 = vsub.f32 %v7950_v24, %v24342_v28  ;;  %v24364_v57 = vand.u32 4294901760, %v7953_v46  ;;  %v478_v59 = vsub.f32 %v24290_v56, %v24312_v9  ;;  %v24372_v61 = vand.u32 4294901760, %v7956_v48  ;;  %v17795_v9 = vld [vmem:[%s24195_s21 + $0xf9] sm:$0xff]  ;;  %v17804_v56 = vld [vmem:[%s24195_s21 + $0x169] sm:$0xff] }
  0x26   : > { %29993 = vst [vmem:[#allocation33_spill] sm:$0xff] %v24342_v28  ;;  %29994 = vst [vmem:[#allocation34_spill] sm:$0xff] %v24347_v45  ;;  %19733 = vmatmul.mubr.f32.gmra.mrb[2].mxu1 %v24308_v2  ;;  %v24368_v58 = vand.u32 4294901760, %v24350_v32  ;;  %v7959_v63 = vsel %vm238_vm1, %v17789_v40, 0  ;;  %v24377_v1 = vand.u32 4294901760, %v468_v14  ;;  %v488_v4 = vsub.f32 %v24318_v11, %v24338_v26 }
  0x27   : > { %29995 = vst [vmem:[#allocation35_spill] sm:$0xff] %v24350_v32  ;;  %29996 = vst [vmem:[#allocation36_spill] sm:$0xff] %v24356_v49  ;;  %19735 = vmatprep.mubr.f32.mxu1 %v24335_v25  ;;  %v24383_v13 = vand.u32 4294901760, %v24359_v53  ;;  %v24386_v15 = vsub.f32 %v7953_v46, %v24364_v57  ;;  %v24388_v16 = vand.u32 4294901760, %v7959_v63  ;;  %v24393_v14 = vand.u32 4294901760, %v24362_v54  ;;  %v17793_v25 = vld [vmem:[%s24195_s21 + $0xe1] sm:$0xff] }
  0x28   : > { %29997 = vst [vmem:[#allocation37_spill] sm:$0xff] %v24359_v53  ;;  %29998 = vst [vmem:[#allocation38_spill] sm:$0xff] %v24362_v54  ;;  %21089 = vmatmul.mubr.f32.gmra.mrb[6].mxu0 %v24347_v45  ;;  %v24396_v23 = vsub.f32 %v7956_v48, %v24372_v61  ;;  %v7962_v24 = vsel %vm238_vm1, %v17790_v0, 0  ;;  %v24400_v40 = vand.u32 4294901760, %v478_v59  ;;  %v498_v46 = vsub.f32 %v24328_v18, %v24347_v45  ;;  %v17802_v18 = vld [vmem:[%s24195_s21 + $0x151] sm:$0xff] }
  0x29   : > { %29999 = vst [vmem:[#allocation39_spill] sm:$0xff] %v24364_v57  ;;  %30000 = vst [vmem:[#allocation40_spill] sm:$0xff] %v24368_v58  ;;  %21091 = vmatprep.mubr.f32.mxu0 %v24368_v58  ;;  %v24404_v51 = vand.u32 4294901760, %v7962_v24  ;;  %v24409_v2 = vand.u32 4294901760, %v488_v4  ;;  %v508_v48 = vsub.f32 %v24350_v32, %v24368_v58  ;;  %v7965_v0 = vsel %vm238_vm1, %v17791_v17, 0 }
  0x2a   : > { %30001 = vst [vmem:[#allocation41_spill] sm:$0xff] %v24372_v61  ;;  %30002 = vst [vmem:[#allocation42_spill] sm:$0xff] %v24377_v1  ;;  %19736 = vmatmul.mubr.f32.gmra.mrb[4].mxu1 %v24356_v49  ;;  %v17794_v49 = vld [vmem:[%s24195_s21 + $0xf1] sm:$0xff]  ;;  %v24417_v59 = vand.u32 4294901760, %v24386_v15  ;;  %v24420_v60 = vsub.f32 %v7959_v63, %v24388_v16  ;;  %v24422_v6 = vand.u32 4294901760, %v7965_v0  ;;  %v24426_v4 = vand.u32 4294901760, %v24396_v23 }
  0x2b   : > { %30003 = vst [vmem:[#allocation43_spill] sm:$0xff] %v24383_v13  ;;  %30004 = vst [vmem:[#allocation44_spill] sm:$0xff] %v24386_v15  ;;  %19738 = vmatprep.mubr.f32.mxu1 %v24377_v1  ;;  %v24429_v17 = vsub.f32 %v7962_v24, %v24404_v51  ;;  %v7968_v1 = vsel %vm238_vm1, %v17792_v39, 0  ;;  %v7971_v8 = vsel %vm238_vm1, %v17793_v25, 0  ;;  %v24434_v58 = vand.u32 4294901760, %v498_v46  ;;  %v17796_v25 = vld [vmem:[%s24195_s21 + $0x109] sm:$0xff] }
  0x2c   : > { %30005 = vst [vmem:[#allocation45_spill] sm:$0xff] %v24388_v16  ;;  %30006 = vst [vmem:[#allocation46_spill] sm:$0xff] %v24393_v14  ;;  %21092 = vmatmul.mubr.f32.gmra.mrb[8].mxu0 %v24383_v13  ;;  %v518_v63 = vsub.f32 %v24359_v53, %v24383_v13  ;;  %v24438_v45 = vand.u32 4294901760, %v7968_v1  ;;  %v7974_v26 = vsel %vm238_vm1, %v17794_v49, 0  ;;  %v24443_v24 = vand.u32 4294901760, %v508_v48  ;;  %v17800_v53 = vld [vmem:[%s24195_s21 + $0x139] sm:$0xff] }
  0x2d   : > { %30007 = vst [vmem:[#allocation47_spill] sm:$0xff] %v24396_v23  ;;  %30008 = vst [vmem:[#allocation48_spill] sm:$0xff] %v24400_v40  ;;  %21094 = vmatprep.mubr.f32.mxu0 %v24393_v14  ;;  %v528_v39 = vsub.f32 %v24362_v54, %v24393_v14  ;;  %v24450_v46 = vand.u32 4294901760, %v24420_v60  ;;  %v24455_v49 = vand.u32 4294901760, %v7971_v8  ;;  %v24459_v48 = vand.u32 4294901760, %v24429_v17 }
  0x2e   : > { %30009 = vst [vmem:[#allocation49_spill] sm:$0xff] %v24404_v51  ;;  %30010 = vst [vmem:[#allocation50_spill] sm:$0xff] %v24409_v2  ;;  %19739 = vmatmul.mubr.f32.gmra.mrb[6].mxu1 %v24400_v40  ;;  %v24453_v40 = vsub.f32 %v7965_v0, %v24422_v6  ;;  %v24464_v14 = vand.u32 4294901760, %v7974_v26  ;;  %v7977_v13 = vsel %vm238_vm1, %v17795_v9, 0  ;;  %v24468_v55 = vand.u32 4294901760, %v518_v63 }
  0x2f   : > { %30011 = vst [vmem:[#allocation51_spill] sm:$0xff] %v24417_v59  ;;  %30012 = vst [vmem:[#allocation52_spill] sm:$0xff] %v24420_v60  ;;  %19741 = vmatprep.mubr.f32.mxu1 %v24409_v2  ;;  %v24462_v2 = vsub.f32 %v7968_v1, %v24438_v45  ;;  %v538_v0 = vsub.f32 %v24386_v15, %v24417_v59  ;;  %v7980_v52 = vsel %vm238_vm1, %v17796_v25, 0  ;;  %v24475_v38 = vand.u32 4294901760, %v528_v39  ;;  %v17799_v15 = vld [vmem:[%s24195_s21 + $0x129] sm:$0xff] }
  0x30   : > { %30013 = vst [vmem:[#allocation53_spill] sm:$0xff] %v24422_v6  ;;  %30014 = vst [vmem:[#allocation54_spill] sm:$0xff] %v24426_v4  ;;  %21095 = vmatmul.mubr.f32.gmra.mrb[10].mxu0 %v24417_v59  ;;  %v548_v1 = vsub.f32 %v24396_v23, %v24426_v4  ;;  %v24482_v9 = vand.u32 4294901760, %v24453_v40  ;;  %v24485_v63 = vsub.f32 %v7971_v8, %v24455_v49  ;;  %v24487_v25 = vand.u32 4294901760, %v7977_v13 }
  0x31   : > { %30015 = vst [vmem:[#allocation55_spill] sm:$0xff] %v24429_v17  ;;  %30016 = vst [vmem:[#allocation56_spill] sm:$0xff] %v24434_v58  ;;  %21097 = vmatprep.mubr.f32.mxu0 %v24426_v4  ;;  %v24491_v39 = vand.u32 4294901760, %v24462_v2  ;;  %v7983_v4 = vsel %vm238_vm1, %v17797_v50, 0  ;;  %v24500_v59 = vand.u32 4294901760, %v538_v0  ;;  %v558_v8 = vsub.f32 %v24420_v60, %v24450_v46  ;;  %v17801_v60 = vld [vmem:[%s24195_s21 + $0x141] sm:$0xff] }
  0x32   : > { %30017 = vst [vmem:[#allocation57_spill] sm:$0xff] %v24438_v45  ;;  %30018 = vst [vmem:[#allocation58_spill] sm:$0xff] %v24443_v24  ;;  %19742 = vmatmul.mubr.f32.gmra.mrb[8].mxu1 %v24434_v58  ;;  %v24496_v58 = vand.u32 4294901760, %v7980_v52  ;;  %v7986_v23 = vsel %vm238_vm1, %v17798_v37, 0  ;;  %v24507_v54 = vand.u32 4294901760, %v548_v1  ;;  %v24514_v50 = vand.u32 4294901760, %v24485_v63 }
  0x33   : > { %30019 = vst [vmem:[#allocation59_spill] sm:$0xff] %v24450_v46  ;;  %30020 = vst [vmem:[#allocation60_spill] sm:$0xff] %v24453_v40  ;;  %19744 = vmatprep.mubr.f32.mxu1 %v24443_v24  ;;  %v24494_v24 = vsub.f32 %v7974_v26, %v24464_v14  ;;  %v568_v26 = vsub.f32 %v24429_v17, %v24459_v48  ;;  %v24517_v0 = vsub.f32 %v7977_v13, %v24487_v25 }
  0x34   : > { %30021 = vst [vmem:[#allocation61_spill] sm:$0xff] %v24455_v49  ;;  %30022 = vst [vmem:[#allocation62_spill] sm:$0xff] %v24459_v48  ;;  %21098 = vmatmul.mubr.f32.gmra.mrb[12].mxu0 %v24450_v46  ;;  %v24519_v37 = vand.u32 4294901760, %v7983_v4  ;;  %v24532_v46 = vand.u32 4294901760, %v558_v8  ;;  %v578_v13 = vsub.f32 %v24453_v40, %v24482_v9  ;;  %v7992_v17 = vsel %vm238_vm1, %v17800_v53, 0  ;;  %v17803_v40 = vld [vmem:[%s24195_s21 + $0x159] sm:$0xff] }
  0x35   : > { %30023 = vst [vmem:[#allocation63_spill] sm:$0xff] %v24462_v2  ;;  %30024 = vst [vmem:[#allocation64_spill] sm:$0xff] %v24464_v14  ;;  %21100 = vmatprep.mubr.f32.mxu0 %v24459_v48  ;;  %v24523_v1 = vand.u32 4294901760, %v24494_v24  ;;  %v7989_v48 = vsel %vm238_vm1, %v17799_v15, 0  ;;  %v24539_v32 = vand.u32 4294901760, %v568_v26  ;;  %v24546_v15 = vand.u32 4294901760, %v24517_v0 }
  0x36   : > { %30025 = vst [vmem:[#allocation65_spill] sm:$0xff] %v24468_v55  ;;  %30026 = vst [vmem:[#allocation66_spill] sm:$0xff] %v24475_v38  ;;  %19745 = vmatmul.mubr.f32.gmra.mrb[10].mxu1 %v24468_v55  ;;  %v24528_v55 = vand.u32 4294901760, %v7986_v23  ;;  %v24549_v8 = vsub.f32 %v7983_v4, %v24519_v37  ;;  %v24551_v53 = vand.u32 4294901760, %v7989_v48  ;;  %v598_v4 = vsub.f32 %v24485_v63, %v24514_v50 }
  0x37   : > { %30027 = vst [vmem:[#allocation67_spill] sm:$0xff] %v24482_v9  ;;  %30028 = vst [vmem:[#allocation68_spill] sm:$0xff] %v24485_v63  ;;  %19747 = vmatprep.mubr.f32.mxu1 %v24475_v38  ;;  %v24526_v38 = vsub.f32 %v7980_v52, %v24496_v58  ;;  %v588_v52 = vsub.f32 %v24462_v2, %v24491_v39  ;;  %v7998_v2 = vsel %vm238_vm1, %v17802_v18, 0  ;;  %v17805_v63 = vld [vmem:[%s24195_s21 + $0x171] sm:$0xff] }
  0x38   : > { %30029 = vst [vmem:[#allocation69_spill] sm:$0xff] %v24487_v25  ;;  %30030 = vst [vmem:[#allocation70_spill] sm:$0xff] %v24491_v39  ;;  %21101 = vmatmul.mubr.f32.gmra.mrb[14].mxu0 %v24482_v9  ;;  %v24564_v9 = vand.u32 4294901760, %v578_v13  ;;  %v24581_v13 = vsub.f32 %v7989_v48, %v24551_v53  ;;  %v618_v48 = vsub.f32 %v24517_v0, %v24546_v15 }
  0x39   : > { %30031 = vst [vmem:[#allocation71_spill] sm:$0xff] %v24494_v24  ;;  %30032 = vst [vmem:[#allocation72_spill] sm:$0xff] %v24496_v58  ;;  %21103 = vmatprep.mubr.f32.mxu0 %v24491_v39  ;;  %v24555_v26 = vand.u32 4294901760, %v24526_v38  ;;  %v7995_v39 = vsel %vm238_vm1, %v17801_v60, 0  ;;  %v24571_v11 = vand.u32 4294901760, %v588_v52  ;;  %v24578_v60 = vand.u32 4294901760, %v24549_v8 }
  0x3a   : > { %30033 = vst [vmem:[#allocation73_spill] sm:$0xff] %v24500_v59  ;;  %30034 = vst [vmem:[#allocation74_spill] sm:$0xff] %v24507_v54  ;;  %19748 = vmatmul.mubr.f32.gmra.mrb[12].mxu1 %v24500_v59  ;;  %v24560_v59 = vand.u32 4294901760, %v7992_v17  ;;  %v24583_v18 = vand.u32 4294901760, %v7995_v39 }
  0x3b   : > { %30035 = vst [vmem:[#allocation75_spill] sm:$0xff] %v24514_v50  ;;  %30036 = vst [vmem:[#allocation76_spill] sm:$0xff] %v24517_v0  ;;  %19750 = vmatprep.mubr.f32.mxu1 %v24507_v54  ;;  %v24558_v54 = vsub.f32 %v7986_v23, %v24528_v55  ;;  %v608_v23 = vsub.f32 %v24494_v24, %v24523_v1  ;;  %v8004_v24 = vsel %vm238_vm1, %v17804_v56, 0  ;;  %v17807_v0 = vld [vmem:[%s24195_s21 + $0x189] sm:$0xff] }
  0x3c   : > { %30037 = vst [vmem:[#allocation77_spill] sm:$0xff] %v24519_v37  ;;  %30038 = vst [vmem:[#allocation78_spill] sm:$0xff] %v24523_v1  ;;  %21104 = vmatmul.mubr.f32.gmra.mrb[16].mxu0 %v24514_v50  ;;  %v24596_v50 = vand.u32 4294901760, %v598_v4  ;;  %v24613_v4 = vsub.f32 %v7995_v39, %v24583_v18  ;;  %v638_v39 = vsub.f32 %v24549_v8, %v24578_v60 }
  0x3d   : > { %30039 = vst [vmem:[#allocation79_spill] sm:$0xff] %v24526_v38  ;;  %30040 = vst [vmem:[#allocation80_spill] sm:$0xff] %v24528_v55  ;;  %21106 = vmatprep.mubr.f32.mxu0 %v24523_v1  ;;  %v24587_v52 = vand.u32 4294901760, %v24558_v54  ;;  %v8001_v1 = vsel %vm238_vm1, %v17803_v40, 0  ;;  %v24603_v44 = vand.u32 4294901760, %v608_v23  ;;  %v24610_v40 = vand.u32 4294901760, %v24581_v13 }
  0x3e   : > { %30041 = vst [vmem:[#allocation81_spill] sm:$0xff] %v24532_v46  ;;  %30042 = vst [vmem:[#allocation82_spill] sm:$0xff] %v24539_v32  ;;  %19751 = vmatmul.mubr.f32.gmra.mrb[14].mxu1 %v24532_v46  ;;  %v24592_v46 = vand.u32 4294901760, %v7998_v2 }
  0x3f   : > { %30043 = vst [vmem:[#allocation83_spill] sm:$0xff] %v24546_v15  ;;  %30044 = vst [vmem:[#allocation84_spill] sm:$0xff] %v24549_v8  ;;  %19753 = vmatprep.mubr.f32.mxu1 %v24539_v32  ;;  %v24590_v32 = vsub.f32 %v7992_v17, %v24560_v59  ;;  %v628_v17 = vsub.f32 %v24526_v38, %v24555_v26  ;;  %v8010_v38 = vsel %vm238_vm1, %v17806_v43, 0 }
  0x40   : > { %30045 = vst [vmem:[#allocation85_spill] sm:$0xff] %v24551_v53  ;;  %30046 = vst [vmem:[#allocation86_spill] sm:$0xff] %v24555_v26  ;;  %21107 = vmatmul.mubr.f32.gmra.mrb[18].mxu0 %v24546_v15  ;;  %v24622_v23 = vsub.f32 %v7998_v2, %v24592_v46  ;;  %v24628_v15 = vand.u32 4294901760, %v618_v48  ;;  %v648_v2 = vsub.f32 %v24558_v54, %v24587_v52 }
  0x41   : > { %30047 = vst [vmem:[#allocation87_spill] sm:$0xff] %v24558_v54  ;;  %30048 = vst [vmem:[#allocation88_spill] sm:$0xff] %v24560_v59  ;;  %21109 = vmatprep.mubr.f32.mxu0 %v24555_v26  ;;  %v24619_v56 = vand.u32 4294901760, %v24590_v32  ;;  %v8007_v26 = vsel %vm238_vm1, %v17805_v63, 0  ;;  %v24635_v41 = vand.u32 4294901760, %v628_v17  ;;  %v24641_v63 = vand.u32 4294901760, %v24613_v4 }
  0x42   : > { %30049 = vst [vmem:[#allocation89_spill] sm:$0xff] %v24564_v9  ;;  %30050 = vst [vmem:[#allocation90_spill] sm:$0xff] %v24571_v11  ;;  %19754 = vmatmul.mubr.f32.gmra.mrb[16].mxu1 %v24564_v9  ;;  %v24615_v9 = vand.u32 4294901760, %v8001_v1  ;;  %v24650_v43 = vand.u32 4294901760, %v24622_v23  ;;  %v24664_v54 = vand.u32 4294901760, %v648_v2 }
  0x43   : > { %30051 = vst [vmem:[#allocation91_spill] sm:$0xff] %v24578_v60  ;;  %30052 = vst [vmem:[#allocation92_spill] sm:$0xff] %v24581_v13  ;;  %19756 = vmatprep.mubr.f32.mxu1 %v24571_v11  ;;  %v24624_v11 = vand.u32 4294901760, %v8004_v24  ;;  %v668_v8 = vsub.f32 %v24590_v32, %v24619_v56 }
  0x44   : > { %30053 = vst [vmem:[#allocation93_spill] sm:$0xff] %v24583_v18  ;;  %30054 = vst [vmem:[#allocation94_spill] sm:$0xff] %v24587_v52  ;;  %21110 = vmatmul.mubr.f32.gmra.mrb[20].mxu0 %v24578_v60  ;;  %v24644_v48 = vsub.f32 %v8001_v1, %v24615_v9  ;;  %v24659_v60 = vand.u32 4294901760, %v638_v39  ;;  %v658_v1 = vsub.f32 %v24581_v13, %v24610_v40 }
  0x45   : > { %30055 = vst [vmem:[#allocation95_spill] sm:$0xff] %v24590_v32  ;;  %30056 = vst [vmem:[#allocation96_spill] sm:$0xff] %v24592_v46  ;;  %21112 = vmatprep.mubr.f32.mxu0 %v24587_v52  ;;  %v24653_v17 = vsub.f32 %v8004_v24, %v24624_v11  ;;  %v8013_v52 = vsel %vm238_vm1, %v17807_v0, 0 }
  0x46   : > { %30057 = vst [vmem:[#allocation97_spill] sm:$0xff] %v24596_v50  ;;  %30058 = vst [vmem:[#allocation98_spill] sm:$0xff] %v24603_v44  ;;  %19757 = vmatmul.mubr.f32.gmra.mrb[18].mxu1 %v24596_v50  ;;  %v24646_v50 = vand.u32 4294901760, %v8007_v26  ;;  %v24670_v24 = vand.u32 4294901760, %v24644_v48  ;;  %v24675_v39 = vand.u32 4294901760, %v8013_v52 }
  0x47   : > { %30059 = vst [vmem:[#allocation99_spill] sm:$0xff] %v24610_v40  ;;  %30060 = vst [vmem:[#allocation100_spill] sm:$0xff] %v24613_v4  ;;  %19759 = vmatprep.mubr.f32.mxu1 %v24603_v44  ;;  %v24655_v44 = vand.u32 4294901760, %v8010_v38 }
  0x48   : > { %30061 = vst [vmem:[#allocation101_spill] sm:$0xff] %v24615_v9  ;;  %30062 = vst [vmem:[#allocation102_spill] sm:$0xff] %v24619_v56  ;;  %21113 = vmatmul.mubr.f32.gmra.mrb[22].mxu0 %v24610_v40  ;;  %v24673_v0 = vsub.f32 %v8007_v26, %v24646_v50  ;;  %v24690_v26 = vand.u32 4294901760, %v668_v8  ;;  %v688_v40 = vsub.f32 %v24622_v23, %v24650_v43 }
  0x49   : > { %30063 = vst [vmem:[#allocation103_spill] sm:$0xff] %v24622_v23  ;;  %30064 = vst [vmem:[#allocation104_spill] sm:$0xff] %v24624_v11  ;;  %21115 = vmatprep.mubr.f32.mxu0 %v24619_v56  ;;  %v24682_v2 = vsub.f32 %v8010_v38, %v24655_v44  ;;  %v678_v56 = vsub.f32 %v24613_v4, %v24641_v63  ;;  %v24699_v38 = vsub.f32 %v8013_v52, %v24675_v39 }
  0x4a   : > { %30065 = vst [vmem:[#allocation105_spill] sm:$0xff] %v24628_v15  ;;  %30066 = vst [vmem:[#allocation106_spill] sm:$0xff] %v24635_v41  ;;  %19760 = vmatmul.mubr.f32.gmra.mrb[20].mxu1 %v24628_v15  ;;  %v24679_v15 = vand.u32 4294901760, %v24653_v17  ;;  %v24696_v32 = vand.u32 4294901760, %v24673_v0  ;;  %v698_v8 = vsub.f32 %v24644_v48, %v24670_v24 }
  0x4b   : > { %30067 = vst [vmem:[#allocation107_spill] sm:$0xff] %v24644_v48  ;;  %30068 = vst [vmem:[#allocation108_spill] sm:$0xff] %v24646_v50  ;;  %19762 = vmatprep.mubr.f32.mxu1 %v24635_v41  ;;  %v24685_v41 = vand.u32 4294901760, %v658_v1  ;;  %v17841_v1 = vld [vmem:[%s28967_s1 + $0x14] sm:$0xf] }
  0x4c   : > { %30069 = vst [vmem:[#allocation109_spill] sm:$0xff] %v24650_v43  ;;  %30070 = vst [vmem:[#allocation110_spill] sm:$0xff] %v24653_v17  ;;  %21116 = vmatmul.mubr.f32.gmra.mrb[24].mxu0 %v24641_v63  ;;  %v9960_v52 = vsel %vm335_vm0, %v17841_v1, 0 }
  0x4d   : > { %30071 = vst [vmem:[#allocation111_spill] sm:$0xff] %v24655_v44  ;;  %30072 = vst [vmem:[#allocation112_spill] sm:$0xff] %v24659_v60  ;;  %21118 = vmatprep.mubr.f32.mxu0 %v24650_v43  ;;  %v708_v43 = vsub.f32 %v24653_v17, %v24679_v15 }
  0x4e   : > { %30073 = vst [vmem:[#allocation113_spill] sm:$0xff] %v24664_v54  ;;  %30074 = vst [vmem:[#allocation114_spill] sm:$0xff] %v24673_v0  ;;  %19763 = vmatmul.mubr.f32.gmra.mrb[22].mxu1 %v24659_v60  ;;  %v24709_v60 = vand.u32 4294901760, %v688_v40  ;;  %v718_v40 = vsub.f32 %v24673_v0, %v24696_v32 }
  0x4f   : > { %30075 = vst [vmem:[#allocation115_spill] sm:$0xff] %v24675_v39  ;;  %30076 = vst [vmem:[#allocation116_spill] sm:$0xff] %v24679_v15  ;;  %19765 = vmatprep.mubr.f32.mxu1 %v24664_v54  ;;  %v24704_v54 = vand.u32 4294901760, %v678_v56  ;;  %v30083_v56 = vand.u32 4294901760, %v24682_v2 }
  0x50   : > { %30077 = vst [vmem:[#allocation117_spill] sm:$0xff] %v24682_v2  ;;  %30078 = vst [vmem:[#allocation118_spill] sm:$0xff] %v24685_v41  ;;  %21119 = vmatmul.mubr.f32.gmra.mrb[26].mxu0 %v24670_v24  ;;  %v17812_v2 = vld [vmem:[%s24195_s21 + $0x3a] sm:$0xff] }
  0x51   : > { %30079 = vst [vmem:[#allocation119_spill] sm:$0xff] %v24690_v26  ;;  %30080 = vst [vmem:[#allocation120_spill] sm:$0xff] %v24699_v38  ;;  %21121 = vmatprep.mubr.f32.mxu0 %v24679_v15  ;;  %v30086_v15 = vand.u32 4294901760, %v24699_v38  ;;  %v30103_v38 = vld [vmem:[#allocation63_spill] sm:$0xff] }
  0x52   : > { %19766 = vmatmul.mubr.f32.gmra.mrb[24].mxu1 %v24685_v41  ;;  %30081 = vst [vmem:[#allocation121_spill] sm:$0xff] %v24704_v54  ;;  %30082 = vst [vmem:[#allocation122_spill] sm:$0xff] %v24709_v60  ;;  %v24721_v41 = vand.u32 4294901760, %v698_v8  ;;  %v24735_v8 = vand.u32 4294901760, %v9960_v52 }
  0x53   : > { %19768 = vmatprep.mubr.f32.mxu1 %v24690_v26  ;;  %v24726_v26 = vand.u32 4294901760, %v708_v43 }
  0x54   : > { %21122 = vmatmul.mubr.f32.gmra.mrb[28].mxu0 %v24696_v32  ;;  %30084 = vst [vmem:[#allocation123_spill] sm:$0xff] %v24721_v41 }
  0x55   : > { %21124 = vmatprep.mubr.f32.mxu0 %v30083_v56  ;;  %30085 = vst [vmem:[#allocation124_spill] sm:$0xff] %v24726_v26  ;;  %v24733_v56 = vand.u32 4294901760, %v718_v40  ;;  %v30090_v40 = vld [vmem:[#allocation15_spill] sm:$0xff] }
  0x56   : > { %19769 = vmatmul.mubr.f32.gmra.mrb[26].mxu1 %v24704_v54 }
  0x57   : > { %19771 = vmatprep.mubr.f32.mxu1 %v24709_v60  ;;  %30087 = vst [vmem:[#allocation125_spill] sm:$0xff] %v24733_v56  ;;  %v30104_v60 = vld [vmem:[#allocation68_spill] sm:$0xff] }
  0x58   : > { %21125 = vmatmul.mubr.f32.gmra.mrb[30].mxu0 %v30086_v15 }
  0x59   : > { %21129 = vmatprep.mubr.f32.mxu0 %v24214_v19 }
  0x5a   : > { %19772 = vmatmul.mubr.f32.gmra.mrb[28].mxu1 %v24721_v41 }
  0x5b   : > { %19774 = vmatprep.mubr.f32.mxu1 %v24726_v26  ;;  %v30102_v26 = vld [vmem:[#allocation60_spill] sm:$0xff] }
  0x5c   : > { %21130 = vmatmul.mubr.f32.vlgmr.msra.gmra.mrb[0].mxu0 %v24216_v20 }
  0x5d   : > { %21132 = vmatprep.mubr.f32.mxu0 %v24237_v33  ;;  %21178 = vmatpush3.msra.mxu0 %v24175_v3 }
  0x5e   : > { %19775 = vmatmul.mubr.f32.gmra.mrb[30].mxu1 %v24733_v56  ;;  %21227 = vmatprep.subr.mxu0 %v24735_v8  ;;  %v30093_v56 = vld [vmem:[#allocation27_spill] sm:$0xff] }
  0x5f   : > { %19779 = vmatprep.mubr.f32.mxu1 %v24218_v21 }
  0x60   : > { %21133 = vmatmul.mubr.f32.gmra.mrb[2].mxu0 %v24241_v35 }
  0x61   : > { %21135 = vmatprep.mubr.f32.mxu0 %v24243_v36 }
  0x62   : > { %19780 = vmatmul.mubr.f32.vlgmr.msra.gmra.mrb[0].mxu1 %v24239_v34 }
  0x63   : > { %19828 = vmatpush3.msra.mxu1 %v24190_v7  ;;  %19782 = vmatprep.mubr.f32.mxu1 %v24214_v19  ;;  %v24794_v7 = vsub.f32 %v9960_v52, %v24735_v8  ;;  %v30089_v52 = vld [vmem:[#allocation14_spill] sm:$0xff] }
  0x64   : > { %21136 = vmatmul.mubr.f32.gmra.mrb[4].mxu0 %v24271_v47  ;;  %19877 = vmatprep.subr.mxu1 %v24180_v5 }
  0x65   : > { %21138 = vmatprep.mubr.f32.mxu0 %v24303_v62  ;;  %v24801_v15 = vand.u32 4294901760, %v24794_v7 }
  0x66   : > { %19783 = vmatmul.mubr.f32.gmra.mrb[2].mxu1 %v24216_v20 }
  0x67   : > { %19785 = vmatprep.mubr.f32.mxu1 %v24237_v33  ;;  %30088 = vst [vmem:[#allocation126_spill] sm:$0xff] %v24801_v15  ;;  %v10352_v43 = vsub.f32 %v24794_v7, %v24801_v15  ;;  %v30107_v15 = vld [vmem:[#allocation76_spill] sm:$0xff] }
  0x68   : > { %21139 = vmatmul.mubr.f32.gmra.mrb[6].mxu0 %v24314_v10 }
  0x69   : > { %21141 = vmatprep.mubr.f32.mxu0 %v24330_v22  ;;  %v24813_v1 = vand.u32 4294901760, %v10352_v43  ;;  %v30091_v43 = vld [vmem:[#allocation16_spill] sm:$0xff] }
  0x6a   : > { %19786 = vmatmul.mubr.f32.gmra.mrb[4].mxu1 %v24241_v35 }
  0x6b   : > { %19788 = vmatprep.mubr.f32.mxu1 %v24243_v36 }
  0x6c   : > { %21142 = vmatmul.mubr.f32.gmra.mrb[8].mxu0 %v24340_v27 }
  0x6d   : > { %21144 = vmatprep.mubr.f32.mxu0 %v24342_v28 }
  0x6e   : > { %19789 = vmatmul.mubr.f32.gmra.mrb[6].mxu1 %v24271_v47 }
  0x6f   : > { %19791 = vmatprep.mubr.f32.mxu1 %v24303_v62 }
  0x70   : > { %21145 = vmatmul.mubr.f32.gmra.mrb[10].mxu0 %v24364_v57 }
  0x71   : > { %21147 = vmatprep.mubr.f32.mxu0 %v24372_v61 }
  0x72   : > { %19792 = vmatmul.mubr.f32.gmra.mrb[8].mxu1 %v24314_v10 }
  0x73   : > { %19794 = vmatprep.mubr.f32.mxu1 %v24330_v22 }
  0x74   : > { %21148 = vmatmul.mubr.f32.gmra.mrb[12].mxu0 %v24388_v16 }
  0x75   : > { %21150 = vmatprep.mubr.f32.mxu0 %v24404_v51 }
  0x76   : > { %19795 = vmatmul.mubr.f32.gmra.mrb[10].mxu1 %v24340_v27 }
  0x77   : > { %19797 = vmatprep.mubr.f32.mxu1 %v24342_v28 }
  0x78   : > { %21151 = vmatmul.mubr.f32.gmra.mrb[14].mxu0 %v24422_v6 }
  0x79   : > { %21153 = vmatprep.mubr.f32.mxu0 %v24438_v45 }
  0x7a   : > { %19798 = vmatmul.mubr.f32.gmra.mrb[12].mxu1 %v24364_v57 }
  0x7b   : > { %19800 = vmatprep.mubr.f32.mxu1 %v24372_v61 }
  0x7c   : > { %21154 = vmatmul.mubr.f32.gmra.mrb[16].mxu0 %v24455_v49 }
  0x7d   : > { %21156 = vmatprep.mubr.f32.mxu0 %v24464_v14 }
  0x7e   : > { %19801 = vmatmul.mubr.f32.gmra.mrb[14].mxu1 %v24388_v16 }
  0x7f   : > { %19803 = vmatprep.mubr.f32.mxu1 %v24404_v51 }
  0x80   : > { %21157 = vmatmul.mubr.f32.gmra.mrb[18].mxu0 %v24487_v25 }
  0x81   : > { %21159 = vmatprep.mubr.f32.mxu0 %v24496_v58 }
  0x82   : > { %19804 = vmatmul.mubr.f32.gmra.mrb[16].mxu1 %v24422_v6 }
  0x83   : > { %19806 = vmatprep.mubr.f32.mxu1 %v24438_v45 }
  0x84   : > { %21160 = vmatmul.mubr.f32.gmra.mrb[20].mxu0 %v24519_v37 }
  0x85   : > { %21162 = vmatprep.mubr.f32.mxu0 %v24528_v55 }
  0x86   : > { %19807 = vmatmul.mubr.f32.gmra.mrb[18].mxu1 %v24455_v49 }
  0x87   : > { %19809 = vmatprep.mubr.f32.mxu1 %v24464_v14 }
  0x88   : > { %21163 = vmatmul.mubr.f32.gmra.mrb[22].mxu0 %v24551_v53 }
  0x89   : > { %21165 = vmatprep.mubr.f32.mxu0 %v24560_v59 }
  0x8a   : > { %19810 = vmatmul.mubr.f32.gmra.mrb[20].mxu1 %v24487_v25 }
  0x8b   : > { %19812 = vmatprep.mubr.f32.mxu1 %v24496_v58 }
  0x8c   : > { %21166 = vmatmul.mubr.f32.gmra.mrb[24].mxu0 %v24583_v18 }
  0x8d   : > { %21168 = vmatprep.mubr.f32.mxu0 %v24592_v46 }
  0x8e   : > { %19813 = vmatmul.mubr.f32.gmra.mrb[22].mxu1 %v24519_v37 }
  0x8f   : > { %19815 = vmatprep.mubr.f32.mxu1 %v24528_v55 }
  0x90   : > { %21169 = vmatmul.mubr.f32.gmra.mrb[26].mxu0 %v24615_v9 }
  0x91   : > { %21171 = vmatprep.mubr.f32.mxu0 %v24624_v11 }
  0x92   : > { %19816 = vmatmul.mubr.f32.gmra.mrb[24].mxu1 %v24551_v53 }
  0x93   : > { %19818 = vmatprep.mubr.f32.mxu1 %v24560_v59 }
  0x94   : > { %21172 = vmatmul.mubr.f32.gmra.mrb[28].mxu0 %v24646_v50 }
  0x95   : > { %21174 = vmatprep.mubr.f32.mxu0 %v24655_v44 }
  0x96   : > { %19819 = vmatmul.mubr.f32.gmra.mrb[26].mxu1 %v24583_v18 }
  0x97   : > { %19821 = vmatprep.mubr.f32.mxu1 %v24592_v46 }
  0x98   : > { %21175 = vmatmul.mubr.f32.gmra.mrb[30].mxu0 %v24675_v39 }
  0x99   : > { %21179 = vmatprep.mubr.f32.mxu0 %v24214_v19 }
  0x9a   : > { %19822 = vmatmul.mubr.f32.gmra.mrb[28].mxu1 %v24615_v9 }
  0x9b   : > { %19824 = vmatprep.mubr.f32.mxu1 %v24624_v11 }
  0x9c   : > { %21180 = vmatmul.mubr.f32.vlgmr.msra.gmra.mrb[0].mxu0 %v24216_v20 }
  0x9d   : > { %21182 = vmatprep.mubr.f32.mxu0 %v24237_v33  ;;  %21228 = vmatpush3.msra.mxu0 %v24735_v8 }
  0x9e   : > { %19825 = vmatmul.mubr.f32.gmra.mrb[30].mxu1 %v24646_v50  ;;  %21277 = vmatprep.subr.mxu0 %v24813_v1 }
  0x9f   : > { %19829 = vmatprep.mubr.f32.mxu1 %v24235_v31 }
  0xa0   : > { %21183 = vmatmul.mubr.f32.gmra.mrb[2].mxu0 %v24241_v35 }
  0xa1   : > { %21185 = vmatprep.mubr.f32.mxu0 %v24243_v36 }
  0xa2   : > { %19830 = vmatmul.mubr.f32.vlgmr.msra.gmra.mrb[0].mxu1 %v24257_v42 }
  0xa3   : > { %19878 = vmatpush3.msra.mxu1 %v24180_v5  ;;  %19832 = vmatprep.mubr.f32.mxu1 %v24229_v29  ;;  %v30092_v29 = vld [vmem:[#allocation21_spill] sm:$0xff] }
  0xa4   : > { %21186 = vmatmul.mubr.f32.gmra.mrb[4].mxu0 %v24271_v47  ;;  %19927 = vmatprep.subr.mxu1 %v24205_v12 }
  0xa5   : > { %21188 = vmatprep.mubr.f32.mxu0 %v24303_v62 }
  0xa6   : > { %19833 = vmatmul.mubr.f32.gmra.mrb[2].mxu1 %v24232_v30  ;;  %v30095_v30 = vld [vmem:[#allocation35_spill] sm:$0xff] }
  0xa7   : > { %19835 = vmatprep.mubr.f32.mxu1 %v30089_v52  ;;  %v30094_v52 = vld [vmem:[#allocation28_spill] sm:$0xff] }
  0xa8   : > { %21189 = vmatmul.mubr.f32.gmra.mrb[6].mxu0 %v24314_v10 }
  0xa9   : > { %21191 = vmatprep.mubr.f32.mxu0 %v24330_v22 }
  0xaa   : > { %19836 = vmatmul.mubr.f32.gmra.mrb[4].mxu1 %v30090_v40  ;;  %v30097_v40 = vld [vmem:[#allocation38_spill] sm:$0xff] }
  0xab   : > { %19838 = vmatprep.mubr.f32.mxu1 %v30091_v43  ;;  %v30096_v43 = vld [vmem:[#allocation37_spill] sm:$0xff] }
  0xac   : > { %21192 = vmatmul.mubr.f32.gmra.mrb[8].mxu0 %v24340_v27 }
  0xad   : > { %21194 = vmatprep.mubr.f32.mxu0 %v24342_v28 }
  0xae   : > { %19839 = vmatmul.mubr.f32.gmra.mrb[6].mxu1 %v30092_v29  ;;  %v30099_v29 = vld [vmem:[#allocation47_spill] sm:$0xff] }
  0xaf   : > { %19841 = vmatprep.mubr.f32.mxu1 %v30093_v56  ;;  %v30098_v56 = vld [vmem:[#allocation44_spill] sm:$0xff] }
  0xb0   : > { %21195 = vmatmul.mubr.f32.gmra.mrb[10].mxu0 %v24364_v57 }
  0xb1   : > { %21197 = vmatprep.mubr.f32.mxu0 %v24372_v61 }
  0xb2   : > { %19842 = vmatmul.mubr.f32.gmra.mrb[8].mxu1 %v30094_v52  ;;  %v17809_v52 = vld [vmem:[%s24195_s21 + $0x1a] sm:$0xff] }
  0xb3   : > { %19844 = vmatprep.mubr.f32.mxu1 %v30095_v30  ;;  %v30100_v30 = vld [vmem:[#allocation52_spill] sm:$0xff] }
  0xb4   : > { %21198 = vmatmul.mubr.f32.gmra.mrb[12].mxu0 %v24388_v16 }
  0xb5   : > { %21200 = vmatprep.mubr.f32.mxu0 %v24404_v51  ;;  %v30162_v51 = vld [vmem:[#allocation19_spill] sm:$0xff] }
  0xb6   : > { %19845 = vmatmul.mubr.f32.gmra.mrb[10].mxu1 %v30096_v43  ;;  %v30101_v43 = vld [vmem:[#allocation55_spill] sm:$0xff] }
  0xb7   : > { %19847 = vmatprep.mubr.f32.mxu1 %v30097_v40  ;;  %v9864_v40 = vsel %vm238_vm1, %v17809_v52, 0  ;;  %v17813_v52 = vld [vmem:[%s24195_s21 + $0x4a] sm:$0xff] }
  0xb8   : > { %21201 = vmatmul.mubr.f32.gmra.mrb[14].mxu0 %v24422_v6 }
  0xb9   : > { %21203 = vmatprep.mubr.f32.mxu0 %v24438_v45  ;;  %v17820_v45 = vld [vmem:[%s24195_s21 + $0x9a] sm:$0xff] }
  0xba   : > { %19848 = vmatmul.mubr.f32.gmra.mrb[12].mxu1 %v30098_v56  ;;  %v17810_v56 = vld [vmem:[%s24195_s21 + $0x22] sm:$0xff] }
  0xbb   : > { %19850 = vmatprep.mubr.f32.mxu1 %v30099_v29  ;;  %v17811_v29 = vld [vmem:[%s24195_s21 + $0x32] sm:$0xff]  ;;  %v9867_v41 = vsel %vm238_vm1, %v17810_v56, 0  ;;  %v9873_v56 = vsel %vm238_vm1, %v17812_v2, 0 }
  0xbc   : > { %21204 = vmatmul.mubr.f32.gmra.mrb[16].mxu0 %v24455_v49  ;;  %v24874_v54 = vand.u32 4294901760, %v9867_v41  ;;  %v30120_v49 = vld [vmem:[#allocation95_spill] sm:$0xff] }
  0xbd   : > { %21206 = vmatprep.mubr.f32.mxu0 %v24464_v14  ;;  %v17819_v14 = vld [vmem:[%s24195_s21 + $0x92] sm:$0xff] }
  0xbe   : > { %19851 = vmatmul.mubr.f32.gmra.mrb[14].mxu1 %v30100_v30  ;;  %v24865_v30 = vand.u32 4294901760, %v9864_v40 }
  0xbf   : > { %19853 = vmatprep.mubr.f32.mxu1 %v30101_v43  ;;  %v9870_v43 = vsel %vm238_vm1, %v17811_v29, 0  ;;  %v9876_v29 = vsel %vm238_vm1, %v17813_v52, 0 }
  0xc0   : > { %21207 = vmatmul.mubr.f32.gmra.mrb[18].mxu0 %v24487_v25  ;;  %v24880_v3 = vand.u32 4294901760, %v9870_v43  ;;  %v24899_v52 = vand.u32 4294901760, %v9876_v29  ;;  %v17817_v25 = vld [vmem:[%s24195_s21 + $0x7a] sm:$0xff] }
  0xc1   : > { %21209 = vmatprep.mubr.f32.mxu0 %v24496_v58  ;;  %v30114_v58 = vld [vmem:[#allocation87_spill] sm:$0xff]  ;;  %v9888_v2 = vsel %vm238_vm1, %v17817_v25, 0 }
  0xc2   : > { %19854 = vmatmul.mubr.f32.gmra.mrb[16].mxu1 %v30102_v26  ;;  %v30105_v26 = vld [vmem:[#allocation71_spill] sm:$0xff]  ;;  %30112 = vst [vmem:[#allocation131_spill] sm:$0xff] %v24899_v52 }
  0xc3   : > { %19856 = vmatprep.mubr.f32.mxu1 %v30103_v38  ;;  %v24878_v38 = vsub.f32 %v9864_v40, %v24865_v30  ;;  %v24891_v40 = vand.u32 4294901760, %v9873_v56 }
  0xc4   : > { %21210 = vmatmul.mubr.f32.gmra.mrb[20].mxu0 %v24519_v37 }
  0xc5   : > { %21212 = vmatprep.mubr.f32.mxu0 %v24528_v55  ;;  %30106 = vst [vmem:[#allocation127_spill] sm:$0xff] %v24878_v38  ;;  %v24889_v55 = vsub.f32 %v9867_v41, %v24874_v54  ;;  %30110 = vst [vmem:[#allocation129_spill] sm:$0xff] %v24891_v40  ;;  %v30113_v41 = vld [vmem:[#allocation84_spill] sm:$0xff] }
  0xc6   : > { %19857 = vmatmul.mubr.f32.gmra.mrb[18].mxu1 %v30104_v60  ;;  %v17814_v60 = vld [vmem:[%s24195_s21 + $0x52] sm:$0xff] }
  0xc7   : > { %19859 = vmatprep.mubr.f32.mxu1 %v30105_v26  ;;  %v30108_v26 = vld [vmem:[#allocation79_spill] sm:$0xff]  ;;  %30109 = vst [vmem:[#allocation128_spill] sm:$0xff] %v24889_v55 }
  0xc8   : > { %21213 = vmatmul.mubr.f32.gmra.mrb[22].mxu0 %v24551_v53  ;;  %v17815_v53 = vld [vmem:[%s24195_s21 + $0x62] sm:$0xff] }
  0xc9   : > { %21215 = vmatprep.mubr.f32.mxu0 %v24560_v59  ;;  %v24897_v59 = vsub.f32 %v9870_v43, %v24880_v3  ;;  %v9882_v37 = vsel %vm238_vm1, %v17815_v53, 0  ;;  %v24909_v43 = vsub.f32 %v9873_v56, %v24891_v40  ;;  %v24920_v53 = vsub.f32 %v9876_v29, %v24899_v52 }
  0xca   : > { %19860 = vmatmul.mubr.f32.gmra.mrb[20].mxu1 %v30107_v15  ;;  %v9879_v15 = vsel %vm238_vm1, %v17814_v60, 0  ;;  %v30117_v60 = vand.u32 4294901760, %v24878_v38  ;;  %v24924_v56 = vand.u32 4294901760, %v9882_v37 }
  0xcb   : > { %19862 = vmatprep.mubr.f32.mxu1 %v30108_v26  ;;  %30111 = vst [vmem:[#allocation130_spill] sm:$0xff] %v24897_v59  ;;  %v17816_v26 = vld [vmem:[%s24195_s21 + $0x6a] sm:$0xff]  ;;  %30115 = vst [vmem:[#allocation132_spill] sm:$0xff] %v24909_v43 }
  0xcc   : > { %21216 = vmatmul.mubr.f32.gmra.mrb[24].mxu0 %v24583_v18  ;;  %v24911_v18 = vand.u32 4294901760, %v9879_v15  ;;  %30118 = vst [vmem:[#allocation134_spill] sm:$0xff] %v24920_v53  ;;  %30119 = vst [vmem:[#allocation135_spill] sm:$0xff] %v24924_v56 }
  0xcd   : > { %21218 = vmatprep.mubr.f32.mxu0 %v24592_v46 }
  0xce   : > { %19863 = vmatmul.mubr.f32.gmra.mrb[22].mxu1 %v30113_v41  ;;  %30116 = vst [vmem:[#allocation133_spill] sm:$0xff] %v24911_v18  ;;  %v10031_v41 = vsub.f32 %v24878_v38, %v30117_v60  ;;  %v24933_v29 = vsub.f32 %v9879_v15, %v24911_v18  ;;  %v24947_v15 = vsub.f32 %v9882_v37, %v24924_v56  ;;  %v24949_v60 = vand.u32 4294901760, %v9888_v2 }
  0xcf   : > { %19865 = vmatprep.mubr.f32.mxu1 %v30114_v58  ;;  %v9885_v58 = vsel %vm238_vm1, %v17816_v26, 0 }
  0xd0   : > { %21219 = vmatmul.mubr.f32.gmra.mrb[26].mxu0 %v24615_v9  ;;  %v17818_v9 = vld [vmem:[%s24195_s21 + $0x82] sm:$0xff]  ;;  %30121 = vst [vmem:[#allocation136_spill] sm:$0xff] %v24933_v29  ;;  %v24935_v46 = vand.u32 4294901760, %v9885_v58  ;;  %v10032_v26 = vand.u32 4294901760, %v10031_v41  ;;  %30125 = vst [vmem:[#allocation138_spill] sm:$0xff] %v24947_v15  ;;  %v9894_v41 = vsel %vm238_vm1, %v17819_v14, 0 }
  0xd1   : > { %21221 = vmatprep.mubr.f32.mxu0 %v24624_v11  ;;  %v30124_v11 = vand.u32 4294901760, %v24897_v59  ;;  %30126 = vst [vmem:[#allocation139_spill] sm:$0xff] %v24949_v60 }
  0xd2   : > { %19866 = vmatmul.mubr.f32.gmra.mrb[24].mxu1 %v24581_v13  ;;  %30122 = vst [vmem:[#allocation137_spill] sm:$0xff] %v24935_v46  ;;  %v30123_v13 = vand.u32 4294901760, %v24889_v55 }
  0xd3   : > { %19868 = vmatprep.mubr.f32.mxu1 %v30120_v49  ;;  %v10051_v38 = vsub.f32 %v24897_v59, %v30124_v11  ;;  %v30127_v11 = vand.u32 4294901760, %v24909_v43  ;;  %v24961_v49 = vsub.f32 %v9885_v58, %v24935_v46  ;;  %v24975_v58 = vsub.f32 %v9888_v2, %v24949_v60 }
  0xd4   : > { %21222 = vmatmul.mubr.f32.gmra.mrb[28].mxu0 %v24646_v50  ;;  %v10041_v25 = vsub.f32 %v24889_v55, %v30123_v13  ;;  %v9891_v50 = vsel %vm238_vm1, %v17818_v9, 0  ;;  %v30131_v55 = vand.u32 4294901760, %v24920_v53 }
  0xd5   : > { %21224 = vmatprep.mubr.f32.mxu0 %v24655_v44  ;;  %v10061_v13 = vsub.f32 %v24909_v43, %v30127_v11  ;;  %30128 = vst [vmem:[#allocation140_spill] sm:$0xff] %v24961_v49  ;;  %v17821_v44 = vld [vmem:[%s24195_s21 + $0xaa] sm:$0xff]  ;;  %v24965_v9 = vand.u32 4294901760, %v9891_v50  ;;  %v10052_v59 = vand.u32 4294901760, %v10051_v38  ;;  %30132 = vst [vmem:[#allocation143_spill] sm:$0xff] %v24975_v58  ;;  %v17822_v43 = vld [vmem:[%s24195_s21 + $0xb2] sm:$0xff] }
  0xd6   : > { %19869 = vmatmul.mubr.f32.gmra.mrb[26].mxu1 %v24613_v4  ;;  %v10042_v14 = vand.u32 4294901760, %v10041_v25  ;;  %v24967_v4 = vand.u32 4294901760, %v9894_v41  ;;  %v10071_v11 = vsub.f32 %v24920_v53, %v30131_v55  ;;  %v9900_v25 = vsel %vm238_vm1, %v17821_v44, 0 }
  0xd7   : > { %19871 = vmatprep.mubr.f32.mxu1 %v24622_v23  ;;  %30129 = vst [vmem:[#allocation141_spill] sm:$0xff] %v24965_v9  ;;  %v9897_v23 = vsel %vm238_vm1, %v17820_v45, 0  ;;  %v10062_v45 = vand.u32 4294901760, %v10061_v13  ;;  %v30133_v38 = vand.u32 4294901760, %v24933_v29  ;;  %v24989_v2 = vsub.f32 %v9891_v50, %v24965_v9 }
  0xd8   : > { %21225 = vmatmul.mubr.f32.gmra.mrb[30].mxu0 %v24675_v39  ;;  %30130 = vst [vmem:[#allocation142_spill] sm:$0xff] %v24967_v4  ;;  %v17823_v39 = vld [vmem:[%s24195_s21 + $0xc2] sm:$0xff]  ;;  %v24986_v37 = vand.u32 4294901760, %v9897_v23  ;;  %v9903_v44 = vsel %vm238_vm1, %v17822_v43, 0  ;;  %v30137_v55 = vand.u32 4294901760, %v24947_v15  ;;  %v25001_v50 = vand.u32 4294901760, %v9900_v25 }
  0xd9   : > { %21229 = vmatprep.mubr.f32.mxu0 %v10032_v26  ;;  %v10081_v26 = vsub.f32 %v24933_v29, %v30133_v38  ;;  %30135 = vst [vmem:[#allocation145_spill] sm:$0xff] %v24989_v2  ;;  %v9906_v13 = vsel %vm238_vm1, %v17823_v39, 0  ;;  %v10072_v38 = vand.u32 4294901760, %v10071_v11  ;;  %v17824_v29 = vld [vmem:[%s24195_s21 + $0xca] sm:$0xff]  ;;  %v30139_v43 = vand.u32 4294901760, %v24235_v31  ;;  %v17825_v11 = vld [vmem:[%s24195_s21 + $0xda] sm:$0xff] }
  0xda   : > { %19872 = vmatmul.mubr.f32.gmra.mrb[28].mxu1 %v24644_v48  ;;  %30134 = vst [vmem:[#allocation144_spill] sm:$0xff] %v24986_v37  ;;  %v24992_v48 = vsub.f32 %v9894_v41, %v24967_v4  ;;  %30138 = vst [vmem:[#allocation147_spill] sm:$0xff] %v25001_v50  ;;  %v25009_v39 = vsub.f32 %v9897_v23, %v24986_v37  ;;  %v25013_v41 = vand.u32 4294901760, %v9906_v13  ;;  %v30147_v31 = vld [vmem:[#allocation12_spill] sm:$0xff] }
  0xdb   : > { %19874 = vmatprep.mubr.f32.mxu1 %v24653_v17  ;;  %v10091_v17 = vsub.f32 %v24947_v15, %v30137_v55  ;;  %v30143_v55 = vand.u32 4294901760, %v24961_v49  ;;  %v25026_v53 = vsub.f32 %v9900_v25, %v25001_v50 }
  0xdc   : > { %21230 = vmatmul.mubr.f32.vlgmr.msra.gmra.mrb[0].mxu0 %v10042_v14  ;;  %30136 = vst [vmem:[#allocation146_spill] sm:$0xff] %v24992_v48  ;;  %30140 = vst [vmem:[#allocation148_spill] sm:$0xff] %v25009_v39 }
  0xdd   : > { %21232 = vmatprep.mubr.f32.mxu0 %v10052_v59  ;;  %21278 = vmatpush3.msra.mxu0 %v24813_v1  ;;  %v10082_v59 = vand.u32 4294901760, %v10081_v26  ;;  %v25011_v1 = vand.u32 4294901760, %v9903_v44  ;;  %30142 = vst [vmem:[#allocation150_spill] sm:$0xff] %v25013_v41  ;;  %v10101_v14 = vsub.f32 %v24961_v49, %v30143_v55  ;;  %v9909_v26 = vsel %vm238_vm1, %v17824_v29, 0  ;;  %30145 = vst [vmem:[#allocation151_spill] sm:$0xff] %v25026_v53 }
  0xde   : > { %19875 = vmatmul.mubr.f32.gmra.mrb[30].mxu1 %v24673_v0  ;;  %21327 = vmatprep.subr.mxu0 %v24794_v7  ;;  %v10092_v23 = vand.u32 4294901760, %v10091_v17  ;;  %v9912_v55 = vsel %vm238_vm1, %v17825_v11, 0  ;;  %v17826_v0 = vld [vmem:[%s24195_s21 + $0xe2] sm:$0xff]  ;;  %v25041_v25 = vand.u32 4294901760, %v9909_v26  ;;  %v30151_v11 = vand.u32 4294901760, %v24989_v2 }
  0xdf   : > { %19879 = vmatprep.mubr.f32.mxu1 %v30139_v43  ;;  %30141 = vst [vmem:[#allocation149_spill] sm:$0xff] %v25011_v1  ;;  %v30144_v43 = vand.u32 4294901760, %v24975_v58  ;;  %v25036_v17 = vsub.f32 %v9903_v44, %v25011_v1  ;;  %v25052_v29 = vand.u32 4294901760, %v9912_v55 }
  0xe0   : > { %21233 = vmatmul.mubr.f32.gmra.mrb[2].mxu0 %v10062_v45  ;;  %v30146_v45 = vand.u32 4294901760, %v24257_v42  ;;  %30150 = vst [vmem:[#allocation153_spill] sm:$0xff] %v25041_v25  ;;  %v17827_v42 = vld [vmem:[%s24195_s21 + $0xf2] sm:$0xff] }
  0xe1   : > { %21235 = vmatprep.mubr.f32.mxu0 %v10072_v38  ;;  %v10111_v15 = vsub.f32 %v24975_v58, %v30144_v43  ;;  %30148 = vst [vmem:[#allocation12_spill] sm:$0xff] %v25036_v17  ;;  %v25039_v38 = vsub.f32 %v9906_v13, %v25013_v41  ;;  %v10102_v43 = vand.u32 4294901760, %v10101_v14  ;;  %30153 = vst [vmem:[#allocation154_spill] sm:$0xff] %v25052_v29  ;;  %v30154_v14 = vld [vmem:[#allocation13_spill] sm:$0xff]  ;;  %v9918_v58 = vsel %vm238_vm1, %v17827_v42, 0 }
  0xe2   : > { %19880 = vmatmul.mubr.f32.vlgmr.msra.gmra.mrb[0].mxu1 %v30146_v45 }
  0xe3   : > { %19928 = vmatpush3.msra.mxu1 %v24205_v12  ;;  %19882 = vmatprep.mubr.f32.mxu1 %v30147_v31  ;;  %30149 = vst [vmem:[#allocation152_spill] sm:$0xff] %v25039_v38  ;;  %v10121_v12 = vsub.f32 %v24989_v2, %v30151_v11  ;;  %v30152_v31 = vand.u32 4294901760, %v24992_v48  ;;  %v10112_v44 = vand.u32 4294901760, %v10111_v15  ;;  %v17828_v11 = vld [vmem:[%s24195_s21 + $0xfa] sm:$0xff]  ;;  %v25076_v15 = vand.u32 4294901760, %v9918_v58 }
  0xe4   : > { %21236 = vmatmul.mubr.f32.gmra.mrb[4].mxu0 %v10082_v59  ;;  %19977 = vmatprep.subr.mxu1 %v24180_v5  ;;  %v9915_v59 = vsel %vm238_vm1, %v17826_v0, 0  ;;  %v30155_v2 = vld [vmem:[#allocation18_spill] sm:$0xff]  ;;  %v17829_v0 = vld [vmem:[%s24195_s21 + $0x10a] sm:$0xff]  ;;  %v9921_v13 = vsel %vm238_vm1, %v17828_v11, 0 }
  0xe5   : > { %v10131_v45 = vsub.f32 %v24992_v48, %v30152_v31  ;;  %21238 = vmatprep.mubr.f32.mxu0 %v10092_v23  ;;  %v30156_v31 = vand.u32 4294901760, %v25009_v39  ;;  %v25065_v48 = vsub.f32 %v9909_v26, %v25041_v25  ;;  %v25068_v49 = vand.u32 4294901760, %v9915_v59  ;;  %30161 = vst [vmem:[#allocation156_spill] sm:$0xff] %v25076_v15  ;;  %v17830_v26 = vld [vmem:[%s24195_s21 + $0x112] sm:$0xff]  ;;  %v17832_v11 = vld [vmem:[%s24195_s21 + $0x12a] sm:$0xff] }
  0xe6   : > { %19883 = vmatmul.mubr.f32.gmra.mrb[2].mxu1 %v30154_v14  ;;  %v10122_v14 = vand.u32 4294901760, %v10121_v12  ;;  %v30163_v12 = vld [vmem:[#allocation20_spill] sm:$0xff] }
  0xe7   : > { %19885 = vmatprep.mubr.f32.mxu1 %v30155_v2  ;;  %v10141_v23 = vsub.f32 %v25009_v39, %v30156_v31  ;;  %30157 = vst [vmem:[#allocation13_spill] sm:$0xff] %v25065_v48  ;;  %v10132_v42 = vand.u32 4294901760, %v10131_v45  ;;  %30158 = vst [vmem:[#allocation18_spill] sm:$0xff] %v25068_v49  ;;  %v30159_v2 = vand.u32 4294901760, %v25026_v53  ;;  %v25074_v31 = vsub.f32 %v9912_v55, %v25052_v29  ;;  %v17831_v39 = vld [vmem:[%s24195_s21 + $0x122] sm:$0xff] }
  0xe8   : > { %21239 = vmatmul.mubr.f32.gmra.mrb[6].mxu0 %v10102_v43  ;;  %v9924_v43 = vsel %vm238_vm1, %v17829_v0, 0  ;;  %v25094_v0 = vand.u32 4294901760, %v9921_v13 }
  0xe9   : > { %21241 = vmatprep.mubr.f32.mxu0 %v10112_v44  ;;  %v10151_v6 = vsub.f32 %v25026_v53, %v30159_v2  ;;  %30160 = vst [vmem:[#allocation155_spill] sm:$0xff] %v25074_v31  ;;  %v10142_v45 = vand.u32 4294901760, %v10141_v23  ;;  %v30164_v44 = vand.u32 4294901760, %v25036_v17  ;;  %v30165_v2 = vand.u32 4294901760, %v25039_v38 }
  0xea   : > { %19886 = vmatmul.mubr.f32.gmra.mrb[4].mxu1 %v30162_v51  ;;  %v25092_v51 = vsub.f32 %v9915_v59, %v25068_v49  ;;  %30167 = vst [vmem:[#allocation20_spill] sm:$0xff] %v25094_v0  ;;  %v9930_v23 = vsel %vm238_vm1, %v17831_v39, 0  ;;  %v17833_v59 = vld [vmem:[%s24195_s21 + $0x13a] sm:$0xff] }
  0xeb   : > { %19888 = vmatprep.mubr.f32.mxu1 %v30163_v12  ;;  %v10161_v55 = vsub.f32 %v25036_v17, %v30164_v44  ;;  %v10171_v53 = vsub.f32 %v25039_v38, %v30165_v2  ;;  %v9927_v12 = vsel %vm238_vm1, %v17830_v26, 0  ;;  %v10152_v16 = vand.u32 4294901760, %v10151_v6  ;;  %v30171_v38 = vld [vmem:[#allocation31_spill] sm:$0xff] }
  0xec   : > { %21242 = vmatmul.mubr.f32.gmra.mrb[8].mxu0 %v10122_v14  ;;  %30166 = vst [vmem:[#allocation19_spill] sm:$0xff] %v25092_v51  ;;  %v29166_v44 = vand.u32 4294901760, %v25074_v31  ;;  %v25100_v17 = vsub.f32 %v9918_v58, %v25076_v15  ;;  %v25102_v2 = vand.u32 4294901760, %v9924_v43  ;;  %v30170_v14 = vld [vmem:[#allocation25_spill] sm:$0xff]  ;;  %v25108_v61 = vand.u32 4294901760, %v9927_v12 }
  0xed   : > { %21244 = vmatprep.mubr.f32.mxu0 %v10132_v42  ;;  %v10162_v49 = vand.u32 4294901760, %v10161_v55  ;;  %v10172_v26 = vand.u32 4294901760, %v10171_v53  ;;  %v25110_v39 = vand.u32 4294901760, %v9930_v23  ;;  %v30174_v6 = vand.u32 4294901760, %v25065_v48  ;;  %v17834_v42 = vld [vmem:[%s24195_s21 + $0x142] sm:$0xff] }
  0xee   : > { %30168 = vst [vmem:[#allocation157_spill] sm:$0xff] %v25100_v17  ;;  %30169 = vst [vmem:[#allocation158_spill] sm:$0xff] %v25102_v2  ;;  %19889 = vmatmul.mubr.f32.gmra.mrb[6].mxu1 %v30170_v14  ;;  %v25117_v14 = vsub.f32 %v9921_v13, %v25094_v0  ;;  %v10191_v53 = vsub.f32 %v25074_v31, %v29166_v44  ;;  %v9936_v15 = vsel %vm238_vm1, %v17833_v59, 0  ;;  %v17835_v44 = vld [vmem:[%s24195_s21 + $0x152] sm:$0xff]  ;;  %v30182_v55 = vand.u32 4294901760, %v25092_v51 }
  0xef   : > { %19891 = vmatprep.mubr.f32.mxu1 %v30171_v38  ;;  %30172 = vst [vmem:[#allocation25_spill] sm:$0xff] %v25108_v61  ;;  %30173 = vst [vmem:[#allocation31_spill] sm:$0xff] %v25110_v39  ;;  %v10181_v58 = vsub.f32 %v25065_v48, %v30174_v6  ;;  %v9933_v38 = vsel %vm238_vm1, %v17832_v11, 0  ;;  %v30177_v6 = vld [vmem:[#allocation34_spill] sm:$0xff]  ;;  %v30178_v48 = vld [vmem:[#allocation40_spill] sm:$0xff]  ;;  %v25132_v13 = vsub.f32 %v9927_v12, %v25108_v61  ;;  %v30184_v31 = vand.u32 4294901760, %v25100_v17 }
  0xf0   : > { %21245 = vmatmul.mubr.f32.gmra.mrb[10].mxu0 %v10142_v45  ;;  %30175 = vst [vmem:[#allocation159_spill] sm:$0xff] %v25117_v14  ;;  %v25125_v45 = vsub.f32 %v9924_v43, %v25102_v2  ;;  %v25137_v11 = vand.u32 4294901760, %v9933_v38  ;;  %v10201_v59 = vsub.f32 %v25092_v51, %v30182_v55  ;;  %v10192_v12 = vand.u32 4294901760, %v10191_v53  ;;  %v17836_v2 = vld [vmem:[%s24195_s21 + $0x15a] sm:$0xff] }
  0xf1   : > { %21247 = vmatprep.mubr.f32.mxu0 %v10152_v16  ;;  %30179 = vst [vmem:[#allocation34_spill] sm:$0xff] %v25132_v13  ;;  %v25135_v16 = vsub.f32 %v9930_v23, %v25110_v39  ;;  %v10182_v43 = vand.u32 4294901760, %v10181_v58  ;;  %v10211_v23 = vsub.f32 %v25100_v17, %v30184_v31  ;;  %v30185_v58 = vld [vmem:[#allocation43_spill] sm:$0xff]  ;;  %v9942_v61 = vsel %vm238_vm1, %v17835_v44, 0  ;;  %v30186_v55 = vld [vmem:[#allocation46_spill] sm:$0xff] }
  0xf2   : > { %30176 = vst [vmem:[#allocation160_spill] sm:$0xff] %v25125_v45  ;;  %19892 = vmatmul.mubr.f32.gmra.mrb[8].mxu1 %v30177_v6  ;;  %30181 = vst [vmem:[#allocation161_spill] sm:$0xff] %v25137_v11  ;;  %v25158_v53 = vsub.f32 %v9933_v38, %v25137_v11  ;;  %v17837_v31 = vld [vmem:[%s24195_s21 + $0x16a] sm:$0xff]  ;;  %v10202_v39 = vand.u32 4294901760, %v10201_v59  ;;  %v25172_v17 = vand.u32 4294901760, %v9942_v61 }
  0xf3   : > { %19894 = vmatprep.mubr.f32.mxu1 %v30178_v48  ;;  %30180 = vst [vmem:[#allocation40_spill] sm:$0xff] %v25135_v16  ;;  %v25144_v48 = vand.u32 4294901760, %v9936_v15  ;;  %v10212_v6 = vand.u32 4294901760, %v10211_v23  ;;  %v30193_v59 = vld [vmem:[#allocation51_spill] sm:$0xff]  ;;  %v9948_v51 = vsel %vm238_vm1, %v17837_v31, 0  ;;  %v30196_v23 = vand.u32 4294901760, %v25135_v16 }
  0xf4   : > { %21248 = vmatmul.mubr.f32.gmra.mrb[12].mxu0 %v10162_v49  ;;  %v9939_v49 = vsel %vm238_vm1, %v17834_v42, 0  ;;  %30187 = vst [vmem:[#allocation43_spill] sm:$0xff] %v25158_v53  ;;  %v30188_v42 = vand.u32 4294901760, %v25117_v14  ;;  %30192 = vst [vmem:[#allocation164_spill] sm:$0xff] %v25172_v17 }
  0xf5   : > { %30183 = vst [vmem:[#allocation162_spill] sm:$0xff] %v25144_v48  ;;  %21250 = vmatprep.mubr.f32.mxu0 %v10172_v26  ;;  %v25165_v44 = vsub.f32 %v9936_v15, %v25144_v48  ;;  %v30191_v26 = vand.u32 4294901760, %v25125_v45  ;;  %v30195_v15 = vand.u32 4294901760, %v25132_v13  ;;  %v17839_v48 = vld [vmem:[%s24195_s21 + $0x182] sm:$0xff] }
  0xf6   : > { %19895 = vmatmul.mubr.f32.gmra.mrb[10].mxu1 %v30185_v58  ;;  %v10221_v58 = vsub.f32 %v25117_v14, %v30188_v42  ;;  %v17838_v42 = vld [vmem:[%s24195_s21 + $0x172] sm:$0xff]  ;;  %v30194_v14 = vld [vmem:[#allocation54_spill] sm:$0xff] }
  0xf7   : > { %19897 = vmatprep.mubr.f32.mxu1 %v30186_v55  ;;  %30189 = vst [vmem:[#allocation46_spill] sm:$0xff] %v25165_v44  ;;  %v25167_v55 = vand.u32 4294901760, %v9939_v49  ;;  %v10231_v38 = vsub.f32 %v25125_v45, %v30191_v26  ;;  %v10251_v26 = vsub.f32 %v25135_v16, %v30196_v23  ;;  %v9951_v23 = vsel %vm238_vm1, %v17838_v42, 0  ;;  %v30200_v45 = vld [vmem:[#allocation59_spill] sm:$0xff] }
  0xf8   : > { %21251 = vmatmul.mubr.f32.gmra.mrb[14].mxu0 %v10182_v43  ;;  %v9945_v43 = vsel %vm238_vm1, %v17836_v2, 0  ;;  %v10222_v2 = vand.u32 4294901760, %v10221_v58  ;;  %v17840_v58 = vld [vmem:[%s24195_s21 + $0x18a] sm:$0xff] }
  0xf9   : > { %30190 = vst [vmem:[#allocation163_spill] sm:$0xff] %v25167_v55  ;;  %21253 = vmatprep.mubr.f32.mxu0 %v10192_v12  ;;  %v10241_v12 = vsub.f32 %v25132_v13, %v30195_v15  ;;  %v25189_v31 = vsub.f32 %v9939_v49, %v25167_v55  ;;  %v10232_v11 = vand.u32 4294901760, %v10231_v38  ;;  %v25194_v15 = vsub.f32 %v9942_v61, %v25172_v17 }
  0xfa   : > { %19898 = vmatmul.mubr.f32.gmra.mrb[12].mxu1 %v30193_v59  ;;  %v25196_v13 = vand.u32 4294901760, %v9948_v51  ;;  %v30201_v59 = vld [vmem:[#allocation62_spill] sm:$0xff]  ;;  %v10252_v16 = vand.u32 4294901760, %v10251_v26  ;;  %v30202_v55 = vand.u32 4294901760, %v25158_v53  ;;  %v30203_v61 = vand.u32 4294901760, %v25165_v44 }
  0xfb   : > { %19900 = vmatprep.mubr.f32.mxu1 %v30194_v14  ;;  %30197 = vst [vmem:[#allocation51_spill] sm:$0xff] %v25189_v31  ;;  %v25191_v14 = vand.u32 4294901760, %v9945_v43  ;;  %v10242_v49 = vand.u32 4294901760, %v10241_v12 }
  0xfc   : > { %21254 = vmatmul.mubr.f32.gmra.mrb[16].mxu0 %v10202_v39  ;;  %30199 = vst [vmem:[#allocation165_spill] sm:$0xff] %v25196_v13  ;;  %v9954_v39 = vsel %vm238_vm1, %v17839_v48, 0  ;;  %v10271_v38 = vsub.f32 %v25165_v44, %v30203_v61  ;;  %v25213_v48 = vand.u32 4294901760, %v9951_v23  ;;  %v25217_v26 = vsub.f32 %v9948_v51, %v25196_v13  ;;  %v30208_v61 = vld [vmem:[#allocation70_spill] sm:$0xff] }
  0xfd   : > { %30198 = vst [vmem:[#allocation54_spill] sm:$0xff] %v25191_v14  ;;  %21256 = vmatprep.mubr.f32.mxu0 %v10212_v6  ;;  %v10261_v6 = vsub.f32 %v25158_v53, %v30202_v55  ;;  %v9957_v55 = vsel %vm238_vm1, %v17840_v58, 0  ;;  %v30211_v58 = vand.u32 4294901760, %v25194_v15 }
  0xfe   : > { %19901 = vmatmul.mubr.f32.gmra.mrb[14].mxu1 %v30200_v45  ;;  %v25211_v45 = vsub.f32 %v9945_v43, %v25191_v14  ;;  %30204 = vst [vmem:[#allocation59_spill] sm:$0xff] %v25213_v48  ;;  %30205 = vst [vmem:[#allocation62_spill] sm:$0xff] %v25217_v26  ;;  %v30209_v43 = vand.u32 4294901760, %v25189_v31  ;;  %v25229_v12 = vsub.f32 %v9951_v23, %v25213_v48  ;;  %v25231_v51 = vand.u32 4294901760, %v9957_v55 }
  0xff   : > { %19903 = vmatprep.mubr.f32.mxu1 %v30201_v59  ;;  %v25219_v59 = vand.u32 4294901760, %v9954_v39  ;;  %v10262_v42 = vand.u32 4294901760, %v10261_v6  ;;  %v10272_v53 = vand.u32 4294901760, %v10271_v38  ;;  %v29200_v6 = vand.u32 4294901760, %v25217_v26 }
 0x100   : > { %21257 = vmatmul.mubr.f32.gmra.mrb[18].mxu0 %v10222_v2  ;;  %v30207_v2 = vld [vmem:[#allocation67_spill] sm:$0xff]  ;;  %v10281_v44 = vsub.f32 %v25189_v31, %v30209_v43  ;;  %v30213_v43 = vld [vmem:[#allocation78_spill] sm:$0xff]  ;;  %v29205_v38 = vand.u32 4294901760, %v25229_v12  ;;  %v25247_v31 = vsub.f32 %v9957_v55, %v25231_v51 }
 0x101   : > { %21259 = vmatprep.mubr.f32.mxu0 %v10232_v11  ;;  %30206 = vst [vmem:[#allocation166_spill] sm:$0xff] %v25219_v59  ;;  %v29199_v11 = vand.u32 4294901760, %v25211_v45  ;;  %30210 = vst [vmem:[#allocation67_spill] sm:$0xff] %v25231_v51 }
 0x102   : > { %19904 = vmatmul.mubr.f32.gmra.mrb[16].mxu1 %v30207_v2  ;;  %v10291_v2 = vsub.f32 %v25194_v15, %v30211_v58  ;;  %v10282_v23 = vand.u32 4294901760, %v10281_v44  ;;  %v30215_v44 = vld [vmem:[#allocation86_spill] sm:$0xff]  ;;  %v29203_v55 = vand.u32 4294901760, %v25247_v31 }
 0x103   : > { %19906 = vmatprep.mubr.f32.mxu1 %v30208_v61  ;;  %v30212_v61 = vld [vmem:[#allocation75_spill] sm:$0xff] }
 0x104   : > { %21260 = vmatmul.mubr.f32.gmra.mrb[20].mxu0 %v10242_v49  ;;  %v25238_v49 = vsub.f32 %v9954_v39, %v25219_v59  ;;  %v10292_v58 = vand.u32 4294901760, %v10291_v2  ;;  %v10311_v39 = vsub.f32 %v25217_v26, %v29200_v6  ;;  %v30216_v6 = vld [vmem:[#allocation91_spill] sm:$0xff]  ;;  %v30217_v26 = vld [vmem:[#allocation94_spill] sm:$0xff] }
 0x105   : > { %21262 = vmatprep.mubr.f32.mxu0 %v10252_v16  ;;  %v10301_v16 = vsub.f32 %v25211_v45, %v29199_v11  ;;  %v10321_v11 = vsub.f32 %v25229_v12, %v29205_v38  ;;  %v30240_v38 = vld [vmem:[#allocation77_spill] sm:$0xff] }
 0x106   : > { %19907 = vmatmul.mubr.f32.gmra.mrb[18].mxu1 %v30212_v61  ;;  %v29204_v61 = vand.u32 4294901760, %v25238_v49 }
 0x107   : > { %19909 = vmatprep.mubr.f32.mxu1 %v30213_v43  ;;  %v30214_v43 = vld [vmem:[#allocation83_spill] sm:$0xff] }
 0x108   : > { %21263 = vmatmul.mubr.f32.gmra.mrb[22].mxu0 %v10262_v42  ;;  %v10302_v42 = vand.u32 4294901760, %v10301_v16  ;;  %v10331_v2 = vsub.f32 %v25238_v49, %v29204_v61  ;;  %v30239_v61 = vld [vmem:[#allocation163_spill] sm:$0xff] }
 0x109   : > { %21265 = vmatprep.mubr.f32.mxu0 %v10272_v53  ;;  %v10312_v53 = vand.u32 4294901760, %v10311_v39 }
 0x10a   : > { %19910 = vmatmul.mubr.f32.gmra.mrb[20].mxu1 %v30214_v43  ;;  %v10322_v43 = vand.u32 4294901760, %v10321_v11  ;;  %v10332_v16 = vand.u32 4294901760, %v10331_v2  ;;  %v30221_v11 = vld [vmem:[#allocation116_spill] sm:$0xff]  ;;  %v30228_v2 = vld [vmem:[#allocation158_spill] sm:$0xff] }
 0x10b   : > { %19912 = vmatprep.mubr.f32.mxu1 %v30215_v44  ;;  %v30218_v44 = vld [vmem:[#allocation99_spill] sm:$0xff] }
 0x10c   : > { %21266 = vmatmul.mubr.f32.gmra.mrb[24].mxu0 %v10282_v23  ;;  %v10341_v23 = vsub.f32 %v25247_v31, %v29203_v55  ;;  %v30238_v55 = vld [vmem:[#allocation72_spill] sm:$0xff] }
 0x10d   : > { %21268 = vmatprep.mubr.f32.mxu0 %v10292_v58  ;;  %v30219_v58 = vld [vmem:[#allocation102_spill] sm:$0xff] }
 0x10e   : > { %19913 = vmatmul.mubr.f32.gmra.mrb[22].mxu1 %v30216_v6  ;;  %v10342_v39 = vand.u32 4294901760, %v10341_v23  ;;  %v30220_v6 = vld [vmem:[#allocation109_spill] sm:$0xff] }
 0x10f   : > { %19915 = vmatprep.mubr.f32.mxu1 %v30217_v26  ;;  %v203_v26 = vld [vmem:[%s28967_s1] sm:$0xf]  ;;  %v30230_v23 = vld [vmem:[#allocation57_spill] sm:$0xff] }
 0x110   : > { %21269 = vmatmul.mubr.f32.gmra.mrb[26].mxu0 %v10302_v42  ;;  %v30226_v42 = vld [vmem:[#allocation45_spill] sm:$0xff] }
 0x111   : > { %21271 = vmatprep.mubr.f32.mxu0 %v10312_v53  ;;  %v30227_v53 = vld [vmem:[#allocation49_spill] sm:$0xff] }
 0x112   : > { %19916 = vmatmul.mubr.f32.gmra.mrb[24].mxu1 %v30218_v44  ;;  %v30232_v44 = vld [vmem:[#allocation31_spill] sm:$0xff] }
 0x113   : > { %19918 = vmatprep.mubr.f32.mxu1 %v30219_v58  ;;  %v30233_v58 = vld [vmem:[#allocation61_spill] sm:$0xff] }
 0x114   : > { %21272 = vmatmul.mubr.f32.gmra.mrb[28].mxu0 %v10322_v43  ;;  %v30229_v43 = vld [vmem:[#allocation53_spill] sm:$0xff] }
 0x115   : > { %21274 = vmatprep.mubr.f32.mxu0 %v10332_v16  ;;  %v30231_v16 = vld [vmem:[#allocation25_spill] sm:$0xff] }
 0x116   : > { %19919 = vmatmul.mubr.f32.gmra.mrb[26].mxu1 %v24641_v63  ;;  %v2215_v63 = vsel %vm335_vm0, %v203_v26, 0  ;;  %v30236_v26 = vld [vmem:[#allocation162_spill] sm:$0xff] }
 0x117   : > { %19921 = vmatprep.mubr.f32.mxu1 %v30220_v6  ;;  %v30235_v6 = vld [vmem:[#allocation161_spill] sm:$0xff] }
 0x118   : > { %21275 = vmatmul.mubr.f32.gmra.mrb[30].mxu0 %v10342_v39  ;;  %v30234_v39 = vld [vmem:[#allocation64_spill] sm:$0xff] }
 0x119   : > { %21279 = vmatprep.mubr.f32.mxu0 %v24865_v30 }
 0x11a   : > { %19922 = vmatmul.mubr.f32.gmra.mrb[28].mxu1 %v24670_v24  ;;  %v25285_v24 = vand.u32 4294901760, %v2215_v63 }
 0x11b   : > { %19924 = vmatprep.mubr.f32.mxu1 %v30221_v11  ;;  %v30237_v11 = vld [vmem:[#allocation69_spill] sm:$0xff] }
 0x11c   : > { %21280 = vmatmul.mubr.f32.vlgmr.msra.gmra.mrb[0].mxu0 %v24874_v54  ;;  %30222 = vst [vmem:[#allocation70_spill] sm:$0xff] %v25285_v24 }
 0x11d   : > { %21282 = vmatprep.mubr.f32.mxu0 %v24880_v3  ;;  %21328 = vmatpush3.msra.mxu0 %v24794_v7  ;;  %v30225_v7 = vld [vmem:[#allocation156_spill] sm:$0xff] }
 0x11e   : > { %19925 = vmatmul.mubr.f32.gmra.mrb[30].mxu1 %v24696_v32  ;;  %21377 = vmatprep.subr.mxu0 %v24735_v8  ;;  %v30224_v32 = vld [vmem:[#allocation18_spill] sm:$0xff] }
 0x11f   : > { %19929 = vmatprep.mubr.f32.mxu1 %v24218_v21 }
 0x120   : > { %21283 = vmatmul.mubr.f32.gmra.mrb[2].mxu0 %v24891_v40 }
 0x121   : > { %21285 = vmatprep.mubr.f32.mxu0 %v24899_v52  ;;  %v178_v52 = vld [vmem:[%s24195_s21 + $0x50] sm:$0xff] }
 0x122   : > { %19930 = vmatmul.mubr.f32.vlgmr.msra.gmra.mrb[0].mxu1 %v24239_v34  ;;  %v2140_v40 = vsel %vm238_vm1, %v178_v52, 0 }
 0x123   : > { %19978 = vmatpush3.msra.mxu1 %v24180_v5  ;;  %19932 = vmatprep.mubr.f32.mxu1 %v24214_v19  ;;  %v30223_v5 = vld [vmem:[#allocation41_spill] sm:$0xff]  ;;  %v25484_v52 = vand.u32 4294901760, %v2140_v40 }
 0x124   : > { %21286 = vmatmul.mubr.f32.gmra.mrb[4].mxu0 %v24911_v18  ;;  %20027 = vmatprep.subr.mxu1 %v25285_v24 }
 0x125   : > { %21288 = vmatprep.mubr.f32.mxu0 %v24924_v56  ;;  %v30281_v56 = vld [vmem:[#allocation62_spill] sm:$0xff] }
 0x126   : > { %19933 = vmatmul.mubr.f32.gmra.mrb[2].mxu1 %v24216_v20 }
 0x127   : > { %19935 = vmatprep.mubr.f32.mxu1 %v24237_v33 }
 0x128   : > { %21289 = vmatmul.mubr.f32.gmra.mrb[6].mxu0 %v24935_v46 }
 0x129   : > { %21291 = vmatprep.mubr.f32.mxu0 %v24949_v60 }
 0x12a   : > { %19936 = vmatmul.mubr.f32.gmra.mrb[4].mxu1 %v24241_v35 }
 0x12b   : > { %19938 = vmatprep.mubr.f32.mxu1 %v24243_v36 }
 0x12c   : > { %21292 = vmatmul.mubr.f32.gmra.mrb[8].mxu0 %v24965_v9  ;;  %v30277_v9 = vld [vmem:[#allocation51_spill] sm:$0xff] }
 0x12d   : > { %21294 = vmatprep.mubr.f32.mxu0 %v24967_v4 }
 0x12e   : > { %19939 = vmatmul.mubr.f32.gmra.mrb[6].mxu1 %v24271_v47 }
 0x12f   : > { %19941 = vmatprep.mubr.f32.mxu1 %v24303_v62 }
 0x130   : > { %21295 = vmatmul.mubr.f32.gmra.mrb[10].mxu0 %v24986_v37  ;;  %v173_v37 = vld [vmem:[%s24195_s21 + $0x18] sm:$0xff] }
 0x131   : > { %21297 = vmatprep.mubr.f32.mxu0 %v25001_v50  ;;  %v30274_v50 = vld [vmem:[#allocation43_spill] sm:$0xff] }
 0x132   : > { %19942 = vmatmul.mubr.f32.gmra.mrb[8].mxu1 %v24314_v10 }
 0x133   : > { %19944 = vmatprep.mubr.f32.mxu1 %v24330_v22 }
 0x134   : > { %21298 = vmatmul.mubr.f32.gmra.mrb[12].mxu0 %v25011_v1  ;;  %v30262_v1 = vld [vmem:[#allocation148_spill] sm:$0xff] }
 0x135   : > { %21300 = vmatprep.mubr.f32.mxu0 %v25013_v41  ;;  %v30257_v41 = vld [vmem:[#allocation138_spill] sm:$0xff] }
 0x136   : > { %19945 = vmatmul.mubr.f32.gmra.mrb[10].mxu1 %v24340_v27 }
 0x137   : > { %19947 = vmatprep.mubr.f32.mxu1 %v24342_v28 }
 0x138   : > { %21301 = vmatmul.mubr.f32.gmra.mrb[14].mxu0 %v25041_v25  ;;  %v30255_v25 = vld [vmem:[#allocation134_spill] sm:$0xff] }
 0x139   : > { %21303 = vmatprep.mubr.f32.mxu0 %v25052_v29 }
 0x13a   : > { %19948 = vmatmul.mubr.f32.gmra.mrb[12].mxu1 %v24364_v57 }
 0x13b   : > { %19950 = vmatprep.mubr.f32.mxu1 %v30223_v5 }
 0x13c   : > { %21304 = vmatmul.mubr.f32.gmra.mrb[16].mxu0 %v30224_v32  ;;  %v30254_v32 = vld [vmem:[#allocation132_spill] sm:$0xff] }
 0x13d   : > { %21306 = vmatprep.mubr.f32.mxu0 %v30225_v7  ;;  %v30252_v7 = vld [vmem:[#allocation108_spill] sm:$0xff] }
 0x13e   : > { %19951 = vmatmul.mubr.f32.gmra.mrb[14].mxu1 %v30226_v42 }
 0x13f   : > { %19953 = vmatprep.mubr.f32.mxu1 %v30227_v53 }
 0x140   : > { %21307 = vmatmul.mubr.f32.gmra.mrb[18].mxu0 %v25094_v0  ;;  %v30249_v0 = vld [vmem:[#allocation104_spill] sm:$0xff] }
 0x141   : > { %21309 = vmatprep.mubr.f32.mxu0 %v30228_v2  ;;  %v30248_v2 = vld [vmem:[#allocation101_spill] sm:$0xff] }
 0x142   : > { %19954 = vmatmul.mubr.f32.gmra.mrb[16].mxu1 %v30229_v43 }
 0x143   : > { %19956 = vmatprep.mubr.f32.mxu1 %v30230_v23 }
 0x144   : > { %21310 = vmatmul.mubr.f32.gmra.mrb[20].mxu0 %v30231_v16  ;;  %v30241_v16 = vld [vmem:[#allocation80_spill] sm:$0xff] }
 0x145   : > { %21312 = vmatprep.mubr.f32.mxu0 %v30232_v44  ;;  %v30242_v44 = vld [vmem:[#allocation85_spill] sm:$0xff] }
 0x146   : > { %19957 = vmatmul.mubr.f32.gmra.mrb[18].mxu1 %v30233_v58 }
 0x147   : > { %19959 = vmatprep.mubr.f32.mxu1 %v30234_v39 }
 0x148   : > { %21313 = vmatmul.mubr.f32.gmra.mrb[22].mxu0 %v30235_v6  ;;  %v30243_v6 = vld [vmem:[#allocation88_spill] sm:$0xff] }
 0x149   : > { %21315 = vmatprep.mubr.f32.mxu0 %v30236_v26  ;;  %v25342_v26 = vsub.f32 %v2215_v63, %v25285_v24 }
 0x14a   : > { %19960 = vmatmul.mubr.f32.gmra.mrb[20].mxu1 %v30237_v11 }
 0x14b   : > { %19962 = vmatprep.mubr.f32.mxu1 %v30238_v55 }
 0x14c   : > { %21316 = vmatmul.mubr.f32.gmra.mrb[24].mxu0 %v30239_v61  ;;  %v30245_v61 = vld [vmem:[#allocation96_spill] sm:$0xff] }
 0x14d   : > { %21318 = vmatprep.mubr.f32.mxu0 %v25172_v17  ;;  %v30244_v17 = vld [vmem:[#allocation93_spill] sm:$0xff] }
 0x14e   : > { %19963 = vmatmul.mubr.f32.gmra.mrb[22].mxu1 %v30240_v38 }
 0x14f   : > { %19965 = vmatprep.mubr.f32.mxu1 %v30241_v16 }
 0x150   : > { %21319 = vmatmul.mubr.f32.gmra.mrb[26].mxu0 %v25191_v14  ;;  %v25349_v14 = vand.u32 4294901760, %v25342_v26 }
 0x151   : > { %21321 = vmatprep.mubr.f32.mxu0 %v25196_v13  ;;  %v30247_v13 = vld [vmem:[#allocation127_spill] sm:$0xff] }
 0x152   : > { %19966 = vmatmul.mubr.f32.gmra.mrb[24].mxu1 %v30242_v44  ;;  %30246 = vst [vmem:[#allocation75_spill] sm:$0xff] %v25349_v14  ;;  %v2607_v63 = vsub.f32 %v25342_v26, %v25349_v14  ;;  %v30256_v14 = vld [vmem:[#allocation136_spill] sm:$0xff] }
 0x153   : > { %19968 = vmatprep.mubr.f32.mxu1 %v30243_v6 }
 0x154   : > { %21322 = vmatmul.mubr.f32.gmra.mrb[28].mxu0 %v25213_v48  ;;  %v30250_v48 = vld [vmem:[#allocation128_spill] sm:$0xff]  ;;  %v25363_v29 = vand.u32 4294901760, %v2607_v63  ;;  %v30259_v63 = vld [vmem:[#allocation143_spill] sm:$0xff] }
 0x155   : > { %21324 = vmatprep.mubr.f32.mxu0 %v25219_v59  ;;  %v30251_v59 = vld [vmem:[#allocation130_spill] sm:$0xff] }
 0x156   : > { %19969 = vmatmul.mubr.f32.gmra.mrb[26].mxu1 %v30244_v17 }
 0x157   : > { %19971 = vmatprep.mubr.f32.mxu1 %v30245_v61 }
 0x158   : > { %21325 = vmatmul.mubr.f32.gmra.mrb[30].mxu0 %v25231_v51  ;;  %v30253_v51 = vld [vmem:[#allocation126_spill] sm:$0xff] }
 0x159   : > { %21329 = vmatprep.mubr.f32.mxu0 %v30247_v13  ;;  %30292 = vst [vmem:[#allocation126_spill] sm:$0xff] %v25484_v52 }
 0x15a   : > { %19972 = vmatmul.mubr.f32.gmra.mrb[28].mxu1 %v30248_v2 }
 0x15b   : > { %19974 = vmatprep.mubr.f32.mxu1 %v30249_v0 }
 0x15c   : > { %21330 = vmatmul.mubr.f32.vlgmr.msra.gmra.mrb[0].mxu0 %v30250_v48 }
 0x15d   : > { %21332 = vmatprep.mubr.f32.mxu0 %v30251_v59  ;;  %21378 = vmatpush3.msra.mxu0 %v24735_v8 }
 0x15e   : > { %19975 = vmatmul.mubr.f32.gmra.mrb[30].mxu1 %v30252_v7  ;;  %21427 = vmatprep.subr.mxu0 %v30253_v51 }
 0x15f   : > { %19979 = vmatprep.mubr.f32.mxu1 %v24218_v21  ;;  %v30258_v21 = vld [vmem:[#allocation140_spill] sm:$0xff] }
 0x160   : > { %21333 = vmatmul.mubr.f32.gmra.mrb[2].mxu0 %v30254_v32 }
 0x161   : > { %21335 = vmatprep.mubr.f32.mxu0 %v30255_v25 }
 0x162   : > { %19980 = vmatmul.mubr.f32.vlgmr.msra.gmra.mrb[0].mxu1 %v24239_v34  ;;  %v30260_v34 = vld [vmem:[#allocation145_spill] sm:$0xff] }
 0x163   : > { %20028 = vmatpush3.msra.mxu1 %v25285_v24  ;;  %19982 = vmatprep.mubr.f32.mxu1 %v24214_v19  ;;  %v30261_v19 = vld [vmem:[#allocation146_spill] sm:$0xff] }
 0x164   : > { %21336 = vmatmul.mubr.f32.gmra.mrb[4].mxu0 %v30256_v14  ;;  %20077 = vmatprep.subr.mxu1 %v25363_v29 }
 0x165   : > { %21338 = vmatprep.mubr.f32.mxu0 %v30257_v41 }
 0x166   : > { %19983 = vmatmul.mubr.f32.gmra.mrb[2].mxu1 %v24216_v20  ;;  %v30263_v20 = vld [vmem:[#allocation151_spill] sm:$0xff] }
 0x167   : > { %19985 = vmatprep.mubr.f32.mxu1 %v24237_v33  ;;  %v30264_v33 = vld [vmem:[#allocation12_spill] sm:$0xff] }
 0x168   : > { %21339 = vmatmul.mubr.f32.gmra.mrb[6].mxu0 %v30258_v21 }
 0x169   : > { %21341 = vmatprep.mubr.f32.mxu0 %v30259_v63 }
 0x16a   : > { %19986 = vmatmul.mubr.f32.gmra.mrb[4].mxu1 %v24241_v35  ;;  %v30265_v35 = vld [vmem:[#allocation152_spill] sm:$0xff] }
 0x16b   : > { %19988 = vmatprep.mubr.f32.mxu1 %v24243_v36  ;;  %v30273_v36 = vld [vmem:[#allocation40_spill] sm:$0xff] }
 0x16c   : > { %21342 = vmatmul.mubr.f32.gmra.mrb[8].mxu0 %v30260_v34 }
 0x16d   : > { %21344 = vmatprep.mubr.f32.mxu0 %v30261_v19 }
 0x16e   : > { %19989 = vmatmul.mubr.f32.gmra.mrb[6].mxu1 %v24271_v47  ;;  %v30266_v47 = vld [vmem:[#allocation13_spill] sm:$0xff] }
 0x16f   : > { %19991 = vmatprep.mubr.f32.mxu1 %v24303_v62  ;;  %v30267_v62 = vld [vmem:[#allocation155_spill] sm:$0xff] }
 0x170   : > { %21345 = vmatmul.mubr.f32.gmra.mrb[10].mxu0 %v30262_v1 }
 0x171   : > { %21347 = vmatprep.mubr.f32.mxu0 %v30263_v20 }
 0x172   : > { %19992 = vmatmul.mubr.f32.gmra.mrb[8].mxu1 %v24314_v10  ;;  %v30268_v10 = vld [vmem:[#allocation19_spill] sm:$0xff] }
 0x173   : > { %19994 = vmatprep.mubr.f32.mxu1 %v24330_v22  ;;  %v30269_v22 = vld [vmem:[#allocation157_spill] sm:$0xff] }
 0x174   : > { %21348 = vmatmul.mubr.f32.gmra.mrb[12].mxu0 %v30264_v33 }
 0x175   : > { %21350 = vmatprep.mubr.f32.mxu0 %v30265_v35 }
 0x176   : > { %19995 = vmatmul.mubr.f32.gmra.mrb[10].mxu1 %v24340_v27  ;;  %v30270_v27 = vld [vmem:[#allocation159_spill] sm:$0xff] }
 0x177   : > { %19997 = vmatprep.mubr.f32.mxu1 %v24342_v28  ;;  %v30271_v28 = vld [vmem:[#allocation160_spill] sm:$0xff] }
 0x178   : > { %21351 = vmatmul.mubr.f32.gmra.mrb[14].mxu0 %v30266_v47 }
 0x179   : > { %21353 = vmatprep.mubr.f32.mxu0 %v30267_v62 }
 0x17a   : > { %19998 = vmatmul.mubr.f32.gmra.mrb[12].mxu1 %v24364_v57  ;;  %v30272_v57 = vld [vmem:[#allocation34_spill] sm:$0xff] }
 0x17b   : > { %20000 = vmatprep.mubr.f32.mxu1 %v30223_v5  ;;  %v171_v5 = vld [vmem:[%s24195_s21] sm:$0xff] }
 0x17c   : > { %21354 = vmatmul.mubr.f32.gmra.mrb[16].mxu0 %v30268_v10 }
 0x17d   : > { %21356 = vmatprep.mubr.f32.mxu0 %v30269_v22 }
 0x17e   : > { %20001 = vmatmul.mubr.f32.gmra.mrb[14].mxu1 %v30226_v42  ;;  %v172_v42 = vld [vmem:[%s24195_s21 + $0x8] sm:$0xff] }
 0x17f   : > { %20003 = vmatprep.mubr.f32.mxu1 %v30227_v53  ;;  %v2119_v53 = vsel %vm238_vm1, %v171_v5, 0  ;;  %v2122_v4 = vsel %vm238_vm1, %v172_v42, 0  ;;  %v175_v5 = vld [vmem:[%s24195_s21 + $0x30] sm:$0xff] }
 0x180   : > { %21357 = vmatmul.mubr.f32.gmra.mrb[18].mxu0 %v30270_v27  ;;  %v25422_v60 = vand.u32 4294901760, %v2122_v4 }
 0x181   : > { %21359 = vmatprep.mubr.f32.mxu0 %v30271_v28 }
 0x182   : > { %20004 = vmatmul.mubr.f32.gmra.mrb[16].mxu1 %v30229_v43  ;;  %v30275_v43 = vld [vmem:[#allocation46_spill] sm:$0xff]  ;;  %30278 = vst [vmem:[#allocation83_spill] sm:$0xff] %v25422_v60  ;;  %v25437_v24 = vsub.f32 %v2122_v4, %v25422_v60 }
 0x183   : > { %20006 = vmatprep.mubr.f32.mxu1 %v30230_v23  ;;  %v25413_v23 = vand.u32 4294901760, %v2119_v53 }
 0x184   : > { %21360 = vmatmul.mubr.f32.gmra.mrb[20].mxu0 %v30272_v57  ;;  %30282 = vst [vmem:[#allocation94_spill] sm:$0xff] %v25437_v24 }
 0x185   : > { %21362 = vmatprep.mubr.f32.mxu0 %v30273_v36  ;;  %30276 = vst [vmem:[#allocation78_spill] sm:$0xff] %v25413_v23 }
 0x186   : > { %20007 = vmatmul.mubr.f32.gmra.mrb[18].mxu1 %v30233_v58  ;;  %v2125_v58 = vsel %vm238_vm1, %v173_v37, 0  ;;  %v2131_v37 = vsel %vm238_vm1, %v175_v5, 0 }
 0x187   : > { %20009 = vmatprep.mubr.f32.mxu1 %v30234_v39  ;;  %v174_v39 = vld [vmem:[%s24195_s21 + $0x20] sm:$0xff]  ;;  %v25428_v46 = vand.u32 4294901760, %v2125_v58  ;;  %v25447_v5 = vand.u32 4294901760, %v2131_v37 }
 0x188   : > { %21363 = vmatmul.mubr.f32.gmra.mrb[22].mxu0 %v30274_v50  ;;  %v2128_v42 = vsel %vm238_vm1, %v174_v39, 0 }
 0x189   : > { %21365 = vmatprep.mubr.f32.mxu0 %v30275_v43  ;;  %30280 = vst [vmem:[#allocation91_spill] sm:$0xff] %v25428_v46  ;;  %30285 = vst [vmem:[#allocation109_spill] sm:$0xff] %v25447_v5 }
 0x18a   : > { %20010 = vmatmul.mubr.f32.gmra.mrb[20].mxu1 %v30237_v11  ;;  %v25426_v11 = vsub.f32 %v2119_v53, %v25413_v23  ;;  %v25439_v53 = vand.u32 4294901760, %v2128_v42 }
 0x18b   : > { %20012 = vmatprep.mubr.f32.mxu1 %v30238_v55  ;;  %v176_v55 = vld [vmem:[%s24195_s21 + $0x38] sm:$0xff] }
 0x18c   : > { %21366 = vmatmul.mubr.f32.gmra.mrb[24].mxu0 %v30277_v9  ;;  %30279 = vst [vmem:[#allocation86_spill] sm:$0xff] %v25426_v11  ;;  %30283 = vst [vmem:[#allocation99_spill] sm:$0xff] %v25439_v53  ;;  %v2134_v18 = vsel %vm238_vm1, %v176_v55, 0  ;;  %v30288_v55 = vand.u32 4294901760, %v25426_v11 }
 0x18d   : > { %21368 = vmatprep.mubr.f32.mxu0 %v25194_v15 }
 0x18e   : > { %20013 = vmatmul.mubr.f32.gmra.mrb[22].mxu1 %v30240_v38  ;;  %v177_v38 = vld [vmem:[%s24195_s21 + $0x48] sm:$0xff] }
 0x18f   : > { %20015 = vmatprep.mubr.f32.mxu1 %v30241_v16  ;;  %v25445_v16 = vsub.f32 %v2125_v58, %v25428_v46  ;;  %v2137_v4 = vsel %vm238_vm1, %v177_v38, 0  ;;  %v25457_v58 = vsub.f32 %v2128_v42, %v25439_v53  ;;  %v179_v46 = vld [vmem:[%s24195_s21 + $0x60] sm:$0xff]  ;;  %v25468_v38 = vsub.f32 %v2131_v37, %v25447_v5  ;;  %v181_v53 = vld [vmem:[%s24195_s21 + $0x78] sm:$0xff] }
 0x190   : > { %21369 = vmatmul.mubr.f32.gmra.mrb[26].mxu0 %v25211_v45  ;;  %v25472_v42 = vand.u32 4294901760, %v2137_v4  ;;  %v2143_v39 = vsel %vm238_vm1, %v179_v46, 0 }
 0x191   : > { %21371 = vmatprep.mubr.f32.mxu0 %v30281_v56  ;;  %30284 = vst [vmem:[#allocation102_spill] sm:$0xff] %v25445_v16  ;;  %30286 = vst [vmem:[#allocation116_spill] sm:$0xff] %v25457_v58  ;;  %v30294_v5 = vand.u32 4294901760, %v25445_v16  ;;  %v25500_v60 = vand.u32 4294901760, %v2143_v39 }
 0x192   : > { %20016 = vmatmul.mubr.f32.gmra.mrb[24].mxu1 %v30242_v44  ;;  %v25459_v44 = vand.u32 4294901760, %v2134_v18  ;;  %30289 = vst [vmem:[#allocation128_spill] sm:$0xff] %v25468_v38  ;;  %30290 = vst [vmem:[#allocation130_spill] sm:$0xff] %v25472_v42 }
 0x193   : > { %20018 = vmatprep.mubr.f32.mxu1 %v30243_v6  ;;  %v2286_v6 = vsub.f32 %v25426_v11, %v30288_v55  ;;  %v30291_v55 = vand.u32 4294901760, %v30247_v13  ;;  %v30293_v11 = vand.u32 4294901760, %v25437_v24  ;;  %v2306_v13 = vsub.f32 %v25445_v16, %v30294_v5  ;;  %30297 = vst [vmem:[#allocation136_spill] sm:$0xff] %v25500_v60 }
 0x194   : > { %21372 = vmatmul.mubr.f32.gmra.mrb[28].mxu0 %v25229_v12  ;;  %30287 = vst [vmem:[#allocation127_spill] sm:$0xff] %v25459_v44  ;;  %v25482_v37 = vsub.f32 %v2134_v18, %v25459_v44  ;;  %v25498_v18 = vsub.f32 %v2137_v4, %v25472_v42  ;;  %v182_v44 = vld [vmem:[%s24195_s21 + $0x80] sm:$0xff]  ;;  %v30299_v5 = vand.u32 4294901760, %v30251_v59 }
 0x195   : > { %21374 = vmatprep.mubr.f32.mxu0 %v25238_v49  ;;  %v2296_v46 = vsub.f32 %v25437_v24, %v30293_v11  ;;  %v30298_v11 = vand.u32 4294901760, %v30250_v48  ;;  %v30307_v24 = vand.u32 4294901760, %v30254_v32 }
 0x196   : > { %20019 = vmatmul.mubr.f32.gmra.mrb[26].mxu1 %v30244_v17  ;;  %v180_v17 = vld [vmem:[%s24195_s21 + $0x68] sm:$0xff]  ;;  %30296 = vst [vmem:[#allocation134_spill] sm:$0xff] %v25498_v18  ;;  %v25514_v16 = vand.u32 4294901760, %v25482_v37 }
 0x197   : > { %20021 = vmatprep.mubr.f32.mxu1 %v30245_v61  ;;  %v2287_v61 = vand.u32 4294901760, %v2286_v6  ;;  %v2146_v6 = vsel %vm238_vm1, %v180_v17, 0  ;;  %v25517_v17 = vsub.f32 %v2140_v40, %v25484_v52  ;;  %v2297_v48 = vand.u32 4294901760, %v2296_v46  ;;  %v184_v46 = vld [vmem:[%s24195_s21 + $0x98] sm:$0xff] }
 0x198   : > { %21375 = vmatmul.mubr.f32.gmra.mrb[30].mxu0 %v25247_v31  ;;  %30301 = vst [vmem:[#allocation138_spill] sm:$0xff] %v25514_v16  ;;  %v25521_v59 = vand.u32 4294901760, %v2146_v6  ;;  %v25530_v40 = vand.u32 4294901760, %v25498_v18  ;;  %v30308_v52 = vand.u32 4294901760, %v30255_v25  ;;  %v2158_v25 = vsel %vm238_vm1, %v184_v46, 0 }
 0x199   : > { %21379 = vmatprep.mubr.f32.mxu0 %v30291_v55  ;;  %v25494_v55 = vand.u32 4294901760, %v25468_v38  ;;  %30302 = vst [vmem:[#allocation140_spill] sm:$0xff] %v25517_v17 }
 0x19a   : > { %20022 = vmatmul.mubr.f32.gmra.mrb[28].mxu1 %v30248_v2  ;;  %v2149_v2 = vsel %vm238_vm1, %v181_v53, 0  ;;  %v183_v53 = vld [vmem:[%s24195_s21 + $0x90] sm:$0xff]  ;;  %30303 = vst [vmem:[#allocation143_spill] sm:$0xff] %v25521_v59  ;;  %30305 = vst [vmem:[#allocation146_spill] sm:$0xff] %v25530_v40 }
 0x19b   : > { %30295 = vst [vmem:[#allocation132_spill] sm:$0xff] %v25494_v55  ;;  %20024 = vmatprep.mubr.f32.mxu1 %v30249_v0  ;;  %v30300_v0 = vand.u32 4294901760, %v25457_v58 }
 0x19c   : > { %21380 = vmatmul.mubr.f32.vlgmr.msra.gmra.mrb[0].mxu0 %v30298_v11  ;;  %v25523_v11 = vand.u32 4294901760, %v2149_v2 }
 0x19d   : > { %21382 = vmatprep.mubr.f32.mxu0 %v30299_v5  ;;  %21428 = vmatpush3.msra.mxu0 %v30253_v51  ;;  %v2316_v4 = vsub.f32 %v25457_v58, %v30300_v0  ;;  %v2152_v51 = vsel %vm238_vm1, %v182_v44, 0  ;;  %v2307_v0 = vand.u32 4294901760, %v2306_v13  ;;  %v2326_v5 = vsub.f32 %v25468_v38, %v25494_v55 }
 0x19e   : > { %20025 = vmatmul.mubr.f32.gmra.mrb[30].mxu1 %v30252_v7  ;;  %30304 = vst [vmem:[#allocation145_spill] sm:$0xff] %v25523_v11  ;;  %21477 = vmatprep.subr.mxu0 %v24735_v8  ;;  %v25533_v58 = vsub.f32 %v2143_v39, %v25500_v60  ;;  %v185_v7 = vld [vmem:[%s24195_s21 + $0xa8] sm:$0xff]  ;;  %v2155_v44 = vsel %vm238_vm1, %v183_v53, 0  ;;  %v2336_v13 = vsub.f32 %v25482_v37, %v25514_v16  ;;  %v25545_v55 = vand.u32 4294901760, %v25517_v17 }
 0x19f   : > { %20029 = vmatprep.mubr.f32.mxu1 %v2287_v61  ;;  %v2317_v61 = vand.u32 4294901760, %v2316_v4  ;;  %v25547_v39 = vand.u32 4294901760, %v2152_v51  ;;  %v25550_v38 = vsub.f32 %v2146_v6, %v25521_v59  ;;  %v2161_v32 = vsel %vm238_vm1, %v185_v7, 0 }
 0x1a0   : > { %30306 = vst [vmem:[#allocation148_spill] sm:$0xff] %v25533_v58  ;;  %21383 = vmatmul.mubr.f32.gmra.mrb[2].mxu0 %v30307_v24  ;;  %30309 = vst [vmem:[#allocation151_spill] sm:$0xff] %v25545_v55  ;;  %v25553_v24 = vsub.f32 %v2149_v2, %v25523_v11  ;;  %v2346_v4 = vsub.f32 %v25498_v18, %v25530_v40  ;;  %v25563_v53 = vand.u32 4294901760, %v25533_v58  ;;  %v25565_v6 = vand.u32 4294901760, %v2155_v44  ;;  %v186_v2 = vld [vmem:[%s24195_s21 + $0xb0] sm:$0xff]  ;;  %v187_v40 = vld [vmem:[%s24195_s21 + $0xc0] sm:$0xff] }
 0x1a1   : > { %21385 = vmatprep.mubr.f32.mxu0 %v30308_v52  ;;  %30310 = vst [vmem:[#allocation12_spill] sm:$0xff] %v25547_v39  ;;  %30311 = vst [vmem:[#allocation152_spill] sm:$0xff] %v25550_v38  ;;  %v25558_v52 = vand.u32 4294901760, %v2326_v5  ;;  %v30317_v7 = vand.u32 4294901760, %v30257_v41  ;;  %v25578_v5 = vand.u32 4294901760, %v2158_v25  ;;  %v25580_v46 = vand.u32 4294901760, %v2161_v32 }
 0x1a2   : > { %20030 = vmatmul.mubr.f32.vlgmr.msra.gmra.mrb[0].mxu1 %v2297_v48  ;;  %30312 = vst [vmem:[#allocation13_spill] sm:$0xff] %v25553_v24  ;;  %30314 = vst [vmem:[#allocation19_spill] sm:$0xff] %v25563_v53  ;;  %v30316_v48 = vand.u32 4294901760, %v30256_v14  ;;  %v2356_v14 = vsub.f32 %v25517_v17, %v25545_v55  ;;  %v25589_v41 = vand.u32 4294901760, %v25553_v24  ;;  %v30325_v55 = vand.u32 4294901760, %v30258_v21  ;;  %v188_v17 = vld [vmem:[%s24195_s21 + $0xc8] sm:$0xff] }
 0x1a3   : > { %20078 = vmatpush3.msra.mxu1 %v25363_v29  ;;  %20032 = vmatprep.mubr.f32.mxu1 %v2307_v0  ;;  %30313 = vst [vmem:[#allocation155_spill] sm:$0xff] %v25558_v52  ;;  %30315 = vst [vmem:[#allocation157_spill] sm:$0xff] %v25565_v6  ;;  %v25573_v29 = vand.u32 4294901760, %v2336_v13  ;;  %v25576_v0 = vsub.f32 %v2152_v51, %v25547_v39  ;;  %v2164_v13 = vsel %vm238_vm1, %v186_v2, 0  ;;  %v25593_v51 = vand.u32 4294901760, %v2346_v4  ;;  %v189_v21 = vld [vmem:[%s24195_s21 + $0xd8] sm:$0xff] }
 0x1a4   : > { %21386 = vmatmul.mubr.f32.gmra.mrb[4].mxu0 %v30316_v48  ;;  %20127 = vmatprep.subr.mxu1 %v25342_v26  ;;  %30320 = vst [vmem:[#allocation34_spill] sm:$0xff] %v25578_v5  ;;  %30321 = vst [vmem:[#allocation40_spill] sm:$0xff] %v25580_v46  ;;  %v25586_v48 = vand.u32 4294901760, %v25550_v38  ;;  %v2167_v16 = vsel %vm238_vm1, %v187_v40, 0  ;;  %v30326_v18 = vand.u32 4294901760, %v30259_v63  ;;  %v25610_v4 = vsub.f32 %v2158_v25, %v25578_v5 }
 0x1a5   : > { %21388 = vmatprep.mubr.f32.mxu0 %v30317_v7  ;;  %30318 = vst [vmem:[#allocation159_spill] sm:$0xff] %v25573_v29  ;;  %30319 = vst [vmem:[#allocation160_spill] sm:$0xff] %v25576_v0  ;;  %v2366_v7 = vsub.f32 %v25533_v58, %v25563_v53  ;;  %v25607_v2 = vand.u32 4294901760, %v25576_v0  ;;  %v25613_v53 = vsub.f32 %v2161_v32, %v25580_v46  ;;  %v25631_v32 = vand.u32 4294901760, %v2167_v16 }
 0x1a6   : > { %20033 = vmatmul.mubr.f32.gmra.mrb[2].mxu1 %v2317_v61  ;;  %30322 = vst [vmem:[#allocation43_spill] sm:$0xff] %v25586_v48  ;;  %30323 = vst [vmem:[#allocation46_spill] sm:$0xff] %v25589_v41  ;;  %v25598_v61 = vsub.f32 %v2155_v44, %v25565_v6  ;;  %v25615_v44 = vand.u32 4294901760, %v2164_v13  ;;  %v2376_v63 = vsub.f32 %v25550_v38, %v25586_v48  ;;  %v190_v48 = vld [vmem:[%s24195_s21 + $0xe0] sm:$0xff]  ;;  %v30336_v38 = vand.u32 4294901760, %v30261_v19 }
 0x1a7   : > { %20035 = vmatprep.mubr.f32.mxu1 %v25558_v52  ;;  %30324 = vst [vmem:[#allocation51_spill] sm:$0xff] %v25593_v51  ;;  %30327 = vst [vmem:[#allocation62_spill] sm:$0xff] %v25607_v2  ;;  %v25626_v40 = vand.u32 4294901760, %v2366_v7  ;;  %v2173_v52 = vsel %vm238_vm1, %v189_v21, 0  ;;  %v2396_v7 = vsub.f32 %v25576_v0, %v25607_v2  ;;  %v25663_v2 = vsub.f32 %v2167_v16, %v25631_v32 }
 0x1a8   : > { %21389 = vmatmul.mubr.f32.gmra.mrb[6].mxu0 %v30325_v55  ;;  %30328 = vst [vmem:[#allocation167_spill] sm:$0xff] %v25610_v4  ;;  %30329 = vst [vmem:[#allocation168_spill] sm:$0xff] %v25613_v53  ;;  %v25619_v55 = vand.u32 4294901760, %v2356_v14  ;;  %v25629_v25 = vand.u32 4294901760, %v25598_v61  ;;  %v30335_v14 = vand.u32 4294901760, %v30260_v34  ;;  %v25649_v34 = vsub.f32 %v2164_v13, %v25615_v44 }
 0x1a9   : > { %21391 = vmatprep.mubr.f32.mxu0 %v30326_v18  ;;  %30330 = vst [vmem:[#allocation169_spill] sm:$0xff] %v25615_v44  ;;  %v2386_v18 = vsub.f32 %v25553_v24, %v25589_v41  ;;  %30332 = vst [vmem:[#allocation171_spill] sm:$0xff] %v25626_v40  ;;  %v25643_v41 = vand.u32 4294901760, %v25610_v4  ;;  %v25653_v21 = vand.u32 4294901760, %v2376_v63  ;;  %v25665_v0 = vand.u32 4294901760, %v2173_v52  ;;  %v192_v24 = vld [vmem:[%s24195_s21 + $0xf8] sm:$0xff] }
 0x1aa   : > { %20036 = vmatmul.mubr.f32.gmra.mrb[4].mxu1 %v25573_v29  ;;  %30331 = vst [vmem:[#allocation170_spill] sm:$0xff] %v25619_v55  ;;  %30333 = vst [vmem:[#allocation172_spill] sm:$0xff] %v25629_v25  ;;  %v2170_v29 = vsel %vm238_vm1, %v188_v17, 0  ;;  %v191_v17 = vld [vmem:[%s24195_s21 + $0xf0] sm:$0xff]  ;;  %v2176_v13 = vsel %vm238_vm1, %v190_v48, 0  ;;  %v30345_v63 = vand.u32 4294901760, %v30262_v1 }
 0x1ab   : > { %20038 = vmatprep.mubr.f32.mxu1 %v25593_v51  ;;  %30334 = vst [vmem:[#allocation173_spill] sm:$0xff] %v25631_v32  ;;  %30337 = vst [vmem:[#allocation174_spill] sm:$0xff] %v25643_v41  ;;  %v25646_v51 = vand.u32 4294901760, %v25613_v53  ;;  %v25655_v19 = vand.u32 4294901760, %v2386_v18  ;;  %v2179_v18 = vsel %vm238_vm1, %v191_v17, 0  ;;  %v30346_v58 = vand.u32 4294901760, %v30263_v20 }
 0x1ac   : > { %21392 = vmatmul.mubr.f32.gmra.mrb[8].mxu0 %v30335_v14  ;;  %30339 = vst [vmem:[#allocation176_spill] sm:$0xff] %v25649_v34  ;;  %30340 = vst [vmem:[#allocation177_spill] sm:$0xff] %v25653_v21  ;;  %v2406_v14 = vsub.f32 %v25598_v61, %v25629_v25  ;;  %v2416_v16 = vsub.f32 %v25610_v4, %v25643_v41  ;;  %v25682_v25 = vand.u32 4294901760, %v25649_v34  ;;  %v25688_v20 = vand.u32 4294901760, %v2176_v13 }
 0x1ad   : > { %21394 = vmatprep.mubr.f32.mxu0 %v30336_v38  ;;  %30338 = vst [vmem:[#allocation175_spill] sm:$0xff] %v25646_v51  ;;  %30341 = vst [vmem:[#allocation178_spill] sm:$0xff] %v25655_v19  ;;  %v25657_v38 = vand.u32 4294901760, %v2170_v29  ;;  %v2426_v48 = vsub.f32 %v25613_v53, %v25646_v51  ;;  %v25699_v51 = vsub.f32 %v2173_v52, %v25665_v0  ;;  %v25701_v41 = vand.u32 4294901760, %v2179_v18  ;;  %v195_v53 = vld [vmem:[%s24195_s21 + $0x120] sm:$0xff] }
 0x1ae   : > { %20039 = vmatmul.mubr.f32.gmra.mrb[6].mxu1 %v25619_v55  ;;  %30343 = vst [vmem:[#allocation180_spill] sm:$0xff] %v25663_v2  ;;  %30344 = vst [vmem:[#allocation181_spill] sm:$0xff] %v25665_v0  ;;  %v193_v55 = vld [vmem:[%s24195_s21 + $0x108] sm:$0xff]  ;;  %v25693_v17 = vand.u32 4294901760, %v2406_v14 }
 0x1af   : > { %30342 = vst [vmem:[#allocation179_spill] sm:$0xff] %v25657_v38  ;;  %20041 = vmatprep.mubr.f32.mxu1 %v25626_v40  ;;  %v25675_v40 = vand.u32 4294901760, %v2396_v7  ;;  %30348 = vst [vmem:[#allocation183_spill] sm:$0xff] %v25682_v25  ;;  %v25686_v1 = vsub.f32 %v2170_v29, %v25657_v38  ;;  %v2185_v7 = vsel %vm238_vm1, %v193_v55, 0  ;;  %v194_v29 = vld [vmem:[%s24195_s21 + $0x110] sm:$0xff]  ;;  %v25709_v55 = vand.u32 4294901760, %v2416_v16 }
 0x1b0   : > { %21395 = vmatmul.mubr.f32.gmra.mrb[10].mxu0 %v30345_v63  ;;  %30350 = vst [vmem:[#allocation185_spill] sm:$0xff] %v25688_v20  ;;  %30351 = vst [vmem:[#allocation186_spill] sm:$0xff] %v25693_v17  ;;  %v25696_v63 = vand.u32 4294901760, %v25663_v2  ;;  %v25711_v14 = vand.u32 4294901760, %v2426_v48  ;;  %v25715_v4 = vand.u32 4294901760, %v2185_v7  ;;  %v25731_v48 = vand.u32 4294901760, %v25699_v51 }
 0x1b1   : > { %21397 = vmatprep.mubr.f32.mxu0 %v30346_v58  ;;  %30347 = vst [vmem:[#allocation182_spill] sm:$0xff] %v25675_v40  ;;  %30349 = vst [vmem:[#allocation184_spill] sm:$0xff] %v25686_v1  ;;  %v2182_v58 = vsel %vm238_vm1, %v192_v24, 0  ;;  %v30356_v24 = vand.u32 4294901760, %v30265_v35  ;;  %v25721_v52 = vand.u32 4294901760, %v25686_v1  ;;  %v25724_v35 = vsub.f32 %v2176_v13, %v25688_v20  ;;  %v196_v13 = vld [vmem:[%s24195_s21 + $0x128] sm:$0xff] }
 0x1b2   : > { %20042 = vmatmul.mubr.f32.gmra.mrb[8].mxu1 %v25653_v21  ;;  %30352 = vst [vmem:[#allocation187_spill] sm:$0xff] %v25696_v63  ;;  %30353 = vst [vmem:[#allocation188_spill] sm:$0xff] %v25699_v51  ;;  %v30355_v21 = vand.u32 4294901760, %v30264_v33  ;;  %v2436_v33 = vsub.f32 %v25649_v34, %v25682_v25  ;;  %v2446_v16 = vsub.f32 %v25663_v2, %v25696_v63  ;;  %v2191_v25 = vsel %vm238_vm1, %v195_v53, 0 }
 0x1b3   : > { %20044 = vmatprep.mubr.f32.mxu1 %v25655_v19  ;;  %30354 = vst [vmem:[#allocation189_spill] sm:$0xff] %v25701_v41  ;;  %30357 = vst [vmem:[#allocation190_spill] sm:$0xff] %v25709_v55  ;;  %v25713_v19 = vand.u32 4294901760, %v2182_v58  ;;  %v30366_v34 = vand.u32 4294901760, %v30267_v62  ;;  %v25746_v63 = vsub.f32 %v2185_v7, %v25715_v4  ;;  %v25757_v62 = vand.u32 4294901760, %v25724_v35 }
 0x1b4   : > { %21398 = vmatmul.mubr.f32.gmra.mrb[12].mxu0 %v30355_v21  ;;  %30358 = vst [vmem:[#allocation191_spill] sm:$0xff] %v25711_v14  ;;  %30360 = vst [vmem:[#allocation193_spill] sm:$0xff] %v25715_v4  ;;  %v2188_v21 = vsel %vm238_vm1, %v194_v29, 0  ;;  %v25752_v53 = vand.u32 4294901760, %v2436_v33  ;;  %v2194_v33 = vsel %vm238_vm1, %v196_v13, 0  ;;  %v30376_v2 = vand.u32 4294901760, %v30269_v22 }
 0x1b5   : > { %21400 = vmatprep.mubr.f32.mxu0 %v30356_v24  ;;  %30359 = vst [vmem:[#allocation192_spill] sm:$0xff] %v25713_v19  ;;  %30361 = vst [vmem:[#allocation194_spill] sm:$0xff] %v25721_v52  ;;  %v25734_v24 = vsub.f32 %v2179_v18, %v25701_v41  ;;  %v25743_v29 = vsub.f32 %v2182_v58, %v25713_v19  ;;  %v197_v18 = vld [vmem:[%s24195_s21 + $0x138] sm:$0xff]  ;;  %v2466_v58 = vsub.f32 %v25699_v51, %v25731_v48  ;;  %v199_v13 = vld [vmem:[%s24195_s21 + $0x150] sm:$0xff] }
 0x1b6   : > { %20045 = vmatmul.mubr.f32.gmra.mrb[10].mxu1 %v25675_v40  ;;  %30362 = vst [vmem:[#allocation195_spill] sm:$0xff] %v25724_v35  ;;  %30363 = vst [vmem:[#allocation196_spill] sm:$0xff] %v25731_v48  ;;  %v30365_v40 = vand.u32 4294901760, %v30266_v47  ;;  %v2456_v47 = vsub.f32 %v25686_v1, %v25721_v52  ;;  %v2197_v52 = vsel %vm238_vm1, %v197_v18, 0  ;;  %v198_v1 = vld [vmem:[%s24195_s21 + $0x140] sm:$0xff]  ;;  %v25780_v48 = vand.u32 4294901760, %v25746_v63 }
 0x1b7   : > { %20047 = vmatprep.mubr.f32.mxu1 %v25693_v17  ;;  %30364 = vst [vmem:[#allocation197_spill] sm:$0xff] %v25734_v24  ;;  %30367 = vst [vmem:[#allocation198_spill] sm:$0xff] %v25743_v29  ;;  %v25748_v17 = vand.u32 4294901760, %v2188_v21  ;;  %v25767_v7 = vand.u32 4294901760, %v25734_v24  ;;  %v2476_v22 = vsub.f32 %v25724_v35, %v25757_v62  ;;  %v25797_v18 = vand.u32 4294901760, %v2466_v58 }
 0x1b8   : > { %21401 = vmatmul.mubr.f32.gmra.mrb[14].mxu0 %v30365_v40  ;;  %30368 = vst [vmem:[#allocation199_spill] sm:$0xff] %v25746_v63  ;;  %30370 = vst [vmem:[#allocation201_spill] sm:$0xff] %v25752_v53  ;;  %v25759_v40 = vand.u32 4294901760, %v2191_v25  ;;  %v25801_v51 = vand.u32 4294901760, %v2197_v52  ;;  %v30383_v35 = vand.u32 4294901760, %v30271_v28 }
 0x1b9   : > { %21403 = vmatprep.mubr.f32.mxu0 %v30366_v34  ;;  %30369 = vst [vmem:[#allocation200_spill] sm:$0xff] %v25748_v17  ;;  %30371 = vst [vmem:[#allocation202_spill] sm:$0xff] %v25757_v62  ;;  %v25762_v34 = vand.u32 4294901760, %v2446_v16  ;;  %v25777_v16 = vand.u32 4294901760, %v25743_v29  ;;  %v2203_v62 = vsel %vm238_vm1, %v199_v13, 0 }
 0x1ba   : > { %20048 = vmatmul.mubr.f32.gmra.mrb[12].mxu1 %v25709_v55  ;;  %30372 = vst [vmem:[#allocation203_spill] sm:$0xff] %v25759_v40  ;;  %30374 = vst [vmem:[#allocation205_spill] sm:$0xff] %v25767_v7  ;;  %v30375_v55 = vand.u32 4294901760, %v30268_v10  ;;  %v25787_v10 = vand.u32 4294901760, %v2456_v47  ;;  %v2200_v47 = vsel %vm238_vm1, %v198_v1, 0  ;;  %v201_v1 = vld [vmem:[%s24195_s21 + $0x168] sm:$0xff] }
 0x1bb   : > { %20050 = vmatprep.mubr.f32.mxu1 %v25711_v14  ;;  %30373 = vst [vmem:[#allocation204_spill] sm:$0xff] %v25762_v34  ;;  %30377 = vst [vmem:[#allocation206_spill] sm:$0xff] %v25777_v16  ;;  %v25783_v14 = vsub.f32 %v2188_v21, %v25748_v17  ;;  %v2486_v21 = vsub.f32 %v25734_v24, %v25767_v7  ;;  %v2496_v58 = vsub.f32 %v25743_v29, %v25777_v16 }
 0x1bc   : > { %21404 = vmatmul.mubr.f32.gmra.mrb[16].mxu0 %v30375_v55  ;;  %30378 = vst [vmem:[#allocation207_spill] sm:$0xff] %v25780_v48  ;;  %30379 = vst [vmem:[#allocation208_spill] sm:$0xff] %v25787_v10  ;;  %v25794_v55 = vand.u32 4294901760, %v2194_v33  ;;  %v2506_v7 = vsub.f32 %v25746_v63, %v25780_v48  ;;  %v25833_v48 = vsub.f32 %v2197_v52, %v25801_v51  ;;  %v25835_v16 = vand.u32 4294901760, %v2203_v62 }
 0x1bd   : > { %21406 = vmatprep.mubr.f32.mxu0 %v30376_v2  ;;  %v25792_v2 = vsub.f32 %v2191_v25, %v25759_v40  ;;  %30381 = vst [vmem:[#allocation210_spill] sm:$0xff] %v25801_v51  ;;  %v200_v25 = vld [vmem:[%s24195_s21 + $0x158] sm:$0xff]  ;;  %v25830_v13 = vand.u32 4294901760, %v2486_v21  ;;  %v2209_v63 = vsel %vm238_vm1, %v201_v1, 0  ;;  %v30391_v29 = vand.u32 4294901760, %v30273_v36 }
 0x1be   : > { %20051 = vmatmul.mubr.f32.gmra.mrb[14].mxu1 %v25752_v53  ;;  %30380 = vst [vmem:[#allocation209_spill] sm:$0xff] %v25794_v55  ;;  %v30382_v53 = vand.u32 4294901760, %v30270_v27  ;;  %v25819_v27 = vand.u32 4294901760, %v2476_v22  ;;  %v25825_v28 = vsub.f32 %v2194_v33, %v25794_v55  ;;  %30389 = vst [vmem:[#allocation216_spill] sm:$0xff] %v25835_v16  ;;  %v2206_v22 = vsel %vm238_vm1, %v200_v25, 0  ;;  %v202_v33 = vld [vmem:[%s24195_s21 + $0x170] sm:$0xff] }
 0x1bf   : > { %20053 = vmatprep.mubr.f32.mxu1 %v25762_v34  ;;  %v25815_v34 = vand.u32 4294901760, %v25783_v14  ;;  %30388 = vst [vmem:[#allocation215_spill] sm:$0xff] %v25830_v13  ;;  %v25844_v24 = vand.u32 4294901760, %v2496_v58  ;;  %v25846_v21 = vand.u32 4294901760, %v2506_v7  ;;  %v25859_v36 = vand.u32 4294901760, %v2206_v22 }
 0x1c0   : > { %21407 = vmatmul.mubr.f32.gmra.mrb[18].mxu0 %v30382_v53  ;;  %30385 = vst [vmem:[#allocation212_spill] sm:$0xff] %v25819_v27  ;;  %v25822_v53 = vand.u32 4294901760, %v25792_v2  ;;  %v25866_v7 = vsub.f32 %v2203_v62, %v25835_v16  ;;  %v25868_v58 = vand.u32 4294901760, %v2209_v63  ;;  %v2212_v1 = vsel %vm238_vm1, %v202_v33, 0 }
 0x1c1   : > { %21409 = vmatprep.mubr.f32.mxu0 %v30383_v35  ;;  %30384 = vst [vmem:[#allocation211_spill] sm:$0xff] %v25815_v34  ;;  %v25827_v35 = vand.u32 4294901760, %v2200_v47  ;;  %30392 = vst [vmem:[#allocation217_spill] sm:$0xff] %v25846_v21  ;;  %v2516_v52 = vsub.f32 %v25783_v14, %v25815_v34  ;;  %v25886_v33 = vand.u32 4294901760, %v2212_v1 }
 0x1c2   : > { %20054 = vmatmul.mubr.f32.gmra.mrb[16].mxu1 %v25787_v10  ;;  %30386 = vst [vmem:[#allocation213_spill] sm:$0xff] %v25822_v53  ;;  %v30390_v10 = vand.u32 4294901760, %v30272_v57  ;;  %v2526_v25 = vsub.f32 %v25792_v2, %v25822_v53  ;;  %v25854_v57 = vand.u32 4294901760, %v25825_v28  ;;  %30394 = vst [vmem:[#allocation219_spill] sm:$0xff] %v25859_v36  ;;  %v30397_v53 = vand.u32 4294901760, %v30274_v50 }
 0x1c3   : > { %30387 = vst [vmem:[#allocation214_spill] sm:$0xff] %v25827_v35  ;;  %20056 = vmatprep.mubr.f32.mxu1 %v25797_v18  ;;  %30396 = vst [vmem:[#allocation221_spill] sm:$0xff] %v25868_v58  ;;  %v25875_v34 = vand.u32 4294901760, %v2516_v52  ;;  %v25897_v52 = vsub.f32 %v2209_v63, %v25868_v58 }
 0x1c4   : > { %21410 = vmatmul.mubr.f32.gmra.mrb[20].mxu0 %v30390_v10  ;;  %30393 = vst [vmem:[#allocation218_spill] sm:$0xff] %v25854_v57  ;;  %v25857_v10 = vsub.f32 %v2200_v47, %v25827_v35  ;;  %v30398_v47 = vand.u32 4294901760, %v30275_v43  ;;  %30401 = vst [vmem:[#allocation224_spill] sm:$0xff] %v25886_v33  ;;  %v25889_v50 = vand.u32 4294901760, %v2526_v25 }
 0x1c5   : > { %21412 = vmatprep.mubr.f32.mxu0 %v30391_v29  ;;  %v25863_v29 = vand.u32 4294901760, %v25833_v48  ;;  %30403 = vst [vmem:[#allocation226_spill] sm:$0xff] %v25897_v52  ;;  %v25920_v63 = vand.u32 4294901760, %v25897_v52 }
 0x1c6   : > { %20057 = vmatmul.mubr.f32.gmra.mrb[18].mxu1 %v25819_v27  ;;  %v25881_v62 = vand.u32 4294901760, %v25857_v10  ;;  %v25884_v27 = vsub.f32 %v2206_v22, %v25859_v36  ;;  %v30405_v22 = vand.u32 4294901760, %v25194_v15 }
 0x1c7   : > { %20059 = vmatprep.mubr.f32.mxu1 %v25830_v13  ;;  %30395 = vst [vmem:[#allocation220_spill] sm:$0xff] %v25863_v29  ;;  %v2536_v13 = vsub.f32 %v25825_v28, %v25854_v57  ;;  %v2546_v43 = vsub.f32 %v25833_v48, %v25863_v29  ;;  %30408 = vst [vmem:[#allocation229_spill] sm:$0xff] %v25920_v63 }
 0x1c8   : > { %21413 = vmatmul.mubr.f32.gmra.mrb[22].mxu0 %v30397_v53  ;;  %30399 = vst [vmem:[#allocation222_spill] sm:$0xff] %v25881_v62  ;;  %30400 = vst [vmem:[#allocation223_spill] sm:$0xff] %v25884_v27  ;;  %v25894_v53 = vand.u32 4294901760, %v25866_v7  ;;  %v2556_v25 = vsub.f32 %v25857_v10, %v25881_v62  ;;  %v25909_v29 = vand.u32 4294901760, %v25884_v27  ;;  %v30428_v62 = vld [vmem:[#allocation139_spill] sm:$0xff] }
 0x1c9   : > { %21415 = vmatprep.mubr.f32.mxu0 %v30398_v47  ;;  %v30404_v47 = vand.u32 4294901760, %v30277_v9  ;;  %v25904_v57 = vand.u32 4294901760, %v2536_v13  ;;  %v25915_v9 = vand.u32 4294901760, %v2546_v43  ;;  %v30409_v13 = vand.u32 4294901760, %v25211_v45 }
 0x1ca   : > { %20060 = vmatmul.mubr.f32.gmra.mrb[20].mxu1 %v25844_v24  ;;  %30402 = vst [vmem:[#allocation225_spill] sm:$0xff] %v25894_v53  ;;  %30406 = vst [vmem:[#allocation227_spill] sm:$0xff] %v25909_v29  ;;  %v2566_v15 = vsub.f32 %v25866_v7, %v25894_v53  ;;  %v2576_v43 = vsub.f32 %v25884_v27, %v25909_v29  ;;  %v2586_v45 = vsub.f32 %v25897_v52, %v25920_v63  ;;  %v30426_v29 = vld [vmem:[#allocation109_spill] sm:$0xff] }
 0x1cb   : > { %20062 = vmatprep.mubr.f32.mxu1 %v25846_v21  ;;  %v25912_v21 = vsub.f32 %v2212_v1, %v25886_v33  ;;  %v25927_v1 = vand.u32 4294901760, %v2556_v25  ;;  %v17874_v25 = vld [vmem:[%s28967_s1 + $0x18] sm:$0xf] }
 0x1cc   : > { %21416 = vmatmul.mubr.f32.gmra.mrb[24].mxu0 %v30404_v47  ;;  %v30410_v47 = vand.u32 4294901760, %v30281_v56  ;;  %v25935_v53 = vand.u32 4294901760, %v2566_v15  ;;  %v30412_v56 = vand.u32 4294901760, %v25229_v12  ;;  %v25952_v63 = vand.u32 4294901760, %v2586_v45  ;;  %v30419_v45 = vld [vmem:[#allocation131_spill] sm:$0xff] }
 0x1cd   : > { %21418 = vmatprep.mubr.f32.mxu0 %v30405_v22  ;;  %30407 = vst [vmem:[#allocation228_spill] sm:$0xff] %v25912_v21  ;;  %v25932_v22 = vand.u32 4294901760, %v25912_v21  ;;  %v11905_v12 = vsel %vm335_vm0, %v17874_v25, 0  ;;  %v30420_v25 = vld [vmem:[#allocation83_spill] sm:$0xff] }
 0x1ce   : > { %20063 = vmatmul.mubr.f32.gmra.mrb[22].mxu1 %v25875_v34  ;;  %30415 = vst [vmem:[#allocation232_spill] sm:$0xff] %v25952_v63 }
 0x1cf   : > { %20065 = vmatprep.mubr.f32.mxu1 %v25889_v50  ;;  %30411 = vst [vmem:[#allocation230_spill] sm:$0xff] %v25932_v22  ;;  %v2596_v15 = vsub.f32 %v25912_v21, %v25932_v22  ;;  %v30425_v22 = vld [vmem:[#allocation99_spill] sm:$0xff] }
 0x1d0   : > { %21419 = vmatmul.mubr.f32.gmra.mrb[26].mxu0 %v30409_v13  ;;  %v30413_v13 = vand.u32 4294901760, %v25238_v49 }
 0x1d1   : > { %21421 = vmatprep.mubr.f32.mxu0 %v30410_v47  ;;  %v25947_v47 = vand.u32 4294901760, %v2576_v43  ;;  %v25959_v49 = vand.u32 4294901760, %v2596_v15  ;;  %v25961_v43 = vand.u32 4294901760, %v11905_v12  ;;  %v30422_v15 = vld [vmem:[#allocation133_spill] sm:$0xff] }
 0x1d2   : > { %20066 = vmatmul.mubr.f32.gmra.mrb[24].mxu1 %v25904_v57 }
 0x1d3   : > { %20068 = vmatprep.mubr.f32.mxu1 %v25915_v9  ;;  %30414 = vst [vmem:[#allocation231_spill] sm:$0xff] %v25947_v47  ;;  %30417 = vst [vmem:[#allocation233_spill] sm:$0xff] %v25959_v49 }
 0x1d4   : > { %21422 = vmatmul.mubr.f32.gmra.mrb[28].mxu0 %v30412_v56  ;;  %v30416_v56 = vand.u32 4294901760, %v25247_v31  ;;  %v30418_v31 = vld [vmem:[#allocation129_spill] sm:$0xff] }
 0x1d5   : > { %21424 = vmatprep.mubr.f32.mxu0 %v30413_v13  ;;  %v30421_v13 = vld [vmem:[#allocation91_spill] sm:$0xff] }
 0x1d6   : > { %20069 = vmatmul.mubr.f32.gmra.mrb[26].mxu1 %v25927_v1 }
 0x1d7   : > { %20071 = vmatprep.mubr.f32.mxu1 %v25935_v53 }
 0x1d8   : > { %21425 = vmatmul.mubr.f32.gmra.mrb[30].mxu0 %v30416_v56  ;;  %v30423_v56 = vld [vmem:[#allocation70_spill] sm:$0xff] }
 0x1d9   : > { %21429 = vmatprep.mubr.f32.mxu0 %v24865_v30 }
 0x1da   : > { %20072 = vmatmul.mubr.f32.gmra.mrb[28].mxu1 %v25947_v47  ;;  %v30453_v47 = vld [vmem:[#allocation166_spill] sm:$0xff] }
 0x1db   : > { %20074 = vmatprep.mubr.f32.mxu1 %v25952_v63  ;;  %v30433_v63 = vld [vmem:[#allocation144_spill] sm:$0xff] }
 0x1dc   : > { %21430 = vmatmul.mubr.f32.vlgmr.msra.gmra.mrb[0].mxu0 %v24874_v54 }
 0x1dd   : > { %21432 = vmatprep.mubr.f32.mxu0 %v24880_v3  ;;  %21478 = vmatpush3.msra.mxu0 %v24735_v8  ;;  %v30424_v8 = vld [vmem:[#allocation135_spill] sm:$0xff] }
 0x1de   : > { %20075 = vmatmul.mubr.f32.gmra.mrb[30].mxu1 %v25959_v49  ;;  %21527 = vmatprep.subr.mxu0 %v25961_v43  ;;  %v30429_v49 = vld [vmem:[#allocation127_spill] sm:$0xff] }
 0x1df   : > { %20079 = vmatprep.mubr.f32.mxu1 %v25413_v23  ;;  %v30427_v23 = vld [vmem:[#allocation137_spill] sm:$0xff] }
 0x1e0   : > { %21433 = vmatmul.mubr.f32.gmra.mrb[2].mxu0 %v30418_v31 }
 0x1e1   : > { %21435 = vmatprep.mubr.f32.mxu0 %v30419_v45 }
 0x1e2   : > { %20080 = vmatmul.mubr.f32.vlgmr.msra.gmra.mrb[0].mxu1 %v30420_v25  ;;  %v30432_v25 = vld [vmem:[#allocation126_spill] sm:$0xff] }
 0x1e3   : > { %20128 = vmatpush3.msra.mxu1 %v25342_v26  ;;  %20082 = vmatprep.mubr.f32.mxu1 %v30421_v13  ;;  %v30430_v26 = vld [vmem:[#allocation141_spill] sm:$0xff]  ;;  %v30431_v13 = vld [vmem:[#allocation142_spill] sm:$0xff] }
 0x1e4   : > { %21436 = vmatmul.mubr.f32.gmra.mrb[4].mxu0 %v30422_v15  ;;  %20177 = vmatprep.subr.mxu1 %v30423_v56 }
 0x1e5   : > { %21438 = vmatprep.mubr.f32.mxu0 %v30424_v8 }
 0x1e6   : > { %20083 = vmatmul.mubr.f32.gmra.mrb[2].mxu1 %v30425_v22  ;;  %v30434_v22 = vld [vmem:[#allocation147_spill] sm:$0xff] }
 0x1e7   : > { %20085 = vmatprep.mubr.f32.mxu1 %v30426_v29  ;;  %v30435_v29 = vld [vmem:[#allocation149_spill] sm:$0xff] }
 0x1e8   : > { %21439 = vmatmul.mubr.f32.gmra.mrb[6].mxu0 %v30427_v23 }
 0x1e9   : > { %21441 = vmatprep.mubr.f32.mxu0 %v30428_v62 }
 0x1ea   : > { %20086 = vmatmul.mubr.f32.gmra.mrb[4].mxu1 %v30429_v49  ;;  %v30436_v49 = vld [vmem:[#allocation150_spill] sm:$0xff] }
 0x1eb   : > { %20088 = vmatprep.mubr.f32.mxu1 %v25472_v42  ;;  %v30437_v42 = vld [vmem:[#allocation153_spill] sm:$0xff] }
 0x1ec   : > { %21442 = vmatmul.mubr.f32.gmra.mrb[8].mxu0 %v30430_v26 }
 0x1ed   : > { %21444 = vmatprep.mubr.f32.mxu0 %v30431_v13 }
 0x1ee   : > { %20089 = vmatmul.mubr.f32.gmra.mrb[6].mxu1 %v30432_v25  ;;  %v30438_v25 = vld [vmem:[#allocation154_spill] sm:$0xff] }
 0x1ef   : > { %20091 = vmatprep.mubr.f32.mxu1 %v25500_v60  ;;  %v30439_v60 = vld [vmem:[#allocation18_spill] sm:$0xff] }
 0x1f0   : > { %21445 = vmatmul.mubr.f32.gmra.mrb[10].mxu0 %v30433_v63 }
 0x1f1   : > { %21447 = vmatprep.mubr.f32.mxu0 %v30434_v22 }
 0x1f2   : > { %20092 = vmatmul.mubr.f32.gmra.mrb[8].mxu1 %v25521_v59  ;;  %v30440_v59 = vld [vmem:[#allocation156_spill] sm:$0xff] }
 0x1f3   : > { %20094 = vmatprep.mubr.f32.mxu1 %v25523_v11  ;;  %v30441_v11 = vld [vmem:[#allocation20_spill] sm:$0xff] }
 0x1f4   : > { %21448 = vmatmul.mubr.f32.gmra.mrb[12].mxu0 %v30435_v29 }
 0x1f5   : > { %21450 = vmatprep.mubr.f32.mxu0 %v30436_v49 }
 0x1f6   : > { %20095 = vmatmul.mubr.f32.gmra.mrb[10].mxu1 %v25547_v39  ;;  %v30442_v39 = vld [vmem:[#allocation158_spill] sm:$0xff] }
 0x1f7   : > { %20097 = vmatprep.mubr.f32.mxu1 %v25565_v6  ;;  %v30443_v6 = vld [vmem:[#allocation25_spill] sm:$0xff] }
 0x1f8   : > { %21451 = vmatmul.mubr.f32.gmra.mrb[14].mxu0 %v30437_v42 }
 0x1f9   : > { %21453 = vmatprep.mubr.f32.mxu0 %v30438_v25 }
 0x1fa   : > { %20098 = vmatmul.mubr.f32.gmra.mrb[12].mxu1 %v25578_v5  ;;  %v30444_v5 = vld [vmem:[#allocation31_spill] sm:$0xff] }
 0x1fb   : > { %20100 = vmatprep.mubr.f32.mxu1 %v25580_v46  ;;  %v30445_v46 = vld [vmem:[#allocation161_spill] sm:$0xff] }
 0x1fc   : > { %21454 = vmatmul.mubr.f32.gmra.mrb[16].mxu0 %v30439_v60 }
 0x1fd   : > { %21456 = vmatprep.mubr.f32.mxu0 %v30440_v59 }
 0x1fe   : > { %20101 = vmatmul.mubr.f32.gmra.mrb[14].mxu1 %v25615_v44  ;;  %v30446_v44 = vld [vmem:[#allocation162_spill] sm:$0xff] }
 0x1ff   : > { %20103 = vmatprep.mubr.f32.mxu1 %v25631_v32  ;;  %v30447_v32 = vld [vmem:[#allocation163_spill] sm:$0xff] }
 0x200   : > { %21457 = vmatmul.mubr.f32.gmra.mrb[18].mxu0 %v30441_v11 }
 0x201   : > { %21459 = vmatprep.mubr.f32.mxu0 %v30442_v39 }
 0x202   : > { %20104 = vmatmul.mubr.f32.gmra.mrb[16].mxu1 %v25657_v38  ;;  %v30448_v38 = vld [vmem:[#allocation164_spill] sm:$0xff] }
 0x203   : > { %20106 = vmatprep.mubr.f32.mxu1 %v25665_v0  ;;  %v26020_v0 = vsub.f32 %v11905_v12, %v25961_v43 }
 0x204   : > { %21460 = vmatmul.mubr.f32.gmra.mrb[20].mxu0 %v30443_v6 }
 0x205   : > { %21462 = vmatprep.mubr.f32.mxu0 %v30444_v5 }
 0x206   : > { %20107 = vmatmul.mubr.f32.gmra.mrb[18].mxu1 %v25688_v20  ;;  %v30450_v20 = vld [vmem:[#allocation165_spill] sm:$0xff] }
 0x207   : > { %20109 = vmatprep.mubr.f32.mxu1 %v25701_v41  ;;  %v30449_v41 = vld [vmem:[#allocation54_spill] sm:$0xff] }
 0x208   : > { %21463 = vmatmul.mubr.f32.gmra.mrb[22].mxu0 %v30445_v46 }
 0x209   : > { %21465 = vmatprep.mubr.f32.mxu0 %v30446_v44 }
 0x20a   : > { %20110 = vmatmul.mubr.f32.gmra.mrb[20].mxu1 %v25713_v19  ;;  %v26027_v19 = vand.u32 4294901760, %v26020_v0 }
 0x20b   : > { %20112 = vmatprep.mubr.f32.mxu1 %v25715_v4  ;;  %v30452_v4 = vld [vmem:[#allocation59_spill] sm:$0xff] }
 0x20c   : > { %21466 = vmatmul.mubr.f32.gmra.mrb[24].mxu0 %v30447_v32  ;;  %30451 = vst [vmem:[#allocation129_spill] sm:$0xff] %v26027_v19  ;;  %v12297_v12 = vsub.f32 %v26020_v0, %v26027_v19  ;;  %v30455_v19 = vld [vmem:[#allocation86_spill] sm:$0xff] }
 0x20d   : > { %21468 = vmatprep.mubr.f32.mxu0 %v30448_v38 }
 0x20e   : > { %20113 = vmatmul.mubr.f32.gmra.mrb[22].mxu1 %v25748_v17 }
 0x20f   : > { %20115 = vmatprep.mubr.f32.mxu1 %v25759_v40  ;;  %v30454_v40 = vld [vmem:[#allocation67_spill] sm:$0xff] }
 0x210   : > { %21469 = vmatmul.mubr.f32.gmra.mrb[26].mxu0 %v30449_v41 }
 0x211   : > { %21471 = vmatprep.mubr.f32.mxu0 %v30450_v20 }
 0x212   : > { %20116 = vmatmul.mubr.f32.gmra.mrb[24].mxu1 %v25794_v55  ;;  %v26039_v55 = vand.u32 4294901760, %v12297_v12  ;;  %v30457_v12 = vld [vmem:[#allocation102_spill] sm:$0xff] }
 0x213   : > { %20118 = vmatprep.mubr.f32.mxu1 %v25801_v51 }
 0x214   : > { %21472 = vmatmul.mubr.f32.gmra.mrb[28].mxu0 %v30452_v4 }
 0x215   : > { %21474 = vmatprep.mubr.f32.mxu0 %v30453_v47 }
 0x216   : > { %20119 = vmatmul.mubr.f32.gmra.mrb[26].mxu1 %v25827_v35 }
 0x217   : > { %20121 = vmatprep.mubr.f32.mxu1 %v25835_v16 }
 0x218   : > { %21475 = vmatmul.mubr.f32.gmra.mrb[30].mxu0 %v30454_v40 }
 0x219   : > { %21479 = vmatprep.mubr.f32.mxu0 %v24865_v30  ;;  %v30456_v30 = vld [vmem:[#allocation94_spill] sm:$0xff] }
 0x21a   : > { %20122 = vmatmul.mubr.f32.gmra.mrb[28].mxu1 %v25859_v36 }
 0x21b   : > { %20124 = vmatprep.mubr.f32.mxu1 %v25868_v58 }
 0x21c   : > { %21480 = vmatmul.mubr.f32.vlgmr.msra.gmra.mrb[0].mxu0 %v24874_v54  ;;  %v30459_v54 = vld [vmem:[#allocation116_spill] sm:$0xff] }
 0x21d   : > { %21482 = vmatprep.mubr.f32.mxu0 %v24880_v3  ;;  %21528 = vmatpush3.msra.mxu0 %v25961_v43  ;;  %v30458_v3 = vld [vmem:[#allocation75_spill] sm:$0xff] }
 0x21e   : > { %20125 = vmatmul.mubr.f32.gmra.mrb[30].mxu1 %v25886_v33  ;;  %21577 = vmatprep.subr.mxu0 %v26039_v55  ;;  %v30460_v33 = vld [vmem:[#allocation128_spill] sm:$0xff] }
 0x21f   : > { %20129 = vmatprep.mubr.f32.mxu1 %v30455_v19 }
 0x220   : > { %21483 = vmatmul.mubr.f32.gmra.mrb[2].mxu0 %v30418_v31  ;;  %v30461_v31 = vld [vmem:[#allocation134_spill] sm:$0xff] }
 0x221   : > { %21485 = vmatprep.mubr.f32.mxu0 %v30419_v45  ;;  %v30462_v45 = vld [vmem:[#allocation140_spill] sm:$0xff] }
 0x222   : > { %20130 = vmatmul.mubr.f32.vlgmr.msra.gmra.mrb[0].mxu1 %v30456_v30 }
 0x223   : > { %20178 = vmatpush3.msra.mxu1 %v30423_v56  ;;  %20132 = vmatprep.mubr.f32.mxu1 %v30457_v12 }
 0x224   : > { %21486 = vmatmul.mubr.f32.gmra.mrb[4].mxu0 %v30422_v15  ;;  %20227 = vmatprep.subr.mxu1 %v30458_v3  ;;  %v30463_v15 = vld [vmem:[#allocation148_spill] sm:$0xff] }
 0x225   : > { %21488 = vmatprep.mubr.f32.mxu0 %v30424_v8  ;;  %v30464_v8 = vld [vmem:[#allocation152_spill] sm:$0xff] }
 0x226   : > { %20133 = vmatmul.mubr.f32.gmra.mrb[2].mxu1 %v30459_v54 }
 0x227   : > { %20135 = vmatprep.mubr.f32.mxu1 %v30460_v33 }
 0x228   : > { %21489 = vmatmul.mubr.f32.gmra.mrb[6].mxu0 %v30427_v23  ;;  %v30465_v23 = vld [vmem:[#allocation13_spill] sm:$0xff] }
 0x229   : > { %21491 = vmatprep.mubr.f32.mxu0 %v30428_v62  ;;  %v30466_v62 = vld [vmem:[#allocation160_spill] sm:$0xff] }
 0x22a   : > { %20136 = vmatmul.mubr.f32.gmra.mrb[4].mxu1 %v25482_v37 }
 0x22b   : > { %20138 = vmatprep.mubr.f32.mxu1 %v30461_v31 }
 0x22c   : > { %21492 = vmatmul.mubr.f32.gmra.mrb[8].mxu0 %v30430_v26  ;;  %v30491_v26 = vld [vmem:[#allocation138_spill] sm:$0xff] }
 0x22d   : > { %21494 = vmatprep.mubr.f32.mxu0 %v30431_v13  ;;  %v30467_v13 = vld [vmem:[#allocation167_spill] sm:$0xff] }
 0x22e   : > { %20139 = vmatmul.mubr.f32.gmra.mrb[6].mxu1 %v30462_v45 }
 0x22f   : > { %20141 = vmatprep.mubr.f32.mxu1 %v30463_v15 }
 0x230   : > { %21495 = vmatmul.mubr.f32.gmra.mrb[10].mxu0 %v30433_v63  ;;  %v30468_v63 = vld [vmem:[#allocation168_spill] sm:$0xff] }
 0x231   : > { %21497 = vmatprep.mubr.f32.mxu0 %v30434_v22  ;;  %v30469_v22 = vld [vmem:[#allocation176_spill] sm:$0xff] }
 0x232   : > { %20142 = vmatmul.mubr.f32.gmra.mrb[8].mxu1 %v30464_v8 }
 0x233   : > { %20144 = vmatprep.mubr.f32.mxu1 %v30465_v23 }
 0x234   : > { %21498 = vmatmul.mubr.f32.gmra.mrb[12].mxu0 %v30435_v29  ;;  %v30470_v29 = vld [vmem:[#allocation180_spill] sm:$0xff] }
 0x235   : > { %21500 = vmatprep.mubr.f32.mxu0 %v30436_v49  ;;  %v30471_v49 = vld [vmem:[#allocation184_spill] sm:$0xff] }
 0x236   : > { %20145 = vmatmul.mubr.f32.gmra.mrb[10].mxu1 %v30466_v62 }
 0x237   : > { %20147 = vmatprep.mubr.f32.mxu1 %v25598_v61 }
 0x238   : > { %21501 = vmatmul.mubr.f32.gmra.mrb[14].mxu0 %v30437_v42  ;;  %v30472_v42 = vld [vmem:[#allocation188_spill] sm:$0xff] }
 0x239   : > { %21503 = vmatprep.mubr.f32.mxu0 %v30438_v25  ;;  %v30473_v25 = vld [vmem:[#allocation195_spill] sm:$0xff] }
 0x23a   : > { %20148 = vmatmul.mubr.f32.gmra.mrb[12].mxu1 %v30467_v13 }
 0x23b   : > { %20150 = vmatprep.mubr.f32.mxu1 %v30468_v63 }
 0x23c   : > { %21504 = vmatmul.mubr.f32.gmra.mrb[16].mxu0 %v30439_v60  ;;  %v30474_v60 = vld [vmem:[#allocation197_spill] sm:$0xff] }
 0x23d   : > { %21506 = vmatprep.mubr.f32.mxu0 %v30440_v59  ;;  %v30475_v59 = vld [vmem:[#allocation198_spill] sm:$0xff] }
 0x23e   : > { %20151 = vmatmul.mubr.f32.gmra.mrb[14].mxu1 %v30469_v22 }
 0x23f   : > { %20153 = vmatprep.mubr.f32.mxu1 %v30470_v29 }
 0x240   : > { %21507 = vmatmul.mubr.f32.gmra.mrb[18].mxu0 %v30441_v11  ;;  %v30476_v11 = vld [vmem:[#allocation199_spill] sm:$0xff] }
 0x241   : > { %21509 = vmatprep.mubr.f32.mxu0 %v30442_v39  ;;  %v30477_v39 = vld [vmem:[#allocation155_spill] sm:$0xff] }
 0x242   : > { %20154 = vmatmul.mubr.f32.gmra.mrb[16].mxu1 %v30471_v49 }
 0x243   : > { %20156 = vmatprep.mubr.f32.mxu1 %v30472_v42 }
 0x244   : > { %21510 = vmatmul.mubr.f32.gmra.mrb[20].mxu0 %v30443_v6  ;;  %v30478_v6 = vld [vmem:[#allocation159_spill] sm:$0xff] }
 0x245   : > { %21512 = vmatprep.mubr.f32.mxu0 %v30444_v5  ;;  %v30479_v5 = vld [vmem:[#allocation51_spill] sm:$0xff] }
 0x246   : > { %20157 = vmatmul.mubr.f32.gmra.mrb[18].mxu1 %v30473_v25 }
 0x247   : > { %20159 = vmatprep.mubr.f32.mxu1 %v30474_v60 }
 0x248   : > { %21513 = vmatmul.mubr.f32.gmra.mrb[22].mxu0 %v30445_v46  ;;  %v30480_v46 = vand.u32 4294901760, %v30455_v19  ;;  %v30487_v19 = vand.u32 4294901760, %v30459_v54  ;;  %v30496_v54 = vld [vmem:[#allocation19_spill] sm:$0xff] }
 0x249   : > { %21515 = vmatprep.mubr.f32.mxu0 %v30446_v44  ;;  %v30483_v44 = vand.u32 4294901760, %v30456_v30  ;;  %v30492_v30 = vld [vmem:[#allocation146_spill] sm:$0xff] }
 0x24a   : > { %20160 = vmatmul.mubr.f32.gmra.mrb[20].mxu1 %v30475_v59 }
 0x24b   : > { %20162 = vmatprep.mubr.f32.mxu1 %v30476_v11 }
 0x24c   : > { %21516 = vmatmul.mubr.f32.gmra.mrb[24].mxu0 %v30447_v32  ;;  %v30484_v32 = vand.u32 4294901760, %v30457_v12  ;;  %v30493_v12 = vld [vmem:[#allocation190_spill] sm:$0xff] }
 0x24d   : > { %21518 = vmatprep.mubr.f32.mxu0 %v30448_v38  ;;  %v30485_v38 = vld [vmem:[#allocation177_spill] sm:$0xff] }
 0x24e   : > { %20163 = vmatmul.mubr.f32.gmra.mrb[22].mxu1 %v25783_v14 }
 0x24f   : > { %20165 = vmatprep.mubr.f32.mxu1 %v25792_v2 }
 0x250   : > { %21519 = vmatmul.mubr.f32.gmra.mrb[26].mxu0 %v30449_v41  ;;  %v30481_v41 = vld [vmem:[#allocation170_spill] sm:$0xff] }
 0x251   : > { %21521 = vmatprep.mubr.f32.mxu0 %v30450_v20  ;;  %v30486_v20 = vld [vmem:[#allocation178_spill] sm:$0xff] }
 0x252   : > { %20166 = vmatmul.mubr.f32.gmra.mrb[24].mxu1 %v25825_v28 }
 0x253   : > { %20168 = vmatprep.mubr.f32.mxu1 %v25833_v48 }
 0x254   : > { %21522 = vmatmul.mubr.f32.gmra.mrb[28].mxu0 %v30452_v4  ;;  %v30482_v4 = vld [vmem:[#allocation171_spill] sm:$0xff] }
 0x255   : > { %21524 = vmatprep.mubr.f32.mxu0 %v30453_v47  ;;  %v30490_v47 = vld [vmem:[#allocation186_spill] sm:$0xff] }
 0x256   : > { %20169 = vmatmul.mubr.f32.gmra.mrb[26].mxu1 %v25857_v10 }
 0x257   : > { %20171 = vmatprep.mubr.f32.mxu1 %v25866_v7 }
 0x258   : > { %21525 = vmatmul.mubr.f32.gmra.mrb[30].mxu0 %v30454_v40  ;;  %v30488_v40 = vld [vmem:[#allocation132_spill] sm:$0xff] }
 0x259   : > { %21529 = vmatprep.mubr.f32.mxu0 %v30477_v39  ;;  %v30495_v39 = vld [vmem:[#allocation151_spill] sm:$0xff] }
 0x25a   : > { %20172 = vmatmul.mubr.f32.gmra.mrb[28].mxu1 %v25884_v27  ;;  %v30562_v27 = vld [vmem:[#allocation224_spill] sm:$0xff] }
 0x25b   : > { %20174 = vmatprep.mubr.f32.mxu1 %v25897_v52  ;;  %v30561_v52 = vld [vmem:[#allocation209_spill] sm:$0xff] }
 0x25c   : > { %21530 = vmatmul.mubr.f32.vlgmr.msra.gmra.mrb[0].mxu0 %v30478_v6  ;;  %v30497_v6 = vld [vmem:[#allocation201_spill] sm:$0xff] }
 0x25d   : > { %21532 = vmatprep.mubr.f32.mxu0 %v30479_v5  ;;  %21578 = vmatpush3.msra.mxu0 %v26039_v55  ;;  %v30489_v55 = vld [vmem:[#allocation182_spill] sm:$0xff]  ;;  %v30498_v5 = vld [vmem:[#allocation204_spill] sm:$0xff] }
 0x25e   : > { %20175 = vmatmul.mubr.f32.gmra.mrb[30].mxu1 %v25912_v21  ;;  %21627 = vmatprep.subr.mxu0 %v26020_v0  ;;  %v30560_v21 = vld [vmem:[#allocation203_spill] sm:$0xff] }
 0x25f   : > { %20179 = vmatprep.mubr.f32.mxu1 %v30480_v46  ;;  %v30499_v46 = vld [vmem:[#allocation43_spill] sm:$0xff] }
 0x260   : > { %21533 = vmatmul.mubr.f32.gmra.mrb[2].mxu0 %v30481_v41  ;;  %v30500_v41 = vld [vmem:[#allocation46_spill] sm:$0xff] }
 0x261   : > { %21535 = vmatprep.mubr.f32.mxu0 %v30482_v4  ;;  %v30501_v4 = vld [vmem:[#allocation208_spill] sm:$0xff] }
 0x262   : > { %20180 = vmatmul.mubr.f32.vlgmr.msra.gmra.mrb[0].mxu1 %v30483_v44  ;;  %v30502_v44 = vld [vmem:[#allocation62_spill] sm:$0xff] }
 0x263   : > { %20228 = vmatpush3.msra.mxu1 %v30458_v3  ;;  %20182 = vmatprep.mubr.f32.mxu1 %v30484_v32  ;;  %v30494_v3 = vld [vmem:[#allocation191_spill] sm:$0xff]  ;;  %v30503_v32 = vld [vmem:[#allocation172_spill] sm:$0xff] }
 0x264   : > { %21536 = vmatmul.mubr.f32.gmra.mrb[4].mxu0 %v30485_v38  ;;  %20277 = vmatprep.subr.mxu1 %v30423_v56  ;;  %v17870_v38 = vld [vmem:[%s24195_s21 + $0x180] sm:$0xff] }
 0x265   : > { %21538 = vmatprep.mubr.f32.mxu0 %v30486_v20  ;;  %v30504_v20 = vld [vmem:[#allocation212_spill] sm:$0xff] }
 0x266   : > { %20183 = vmatmul.mubr.f32.gmra.mrb[2].mxu1 %v30487_v19  ;;  %v30505_v19 = vld [vmem:[#allocation215_spill] sm:$0xff] }
 0x267   : > { %20185 = vmatprep.mubr.f32.mxu1 %v30488_v40  ;;  %v30555_v40 = vld [vmem:[#allocation181_spill] sm:$0xff] }
 0x268   : > { %21539 = vmatmul.mubr.f32.gmra.mrb[6].mxu0 %v30489_v55  ;;  %v30506_v55 = vld [vmem:[#allocation174_spill] sm:$0xff] }
 0x269   : > { %21541 = vmatprep.mubr.f32.mxu0 %v30490_v47  ;;  %v11893_v47 = vsel %vm238_vm1, %v17870_v38, 0 }
 0x26a   : > { %20186 = vmatmul.mubr.f32.gmra.mrb[4].mxu1 %v30491_v26  ;;  %v30554_v26 = vld [vmem:[#allocation179_spill] sm:$0xff] }
 0x26b   : > { %20188 = vmatprep.mubr.f32.mxu1 %v30492_v30  ;;  %v30553_v30 = vld [vmem:[#allocation173_spill] sm:$0xff] }
 0x26c   : > { %21542 = vmatmul.mubr.f32.gmra.mrb[8].mxu0 %v30493_v12  ;;  %v17871_v12 = vld [vmem:[%s24195_s21 + $0x188] sm:$0xff] }
 0x26d   : > { %21544 = vmatprep.mubr.f32.mxu0 %v30494_v3  ;;  %v30507_v3 = vld [vmem:[#allocation175_spill] sm:$0xff] }
 0x26e   : > { %20189 = vmatmul.mubr.f32.gmra.mrb[6].mxu1 %v30495_v39  ;;  %v30552_v39 = vld [vmem:[#allocation169_spill] sm:$0xff] }
 0x26f   : > { %20191 = vmatprep.mubr.f32.mxu1 %v30496_v54  ;;  %v30551_v54 = vld [vmem:[#allocation40_spill] sm:$0xff] }
 0x270   : > { %21545 = vmatmul.mubr.f32.gmra.mrb[10].mxu0 %v30497_v6  ;;  %v17872_v6 = vld [vmem:[%s24195_s21 + $0x198] sm:$0xff] }
 0x271   : > { %21547 = vmatprep.mubr.f32.mxu0 %v30498_v5  ;;  %v26156_v5 = vand.u32 4294901760, %v11893_v47 }
 0x272   : > { %20192 = vmatmul.mubr.f32.gmra.mrb[8].mxu1 %v30499_v46  ;;  %v30530_v46 = vld [vmem:[#allocation218_spill] sm:$0xff] }
 0x273   : > { %20194 = vmatprep.mubr.f32.mxu1 %v30500_v41  ;;  %30509 = vst [vmem:[#allocation131_spill] sm:$0xff] %v26156_v5 }
 0x274   : > { %21548 = vmatmul.mubr.f32.gmra.mrb[12].mxu0 %v30501_v4  ;;  %v11896_v4 = vsel %vm238_vm1, %v17871_v12, 0 }
 0x275   : > { %21550 = vmatprep.mubr.f32.mxu0 %v25797_v18  ;;  %v30508_v18 = vld [vmem:[#allocation217_spill] sm:$0xff]  ;;  %v26164_v38 = vand.u32 4294901760, %v11896_v4 }
 0x276   : > { %20195 = vmatmul.mubr.f32.gmra.mrb[10].mxu1 %v30502_v44  ;;  %v30527_v44 = vld [vmem:[#allocation211_spill] sm:$0xff] }
 0x277   : > { %20197 = vmatprep.mubr.f32.mxu1 %v30503_v32  ;;  %v30510_v32 = vld [vmem:[#allocation183_spill] sm:$0xff]  ;;  %30512 = vst [vmem:[#allocation133_spill] sm:$0xff] %v26164_v38 }
 0x278   : > { %21551 = vmatmul.mubr.f32.gmra.mrb[14].mxu0 %v30504_v20  ;;  %v11899_v20 = vsel %vm238_vm1, %v17872_v6, 0  ;;  %v26177_v6 = vsub.f32 %v11896_v4, %v26164_v38 }
 0x279   : > { %21553 = vmatprep.mubr.f32.mxu0 %v30505_v19  ;;  %v17873_v19 = vld [vmem:[%s24195_s21 + $0x1a0] sm:$0xff] }
 0x27a   : > { %20198 = vmatmul.mubr.f32.gmra.mrb[12].mxu1 %v30506_v55  ;;  %v30511_v55 = vld [vmem:[#allocation187_spill] sm:$0xff]  ;;  %v11902_v12 = vsel %vm238_vm1, %v17873_v19, 0  ;;  %30517 = vst [vmem:[#allocation137_spill] sm:$0xff] %v26177_v6  ;;  %v30521_v19 = vld [vmem:[#allocation205_spill] sm:$0xff] }
 0x27b   : > { %20200 = vmatprep.mubr.f32.mxu1 %v30507_v3  ;;  %v30515_v3 = vld [vmem:[#allocation194_spill] sm:$0xff] }
 0x27c   : > { %21554 = vmatmul.mubr.f32.gmra.mrb[16].mxu0 %v25844_v24  ;;  %v26168_v24 = vsub.f32 %v11893_v47, %v26156_v5 }
 0x27d   : > { %21556 = vmatprep.mubr.f32.mxu0 %v30508_v18  ;;  %v26170_v18 = vand.u32 4294901760, %v11899_v20 }
 0x27e   : > { %20201 = vmatmul.mubr.f32.gmra.mrb[14].mxu1 %v30510_v32  ;;  %30513 = vst [vmem:[#allocation70_spill] sm:$0xff] %v26168_v24  ;;  %v30516_v32 = vld [vmem:[#allocation196_spill] sm:$0xff] }
 0x27f   : > { %20203 = vmatprep.mubr.f32.mxu1 %v30511_v55  ;;  %30514 = vst [vmem:[#allocation135_spill] sm:$0xff] %v26170_v18  ;;  %v26184_v47 = vsub.f32 %v11899_v20, %v26170_v18  ;;  %v30520_v55 = vld [vmem:[#allocation202_spill] sm:$0xff] }
 0x280   : > { %21557 = vmatmul.mubr.f32.gmra.mrb[18].mxu0 %v25875_v34  ;;  %v26179_v34 = vand.u32 4294901760, %v11902_v12 }
 0x281   : > { %21559 = vmatprep.mubr.f32.mxu0 %v25889_v50  ;;  %v29454_v50 = vand.u32 4294901760, %v26168_v24  ;;  %30519 = vst [vmem:[#allocation141_spill] sm:$0xff] %v26184_v47  ;;  %v29456_v20 = vand.u32 4294901760, %v26184_v47 }
 0x282   : > { %20204 = vmatmul.mubr.f32.gmra.mrb[16].mxu1 %v30515_v3  ;;  %30518 = vst [vmem:[#allocation139_spill] sm:$0xff] %v26179_v34  ;;  %v26191_v4 = vsub.f32 %v11902_v12, %v26179_v34  ;;  %v30526_v3 = vld [vmem:[#allocation232_spill] sm:$0xff] }
 0x283   : > { %20206 = vmatprep.mubr.f32.mxu1 %v30516_v32  ;;  %v30523_v32 = vld [vmem:[#allocation206_spill] sm:$0xff] }
 0x284   : > { %21560 = vmatmul.mubr.f32.gmra.mrb[20].mxu0 %v25904_v57  ;;  %v29455_v57 = vand.u32 4294901760, %v26177_v6  ;;  %30522 = vst [vmem:[#allocation142_spill] sm:$0xff] %v26191_v4  ;;  %v29457_v12 = vand.u32 4294901760, %v26191_v4 }
 0x285   : > { %21562 = vmatprep.mubr.f32.mxu0 %v25915_v9  ;;  %v12256_v9 = vsub.f32 %v26168_v24, %v29454_v50  ;;  %v12276_v50 = vsub.f32 %v26184_v47, %v29456_v20  ;;  %v30532_v20 = vld [vmem:[#allocation222_spill] sm:$0xff]  ;;  %v30557_v47 = vld [vmem:[#allocation189_spill] sm:$0xff] }
 0x286   : > { %20207 = vmatmul.mubr.f32.gmra.mrb[18].mxu1 %v30520_v55  ;;  %v30524_v55 = vld [vmem:[#allocation207_spill] sm:$0xff]  ;;  %v30559_v24 = vld [vmem:[#allocation193_spill] sm:$0xff] }
 0x287   : > { %20209 = vmatprep.mubr.f32.mxu1 %v30521_v19  ;;  %v30525_v19 = vld [vmem:[#allocation231_spill] sm:$0xff]  ;;  %v12277_v41 = vand.u32 4294901760, %v12276_v50 }
 0x288   : > { %21563 = vmatmul.mubr.f32.gmra.mrb[22].mxu0 %v25927_v1  ;;  %v12266_v1 = vsub.f32 %v26177_v6, %v29455_v57  ;;  %v12286_v57 = vsub.f32 %v26191_v4, %v29457_v12  ;;  %v17742_v50 = vld [vmem:[%s28967_s1 + $0x8] sm:$0xf]  ;;  %v30556_v4 = vld [vmem:[#allocation185_spill] sm:$0xff]  ;;  %v30558_v6 = vld [vmem:[#allocation192_spill] sm:$0xff] }
 0x289   : > { %21565 = vmatprep.mubr.f32.mxu0 %v25935_v53  ;;  %v12257_v53 = vand.u32 4294901760, %v12256_v9  ;;  %v30537_v12 = vld [vmem:[#allocation127_spill] sm:$0xff] }
 0x28a   : > { %20210 = vmatmul.mubr.f32.gmra.mrb[20].mxu1 %v30523_v32  ;;  %v30528_v32 = vld [vmem:[#allocation213_spill] sm:$0xff]  ;;  %v12287_v9 = vand.u32 4294901760, %v12286_v57  ;;  %v30539_v57 = vld [vmem:[#allocation230_spill] sm:$0xff] }
 0x28b   : > { %20212 = vmatprep.mubr.f32.mxu1 %v30524_v55  ;;  %v30529_v55 = vld [vmem:[#allocation233_spill] sm:$0xff] }
 0x28c   : > { %21566 = vmatmul.mubr.f32.gmra.mrb[24].mxu0 %v30525_v19  ;;  %v12267_v19 = vand.u32 4294901760, %v12266_v1  ;;  %v30535_v1 = vld [vmem:[#allocation227_spill] sm:$0xff] }
 0x28d   : > { %21568 = vmatprep.mubr.f32.mxu0 %v30526_v3  ;;  %v30531_v3 = vld [vmem:[#allocation220_spill] sm:$0xff] }
 0x28e   : > { %20213 = vmatmul.mubr.f32.gmra.mrb[22].mxu1 %v30527_v44  ;;  %v30533_v44 = vld [vmem:[#allocation225_spill] sm:$0xff] }
 0x28f   : > { %20215 = vmatprep.mubr.f32.mxu1 %v30528_v32  ;;  %v30549_v32 = vld [vmem:[#allocation157_spill] sm:$0xff] }
 0x290   : > { %21569 = vmatmul.mubr.f32.gmra.mrb[26].mxu0 %v30529_v55  ;;  %v30534_v55 = vld [vmem:[#allocation109_spill] sm:$0xff] }
 0x291   : > { %21571 = vmatprep.mubr.f32.mxu0 %v12257_v53  ;;  %v30536_v53 = vld [vmem:[#allocation229_spill] sm:$0xff] }
 0x292   : > { %20216 = vmatmul.mubr.f32.gmra.mrb[24].mxu1 %v30530_v46  ;;  %v30548_v46 = vld [vmem:[#allocation12_spill] sm:$0xff] }
 0x293   : > { %20218 = vmatprep.mubr.f32.mxu1 %v30531_v3  ;;  %v30544_v3 = vld [vmem:[#allocation91_spill] sm:$0xff] }
 0x294   : > { %21572 = vmatmul.mubr.f32.gmra.mrb[28].mxu0 %v12267_v19  ;;  %v30538_v19 = vld [vmem:[#allocation130_spill] sm:$0xff] }
 0x295   : > { %21574 = vmatprep.mubr.f32.mxu0 %v12277_v41  ;;  %v4127_v41 = vsel %vm335_vm0, %v17742_v50, 0  ;;  %v30546_v50 = vld [vmem:[#allocation145_spill] sm:$0xff] }
 0x296   : > { %20219 = vmatmul.mubr.f32.gmra.mrb[26].mxu1 %v30532_v20  ;;  %v30542_v20 = vld [vmem:[#allocation136_spill] sm:$0xff] }
 0x297   : > { %20221 = vmatprep.mubr.f32.mxu1 %v30533_v44  ;;  %v26233_v44 = vand.u32 4294901760, %v4127_v41 }
 0x298   : > { %21575 = vmatmul.mubr.f32.gmra.mrb[30].mxu0 %v12287_v9  ;;  %v30540_v9 = vld [vmem:[#allocation78_spill] sm:$0xff] }
 0x299   : > { %21579 = vmatprep.mubr.f32.mxu0 %v30534_v55 }
 0x29a   : > { %20222 = vmatmul.mubr.f32.gmra.mrb[28].mxu1 %v30535_v1  ;;  %v30541_v1 = vld [vmem:[#allocation126_spill] sm:$0xff] }
 0x29b   : > { %20224 = vmatprep.mubr.f32.mxu1 %v30536_v53  ;;  %v30543_v53 = vld [vmem:[#allocation83_spill] sm:$0xff] }
 0x29c   : > { %21580 = vmatmul.mubr.f32.vlgmr.msra.gmra.mrb[0].mxu0 %v30537_v12 }
 0x29d   : > { %21582 = vmatprep.mubr.f32.mxu0 %v30538_v19  ;;  %21628 = vmatpush3.msra.mxu0 %v26020_v0  ;;  %v30545_v0 = vld [vmem:[#allocation143_spill] sm:$0xff] }
 0x29e   : > { %20225 = vmatmul.mubr.f32.gmra.mrb[30].mxu1 %v30539_v57  ;;  %21677 = vmatprep.subr.mxu0 %v25961_v43  ;;  %v30547_v57 = vld [vmem:[#allocation99_spill] sm:$0xff] }
 0x29f   : > { %20229 = vmatprep.mubr.f32.mxu1 %v30540_v9 }
 0x2a0   : > { %21583 = vmatmul.mubr.f32.gmra.mrb[2].mxu0 %v30541_v1 }
 0x2a1   : > { %21585 = vmatprep.mubr.f32.mxu0 %v30542_v20 }
 0x2a2   : > { %20230 = vmatmul.mubr.f32.vlgmr.msra.gmra.mrb[0].mxu1 %v30543_v53 }
 0x2a3   : > { %20278 = vmatpush3.msra.mxu1 %v30423_v56  ;;  %20232 = vmatprep.mubr.f32.mxu1 %v30544_v3  ;;  %v30550_v56 = vld [vmem:[#allocation34_spill] sm:$0xff] }
 0x2a4   : > { %21586 = vmatmul.mubr.f32.gmra.mrb[4].mxu0 %v30545_v0  ;;  %20327 = vmatprep.subr.mxu1 %v26233_v44 }
 0x2a5   : > { %21588 = vmatprep.mubr.f32.mxu0 %v30546_v50 }
 0x2a6   : > { %20233 = vmatmul.mubr.f32.gmra.mrb[2].mxu1 %v30547_v57 }
 0x2a7   : > { %20235 = vmatprep.mubr.f32.mxu1 %v30534_v55 }
 0x2a8   : > { %21589 = vmatmul.mubr.f32.gmra.mrb[6].mxu0 %v30548_v46 }
 0x2a9   : > { %21591 = vmatprep.mubr.f32.mxu0 %v30549_v32 }
 0x2aa   : > { %20236 = vmatmul.mubr.f32.gmra.mrb[4].mxu1 %v30537_v12 }
 0x2ab   : > { %20238 = vmatprep.mubr.f32.mxu1 %v30538_v19 }
 0x2ac   : > { %21592 = vmatmul.mubr.f32.gmra.mrb[8].mxu0 %v30550_v56 }
 0x2ad   : > { %21594 = vmatprep.mubr.f32.mxu0 %v30551_v54 }
 0x2ae   : > { %20239 = vmatmul.mubr.f32.gmra.mrb[6].mxu1 %v30541_v1 }
 0x2af   : > { %20241 = vmatprep.mubr.f32.mxu1 %v30542_v20 }
 0x2b0   : > { %21595 = vmatmul.mubr.f32.gmra.mrb[10].mxu0 %v30552_v39 }
 0x2b1   : > { %21597 = vmatprep.mubr.f32.mxu0 %v30553_v30 }
 0x2b2   : > { %20242 = vmatmul.mubr.f32.gmra.mrb[8].mxu1 %v30545_v0 }
 0x2b3   : > { %20244 = vmatprep.mubr.f32.mxu1 %v30546_v50 }
 0x2b4   : > { %21598 = vmatmul.mubr.f32.gmra.mrb[12].mxu0 %v30554_v26 }
 0x2b5   : > { %21600 = vmatprep.mubr.f32.mxu0 %v30555_v40 }
 0x2b6   : > { %20245 = vmatmul.mubr.f32.gmra.mrb[10].mxu1 %v30548_v46 }
 0x2b7   : > { %20247 = vmatprep.mubr.f32.mxu1 %v30549_v32 }
 0x2b8   : > { %21601 = vmatmul.mubr.f32.gmra.mrb[14].mxu0 %v30556_v4 }
 0x2b9   : > { %21603 = vmatprep.mubr.f32.mxu0 %v30557_v47 }
 0x2ba   : > { %20248 = vmatmul.mubr.f32.gmra.mrb[12].mxu1 %v30550_v56 }
 0x2bb   : > { %20250 = vmatprep.mubr.f32.mxu1 %v30551_v54 }
 0x2bc   : > { %21604 = vmatmul.mubr.f32.gmra.mrb[16].mxu0 %v30558_v6 }
 0x2bd   : > { %21606 = vmatprep.mubr.f32.mxu0 %v30559_v24 }
 0x2be   : > { %20251 = vmatmul.mubr.f32.gmra.mrb[14].mxu1 %v30552_v39 }
 0x2bf   : > { %20253 = vmatprep.mubr.f32.mxu1 %v30553_v30 }
 0x2c0   : > { %21607 = vmatmul.mubr.f32.gmra.mrb[18].mxu0 %v25748_v17 }
 0x2c1   : > { %21609 = vmatprep.mubr.f32.mxu0 %v30560_v21 }
 0x2c2   : > { %20254 = vmatmul.mubr.f32.gmra.mrb[16].mxu1 %v30554_v26 }
 0x2c3   : > { %20256 = vmatprep.mubr.f32.mxu1 %v30555_v40 }
 0x2c4   : > { %21610 = vmatmul.mubr.f32.gmra.mrb[20].mxu0 %v30561_v52 }
 0x2c5   : > { %21612 = vmatprep.mubr.f32.mxu0 %v25801_v51 }
 0x2c6   : > { %20257 = vmatmul.mubr.f32.gmra.mrb[18].mxu1 %v30556_v4 }
 0x2c7   : > { %20259 = vmatprep.mubr.f32.mxu1 %v30557_v47 }
 0x2c8   : > { %21613 = vmatmul.mubr.f32.gmra.mrb[22].mxu0 %v25827_v35 }
 0x2c9   : > { %21615 = vmatprep.mubr.f32.mxu0 %v25835_v16 }
 0x2ca   : > { %20260 = vmatmul.mubr.f32.gmra.mrb[20].mxu1 %v30558_v6 }
 0x2cb   : > { %20262 = vmatprep.mubr.f32.mxu1 %v30559_v24  ;;  %v26290_v24 = vsub.f32 %v4127_v41, %v26233_v44 }
 0x2cc   : > { %21616 = vmatmul.mubr.f32.gmra.mrb[24].mxu0 %v25859_v36 }
 0x2cd   : > { %21618 = vmatprep.mubr.f32.mxu0 %v25868_v58 }
 0x2ce   : > { %20263 = vmatmul.mubr.f32.gmra.mrb[22].mxu1 %v25748_v17 }
 0x2cf   : > { %20265 = vmatprep.mubr.f32.mxu1 %v30560_v21  ;;  %v26297_v21 = vand.u32 4294901760, %v26290_v24 }
 0x2d0   : > { %21619 = vmatmul.mubr.f32.gmra.mrb[26].mxu0 %v30562_v27 }
 0x2d1   : > { %21621 = vmatprep.mubr.f32.mxu0 %v26156_v5  ;;  %30563 = vst [vmem:[#allocation144_spill] sm:$0xff] %v26297_v21  ;;  %v4519_v41 = vsub.f32 %v26290_v24, %v26297_v21  ;;  %v4006_v21 = vld [vmem:[%s24195_s21 + $0x7a] sm:$0xff] }
 0x2d2   : > { %20266 = vmatmul.mubr.f32.gmra.mrb[24].mxu1 %v30561_v52 }
 0x2d3   : > { %20268 = vmatprep.mubr.f32.mxu1 %v25801_v51 }
 0x2d4   : > { %21622 = vmatmul.mubr.f32.gmra.mrb[28].mxu0 %v26164_v38 }
 0x2d5   : > { %21624 = vmatprep.mubr.f32.mxu0 %v26170_v18  ;;  %v30586_v18 = vld [vmem:[#allocation132_spill] sm:$0xff] }
 0x2d6   : > { %20269 = vmatmul.mubr.f32.gmra.mrb[26].mxu1 %v25827_v35 }
 0x2d7   : > { %20271 = vmatprep.mubr.f32.mxu1 %v25835_v16 }
 0x2d8   : > { %21625 = vmatmul.mubr.f32.gmra.mrb[30].mxu0 %v26179_v34  ;;  %v30564_v34 = vld [vmem:[#allocation129_spill] sm:$0xff] }
 0x2d9   : > { %21629 = vmatprep.mubr.f32.mxu0 %v30460_v33  ;;  %v26311_v33 = vand.u32 4294901760, %v4519_v41  ;;  %v4003_v41 = vld [vmem:[%s24195_s21 + $0x52] sm:$0xff] }
 0x2da   : > { %20272 = vmatmul.mubr.f32.gmra.mrb[28].mxu1 %v25859_v36 }
 0x2db   : > { %20274 = vmatprep.mubr.f32.mxu1 %v25868_v58 }
 0x2dc   : > { %21630 = vmatmul.mubr.f32.vlgmr.msra.gmra.mrb[0].mxu0 %v25482_v37  ;;  %v3996_v37 = vld [vmem:[%s24195_s21 + $0x2] sm:$0xff] }
 0x2dd   : > { %21632 = vmatprep.mubr.f32.mxu0 %v30461_v31  ;;  %21678 = vmatpush3.msra.mxu0 %v25961_v43 }
 0x2de   : > { %20275 = vmatmul.mubr.f32.gmra.mrb[30].mxu1 %v30562_v27  ;;  %21727 = vmatprep.subr.mxu0 %v30564_v34 }
 0x2df   : > { %20279 = vmatprep.mubr.f32.mxu1 %v30540_v9 }
 0x2e0   : > { %21633 = vmatmul.mubr.f32.gmra.mrb[2].mxu0 %v30462_v45 }
 0x2e1   : > { %21635 = vmatprep.mubr.f32.mxu0 %v30463_v15  ;;  %v3999_v15 = vld [vmem:[%s24195_s21 + $0x22] sm:$0xff] }
 0x2e2   : > { %20280 = vmatmul.mubr.f32.vlgmr.msra.gmra.mrb[0].mxu1 %v30543_v53 }
 0x2e3   : > { %20328 = vmatpush3.msra.mxu1 %v26233_v44  ;;  %20282 = vmatprep.mubr.f32.mxu1 %v30544_v3 }
 0x2e4   : > { %21636 = vmatmul.mubr.f32.gmra.mrb[4].mxu0 %v30464_v8  ;;  %20377 = vmatprep.subr.mxu1 %v26311_v33  ;;  %v30567_v8 = vld [vmem:[#allocation223_spill] sm:$0xff] }
 0x2e5   : > { %21638 = vmatprep.mubr.f32.mxu0 %v30465_v23  ;;  %v4000_v23 = vld [vmem:[%s24195_s21 + $0x32] sm:$0xff] }
 0x2e6   : > { %20283 = vmatmul.mubr.f32.gmra.mrb[2].mxu1 %v30547_v57 }
 0x2e7   : > { %20285 = vmatprep.mubr.f32.mxu1 %v30534_v55 }
 0x2e8   : > { %21639 = vmatmul.mubr.f32.gmra.mrb[6].mxu0 %v30466_v62 }
 0x2e9   : > { %21641 = vmatprep.mubr.f32.mxu0 %v25598_v61  ;;  %v4031_v61 = vsel %vm238_vm1, %v3996_v37, 0  ;;  %v30579_v37 = vld [vmem:[#allocation137_spill] sm:$0xff] }
 0x2ea   : > { %20286 = vmatmul.mubr.f32.gmra.mrb[4].mxu1 %v30537_v12 }
 0x2eb   : > { %20288 = vmatprep.mubr.f32.mxu1 %v30538_v19 }
 0x2ec   : > { %21642 = vmatmul.mubr.f32.gmra.mrb[8].mxu0 %v30467_v13 }
 0x2ed   : > { %21644 = vmatprep.mubr.f32.mxu0 %v30468_v63  ;;  %v4040_v63 = vsel %vm238_vm1, %v3999_v15, 0  ;;  %v4004_v15 = vld [vmem:[%s24195_s21 + $0x62] sm:$0xff] }
 0x2ee   : > { %20289 = vmatmul.mubr.f32.gmra.mrb[6].mxu1 %v30541_v1 }
 0x2ef   : > { %20291 = vmatprep.mubr.f32.mxu1 %v30542_v20 }
 0x2f0   : > { %21645 = vmatmul.mubr.f32.gmra.mrb[10].mxu0 %v30469_v22  ;;  %v30572_v22 = vld [vmem:[#allocation203_spill] sm:$0xff] }
 0x2f1   : > { %21647 = vmatprep.mubr.f32.mxu0 %v30470_v29  ;;  %v4043_v29 = vsel %vm238_vm1, %v4000_v23, 0 }
 0x2f2   : > { %20292 = vmatmul.mubr.f32.gmra.mrb[8].mxu1 %v30545_v0  ;;  %v26395_v57 = vand.u32 4294901760, %v4043_v29 }
 0x2f3   : > { %20294 = vmatprep.mubr.f32.mxu1 %v30546_v50 }
 0x2f4   : > { %21648 = vmatmul.mubr.f32.gmra.mrb[12].mxu0 %v30471_v49  ;;  %v4001_v49 = vld [vmem:[%s24195_s21 + $0x3a] sm:$0xff]  ;;  %30578 = vst [vmem:[#allocation20_spill] sm:$0xff] %v26395_v57 }
 0x2f5   : > { %21650 = vmatprep.mubr.f32.mxu0 %v30472_v42  ;;  %v30573_v42 = vld [vmem:[#allocation228_spill] sm:$0xff]  ;;  %v4046_v9 = vsel %vm238_vm1, %v4001_v49, 0  ;;  %v4052_v49 = vsel %vm238_vm1, %v4003_v41, 0 }
 0x2f6   : > { %20295 = vmatmul.mubr.f32.gmra.mrb[10].mxu1 %v30548_v46  ;;  %v26431_v23 = vand.u32 4294901760, %v4052_v49 }
 0x2f7   : > { %20297 = vmatprep.mubr.f32.mxu1 %v30549_v32 }
 0x2f8   : > { %21651 = vmatmul.mubr.f32.gmra.mrb[14].mxu0 %v30473_v25  ;;  %v30574_v25 = vld [vmem:[#allocation70_spill] sm:$0xff]  ;;  %30588 = vst [vmem:[#allocation163_spill] sm:$0xff] %v26431_v23 }
 0x2f9   : > { %21653 = vmatprep.mubr.f32.mxu0 %v30474_v60 }
 0x2fa   : > { %20298 = vmatmul.mubr.f32.gmra.mrb[12].mxu1 %v30550_v56 }
 0x2fb   : > { %20300 = vmatprep.mubr.f32.mxu1 %v30551_v54 }
 0x2fc   : > { %21654 = vmatmul.mubr.f32.gmra.mrb[16].mxu0 %v30475_v59  ;;  %v26387_v59 = vand.u32 4294901760, %v4040_v63 }
 0x2fd   : > { %21656 = vmatprep.mubr.f32.mxu0 %v30476_v11  ;;  %v4002_v11 = vld [vmem:[%s24195_s21 + $0x4a] sm:$0xff] }
 0x2fe   : > { %20301 = vmatmul.mubr.f32.gmra.mrb[14].mxu1 %v30552_v39  ;;  %30576 = vst [vmem:[#allocation18_spill] sm:$0xff] %v26387_v59 }
 0x2ff   : > { %20303 = vmatprep.mubr.f32.mxu1 %v30553_v30 }
 0x300   : > { %21657 = vmatmul.mubr.f32.gmra.mrb[18].mxu0 %v25783_v14  ;;  %v3997_v14 = vld [vmem:[%s24195_s21 + $0xa] sm:$0xff] }
 0x301   : > { %21659 = vmatprep.mubr.f32.mxu0 %v25792_v2  ;;  %v3998_v2 = vld [vmem:[%s24195_s21 + $0x1a] sm:$0xff]  ;;  %v4034_v31 = vsel %vm238_vm1, %v3997_v14, 0 }
 0x302   : > { %20304 = vmatmul.mubr.f32.gmra.mrb[16].mxu1 %v30554_v26  ;;  %v4037_v45 = vsel %vm238_vm1, %v3998_v2, 0  ;;  %v26370_v62 = vand.u32 4294901760, %v4034_v31  ;;  %v30580_v14 = vld [vmem:[#allocation141_spill] sm:$0xff]  ;;  %v4005_v2 = vld [vmem:[%s24195_s21 + $0x6a] sm:$0xff] }
 0x303   : > { %20306 = vmatprep.mubr.f32.mxu1 %v30555_v40  ;;  %v26376_v13 = vand.u32 4294901760, %v4037_v45 }
 0x304   : > { %21660 = vmatmul.mubr.f32.gmra.mrb[20].mxu0 %v25825_v28  ;;  %v26361_v28 = vand.u32 4294901760, %v4031_v61  ;;  %30569 = vst [vmem:[#allocation149_spill] sm:$0xff] %v26370_v62  ;;  %v26385_v60 = vsub.f32 %v4034_v31, %v26370_v62  ;;  %v26405_v31 = vsub.f32 %v4040_v63, %v26387_v59 }
 0x305   : > { %21662 = vmatprep.mubr.f32.mxu0 %v25833_v48  ;;  %v30566_v48 = vld [vmem:[#allocation193_spill] sm:$0xff]  ;;  %30571 = vst [vmem:[#allocation153_spill] sm:$0xff] %v26376_v13  ;;  %v26393_v53 = vsub.f32 %v4037_v45, %v26376_v13  ;;  %v26407_v45 = vand.u32 4294901760, %v4046_v9 }
 0x306   : > { %20307 = vmatmul.mubr.f32.gmra.mrb[18].mxu1 %v30556_v4  ;;  %30565 = vst [vmem:[#allocation147_spill] sm:$0xff] %v26361_v28  ;;  %30575 = vst [vmem:[#allocation154_spill] sm:$0xff] %v26385_v60 }
 0x307   : > { %20309 = vmatprep.mubr.f32.mxu1 %v30557_v47  ;;  %30577 = vst [vmem:[#allocation156_spill] sm:$0xff] %v26393_v53  ;;  %30581 = vst [vmem:[#allocation158_spill] sm:$0xff] %v26405_v31  ;;  %v30590_v38 = vand.u32 4294901760, %v26393_v53 }
 0x308   : > { %21663 = vmatmul.mubr.f32.gmra.mrb[22].mxu0 %v25857_v10  ;;  %v30568_v10 = vld [vmem:[#allocation226_spill] sm:$0xff]  ;;  %30582 = vst [vmem:[#allocation25_spill] sm:$0xff] %v26407_v45 }
 0x309   : > { %21665 = vmatprep.mubr.f32.mxu0 %v25866_v7  ;;  %v26374_v7 = vsub.f32 %v4031_v61, %v26361_v28  ;;  %v4049_v61 = vsel %vm238_vm1, %v4002_v11, 0  ;;  %v4055_v11 = vsel %vm238_vm1, %v4004_v15, 0  ;;  %v4218_v5 = vsub.f32 %v26393_v53, %v30590_v38 }
 0x30a   : > { %20310 = vmatmul.mubr.f32.gmra.mrb[20].mxu1 %v30558_v6  ;;  %v26420_v63 = vand.u32 4294901760, %v4049_v61  ;;  %v30595_v38 = vand.u32 4294901760, %v26405_v31  ;;  %v26458_v53 = vsub.f32 %v4052_v49, %v26431_v23  ;;  %v30624_v6 = vld [vmem:[#allocation174_spill] sm:$0xff] }
 0x30b   : > { %20312 = vmatprep.mubr.f32.mxu1 %v30566_v48  ;;  %30570 = vst [vmem:[#allocation150_spill] sm:$0xff] %v26374_v7  ;;  %v29477_v3 = vand.u32 4294901760, %v26374_v7  ;;  %v30618_v48 = vld [vmem:[#allocation172_spill] sm:$0xff] }
 0x30c   : > { %21666 = vmatmul.mubr.f32.gmra.mrb[24].mxu0 %v30567_v8  ;;  %30584 = vst [vmem:[#allocation161_spill] sm:$0xff] %v26420_v63  ;;  %30596 = vst [vmem:[#allocation165_spill] sm:$0xff] %v26458_v53 }
 0x30d   : > { %21668 = vmatprep.mubr.f32.mxu0 %v30568_v10  ;;  %v4198_v8 = vsub.f32 %v26374_v7, %v29477_v3  ;;  %v26416_v10 = vsub.f32 %v4043_v29, %v26395_v57  ;;  %v26429_v29 = vsub.f32 %v4046_v9, %v26407_v45  ;;  %v30589_v7 = vand.u32 4294901760, %v26385_v60 }
 0x30e   : > { %20313 = vmatmul.mubr.f32.gmra.mrb[22].mxu1 %v25748_v17  ;;  %v26443_v9 = vsub.f32 %v4049_v61, %v26420_v63  ;;  %v26445_v3 = vand.u32 4294901760, %v4055_v11 }
 0x30f   : > { %20315 = vmatprep.mubr.f32.mxu1 %v30572_v22  ;;  %30583 = vst [vmem:[#allocation31_spill] sm:$0xff] %v26416_v10  ;;  %30587 = vst [vmem:[#allocation162_spill] sm:$0xff] %v26429_v29  ;;  %v4199_v41 = vand.u32 4294901760, %v4198_v8  ;;  %v4208_v15 = vsub.f32 %v26385_v60, %v30589_v7  ;;  %v4058_v8 = vsel %vm238_vm1, %v4005_v2, 0  ;;  %v30594_v7 = vld [vmem:[#allocation146_spill] sm:$0xff]  ;;  %v4008_v2 = vld [vmem:[%s24195_s21 + $0x92] sm:$0xff] }
 0x310   : > { %21669 = vmatmul.mubr.f32.gmra.mrb[26].mxu0 %v30573_v42  ;;  %v30585_v42 = vld [vmem:[#allocation142_spill] sm:$0xff]  ;;  %30591 = vst [vmem:[#allocation164_spill] sm:$0xff] %v26443_v9  ;;  %30592 = vst [vmem:[#allocation54_spill] sm:$0xff] %v26445_v3  ;;  %v26473_v60 = vsub.f32 %v4055_v11, %v26445_v3 }
 0x311   : > { %21671 = vmatprep.mubr.f32.mxu0 %v30574_v25 }
 0x312   : > { %20316 = vmatmul.mubr.f32.gmra.mrb[24].mxu1 %v30561_v52  ;;  %30600 = vst [vmem:[#allocation67_spill] sm:$0xff] %v26473_v60 }
 0x313   : > { %20318 = vmatprep.mubr.f32.mxu1 %v25801_v51  ;;  %v4067_v51 = vsel %vm238_vm1, %v4008_v2, 0 }
 0x314   : > { %21672 = vmatmul.mubr.f32.gmra.mrb[28].mxu0 %v30579_v37 }
 0x315   : > { %21674 = vmatprep.mubr.f32.mxu0 %v30580_v14 }
 0x316   : > { %20319 = vmatmul.mubr.f32.gmra.mrb[26].mxu1 %v25827_v35  ;;  %v30593_v35 = vld [vmem:[#allocation138_spill] sm:$0xff] }
 0x317   : > { %20321 = vmatprep.mubr.f32.mxu1 %v25835_v16  ;;  %v4007_v16 = vld [vmem:[%s24195_s21 + $0x82] sm:$0xff] }
 0x318   : > { %21675 = vmatmul.mubr.f32.gmra.mrb[30].mxu0 %v30585_v42 }
 0x319   : > { %21679 = vmatprep.mubr.f32.mxu0 %v30586_v18  ;;  %v4228_v18 = vsub.f32 %v26405_v31, %v30595_v38  ;;  %v4219_v38 = vand.u32 4294901760, %v4218_v5  ;;  %v30599_v31 = vand.u32 4294901760, %v26416_v10  ;;  %v30603_v5 = vand.u32 4294901760, %v26429_v29 }
 0x31a   : > { %20322 = vmatmul.mubr.f32.gmra.mrb[28].mxu1 %v25859_v36  ;;  %v4061_v36 = vsel %vm238_vm1, %v4006_v21, 0  ;;  %v4209_v21 = vand.u32 4294901760, %v4208_v15  ;;  %v4009_v15 = vld [vmem:[%s24195_s21 + $0x9a] sm:$0xff] }
 0x31b   : > { %20324 = vmatprep.mubr.f32.mxu1 %v25868_v58  ;;  %v4238_v61 = vsub.f32 %v26416_v10, %v30599_v31  ;;  %v30601_v58 = vld [vmem:[#allocation151_spill] sm:$0xff]  ;;  %v4248_v52 = vsub.f32 %v26429_v29, %v30603_v5  ;;  %v4070_v2 = vsel %vm238_vm1, %v4009_v15, 0  ;;  %v30607_v5 = vand.u32 4294901760, %v26443_v9  ;;  %v4011_v29 = vld [vmem:[%s24195_s21 + $0xb2] sm:$0xff]  ;;  %v30610_v15 = vld [vmem:[#allocation46_spill] sm:$0xff] }
 0x31c   : > { %21680 = vmatmul.mubr.f32.vlgmr.msra.gmra.mrb[0].mxu0 %v30593_v35  ;;  %v26462_v35 = vand.u32 4294901760, %v4058_v8  ;;  %v30615_v10 = vand.u32 4294901760, %v26473_v60 }
 0x31d   : > { %21682 = vmatprep.mubr.f32.mxu0 %v30594_v7  ;;  %21728 = vmatpush3.msra.mxu0 %v30564_v34  ;;  %v26464_v7 = vand.u32 4294901760, %v4061_v36  ;;  %v4064_v34 = vsel %vm238_vm1, %v4007_v16, 0  ;;  %v30602_v16 = vld [vmem:[#allocation19_spill] sm:$0xff]  ;;  %v4258_v31 = vsub.f32 %v26443_v9, %v30607_v5 }
 0x31e   : > { %20325 = vmatmul.mubr.f32.gmra.mrb[30].mxu1 %v30562_v27  ;;  %30597 = vst [vmem:[#allocation59_spill] sm:$0xff] %v26462_v35  ;;  %21777 = vmatprep.subr.mxu0 %v25961_v43  ;;  %v4010_v27 = vld [vmem:[%s24195_s21 + $0xaa] sm:$0xff]  ;;  %v26484_v49 = vand.u32 4294901760, %v4064_v34  ;;  %v26487_v11 = vsub.f32 %v4058_v8, %v26462_v35  ;;  %v26499_v8 = vand.u32 4294901760, %v4067_v51  ;;  %v4012_v5 = vld [vmem:[%s24195_s21 + $0xc2] sm:$0xff]  ;;  %v4278_v22 = vsub.f32 %v26473_v60, %v30615_v10 }
 0x31f   : > { %30598 = vst [vmem:[#allocation166_spill] sm:$0xff] %v26464_v7  ;;  %20329 = vmatprep.mubr.f32.mxu1 %v4199_v41  ;;  %v4229_v41 = vand.u32 4294901760, %v4228_v18  ;;  %v4073_v18 = vsel %vm238_vm1, %v4010_v27, 0  ;;  %v4249_v27 = vand.u32 4294901760, %v4248_v52  ;;  %v4076_v52 = vsel %vm238_vm1, %v4011_v29, 0 }
 0x320   : > { %21683 = vmatmul.mubr.f32.gmra.mrb[2].mxu0 %v30601_v58  ;;  %30604 = vst [vmem:[#allocation86_spill] sm:$0xff] %v26484_v49  ;;  %30605 = vst [vmem:[#allocation94_spill] sm:$0xff] %v26487_v11  ;;  %v26490_v58 = vsub.f32 %v4061_v36, %v26464_v7  ;;  %v30609_v36 = vld [vmem:[#allocation43_spill] sm:$0xff]  ;;  %v26523_v17 = vsub.f32 %v4067_v51, %v26499_v8  ;;  %v26536_v10 = vand.u32 4294901760, %v4076_v52  ;;  %v4014_v51 = vld [vmem:[%s24195_s21 + $0xda] sm:$0xff] }
 0x321   : > { %21685 = vmatprep.mubr.f32.mxu0 %v30602_v16  ;;  %v4239_v16 = vand.u32 4294901760, %v4238_v61  ;;  %30608 = vst [vmem:[#allocation75_spill] sm:$0xff] %v26499_v8  ;;  %v26508_v61 = vand.u32 4294901760, %v4070_v2 }
 0x322   : > { %20330 = vmatmul.mubr.f32.vlgmr.msra.gmra.mrb[0].mxu1 %v4209_v21  ;;  %30606 = vst [vmem:[#allocation102_spill] sm:$0xff] %v26490_v58  ;;  %v30614_v21 = vand.u32 4294901760, %v26458_v53  ;;  %30616 = vst [vmem:[#allocation140_spill] sm:$0xff] %v26523_v17 }
 0x323   : > { %20378 = vmatpush3.msra.mxu1 %v26311_v33  ;;  %20332 = vmatprep.mubr.f32.mxu1 %v4219_v38  ;;  %v26506_v33 = vsub.f32 %v4064_v34, %v26484_v49  ;;  %30612 = vst [vmem:[#allocation128_spill] sm:$0xff] %v26508_v61  ;;  %v26510_v38 = vand.u32 4294901760, %v4073_v18  ;;  %v4259_v34 = vand.u32 4294901760, %v4258_v31  ;;  %v26531_v29 = vsub.f32 %v4070_v2, %v26508_v61 }
 0x324   : > { %21686 = vmatmul.mubr.f32.gmra.mrb[4].mxu0 %v30609_v36  ;;  %20427 = vmatprep.subr.mxu1 %v26290_v24  ;;  %v4268_v9 = vsub.f32 %v26458_v53, %v30614_v21  ;;  %v29517_v36 = vand.u32 4294901760, %v26487_v11  ;;  %v4079_v21 = vsel %vm238_vm1, %v4012_v5, 0  ;;  %v4013_v53 = vld [vmem:[%s24195_s21 + $0xca] sm:$0xff]  ;;  %30621 = vst [vmem:[#allocation13_spill] sm:$0xff] %v26536_v10  ;;  %v4279_v2 = vand.u32 4294901760, %v4278_v22 }
 0x325   : > { %21688 = vmatprep.mubr.f32.mxu0 %v30610_v15  ;;  %30611 = vst [vmem:[#allocation116_spill] sm:$0xff] %v26506_v33  ;;  %30613 = vst [vmem:[#allocation134_spill] sm:$0xff] %v26510_v38  ;;  %v26534_v31 = vsub.f32 %v4073_v18, %v26510_v38  ;;  %v26546_v18 = vand.u32 4294901760, %v4079_v21  ;;  %v4082_v60 = vsel %vm238_vm1, %v4013_v53, 0  ;;  %v30625_v38 = vld [vmem:[#allocation175_spill] sm:$0xff]  ;;  %v26559_v15 = vsub.f32 %v4076_v52, %v26536_v10  ;;  %v4016_v53 = vld [vmem:[%s24195_s21 + $0xf2] sm:$0xff] }
 0x326   : > { %20333 = vmatmul.mubr.f32.gmra.mrb[2].mxu1 %v4229_v41  ;;  %v30617_v41 = vld [vmem:[#allocation62_spill] sm:$0xff]  ;;  %30619 = vst [vmem:[#allocation148_spill] sm:$0xff] %v26531_v29  ;;  %v4288_v5 = vsub.f32 %v26487_v11, %v29517_v36  ;;  %v30626_v36 = vand.u32 4294901760, %v26506_v33  ;;  %v30632_v10 = vld [vmem:[#allocation183_spill] sm:$0xff] }
 0x327   : > { %20335 = vmatprep.mubr.f32.mxu1 %v4239_v16  ;;  %30620 = vst [vmem:[#allocation152_spill] sm:$0xff] %v26534_v31  ;;  %v4269_v16 = vand.u32 4294901760, %v4268_v9  ;;  %30623 = vst [vmem:[#allocation160_spill] sm:$0xff] %v26546_v18  ;;  %v4085_v9 = vsel %vm238_vm1, %v4014_v51, 0  ;;  %v4017_v52 = vld [vmem:[%s24195_s21 + $0xfa] sm:$0xff] }
 0x328   : > { %21689 = vmatmul.mubr.f32.gmra.mrb[6].mxu0 %v30617_v41  ;;  %30627 = vst [vmem:[#allocation167_spill] sm:$0xff] %v26559_v15  ;;  %v26570_v22 = vand.u32 4294901760, %v4085_v9 }
 0x329   : > { %21691 = vmatprep.mubr.f32.mxu0 %v30618_v48  ;;  %v30622_v48 = vand.u32 4294901760, %v26490_v58 }
 0x32a   : > { %20336 = vmatmul.mubr.f32.gmra.mrb[4].mxu1 %v4249_v27  ;;  %v4015_v27 = vld [vmem:[%s24195_s21 + $0xe2] sm:$0xff]  ;;  %30631 = vst [vmem:[#allocation180_spill] sm:$0xff] %v26570_v22 }
 0x32b   : > { %v4298_v41 = vsub.f32 %v26490_v58, %v30622_v48  ;;  %20338 = vmatprep.mubr.f32.mxu1 %v4259_v34  ;;  %v4308_v34 = vsub.f32 %v26506_v33, %v30626_v36  ;;  %v26562_v58 = vand.u32 4294901760, %v4082_v60  ;;  %v26568_v36 = vsub.f32 %v4079_v21, %v26546_v18  ;;  %v4018_v33 = vld [vmem:[%s24195_s21 + $0x10a] sm:$0xff] }
 0x32c   : > { %21692 = vmatmul.mubr.f32.gmra.mrb[8].mxu0 %v30624_v6  ;;  %v4289_v6 = vand.u32 4294901760, %v4288_v5  ;;  %v4088_v48 = vsel %vm238_vm1, %v4015_v27, 0  ;;  %v30633_v5 = vld [vmem:[#allocation187_spill] sm:$0xff]  ;;  %v4019_v27 = vld [vmem:[%s24195_s21 + $0x112] sm:$0xff] }
 0x32d   : > { %21694 = vmatprep.mubr.f32.mxu0 %v30625_v38  ;;  %v4299_v51 = vand.u32 4294901760, %v4298_v41  ;;  %30628 = vst [vmem:[#allocation168_spill] sm:$0xff] %v26562_v58  ;;  %v30629_v38 = vand.u32 4294901760, %v26523_v17  ;;  %30630 = vst [vmem:[#allocation176_spill] sm:$0xff] %v26568_v36  ;;  %v4309_v41 = vand.u32 4294901760, %v4308_v34  ;;  %v4097_v34 = vsel %vm238_vm1, %v4018_v33, 0 }
 0x32e   : > { %20339 = vmatmul.mubr.f32.gmra.mrb[6].mxu1 %v4269_v16  ;;  %v4091_v16 = vsel %vm238_vm1, %v4016_v53, 0  ;;  %v26588_v53 = vand.u32 4294901760, %v4088_v48  ;;  %v26604_v33 = vand.u32 4294901760, %v4097_v34 }
 0x32f   : > { %20341 = vmatprep.mubr.f32.mxu1 %v4279_v2  ;;  %v4318_v11 = vsub.f32 %v26523_v17, %v30629_v38  ;;  %v30634_v2 = vand.u32 4294901760, %v26531_v29  ;;  %v30635_v38 = vand.u32 4294901760, %v26534_v31 }
 0x330   : > { %21695 = vmatmul.mubr.f32.gmra.mrb[10].mxu0 %v30632_v10  ;;  %v26586_v10 = vsub.f32 %v4082_v60, %v26562_v58  ;;  %30637 = vst [vmem:[#allocation188_spill] sm:$0xff] %v26588_v53  ;;  %v4020_v60 = vld [vmem:[%s24195_s21 + $0x122] sm:$0xff]  ;;  %30643 = vst [vmem:[#allocation199_spill] sm:$0xff] %v26604_v33 }
 0x331   : > { %21697 = vmatprep.mubr.f32.mxu0 %v30633_v5  ;;  %v4328_v21 = vsub.f32 %v26531_v29, %v30634_v2  ;;  %v4338_v17 = vsub.f32 %v26534_v31, %v30635_v38  ;;  %v4094_v5 = vsel %vm238_vm1, %v4017_v52, 0  ;;  %v4319_v18 = vand.u32 4294901760, %v4318_v11  ;;  %v30641_v31 = vld [vmem:[#allocation196_spill] sm:$0xff] }
 0x332   : > { %20342 = vmatmul.mubr.f32.gmra.mrb[8].mxu1 %v4289_v6  ;;  %30636 = vst [vmem:[#allocation184_spill] sm:$0xff] %v26586_v10  ;;  %v29542_v2 = vand.u32 4294901760, %v26568_v36  ;;  %v26594_v29 = vsub.f32 %v4085_v9, %v26570_v22  ;;  %v26596_v38 = vand.u32 4294901760, %v4091_v16  ;;  %v30640_v6 = vld [vmem:[#allocation194_spill] sm:$0xff]  ;;  %v26602_v61 = vand.u32 4294901760, %v4094_v5 }
 0x333   : > { %20344 = vmatprep.mubr.f32.mxu1 %v4299_v51  ;;  %v4329_v58 = vand.u32 4294901760, %v4328_v21  ;;  %v4339_v52 = vand.u32 4294901760, %v4338_v17  ;;  %v30644_v11 = vand.u32 4294901760, %v26559_v15  ;;  %v4103_v22 = vsel %vm238_vm1, %v4020_v60, 0  ;;  %v4021_v51 = vld [vmem:[%s24195_s21 + $0x12a] sm:$0xff] }
 0x334   : > { %30638 = vst [vmem:[#allocation195_spill] sm:$0xff] %v26594_v29  ;;  %30639 = vst [vmem:[#allocation197_spill] sm:$0xff] %v26596_v38  ;;  %21698 = vmatmul.mubr.f32.gmra.mrb[12].mxu0 %v30640_v6  ;;  %v26611_v6 = vsub.f32 %v4088_v48, %v26588_v53  ;;  %v4358_v17 = vsub.f32 %v26568_v36, %v29542_v2  ;;  %v26626_v48 = vsub.f32 %v4094_v5, %v26602_v61  ;;  %v4022_v2 = vld [vmem:[%s24195_s21 + $0x13a] sm:$0xff] }
 0x335   : > { %21700 = vmatprep.mubr.f32.mxu0 %v30641_v31  ;;  %30642 = vst [vmem:[#allocation198_spill] sm:$0xff] %v26602_v61  ;;  %v4348_v9 = vsub.f32 %v26559_v15, %v30644_v11  ;;  %v4100_v31 = vsel %vm238_vm1, %v4019_v27, 0  ;;  %v30647_v11 = vld [vmem:[#allocation202_spill] sm:$0xff]  ;;  %v30648_v15 = vld [vmem:[#allocation205_spill] sm:$0xff]  ;;  %v30652_v21 = vand.u32 4294901760, %v26586_v10  ;;  %v30654_v36 = vand.u32 4294901760, %v26594_v29 }
 0x336   : > { %20345 = vmatmul.mubr.f32.gmra.mrb[10].mxu1 %v4309_v41  ;;  %30645 = vst [vmem:[#allocation155_spill] sm:$0xff] %v26611_v6  ;;  %v26619_v41 = vsub.f32 %v4091_v16, %v26596_v38  ;;  %30649 = vst [vmem:[#allocation51_spill] sm:$0xff] %v26626_v48  ;;  %v26631_v27 = vand.u32 4294901760, %v4100_v31  ;;  %v4359_v5 = vand.u32 4294901760, %v4358_v17  ;;  %v4109_v61 = vsel %vm238_vm1, %v4022_v2, 0  ;;  %v4023_v38 = vld [vmem:[%s24195_s21 + $0x142] sm:$0xff] }
 0x337   : > { %20347 = vmatprep.mubr.f32.mxu1 %v4319_v18  ;;  %v26629_v18 = vsub.f32 %v4097_v34, %v26604_v33  ;;  %v4349_v16 = vand.u32 4294901760, %v4348_v9  ;;  %v4368_v60 = vsub.f32 %v26586_v10, %v30652_v21  ;;  %v4378_v34 = vsub.f32 %v26594_v29, %v30654_v36  ;;  %v30655_v9 = vld [vmem:[#allocation206_spill] sm:$0xff]  ;;  %v30656_v21 = vld [vmem:[#allocation207_spill] sm:$0xff]  ;;  %v4024_v36 = vld [vmem:[%s24195_s21 + $0x152] sm:$0xff] }
 0x338   : > { %30646 = vst [vmem:[#allocation159_spill] sm:$0xff] %v26619_v41  ;;  %21701 = vmatmul.mubr.f32.gmra.mrb[14].mxu0 %v30647_v11  ;;  %30651 = vst [vmem:[#allocation171_spill] sm:$0xff] %v26631_v27  ;;  %v26652_v17 = vsub.f32 %v4100_v31, %v26631_v27  ;;  %v26666_v29 = vand.u32 4294901760, %v4109_v61  ;;  %v4115_v10 = vsel %vm238_vm1, %v4024_v36, 0 }
 0x339   : > { %21703 = vmatprep.mubr.f32.mxu0 %v30648_v15  ;;  %30650 = vst [vmem:[#allocation170_spill] sm:$0xff] %v26629_v18  ;;  %v26638_v15 = vand.u32 4294901760, %v4103_v22  ;;  %v4369_v33 = vand.u32 4294901760, %v4368_v60  ;;  %v4379_v11 = vand.u32 4294901760, %v4378_v34  ;;  %v30663_v60 = vld [vmem:[#allocation211_spill] sm:$0xff]  ;;  %v30666_v34 = vand.u32 4294901760, %v26629_v18 }
 0x33a   : > { %20348 = vmatmul.mubr.f32.gmra.mrb[12].mxu1 %v4329_v58  ;;  %v4106_v58 = vsel %vm238_vm1, %v4021_v51, 0  ;;  %30657 = vst [vmem:[#allocation178_spill] sm:$0xff] %v26652_v17  ;;  %v30658_v51 = vand.u32 4294901760, %v26611_v6  ;;  %30662 = vst [vmem:[#allocation190_spill] sm:$0xff] %v26666_v29 }
 0x33b   : > { %30653 = vst [vmem:[#allocation177_spill] sm:$0xff] %v26638_v15  ;;  %20350 = vmatprep.mubr.f32.mxu1 %v4339_v52  ;;  %v26659_v2 = vsub.f32 %v4103_v22, %v26638_v15  ;;  %v30661_v52 = vand.u32 4294901760, %v26619_v41  ;;  %v30665_v22 = vand.u32 4294901760, %v26626_v48  ;;  %v4026_v15 = vld [vmem:[%s24195_s21 + $0x16a] sm:$0xff] }
 0x33c   : > { %21704 = vmatmul.mubr.f32.gmra.mrb[16].mxu0 %v30655_v9  ;;  %v4388_v9 = vsub.f32 %v26611_v6, %v30658_v51  ;;  %v4025_v51 = vld [vmem:[%s24195_s21 + $0x15a] sm:$0xff] }
 0x33d   : > { %21706 = vmatprep.mubr.f32.mxu0 %v30656_v21  ;;  %30659 = vst [vmem:[#allocation182_spill] sm:$0xff] %v26659_v2  ;;  %v26661_v21 = vand.u32 4294901760, %v4106_v58  ;;  %v4398_v31 = vsub.f32 %v26619_v41, %v30661_v52  ;;  %v30664_v6 = vld [vmem:[#allocation213_spill] sm:$0xff]  ;;  %v4418_v52 = vsub.f32 %v26629_v18, %v30666_v34  ;;  %v4118_v34 = vsel %vm238_vm1, %v4025_v51, 0  ;;  %v30670_v41 = vld [vmem:[#allocation218_spill] sm:$0xff] }
 0x33e   : > { %20351 = vmatmul.mubr.f32.gmra.mrb[14].mxu1 %v4349_v16  ;;  %v4112_v16 = vsel %vm238_vm1, %v4023_v38, 0  ;;  %v4389_v38 = vand.u32 4294901760, %v4388_v9  ;;  %v4027_v9 = vld [vmem:[%s24195_s21 + $0x172] sm:$0xff] }
 0x33f   : > { %30660 = vst [vmem:[#allocation186_spill] sm:$0xff] %v26661_v21  ;;  %20353 = vmatprep.mubr.f32.mxu1 %v4359_v5  ;;  %v4408_v5 = vsub.f32 %v26626_v48, %v30665_v22  ;;  %v26683_v36 = vsub.f32 %v4106_v58, %v26661_v21  ;;  %v4399_v27 = vand.u32 4294901760, %v4398_v31  ;;  %v26688_v22 = vsub.f32 %v4109_v61, %v26666_v29 }
 0x340   : > { %21707 = vmatmul.mubr.f32.gmra.mrb[18].mxu0 %v30663_v60  ;;  %v26690_v48 = vand.u32 4294901760, %v4115_v10  ;;  %v30671_v60 = vld [vmem:[#allocation220_spill] sm:$0xff]  ;;  %v4419_v18 = vand.u32 4294901760, %v4418_v52  ;;  %v30672_v21 = vand.u32 4294901760, %v26652_v17  ;;  %v30673_v61 = vand.u32 4294901760, %v26659_v2 }
 0x341   : > { %21709 = vmatprep.mubr.f32.mxu0 %v30664_v6  ;;  %30667 = vst [vmem:[#allocation191_spill] sm:$0xff] %v26683_v36  ;;  %v26685_v6 = vand.u32 4294901760, %v4112_v16  ;;  %v4409_v58 = vand.u32 4294901760, %v4408_v5 }
 0x342   : > { %20354 = vmatmul.mubr.f32.gmra.mrb[16].mxu1 %v4369_v33  ;;  %30669 = vst [vmem:[#allocation204_spill] sm:$0xff] %v26690_v48  ;;  %v4121_v33 = vsel %vm238_vm1, %v4026_v15, 0  ;;  %v4438_v31 = vsub.f32 %v26659_v2, %v30673_v61  ;;  %v26707_v15 = vand.u32 4294901760, %v4118_v34  ;;  %v26711_v52 = vsub.f32 %v4115_v10, %v26690_v48  ;;  %v30677_v61 = vld [vmem:[#allocation225_spill] sm:$0xff] }
 0x343   : > { %30668 = vst [vmem:[#allocation201_spill] sm:$0xff] %v26685_v6  ;;  %20356 = vmatprep.mubr.f32.mxu1 %v4379_v11  ;;  %v4428_v11 = vsub.f32 %v26652_v17, %v30672_v21  ;;  %v4124_v21 = vsel %vm238_vm1, %v4027_v9, 0  ;;  %v30680_v9 = vand.u32 4294901760, %v26688_v22 }
 0x344   : > { %21710 = vmatmul.mubr.f32.gmra.mrb[20].mxu0 %v30670_v41  ;;  %v26705_v41 = vsub.f32 %v4112_v16, %v26685_v6  ;;  %30674 = vst [vmem:[#allocation208_spill] sm:$0xff] %v26707_v15  ;;  %v30678_v16 = vand.u32 4294901760, %v26683_v36  ;;  %v26723_v5 = vsub.f32 %v4118_v34, %v26707_v15  ;;  %v26725_v10 = vand.u32 4294901760, %v4124_v21 }
 0x345   : > { %21712 = vmatprep.mubr.f32.mxu0 %v30671_v60  ;;  %v26713_v60 = vand.u32 4294901760, %v4121_v33  ;;  %v4429_v51 = vand.u32 4294901760, %v4428_v11  ;;  %v4439_v17 = vand.u32 4294901760, %v4438_v31  ;;  %v29575_v11 = vand.u32 4294901760, %v26711_v52 }
 0x346   : > { %20357 = vmatmul.mubr.f32.gmra.mrb[18].mxu1 %v4389_v38  ;;  %v30676_v38 = vld [vmem:[#allocation222_spill] sm:$0xff]  ;;  %v4448_v2 = vsub.f32 %v26683_v36, %v30678_v16  ;;  %30679 = vst [vmem:[#allocation215_spill] sm:$0xff] %v26725_v10  ;;  %v30682_v16 = vld [vmem:[#allocation229_spill] sm:$0xff]  ;;  %v29579_v31 = vand.u32 4294901760, %v26723_v5  ;;  %v26741_v36 = vsub.f32 %v4124_v21, %v26725_v10 }
 0x347   : > { %20359 = vmatprep.mubr.f32.mxu1 %v4399_v27  ;;  %30675 = vst [vmem:[#allocation212_spill] sm:$0xff] %v26713_v60  ;;  %v29576_v27 = vand.u32 4294901760, %v26705_v41 }
 0x348   : > { %21713 = vmatmul.mubr.f32.gmra.mrb[22].mxu0 %v30676_v38  ;;  %v4458_v38 = vsub.f32 %v26688_v22, %v30680_v9  ;;  %v4449_v34 = vand.u32 4294901760, %v4448_v2  ;;  %v30684_v2 = vand.u32 4294901760, %v30574_v25  ;;  %v4488_v21 = vsub.f32 %v26723_v5, %v29579_v31  ;;  %v17907_v25 = vld [vmem:[%s28967_s1 + $0x1c] sm:$0xf]  ;;  %v30706_v31 = vld [vmem:[#allocation219_spill] sm:$0xff] }
 0x349   : > { %21715 = vmatprep.mubr.f32.mxu0 %v30677_v61  ;;  %v30681_v61 = vld [vmem:[#allocation227_spill] sm:$0xff] }
 0x34a   : > { %20360 = vmatmul.mubr.f32.gmra.mrb[20].mxu1 %v4409_v58  ;;  %v26732_v58 = vsub.f32 %v4121_v33, %v26713_v60  ;;  %v4459_v9 = vand.u32 4294901760, %v4458_v38  ;;  %v4478_v33 = vsub.f32 %v26711_v52, %v29575_v11 }
 0x34b   : > { %20362 = vmatprep.mubr.f32.mxu1 %v4419_v18  ;;  %v4468_v18 = vsub.f32 %v26705_v41, %v29576_v27  ;;  %v30685_v27 = vand.u32 4294901760, %v30579_v37  ;;  %v30687_v37 = vand.u32 4294901760, %v30585_v42  ;;  %v30692_v42 = vld [vmem:[#allocation193_spill] sm:$0xff] }
 0x34c   : > { %21716 = vmatmul.mubr.f32.gmra.mrb[24].mxu0 %v30681_v61  ;;  %v29578_v61 = vand.u32 4294901760, %v26732_v58  ;;  %v4479_v38 = vand.u32 4294901760, %v4478_v33 }
 0x34d   : > { %21718 = vmatprep.mubr.f32.mxu0 %v30682_v16  ;;  %v30683_v16 = vld [vmem:[#allocation230_spill] sm:$0xff] }
 0x34e   : > { %20363 = vmatmul.mubr.f32.gmra.mrb[22].mxu1 %v4429_v51  ;;  %v4469_v51 = vand.u32 4294901760, %v4468_v18  ;;  %v4498_v11 = vsub.f32 %v26732_v58, %v29578_v61  ;;  %v4489_v18 = vand.u32 4294901760, %v4488_v21  ;;  %v30695_v21 = vld [vmem:[#allocation200_spill] sm:$0xff]  ;;  %v30705_v61 = vld [vmem:[#allocation199_spill] sm:$0xff] }
 0x34f   : > { %20365 = vmatprep.mubr.f32.mxu1 %v4439_v17  ;;  %v29577_v17 = vand.u32 4294901760, %v26741_v36 }
 0x350   : > { %21719 = vmatmul.mubr.f32.gmra.mrb[26].mxu0 %v30683_v16  ;;  %v4499_v33 = vand.u32 4294901760, %v4498_v11  ;;  %v13849_v16 = vsel %vm335_vm0, %v17907_v25, 0  ;;  %v30693_v11 = vld [vmem:[#allocation13_spill] sm:$0xff]  ;;  %v30697_v25 = vld [vmem:[#allocation168_spill] sm:$0xff] }
 0x351   : > { %21721 = vmatprep.mubr.f32.mxu0 %v30684_v2  ;;  %v26771_v2 = vand.u32 4294901760, %v13849_v16 }
 0x352   : > { %20366 = vmatmul.mubr.f32.gmra.mrb[24].mxu1 %v4449_v34  ;;  %v30686_v34 = vand.u32 4294901760, %v30580_v14  ;;  %v30691_v14 = vld [vmem:[#allocation192_spill] sm:$0xff] }
 0x353   : > { %20368 = vmatprep.mubr.f32.mxu1 %v4459_v9  ;;  %v4508_v9 = vsub.f32 %v26741_v36, %v29577_v17  ;;  %30688 = vst [vmem:[#allocation217_spill] sm:$0xff] %v26771_v2  ;;  %v30704_v17 = vld [vmem:[#allocation198_spill] sm:$0xff] }
 0x354   : > { %21722 = vmatmul.mubr.f32.gmra.mrb[28].mxu0 %v30685_v27 }
 0x355   : > { %21724 = vmatprep.mubr.f32.mxu0 %v30686_v34  ;;  %v4509_v27 = vand.u32 4294901760, %v4508_v9  ;;  %v30698_v34 = vld [vmem:[#allocation180_spill] sm:$0xff]  ;;  %v30700_v9 = vld [vmem:[#allocation210_spill] sm:$0xff] }
 0x356   : > { %20369 = vmatmul.mubr.f32.gmra.mrb[26].mxu1 %v4469_v51  ;;  %v30694_v51 = vld [vmem:[#allocation160_spill] sm:$0xff] }
 0x357   : > { %20371 = vmatprep.mubr.f32.mxu1 %v4479_v38  ;;  %v30696_v38 = vld [vmem:[#allocation203_spill] sm:$0xff] }
 0x358   : > { %21725 = vmatmul.mubr.f32.gmra.mrb[30].mxu0 %v30687_v37  ;;  %v30702_v37 = vld [vmem:[#allocation214_spill] sm:$0xff] }
 0x359   : > { %21729 = vmatprep.mubr.f32.mxu0 %v30534_v55 }
 0x35a   : > { %20372 = vmatmul.mubr.f32.gmra.mrb[28].mxu1 %v4489_v18  ;;  %v30699_v18 = vld [vmem:[#allocation209_spill] sm:$0xff] }
 0x35b   : > { %20374 = vmatprep.mubr.f32.mxu1 %v4499_v33  ;;  %v30701_v33 = vld [vmem:[#allocation197_spill] sm:$0xff] }
 0x35c   : > { %21730 = vmatmul.mubr.f32.vlgmr.msra.gmra.mrb[0].mxu0 %v30537_v12 }
 0x35d   : > { %21732 = vmatprep.mubr.f32.mxu0 %v30538_v19  ;;  %21778 = vmatpush3.msra.mxu0 %v25961_v43  ;;  %v30689_v43 = vld [vmem:[#allocation128_spill] sm:$0xff] }
 0x35e   : > { %20375 = vmatmul.mubr.f32.gmra.mrb[30].mxu1 %v4509_v27  ;;  %21827 = vmatprep.subr.mxu0 %v26771_v2  ;;  %v30703_v27 = vld [vmem:[#allocation216_spill] sm:$0xff] }
 0x35f   : > { %20379 = vmatprep.mubr.f32.mxu1 %v26361_v28  ;;  %v17885_v28 = vld [vmem:[%s24195_s21 + $0xa9] sm:$0xff] }
 0x360   : > { %21733 = vmatmul.mubr.f32.gmra.mrb[2].mxu0 %v30541_v1 }
 0x361   : > { %21735 = vmatprep.mubr.f32.mxu0 %v30542_v20 }
 0x362   : > { %20380 = vmatmul.mubr.f32.vlgmr.msra.gmra.mrb[0].mxu1 %v26370_v62 }
 0x363   : > { %20428 = vmatpush3.msra.mxu1 %v26290_v24  ;;  %20382 = vmatprep.mubr.f32.mxu1 %v26376_v13  ;;  %v30690_v24 = vld [vmem:[#allocation134_spill] sm:$0xff] }
 0x364   : > { %21736 = vmatmul.mubr.f32.gmra.mrb[4].mxu0 %v30545_v0  ;;  %20477 = vmatprep.subr.mxu1 %v26233_v44 }
 0x365   : > { %21738 = vmatprep.mubr.f32.mxu0 %v30546_v50 }
 0x366   : > { %20383 = vmatmul.mubr.f32.gmra.mrb[2].mxu1 %v26387_v59  ;;  %v17883_v59 = vld [vmem:[%s24195_s21 + $0x91] sm:$0xff] }
 0x367   : > { %20385 = vmatprep.mubr.f32.mxu1 %v26395_v57  ;;  %v30748_v57 = vld [vmem:[#allocation182_spill] sm:$0xff] }
 0x368   : > { %21739 = vmatmul.mubr.f32.gmra.mrb[6].mxu0 %v30548_v46 }
 0x369   : > { %21741 = vmatprep.mubr.f32.mxu0 %v30549_v32 }
 0x36a   : > { %20386 = vmatmul.mubr.f32.gmra.mrb[4].mxu1 %v26407_v45 }
 0x36b   : > { %20388 = vmatprep.mubr.f32.mxu1 %v26420_v63  ;;  %v17882_v63 = vld [vmem:[%s24195_s21 + $0x81] sm:$0xff] }
 0x36c   : > { %21742 = vmatmul.mubr.f32.gmra.mrb[8].mxu0 %v30550_v56  ;;  %v13774_v62 = vsel %vm238_vm1, %v17882_v63, 0 }
 0x36d   : > { %21744 = vmatprep.mubr.f32.mxu0 %v30551_v54  ;;  %v26969_v13 = vand.u32 4294901760, %v13774_v62 }
 0x36e   : > { %20389 = vmatmul.mubr.f32.gmra.mrb[6].mxu1 %v26431_v23 }
 0x36f   : > { %20391 = vmatprep.mubr.f32.mxu1 %v26445_v3  ;;  %30756 = vst [vmem:[#allocation145_spill] sm:$0xff] %v26969_v13 }
 0x370   : > { %21745 = vmatmul.mubr.f32.gmra.mrb[10].mxu0 %v30552_v39 }
 0x371   : > { %21747 = vmatprep.mubr.f32.mxu0 %v30553_v30 }
 0x372   : > { %20392 = vmatmul.mubr.f32.gmra.mrb[8].mxu1 %v26462_v35  ;;  %v30742_v35 = vld [vmem:[#allocation170_spill] sm:$0xff] }
 0x373   : > { %20394 = vmatprep.mubr.f32.mxu1 %v26464_v7  ;;  %v30741_v7 = vld [vmem:[#allocation51_spill] sm:$0xff] }
 0x374   : > { %21748 = vmatmul.mubr.f32.gmra.mrb[12].mxu0 %v30554_v26 }
 0x375   : > { %21750 = vmatprep.mubr.f32.mxu0 %v30555_v40 }
 0x376   : > { %20395 = vmatmul.mubr.f32.gmra.mrb[10].mxu1 %v26484_v49 }
 0x377   : > { %20397 = vmatprep.mubr.f32.mxu1 %v26499_v8 }
 0x378   : > { %21751 = vmatmul.mubr.f32.gmra.mrb[14].mxu0 %v30556_v4 }
 0x379   : > { %21753 = vmatprep.mubr.f32.mxu0 %v30557_v47 }
 0x37a   : > { %20398 = vmatmul.mubr.f32.gmra.mrb[12].mxu1 %v30689_v43  ;;  %v30715_v43 = vld [vmem:[#allocation135_spill] sm:$0xff] }
 0x37b   : > { %20400 = vmatprep.mubr.f32.mxu1 %v30690_v24  ;;  %v30712_v24 = vld [vmem:[#allocation186_spill] sm:$0xff] }
 0x37c   : > { %21754 = vmatmul.mubr.f32.gmra.mrb[16].mxu0 %v30691_v14 }
 0x37d   : > { %21756 = vmatprep.mubr.f32.mxu0 %v30692_v42 }
 0x37e   : > { %20401 = vmatmul.mubr.f32.gmra.mrb[14].mxu1 %v30693_v11  ;;  %v30711_v11 = vld [vmem:[#allocation131_spill] sm:$0xff] }
 0x37f   : > { %20403 = vmatprep.mubr.f32.mxu1 %v30694_v51  ;;  %v26828_v51 = vsub.f32 %v13849_v16, %v26771_v2 }
 0x380   : > { %21757 = vmatmul.mubr.f32.gmra.mrb[18].mxu0 %v30695_v21 }
 0x381   : > { %21759 = vmatprep.mubr.f32.mxu0 %v30696_v38 }
 0x382   : > { %20404 = vmatmul.mubr.f32.gmra.mrb[16].mxu1 %v30697_v25  ;;  %v30707_v25 = vld [vmem:[#allocation221_spill] sm:$0xff] }
 0x383   : > { %20406 = vmatprep.mubr.f32.mxu1 %v30698_v34  ;;  %v30708_v34 = vld [vmem:[#allocation171_spill] sm:$0xff] }
 0x384   : > { %21760 = vmatmul.mubr.f32.gmra.mrb[20].mxu0 %v30699_v18 }
 0x385   : > { %21762 = vmatprep.mubr.f32.mxu0 %v30700_v9 }
 0x386   : > { %20407 = vmatmul.mubr.f32.gmra.mrb[18].mxu1 %v26588_v53  ;;  %v30709_v53 = vld [vmem:[#allocation177_spill] sm:$0xff] }
 0x387   : > { %20409 = vmatprep.mubr.f32.mxu1 %v30701_v33  ;;  %v30710_v33 = vld [vmem:[#allocation224_spill] sm:$0xff] }
 0x388   : > { %21763 = vmatmul.mubr.f32.gmra.mrb[22].mxu0 %v30702_v37 }
 0x389   : > { %21765 = vmatprep.mubr.f32.mxu0 %v30703_v27 }
 0x38a   : > { %20410 = vmatmul.mubr.f32.gmra.mrb[20].mxu1 %v30704_v17  ;;  %v26835_v17 = vand.u32 4294901760, %v26828_v51 }
 0x38b   : > { %20412 = vmatprep.mubr.f32.mxu1 %v30705_v61  ;;  %v30714_v61 = vld [vmem:[#allocation133_spill] sm:$0xff] }
 0x38c   : > { %21766 = vmatmul.mubr.f32.gmra.mrb[24].mxu0 %v30706_v31  ;;  %30713 = vst [vmem:[#allocation231_spill] sm:$0xff] %v26835_v17  ;;  %v14241_v16 = vsub.f32 %v26828_v51, %v26835_v17  ;;  %v30717_v17 = vld [vmem:[#allocation150_spill] sm:$0xff] }
 0x38d   : > { %21768 = vmatprep.mubr.f32.mxu0 %v30707_v25 }
 0x38e   : > { %20413 = vmatmul.mubr.f32.gmra.mrb[22].mxu1 %v30708_v34  ;;  %v30738_v34 = vld [vmem:[#allocation159_spill] sm:$0xff] }
 0x38f   : > { %20415 = vmatprep.mubr.f32.mxu1 %v30709_v53  ;;  %v30716_v53 = vld [vmem:[#allocation139_spill] sm:$0xff] }
 0x390   : > { %21769 = vmatmul.mubr.f32.gmra.mrb[26].mxu0 %v30710_v33 }
 0x391   : > { %21771 = vmatprep.mubr.f32.mxu0 %v30711_v11 }
 0x392   : > { %20416 = vmatmul.mubr.f32.gmra.mrb[24].mxu1 %v30712_v24  ;;  %v26847_v24 = vand.u32 4294901760, %v14241_v16  ;;  %v30719_v16 = vld [vmem:[#allocation156_spill] sm:$0xff] }
 0x393   : > { %20418 = vmatprep.mubr.f32.mxu1 %v26666_v29  ;;  %v30737_v29 = vld [vmem:[#allocation155_spill] sm:$0xff] }
 0x394   : > { %21772 = vmatmul.mubr.f32.gmra.mrb[28].mxu0 %v30714_v61 }
 0x395   : > { %21774 = vmatprep.mubr.f32.mxu0 %v30715_v43 }
 0x396   : > { %20419 = vmatmul.mubr.f32.gmra.mrb[26].mxu1 %v26685_v6 }
 0x397   : > { %20421 = vmatprep.mubr.f32.mxu1 %v26690_v48  ;;  %v17877_v48 = vld [vmem:[%s24195_s21 + $0x49] sm:$0xff] }
 0x398   : > { %21775 = vmatmul.mubr.f32.gmra.mrb[30].mxu0 %v30716_v53 }
 0x399   : > { %21779 = vmatprep.mubr.f32.mxu0 %v30534_v55  ;;  %v30718_v55 = vld [vmem:[#allocation154_spill] sm:$0xff] }
 0x39a   : > { %20422 = vmatmul.mubr.f32.gmra.mrb[28].mxu1 %v26707_v15  ;;  %v30735_v15 = vld [vmem:[#allocation184_spill] sm:$0xff] }
 0x39b   : > { %20424 = vmatprep.mubr.f32.mxu1 %v26713_v60  ;;  %v30726_v60 = vld [vmem:[#allocation67_spill] sm:$0xff] }
 0x39c   : > { %21780 = vmatmul.mubr.f32.vlgmr.msra.gmra.mrb[0].mxu0 %v30537_v12  ;;  %v30720_v12 = vld [vmem:[#allocation144_spill] sm:$0xff] }
 0x39d   : > { %21782 = vmatprep.mubr.f32.mxu0 %v30538_v19  ;;  %21828 = vmatpush3.msra.mxu0 %v26771_v2  ;;  %v30721_v19 = vld [vmem:[#allocation158_spill] sm:$0xff] }
 0x39e   : > { %20425 = vmatmul.mubr.f32.gmra.mrb[30].mxu1 %v26725_v10  ;;  %21877 = vmatprep.subr.mxu0 %v26847_v24  ;;  %v30722_v10 = vld [vmem:[#allocation31_spill] sm:$0xff] }
 0x39f   : > { %20429 = vmatprep.mubr.f32.mxu1 %v30717_v17  ;;  %v17887_v2 = vld [vmem:[%s24195_s21 + $0xc1] sm:$0xff] }
 0x3a0   : > { %21783 = vmatmul.mubr.f32.gmra.mrb[2].mxu0 %v30541_v1  ;;  %v30724_v1 = vld [vmem:[#allocation164_spill] sm:$0xff] }
 0x3a1   : > { %21785 = vmatprep.mubr.f32.mxu0 %v30542_v20  ;;  %v30723_v20 = vld [vmem:[#allocation162_spill] sm:$0xff] }
 0x3a2   : > { %20430 = vmatmul.mubr.f32.vlgmr.msra.gmra.mrb[0].mxu1 %v30718_v55 }
 0x3a3   : > { %20478 = vmatpush3.msra.mxu1 %v26233_v44  ;;  %20432 = vmatprep.mubr.f32.mxu1 %v30719_v16 }
 0x3a4   : > { %21786 = vmatmul.mubr.f32.gmra.mrb[4].mxu0 %v30545_v0  ;;  %20527 = vmatprep.subr.mxu1 %v30720_v12  ;;  %v30725_v0 = vld [vmem:[#allocation165_spill] sm:$0xff] }
 0x3a5   : > { %21788 = vmatprep.mubr.f32.mxu0 %v30546_v50  ;;  %v30729_v50 = vld [vmem:[#allocation116_spill] sm:$0xff] }
 0x3a6   : > { %20433 = vmatmul.mubr.f32.gmra.mrb[2].mxu1 %v30721_v19 }
 0x3a7   : > { %20435 = vmatprep.mubr.f32.mxu1 %v30722_v10 }
 0x3a8   : > { %21789 = vmatmul.mubr.f32.gmra.mrb[6].mxu0 %v30548_v46  ;;  %v30727_v46 = vld [vmem:[#allocation94_spill] sm:$0xff] }
 0x3a9   : > { %21791 = vmatprep.mubr.f32.mxu0 %v30549_v32  ;;  %v30728_v32 = vld [vmem:[#allocation102_spill] sm:$0xff] }
 0x3aa   : > { %20436 = vmatmul.mubr.f32.gmra.mrb[4].mxu1 %v30723_v20 }
 0x3ab   : > { %20438 = vmatprep.mubr.f32.mxu1 %v30724_v1 }
 0x3ac   : > { %21792 = vmatmul.mubr.f32.gmra.mrb[8].mxu0 %v30550_v56  ;;  %v30734_v56 = vld [vmem:[#allocation176_spill] sm:$0xff] }
 0x3ad   : > { %21794 = vmatprep.mubr.f32.mxu0 %v30551_v54  ;;  %v30730_v54 = vld [vmem:[#allocation140_spill] sm:$0xff] }
 0x3ae   : > { %20439 = vmatmul.mubr.f32.gmra.mrb[6].mxu1 %v30725_v0 }
 0x3af   : > { %20441 = vmatprep.mubr.f32.mxu1 %v30726_v60 }
 0x3b0   : > { %21795 = vmatmul.mubr.f32.gmra.mrb[10].mxu0 %v30552_v39  ;;  %v30731_v39 = vld [vmem:[#allocation148_spill] sm:$0xff] }
 0x3b1   : > { %21797 = vmatprep.mubr.f32.mxu0 %v30553_v30  ;;  %v30732_v30 = vld [vmem:[#allocation152_spill] sm:$0xff] }
 0x3b2   : > { %20442 = vmatmul.mubr.f32.gmra.mrb[8].mxu1 %v30727_v46 }
 0x3b3   : > { %20444 = vmatprep.mubr.f32.mxu1 %v30728_v32 }
 0x3b4   : > { %21798 = vmatmul.mubr.f32.gmra.mrb[12].mxu0 %v30554_v26  ;;  %v30733_v26 = vld [vmem:[#allocation167_spill] sm:$0xff] }
 0x3b5   : > { %21800 = vmatprep.mubr.f32.mxu0 %v30555_v40  ;;  %v17875_v40 = vld [vmem:[%s24195_s21 + $0x31] sm:$0xff] }
 0x3b6   : > { %20445 = vmatmul.mubr.f32.gmra.mrb[10].mxu1 %v30729_v50 }
 0x3b7   : > { %20447 = vmatprep.mubr.f32.mxu1 %v30730_v54 }
 0x3b8   : > { %21801 = vmatmul.mubr.f32.gmra.mrb[14].mxu0 %v30556_v4  ;;  %v17876_v4 = vld [vmem:[%s24195_s21 + $0x39] sm:$0xff] }
 0x3b9   : > { %21803 = vmatprep.mubr.f32.mxu0 %v30557_v47  ;;  %v13753_v47 = vsel %vm238_vm1, %v17875_v40, 0  ;;  %v13756_v6 = vsel %vm238_vm1, %v17876_v4, 0  ;;  %v17879_v40 = vld [vmem:[%s24195_s21 + $0x61] sm:$0xff]  ;;  %v17880_v4 = vld [vmem:[%s24195_s21 + $0x69] sm:$0xff] }
 0x3ba   : > { %20448 = vmatmul.mubr.f32.gmra.mrb[12].mxu1 %v30731_v39  ;;  %v26908_v8 = vand.u32 4294901760, %v13756_v6  ;;  %v13768_v23 = vsel %vm238_vm1, %v17880_v4, 0 }
 0x3bb   : > { %20450 = vmatprep.mubr.f32.mxu1 %v30732_v30 }
 0x3bc   : > { %21804 = vmatmul.mubr.f32.gmra.mrb[16].mxu0 %v30691_v14  ;;  %v30736_v14 = vld [vmem:[#allocation195_spill] sm:$0xff]  ;;  %v26923_v3 = vsub.f32 %v13756_v6, %v26908_v8  ;;  %v30747_v6 = vld [vmem:[#allocation178_spill] sm:$0xff] }
 0x3bd   : > { %21806 = vmatprep.mubr.f32.mxu0 %v30692_v42  ;;  %v26899_v42 = vand.u32 4294901760, %v13753_v47 }
 0x3be   : > { %20451 = vmatmul.mubr.f32.gmra.mrb[14].mxu1 %v30733_v26  ;;  %30743 = vst [vmem:[#allocation109_spill] sm:$0xff] %v26923_v3 }
 0x3bf   : > { %20453 = vmatprep.mubr.f32.mxu1 %v30734_v56 }
 0x3c0   : > { %21807 = vmatmul.mubr.f32.gmra.mrb[18].mxu0 %v30695_v21  ;;  %v13759_v21 = vsel %vm238_vm1, %v17877_v48, 0  ;;  %v13765_v48 = vsel %vm238_vm1, %v17879_v40, 0 }
 0x3c1   : > { %21809 = vmatprep.mubr.f32.mxu0 %v30696_v38  ;;  %v17878_v38 = vld [vmem:[%s24195_s21 + $0x51] sm:$0xff]  ;;  %v26914_v49 = vand.u32 4294901760, %v13759_v21  ;;  %v26933_v40 = vand.u32 4294901760, %v13765_v48 }
 0x3c2   : > { %20454 = vmatmul.mubr.f32.gmra.mrb[16].mxu1 %v30735_v15 }
 0x3c3   : > { %20456 = vmatprep.mubr.f32.mxu1 %v30736_v14  ;;  %30740 = vst [vmem:[#allocation233_spill] sm:$0xff] %v26914_v49  ;;  %30746 = vst [vmem:[#allocation78_spill] sm:$0xff] %v26933_v40 }
 0x3c4   : > { %21810 = vmatmul.mubr.f32.gmra.mrb[20].mxu0 %v30699_v18  ;;  %v26912_v18 = vsub.f32 %v13753_v47, %v26899_v42  ;;  %v17881_v47 = vld [vmem:[%s24195_s21 + $0x79] sm:$0xff] }
 0x3c5   : > { %21812 = vmatprep.mubr.f32.mxu0 %v30700_v9  ;;  %v13762_v9 = vsel %vm238_vm1, %v17878_v38, 0  ;;  %v13771_v45 = vsel %vm238_vm1, %v17881_v47, 0  ;;  %v26945_v38 = vand.u32 4294901760, %v13768_v23  ;;  %v26954_v47 = vsub.f32 %v13765_v48, %v26933_v40 }
 0x3c6   : > { %20457 = vmatmul.mubr.f32.gmra.mrb[18].mxu1 %v30737_v29  ;;  %30739 = vst [vmem:[#allocation232_spill] sm:$0xff] %v26912_v18 }
 0x3c7   : > { %20459 = vmatprep.mubr.f32.mxu1 %v30738_v34  ;;  %30750 = vst [vmem:[#allocation136_spill] sm:$0xff] %v26945_v38  ;;  %30752 = vst [vmem:[#allocation83_spill] sm:$0xff] %v26954_v47  ;;  %v26967_v48 = vsub.f32 %v13768_v23, %v26945_v38  ;;  %v17886_v38 = vld [vmem:[%s24195_s21 + $0xb1] sm:$0xff] }
 0x3c8   : > { %21813 = vmatmul.mubr.f32.gmra.mrb[22].mxu0 %v30702_v37  ;;  %v26925_v37 = vand.u32 4294901760, %v13762_v9 }
 0x3c9   : > { %21815 = vmatprep.mubr.f32.mxu0 %v30703_v27  ;;  %v26931_v27 = vsub.f32 %v13759_v21, %v26914_v49  ;;  %30755 = vst [vmem:[#allocation143_spill] sm:$0xff] %v26967_v48  ;;  %v30764_v49 = vand.u32 4294901760, %v26954_v47 }
 0x3ca   : > { %20460 = vmatmul.mubr.f32.gmra.mrb[20].mxu1 %v30741_v7  ;;  %30744 = vst [vmem:[#allocation127_spill] sm:$0xff] %v26925_v37  ;;  %v26943_v21 = vsub.f32 %v13762_v9, %v26925_v37  ;;  %v26958_v9 = vand.u32 4294901760, %v13771_v45  ;;  %v13777_v37 = vsel %vm238_vm1, %v17883_v59, 0 }
 0x3cb   : > { %20462 = vmatprep.mubr.f32.mxu1 %v30742_v35  ;;  %30745 = vst [vmem:[#allocation130_spill] sm:$0xff] %v26931_v27 }
 0x3cc   : > { %21816 = vmatmul.mubr.f32.gmra.mrb[24].mxu0 %v30706_v31  ;;  %30749 = vst [vmem:[#allocation126_spill] sm:$0xff] %v26943_v21  ;;  %30753 = vst [vmem:[#allocation91_spill] sm:$0xff] %v26958_v9  ;;  %v30754_v31 = vld [vmem:[#allocation191_spill] sm:$0xff]  ;;  %v26981_v23 = vsub.f32 %v13771_v45, %v26958_v9 }
 0x3cd   : > { %21818 = vmatprep.mubr.f32.mxu0 %v30707_v25  ;;  %v30751_v25 = vand.u32 4294901760, %v26912_v18 }
 0x3ce   : > { %20463 = vmatmul.mubr.f32.gmra.mrb[22].mxu1 %v30747_v6  ;;  %30759 = vst [vmem:[#allocation99_spill] sm:$0xff] %v26981_v23 }
 0x3cf   : > { %20465 = vmatprep.mubr.f32.mxu1 %v30748_v57  ;;  %v13920_v4 = vsub.f32 %v26912_v18, %v30751_v25  ;;  %v30758_v18 = vand.u32 4294901760, %v26931_v27  ;;  %v26983_v25 = vand.u32 4294901760, %v13777_v37 }
 0x3d0   : > { %21819 = vmatmul.mubr.f32.gmra.mrb[26].mxu0 %v30710_v33  ;;  %v17884_v33 = vld [vmem:[%s24195_s21 + $0x99] sm:$0xff] }
 0x3d1   : > { %21821 = vmatprep.mubr.f32.mxu0 %v30711_v11  ;;  %v13921_v63 = vand.u32 4294901760, %v13920_v4  ;;  %v30757_v11 = vand.u32 4294901760, %v26923_v3  ;;  %v13940_v40 = vsub.f32 %v26931_v27, %v30758_v18  ;;  %30760 = vst [vmem:[#allocation12_spill] sm:$0xff] %v26983_v25  ;;  %v13783_v4 = vsel %vm238_vm1, %v17885_v28, 0 }
 0x3d2   : > { %20466 = vmatmul.mubr.f32.gmra.mrb[24].mxu1 %v30754_v31  ;;  %v30761_v18 = vand.u32 4294901760, %v26943_v21  ;;  %v27001_v27 = vand.u32 4294901760, %v13783_v4 }
 0x3d3   : > { %20468 = vmatprep.mubr.f32.mxu1 %v26688_v22  ;;  %v13930_v59 = vsub.f32 %v26923_v3, %v30757_v11  ;;  %v26995_v11 = vsub.f32 %v13774_v62, %v26969_v13  ;;  %v13786_v3 = vsel %vm238_vm1, %v17886_v38, 0  ;;  %v13941_v9 = vand.u32 4294901760, %v13940_v40 }
 0x3d4   : > { %21822 = vmatmul.mubr.f32.gmra.mrb[28].mxu0 %v30714_v61  ;;  %v13780_v61 = vsel %vm238_vm1, %v17884_v33, 0  ;;  %30763 = vst [vmem:[#allocation34_spill] sm:$0xff] %v27001_v27  ;;  %v27009_v62 = vsub.f32 %v13777_v37, %v26983_v25  ;;  %v30766_v40 = vand.u32 4294901760, %v26967_v48  ;;  %v27020_v45 = vand.u32 4294901760, %v13786_v3 }
 0x3d5   : > { %21824 = vmatprep.mubr.f32.mxu0 %v30715_v43  ;;  %v13950_v43 = vsub.f32 %v26943_v21, %v30761_v18  ;;  %v13931_v28 = vand.u32 4294901760, %v13930_v59  ;;  %v26999_v33 = vand.u32 4294901760, %v13780_v61  ;;  %v13960_v18 = vsub.f32 %v26954_v47, %v30764_v49  ;;  %v17888_v21 = vld [vmem:[%s24195_s21 + $0xc9] sm:$0xff] }
 0x3d6   : > { %20469 = vmatmul.mubr.f32.gmra.mrb[26].mxu1 %v26705_v41  ;;  %30765 = vst [vmem:[#allocation40_spill] sm:$0xff] %v27009_v62  ;;  %v13789_v59 = vsel %vm238_vm1, %v17887_v2, 0  ;;  %30767 = vst [vmem:[#allocation169_spill] sm:$0xff] %v27020_v45  ;;  %v27026_v47 = vsub.f32 %v13783_v4, %v27001_v27  ;;  %v13792_v2 = vsel %vm238_vm1, %v17888_v21, 0  ;;  %v30770_v49 = vand.u32 4294901760, %v26981_v23 }
 0x3d7   : > { %20471 = vmatprep.mubr.f32.mxu1 %v26711_v52  ;;  %30762 = vst [vmem:[#allocation157_spill] sm:$0xff] %v26999_v33  ;;  %v13951_v38 = vand.u32 4294901760, %v13950_v43  ;;  %v27023_v37 = vsub.f32 %v13780_v61, %v26999_v33  ;;  %v27035_v61 = vand.u32 4294901760, %v13789_v59  ;;  %v17890_v33 = vld [vmem:[%s24195_s21 + $0xe1] sm:$0xff]  ;;  %v30772_v21 = vand.u32 4294901760, %v30717_v17 }
 0x3d8   : > { %21825 = vmatmul.mubr.f32.gmra.mrb[30].mxu0 %v30716_v53  ;;  %v17889_v53 = vld [vmem:[%s24195_s21 + $0xd9] sm:$0xff]  ;;  %30769 = vst [vmem:[#allocation179_spill] sm:$0xff] %v27026_v47  ;;  %v27045_v4 = vand.u32 4294901760, %v13792_v2  ;;  %v30780_v17 = vand.u32 4294901760, %v30719_v16  ;;  %v30785_v16 = vand.u32 4294901760, %v27026_v47 }
 0x3d9   : > { %21829 = vmatprep.mubr.f32.mxu0 %v13921_v63  ;;  %v13970_v63 = vsub.f32 %v26967_v48, %v30766_v40  ;;  %30768 = vst [vmem:[#allocation173_spill] sm:$0xff] %v27023_v37  ;;  %v13795_v43 = vsel %vm238_vm1, %v17889_v53, 0  ;;  %v13961_v40 = vand.u32 4294901760, %v13960_v18  ;;  %v13980_v48 = vsub.f32 %v26981_v23, %v30770_v49  ;;  %30771 = vst [vmem:[#allocation181_spill] sm:$0xff] %v27035_v61  ;;  %v17891_v53 = vld [vmem:[%s24195_s21 + $0xf1] sm:$0xff]  ;;  %v17892_v23 = vld [vmem:[%s24195_s21 + $0xf9] sm:$0xff] }
 0x3da   : > { %20472 = vmatmul.mubr.f32.gmra.mrb[28].mxu1 %v26723_v5  ;;  %30774 = vst [vmem:[#allocation189_spill] sm:$0xff] %v27045_v4  ;;  %v27047_v18 = vand.u32 4294901760, %v13795_v43  ;;  %v30776_v49 = vand.u32 4294901760, %v26995_v11  ;;  %v27060_v27 = vsub.f32 %v13789_v59, %v27035_v61 }
 0x3db   : > { %20474 = vmatprep.mubr.f32.mxu1 %v26732_v58 }
 0x3dc   : > { %21830 = vmatmul.mubr.f32.vlgmr.msra.gmra.mrb[0].mxu0 %v13931_v28  ;;  %30775 = vst [vmem:[#allocation129_spill] sm:$0xff] %v27047_v18  ;;  %v13990_v28 = vsub.f32 %v26995_v11, %v30776_v49  ;;  %30778 = vst [vmem:[#allocation223_spill] sm:$0xff] %v27060_v27  ;;  %v13801_v49 = vsel %vm238_vm1, %v17891_v53, 0  ;;  %v27074_v59 = vsub.f32 %v13795_v43, %v27047_v18 }
 0x3dd   : > { %21832 = vmatprep.mubr.f32.mxu0 %v13941_v9  ;;  %21878 = vmatpush3.msra.mxu0 %v26847_v24  ;;  %v13971_v9 = vand.u32 4294901760, %v13970_v63  ;;  %v27043_v24 = vsub.f32 %v13786_v3, %v27020_v45  ;;  %v13798_v63 = vsel %vm238_vm1, %v17890_v33, 0  ;;  %v13981_v3 = vand.u32 4294901760, %v13980_v48  ;;  %v17894_v48 = vld [vmem:[%s24195_s21 + $0x111] sm:$0xff] }
 0x3de   : > { %20475 = vmatmul.mubr.f32.gmra.mrb[30].mxu1 %v26741_v36  ;;  %21927 = vmatprep.subr.mxu0 %v26828_v51  ;;  %v27071_v33 = vsub.f32 %v13792_v2, %v27045_v4  ;;  %30782 = vst [vmem:[#allocation228_spill] sm:$0xff] %v27074_v59  ;;  %v13991_v53 = vand.u32 4294901760, %v13990_v28  ;;  %v30787_v28 = vand.u32 4294901760, %v30721_v19  ;;  %v17895_v19 = vld [vmem:[%s24195_s21 + $0x121] sm:$0xff]  ;;  %v13810_v43 = vsel %vm238_vm1, %v17894_v48, 0 }
 0x3df   : > { %20479 = vmatprep.mubr.f32.mxu1 %v30772_v21  ;;  %30773 = vst [vmem:[#allocation185_spill] sm:$0xff] %v27043_v24  ;;  %v30777_v21 = vand.u32 4294901760, %v27009_v62 }
 0x3e0   : > { %21833 = vmatmul.mubr.f32.gmra.mrb[2].mxu0 %v13951_v38  ;;  %v30779_v38 = vand.u32 4294901760, %v30718_v55  ;;  %30781 = vst [vmem:[#allocation226_spill] sm:$0xff] %v27071_v33  ;;  %v17893_v55 = vld [vmem:[%s24195_s21 + $0x109] sm:$0xff] }
 0x3e1   : > { %21835 = vmatprep.mubr.f32.mxu0 %v13961_v40  ;;  %v14000_v45 = vsub.f32 %v27009_v62, %v30777_v21  ;;  %v27076_v40 = vand.u32 4294901760, %v13798_v63  ;;  %v30784_v21 = vand.u32 4294901760, %v27023_v37  ;;  %v17898_v62 = vld [vmem:[%s24195_s21 + $0x141] sm:$0xff] }
 0x3e2   : > { %20480 = vmatmul.mubr.f32.vlgmr.msra.gmra.mrb[0].mxu1 %v30779_v38  ;;  %v27087_v38 = vand.u32 4294901760, %v13801_v49 }
 0x3e3   : > { %20528 = vmatpush3.msra.mxu1 %v30720_v12  ;;  %20482 = vmatprep.mubr.f32.mxu1 %v30780_v17  ;;  %30783 = vst [vmem:[#allocation70_spill] sm:$0xff] %v27076_v40  ;;  %v14010_v12 = vsub.f32 %v27023_v37, %v30784_v21  ;;  %v14020_v17 = vsub.f32 %v27026_v47, %v30785_v16  ;;  %v14001_v2 = vand.u32 4294901760, %v14000_v45  ;;  %v13807_v21 = vsel %vm238_vm1, %v17893_v55, 0 }
 0x3e4   : > { %21836 = vmatmul.mubr.f32.gmra.mrb[4].mxu0 %v13971_v9  ;;  %20577 = vmatprep.subr.mxu1 %v26233_v44  ;;  %30786 = vst [vmem:[#allocation137_spill] sm:$0xff] %v27087_v38  ;;  %v13804_v9 = vsel %vm238_vm1, %v17892_v23, 0  ;;  %v30788_v37 = vand.u32 4294901760, %v30722_v10  ;;  %v30789_v16 = vand.u32 4294901760, %v27043_v24  ;;  %v27102_v23 = vsub.f32 %v13798_v63, %v27076_v40  ;;  %v17896_v63 = vld [vmem:[%s24195_s21 + $0x129] sm:$0xff] }
 0x3e5   : > { %21838 = vmatprep.mubr.f32.mxu0 %v13981_v3  ;;  %v14011_v55 = vand.u32 4294901760, %v14010_v12  ;;  %v27105_v47 = vand.u32 4294901760, %v13804_v9  ;;  %v30792_v10 = vand.u32 4294901760, %v27060_v27  ;;  %v27113_v3 = vand.u32 4294901760, %v13807_v21 }
 0x3e6   : > { %20483 = vmatmul.mubr.f32.gmra.mrb[2].mxu1 %v30787_v28  ;;  %v14030_v45 = vsub.f32 %v27043_v24, %v30789_v16  ;;  %30790 = vst [vmem:[#allocation141_spill] sm:$0xff] %v27102_v23  ;;  %v14021_v28 = vand.u32 4294901760, %v14020_v17  ;;  %v27111_v16 = vsub.f32 %v13801_v49, %v27087_v38  ;;  %v17897_v24 = vld [vmem:[%s24195_s21 + $0x139] sm:$0xff]  ;;  %v13813_v12 = vsel %vm238_vm1, %v17895_v19, 0 }
 0x3e7   : > { %20485 = vmatprep.mubr.f32.mxu1 %v30788_v37  ;;  %30791 = vst [vmem:[#allocation142_spill] sm:$0xff] %v27105_v47  ;;  %v14040_v37 = vsub.f32 %v27060_v27, %v30792_v10  ;;  %30794 = vst [vmem:[#allocation138_spill] sm:$0xff] %v27113_v3  ;;  %v30796_v17 = vand.u32 4294901760, %v30724_v1  ;;  %v30797_v10 = vand.u32 4294901760, %v27071_v33  ;;  %v30798_v27 = vand.u32 4294901760, %v27074_v59 }
 0x3e8   : > { %21839 = vmatmul.mubr.f32.gmra.mrb[6].mxu0 %v13991_v53  ;;  %30793 = vst [vmem:[#allocation132_spill] sm:$0xff] %v27111_v16  ;;  %v30795_v53 = vand.u32 4294901760, %v30723_v20  ;;  %v27131_v20 = vsub.f32 %v13804_v9, %v27105_v47  ;;  %v27133_v19 = vand.u32 4294901760, %v13810_v43  ;;  %v13816_v1 = vsel %vm238_vm1, %v17896_v63, 0  ;;  %v17899_v9 = vld [vmem:[%s24195_s21 + $0x151] sm:$0xff] }
 0x3e9   : > { %21841 = vmatprep.mubr.f32.mxu0 %v14001_v2  ;;  %v14031_v2 = vand.u32 4294901760, %v14030_v45  ;;  %v14050_v49 = vsub.f32 %v27071_v33, %v30797_v10  ;;  %v14060_v48 = vsub.f32 %v27074_v59, %v30798_v27  ;;  %v13819_v45 = vsel %vm238_vm1, %v17897_v24, 0 }
 0x3ea   : > { %20486 = vmatmul.mubr.f32.gmra.mrb[4].mxu1 %v30795_v53  ;;  %30799 = vst [vmem:[#allocation146_spill] sm:$0xff] %v27133_v19  ;;  %v14041_v53 = vand.u32 4294901760, %v14040_v37  ;;  %v27139_v10 = vsub.f32 %v13807_v21, %v27113_v3  ;;  %v27141_v27 = vand.u32 4294901760, %v13813_v12  ;;  %v30803_v59 = vand.u32 4294901760, %v30726_v60 }
 0x3eb   : > { %20488 = vmatprep.mubr.f32.mxu1 %v30796_v17  ;;  %v14051_v63 = vand.u32 4294901760, %v14050_v49  ;;  %v14061_v24 = vand.u32 4294901760, %v14060_v48  ;;  %v27151_v37 = vand.u32 4294901760, %v13819_v45  ;;  %v30806_v21 = vand.u32 4294901760, %v27102_v23 }
 0x3ec   : > { %21842 = vmatmul.mubr.f32.gmra.mrb[8].mxu0 %v14011_v55  ;;  %30800 = vst [vmem:[#allocation151_spill] sm:$0xff] %v27139_v10  ;;  %30801 = vst [vmem:[#allocation19_spill] sm:$0xff] %v27141_v27  ;;  %v30802_v55 = vand.u32 4294901760, %v30725_v0  ;;  %v13822_v60 = vsel %vm238_vm1, %v17898_v62, 0  ;;  %v13825_v33 = vsel %vm238_vm1, %v17899_v9, 0  ;;  %v17900_v0 = vld [vmem:[%s24195_s21 + $0x159] sm:$0xff] }
 0x3ed   : > { %21844 = vmatprep.mubr.f32.mxu0 %v14021_v28  ;;  %v27149_v28 = vand.u32 4294901760, %v13816_v1  ;;  %30805 = vst [vmem:[#allocation46_spill] sm:$0xff] %v27151_v37  ;;  %v14070_v17 = vsub.f32 %v27102_v23, %v30806_v21  ;;  %v30810_v21 = vand.u32 4294901760, %v30727_v46  ;;  %v30815_v9 = vand.u32 4294901760, %v27131_v20 }
 0x3ee   : > { %20489 = vmatmul.mubr.f32.gmra.mrb[6].mxu1 %v30802_v55  ;;  %v27158_v55 = vsub.f32 %v13810_v43, %v27133_v19  ;;  %v30811_v43 = vand.u32 4294901760, %v30728_v32  ;;  %v30819_v32 = vand.u32 4294901760, %v30730_v54 }
 0x3ef   : > { %20491 = vmatprep.mubr.f32.mxu1 %v30803_v59  ;;  %30804 = vst [vmem:[#allocation43_spill] sm:$0xff] %v27149_v28  ;;  %v30808_v59 = vand.u32 4294901760, %v27111_v16  ;;  %v27175_v62 = vsub.f32 %v13816_v1, %v27149_v28  ;;  %v14071_v48 = vand.u32 4294901760, %v14070_v17  ;;  %v14090_v46 = vsub.f32 %v27131_v20, %v30815_v9  ;;  %v17902_v9 = vld [vmem:[%s24195_s21 + $0x171] sm:$0xff] }
 0x3f0   : > { %21845 = vmatmul.mubr.f32.gmra.mrb[10].mxu0 %v14031_v2  ;;  %30807 = vst [vmem:[#allocation62_spill] sm:$0xff] %v27158_v55  ;;  %v27166_v2 = vsub.f32 %v13813_v12, %v27141_v27  ;;  %v17901_v12 = vld [vmem:[%s24195_s21 + $0x169] sm:$0xff]  ;;  %v30818_v17 = vand.u32 4294901760, %v30729_v50  ;;  %v30820_v50 = vand.u32 4294901760, %v27158_v55 }
 0x3f1   : > { %21847 = vmatprep.mubr.f32.mxu0 %v14041_v53  ;;  %v14080_v49 = vsub.f32 %v27111_v16, %v30808_v59  ;;  %30812 = vst [vmem:[#allocation174_spill] sm:$0xff] %v27175_v62  ;;  %v27178_v53 = vsub.f32 %v13819_v45, %v27151_v37  ;;  %v27180_v59 = vand.u32 4294901760, %v13822_v60  ;;  %v13831_v23 = vsel %vm238_vm1, %v17901_v12, 0  ;;  %v17903_v16 = vld [vmem:[%s24195_s21 + $0x181] sm:$0xff] }
 0x3f2   : > { %30809 = vst [vmem:[#allocation172_spill] sm:$0xff] %v27166_v2  ;;  %20492 = vmatmul.mubr.f32.gmra.mrb[8].mxu1 %v30810_v21  ;;  %v27187_v21 = vand.u32 4294901760, %v13825_v33  ;;  %v14110_v12 = vsub.f32 %v27158_v55, %v30820_v50  ;;  %v13837_v50 = vsel %vm238_vm1, %v17903_v16, 0  ;;  %v17904_v55 = vld [vmem:[%s24195_s21 + $0x189] sm:$0xff] }
 0x3f3   : > { %20494 = vmatprep.mubr.f32.mxu1 %v30811_v43  ;;  %30813 = vst [vmem:[#allocation175_spill] sm:$0xff] %v27178_v53  ;;  %30814 = vst [vmem:[#allocation183_spill] sm:$0xff] %v27180_v59  ;;  %v14081_v1 = vand.u32 4294901760, %v14080_v49  ;;  %v30817_v43 = vand.u32 4294901760, %v27139_v10  ;;  %v30822_v49 = vand.u32 4294901760, %v27166_v2 }
 0x3f4   : > { %21848 = vmatmul.mubr.f32.gmra.mrb[12].mxu0 %v14051_v63  ;;  %30816 = vst [vmem:[#allocation187_spill] sm:$0xff] %v27187_v21  ;;  %v13828_v63 = vsel %vm238_vm1, %v17900_v0, 0  ;;  %v14091_v0 = vand.u32 4294901760, %v14090_v46  ;;  %v30824_v46 = vand.u32 4294901760, %v30731_v39  ;;  %v14111_v39 = vand.u32 4294901760, %v14110_v12  ;;  %v17906_v12 = vld [vmem:[%s24195_s21 + $0x1a1] sm:$0xff] }
 0x3f5   : > { %21850 = vmatprep.mubr.f32.mxu0 %v14061_v24  ;;  %v14100_v45 = vsub.f32 %v27139_v10, %v30817_v43  ;;  %v27203_v43 = vsub.f32 %v13822_v60, %v27180_v59  ;;  %v27212_v54 = vand.u32 4294901760, %v13828_v63  ;;  %v14120_v60 = vsub.f32 %v27166_v2, %v30822_v49  ;;  %v17905_v2 = vld [vmem:[%s24195_s21 + $0x199] sm:$0xff] }
 0x3f6   : > { %20495 = vmatmul.mubr.f32.gmra.mrb[10].mxu1 %v30818_v17  ;;  %v27210_v17 = vsub.f32 %v13825_v33, %v27187_v21  ;;  %v27217_v24 = vand.u32 4294901760, %v13831_v23  ;;  %v30825_v33 = vand.u32 4294901760, %v30732_v30  ;;  %v30827_v10 = vand.u32 4294901760, %v27178_v53 }
 0x3f7   : > { %20497 = vmatprep.mubr.f32.mxu1 %v30819_v32  ;;  %30821 = vst [vmem:[#allocation194_spill] sm:$0xff] %v27212_v54  ;;  %v14101_v32 = vand.u32 4294901760, %v14100_v45 }
 0x3f8   : > { %21851 = vmatmul.mubr.f32.gmra.mrb[14].mxu0 %v14071_v48  ;;  %30823 = vst [vmem:[#allocation196_spill] sm:$0xff] %v27217_v24  ;;  %v13834_v48 = vsel %vm238_vm1, %v17902_v9, 0  ;;  %v14140_v49 = vsub.f32 %v27178_v53, %v30827_v10  ;;  %v13840_v10 = vsel %vm238_vm1, %v17904_v55, 0  ;;  %v30830_v9 = vand.u32 4294901760, %v30733_v26 }
 0x3f9   : > { %21853 = vmatprep.mubr.f32.mxu0 %v14081_v1  ;;  %v30826_v1 = vand.u32 4294901760, %v27175_v62  ;;  %v27238_v30 = vand.u32 4294901760, %v13834_v48 }
 0x3fa   : > { %20498 = vmatmul.mubr.f32.gmra.mrb[12].mxu1 %v30824_v46  ;;  %v27236_v46 = vsub.f32 %v13828_v63, %v27212_v54  ;;  %v30831_v63 = vand.u32 4294901760, %v30734_v56  ;;  %v14141_v53 = vand.u32 4294901760, %v14140_v49 }
 0x3fb   : > { %20500 = vmatprep.mubr.f32.mxu1 %v30825_v33  ;;  %v14130_v45 = vsub.f32 %v27175_v62, %v30826_v1  ;;  %30828 = vst [vmem:[#allocation202_spill] sm:$0xff] %v27238_v30  ;;  %v14121_v33 = vand.u32 4294901760, %v14120_v60  ;;  %v27241_v1 = vsub.f32 %v13831_v23, %v27217_v24  ;;  %v27243_v62 = vand.u32 4294901760, %v13837_v50 }
 0x3fc   : > { %21854 = vmatmul.mubr.f32.gmra.mrb[16].mxu0 %v14091_v0  ;;  %v13843_v0 = vsel %vm238_vm1, %v17905_v2, 0  ;;  %v30833_v60 = vand.u32 4294901760, %v27210_v17  ;;  %v29687_v26 = vand.u32 4294901760, %v27236_v46  ;;  %v27262_v2 = vand.u32 4294901760, %v13840_v10 }
 0x3fd   : > { %21856 = vmatprep.mubr.f32.mxu0 %v14101_v32  ;;  %30829 = vst [vmem:[#allocation205_spill] sm:$0xff] %v27243_v62  ;;  %v14131_v16 = vand.u32 4294901760, %v14130_v45  ;;  %v30832_v32 = vand.u32 4294901760, %v27203_v43  ;;  %v27266_v45 = vsub.f32 %v13837_v50, %v27243_v62  ;;  %v27268_v49 = vand.u32 4294901760, %v13843_v0 }
 0x3fe   : > { %20501 = vmatmul.mubr.f32.gmra.mrb[14].mxu1 %v30830_v9  ;;  %v14160_v55 = vsub.f32 %v27210_v17, %v30833_v60  ;;  %v27260_v9 = vsub.f32 %v13834_v48, %v27238_v30  ;;  %30834 = vst [vmem:[#allocation206_spill] sm:$0xff] %v27262_v2  ;;  %v27280_v50 = vsub.f32 %v13840_v10, %v27262_v2 }
 0x3ff   : > { %20503 = vmatprep.mubr.f32.mxu1 %v30831_v63  ;;  %v14150_v23 = vsub.f32 %v27203_v43, %v30832_v32  ;;  %30835 = vst [vmem:[#allocation207_spill] sm:$0xff] %v27268_v49  ;;  %v30836_v63 = vand.u32 4294901760, %v30735_v15  ;;  %v30837_v32 = vand.u32 4294901760, %v30736_v14  ;;  %v30839_v15 = vand.u32 4294901760, %v27241_v1 }
 0x400   : > { %21857 = vmatmul.mubr.f32.gmra.mrb[18].mxu0 %v14111_v39  ;;  %v13846_v39 = vsel %vm238_vm1, %v17906_v12, 0  ;;  %v29686_v60 = vand.u32 4294901760, %v27260_v9  ;;  %v14161_v12 = vand.u32 4294901760, %v14160_v55  ;;  %v29684_v55 = vand.u32 4294901760, %v27280_v50 }
 0x401   : > { %21859 = vmatprep.mubr.f32.mxu0 %v14121_v33  ;;  %v14151_v48 = vand.u32 4294901760, %v14150_v23  ;;  %v14170_v33 = vsub.f32 %v27236_v46, %v29687_v26  ;;  %v27282_v56 = vand.u32 4294901760, %v13846_v39  ;;  %v14180_v14 = vsub.f32 %v27241_v1, %v30839_v15  ;;  %v30880_v26 = vld [vmem:[#allocation168_spill] sm:$0xff] }
 0x402   : > { %20504 = vmatmul.mubr.f32.gmra.mrb[16].mxu1 %v30836_v63  ;;  %v29685_v23 = vand.u32 4294901760, %v27266_v45  ;;  %v30840_v63 = vand.u32 4294901760, %v30737_v29 }
 0x403   : > { %20506 = vmatprep.mubr.f32.mxu1 %v30837_v32  ;;  %30838 = vst [vmem:[#allocation211_spill] sm:$0xff] %v27282_v56  ;;  %v30841_v32 = vand.u32 4294901760, %v30738_v34  ;;  %v14171_v10 = vand.u32 4294901760, %v14170_v33  ;;  %v27300_v15 = vsub.f32 %v13846_v39, %v27282_v56  ;;  %v30843_v33 = vand.u32 4294901760, %v30742_v35 }
 0x404   : > { %21860 = vmatmul.mubr.f32.gmra.mrb[20].mxu0 %v14131_v16  ;;  %v27289_v16 = vsub.f32 %v13843_v0, %v27268_v49  ;;  %v14181_v0 = vand.u32 4294901760, %v14180_v14  ;;  %v14200_v29 = vsub.f32 %v27266_v45, %v29685_v23  ;;  %v14210_v39 = vsub.f32 %v27280_v50, %v29684_v55  ;;  %v30877_v55 = vld [vmem:[#allocation134_spill] sm:$0xff]  ;;  %v30878_v23 = vld [vmem:[#allocation13_spill] sm:$0xff] }
 0x405   : > { %21862 = vmatprep.mubr.f32.mxu0 %v14141_v53  ;;  %v14190_v53 = vsub.f32 %v27260_v9, %v29686_v60  ;;  %v30845_v35 = vand.u32 4294901760, %v30748_v57  ;;  %v30848_v57 = vand.u32 4294901760, %v26705_v41  ;;  %v30852_v41 = vld [vmem:[#allocation233_spill] sm:$0xff]  ;;  %v30879_v60 = vld [vmem:[#allocation160_spill] sm:$0xff] }
 0x406   : > { %20507 = vmatmul.mubr.f32.gmra.mrb[18].mxu1 %v30840_v63  ;;  %v29683_v34 = vand.u32 4294901760, %v27289_v16  ;;  %v14201_v14 = vand.u32 4294901760, %v14200_v29  ;;  %v30847_v29 = vand.u32 4294901760, %v26688_v22  ;;  %v17775_v22 = vld [vmem:[%s28967_s1 + $0xc] sm:$0xf] }
 0x407   : > { %20509 = vmatprep.mubr.f32.mxu1 %v30841_v32  ;;  %v14191_v63 = vand.u32 4294901760, %v14190_v53 }
 0x408   : > { %21863 = vmatmul.mubr.f32.gmra.mrb[22].mxu0 %v14151_v48  ;;  %v30842_v48 = vand.u32 4294901760, %v30741_v7  ;;  %v14220_v32 = vsub.f32 %v27289_v16, %v29683_v34  ;;  %v30844_v7 = vand.u32 4294901760, %v30747_v6  ;;  %v30876_v34 = vld [vmem:[#allocation128_spill] sm:$0xff] }
 0x409   : > { %21865 = vmatprep.mubr.f32.mxu0 %v14161_v12  ;;  %v29682_v12 = vand.u32 4294901760, %v27300_v15 }
 0x40a   : > { %20510 = vmatmul.mubr.f32.gmra.mrb[20].mxu1 %v30842_v48  ;;  %v14221_v48 = vand.u32 4294901760, %v14220_v32  ;;  %v30856_v32 = vld [vmem:[#allocation127_spill] sm:$0xff] }
 0x40b   : > { %20512 = vmatprep.mubr.f32.mxu1 %v30843_v33  ;;  %v14230_v53 = vsub.f32 %v27300_v15, %v29682_v12  ;;  %v30849_v33 = vand.u32 4294901760, %v26711_v52  ;;  %v6072_v52 = vsel %vm335_vm0, %v17775_v22, 0  ;;  %v30872_v22 = vld [vmem:[#allocation59_spill] sm:$0xff] }
 0x40c   : > { %21866 = vmatmul.mubr.f32.gmra.mrb[24].mxu0 %v14171_v10  ;;  %v14211_v10 = vand.u32 4294901760, %v14210_v39  ;;  %v30853_v39 = vand.u32 4294901760, %v26741_v36  ;;  %v30862_v36 = vld [vmem:[#allocation91_spill] sm:$0xff] }
 0x40d   : > { %21868 = vmatprep.mubr.f32.mxu0 %v14181_v0  ;;  %v30846_v0 = vand.u32 4294901760, %v30754_v31  ;;  %v14231_v6 = vand.u32 4294901760, %v14230_v53  ;;  %v30851_v31 = vand.u32 4294901760, %v26732_v58  ;;  %v30858_v58 = vld [vmem:[#allocation78_spill] sm:$0xff]  ;;  %v30875_v12 = vld [vmem:[#allocation75_spill] sm:$0xff] }
 0x40e   : > { %20513 = vmatmul.mubr.f32.gmra.mrb[22].mxu1 %v30844_v7  ;;  %v27349_v7 = vand.u32 4294901760, %v6072_v52  ;;  %v30863_v53 = vld [vmem:[#allocation18_spill] sm:$0xff] }
 0x40f   : > { %20515 = vmatprep.mubr.f32.mxu1 %v30845_v35  ;;  %v30859_v35 = vld [vmem:[#allocation149_spill] sm:$0xff] }
 0x410   : > { %21869 = vmatmul.mubr.f32.gmra.mrb[26].mxu0 %v14191_v63  ;;  %v30850_v63 = vand.u32 4294901760, %v26723_v5  ;;  %v30854_v5 = vld [vmem:[#allocation217_spill] sm:$0xff]  ;;  %30857 = vst [vmem:[#allocation213_spill] sm:$0xff] %v27349_v7 }
 0x411   : > { %21871 = vmatprep.mubr.f32.mxu0 %v14201_v14  ;;  %v30855_v14 = vld [vmem:[#allocation147_spill] sm:$0xff] }
 0x412   : > { %20516 = vmatmul.mubr.f32.gmra.mrb[24].mxu1 %v30846_v0  ;;  %v30865_v0 = vld [vmem:[#allocation25_spill] sm:$0xff] }
 0x413   : > { %20518 = vmatprep.mubr.f32.mxu1 %v30847_v29  ;;  %v30866_v29 = vld [vmem:[#allocation161_spill] sm:$0xff] }
 0x414   : > { %21872 = vmatmul.mubr.f32.gmra.mrb[28].mxu0 %v14211_v10  ;;  %v30861_v10 = vld [vmem:[#allocation136_spill] sm:$0xff] }
 0x415   : > { %21874 = vmatprep.mubr.f32.mxu0 %v14221_v48  ;;  %v30864_v48 = vld [vmem:[#allocation20_spill] sm:$0xff] }
 0x416   : > { %20519 = vmatmul.mubr.f32.gmra.mrb[26].mxu1 %v30848_v57  ;;  %v30869_v57 = vld [vmem:[#allocation163_spill] sm:$0xff] }
 0x417   : > { %20521 = vmatprep.mubr.f32.mxu1 %v30849_v33  ;;  %v30870_v33 = vld [vmem:[#allocation54_spill] sm:$0xff] }
 0x418   : > { %21875 = vmatmul.mubr.f32.gmra.mrb[30].mxu0 %v14231_v6  ;;  %v30868_v6 = vld [vmem:[#allocation34_spill] sm:$0xff] }
 0x419   : > { %21879 = vmatprep.mubr.f32.mxu0 %v26899_v42 }
 0x41a   : > { %20522 = vmatmul.mubr.f32.gmra.mrb[28].mxu1 %v30850_v63  ;;  %v30871_v63 = vld [vmem:[#allocation169_spill] sm:$0xff] }
 0x41b   : > { %20524 = vmatprep.mubr.f32.mxu1 %v30851_v31  ;;  %v30873_v31 = vld [vmem:[#allocation166_spill] sm:$0xff] }
 0x41c   : > { %21880 = vmatmul.mubr.f32.vlgmr.msra.gmra.mrb[0].mxu0 %v26908_v8 }
 0x41d   : > { %21882 = vmatprep.mubr.f32.mxu0 %v30852_v41  ;;  %21928 = vmatpush3.msra.mxu0 %v26828_v51  ;;  %v30860_v51 = vld [vmem:[#allocation153_spill] sm:$0xff] }
 0x41e   : > { %20525 = vmatmul.mubr.f32.gmra.mrb[30].mxu1 %v30853_v39  ;;  %21977 = vmatprep.subr.mxu0 %v30854_v5  ;;  %v30874_v39 = vld [vmem:[#allocation86_spill] sm:$0xff] }
 0x41f   : > { %20529 = vmatprep.mubr.f32.mxu1 %v30855_v14 }
 0x420   : > { %21883 = vmatmul.mubr.f32.gmra.mrb[2].mxu0 %v30856_v32 }
 0x421   : > { %21885 = vmatprep.mubr.f32.mxu0 %v30858_v58  ;;  %v17750_v58 = vld [vmem:[%s24195_s21 + $0x68] sm:$0xff] }
 0x422   : > { %20530 = vmatmul.mubr.f32.vlgmr.msra.gmra.mrb[0].mxu1 %v30859_v35  ;;  %v5997_v32 = vsel %vm238_vm1, %v17750_v58, 0 }
 0x423   : > { %20578 = vmatpush3.msra.mxu1 %v26233_v44  ;;  %20532 = vmatprep.mubr.f32.mxu1 %v30860_v51  ;;  %v30867_v44 = vld [vmem:[#allocation157_spill] sm:$0xff]  ;;  %v27548_v58 = vand.u32 4294901760, %v5997_v32 }
 0x424   : > { %21886 = vmatmul.mubr.f32.gmra.mrb[4].mxu0 %v30861_v10  ;;  %20627 = vmatprep.subr.mxu1 %v27349_v7 }
 0x425   : > { %21888 = vmatprep.mubr.f32.mxu0 %v30862_v36  ;;  %30932 = vst [vmem:[#allocation214_spill] sm:$0xff] %v27548_v58 }
 0x426   : > { %20533 = vmatmul.mubr.f32.gmra.mrb[2].mxu1 %v30863_v53 }
 0x427   : > { %20535 = vmatprep.mubr.f32.mxu1 %v30864_v48 }
 0x428   : > { %21889 = vmatmul.mubr.f32.gmra.mrb[6].mxu0 %v26969_v13 }
 0x429   : > { %21891 = vmatprep.mubr.f32.mxu0 %v26983_v25  ;;  %v30903_v25 = vld [vmem:[#allocation99_spill] sm:$0xff] }
 0x42a   : > { %20536 = vmatmul.mubr.f32.gmra.mrb[4].mxu1 %v30865_v0 }
 0x42b   : > { %20538 = vmatprep.mubr.f32.mxu1 %v30866_v29 }
 0x42c   : > { %21892 = vmatmul.mubr.f32.gmra.mrb[8].mxu0 %v30867_v44  ;;  %v30901_v44 = vld [vmem:[#allocation83_spill] sm:$0xff] }
 0x42d   : > { %21894 = vmatprep.mubr.f32.mxu0 %v30868_v6 }
 0x42e   : > { %20539 = vmatmul.mubr.f32.gmra.mrb[6].mxu1 %v30869_v57 }
 0x42f   : > { %20541 = vmatprep.mubr.f32.mxu1 %v30870_v33 }
 0x430   : > { %21895 = vmatmul.mubr.f32.gmra.mrb[10].mxu0 %v30871_v63  ;;  %v30900_v63 = vld [vmem:[#allocation126_spill] sm:$0xff] }
 0x431   : > { %21897 = vmatprep.mubr.f32.mxu0 %v27035_v61  ;;  %v30898_v61 = vld [vmem:[#allocation215_spill] sm:$0xff] }
 0x432   : > { %20542 = vmatmul.mubr.f32.gmra.mrb[8].mxu1 %v30872_v22 }
 0x433   : > { %20544 = vmatprep.mubr.f32.mxu1 %v30873_v31 }
 0x434   : > { %21898 = vmatmul.mubr.f32.gmra.mrb[12].mxu0 %v27045_v4  ;;  %v30895_v4 = vld [vmem:[#allocation212_spill] sm:$0xff] }
 0x435   : > { %21900 = vmatprep.mubr.f32.mxu0 %v27047_v18  ;;  %v30894_v18 = vld [vmem:[#allocation208_spill] sm:$0xff] }
 0x436   : > { %20545 = vmatmul.mubr.f32.gmra.mrb[10].mxu1 %v30874_v39 }
 0x437   : > { %20547 = vmatprep.mubr.f32.mxu1 %v30875_v12 }
 0x438   : > { %21901 = vmatmul.mubr.f32.gmra.mrb[14].mxu0 %v27076_v40  ;;  %v30881_v40 = vld [vmem:[#allocation180_spill] sm:$0xff] }
 0x439   : > { %21903 = vmatprep.mubr.f32.mxu0 %v27087_v38  ;;  %v30882_v38 = vld [vmem:[#allocation188_spill] sm:$0xff] }
 0x43a   : > { %20548 = vmatmul.mubr.f32.gmra.mrb[12].mxu1 %v30876_v34 }
 0x43b   : > { %20550 = vmatprep.mubr.f32.mxu1 %v30877_v55 }
 0x43c   : > { %21904 = vmatmul.mubr.f32.gmra.mrb[16].mxu0 %v27105_v47  ;;  %v30883_v47 = vld [vmem:[#allocation197_spill] sm:$0xff] }
 0x43d   : > { %21906 = vmatprep.mubr.f32.mxu0 %v27113_v3  ;;  %v30884_v3 = vld [vmem:[#allocation198_spill] sm:$0xff] }
 0x43e   : > { %20551 = vmatmul.mubr.f32.gmra.mrb[14].mxu1 %v30878_v23 }
 0x43f   : > { %20553 = vmatprep.mubr.f32.mxu1 %v30879_v60 }
 0x440   : > { %21907 = vmatmul.mubr.f32.gmra.mrb[18].mxu0 %v27133_v19  ;;  %v30885_v19 = vld [vmem:[#allocation199_spill] sm:$0xff] }
 0x441   : > { %21909 = vmatprep.mubr.f32.mxu0 %v27141_v27  ;;  %v30886_v27 = vld [vmem:[#allocation171_spill] sm:$0xff] }
 0x442   : > { %20554 = vmatmul.mubr.f32.gmra.mrb[16].mxu1 %v30880_v26 }
 0x443   : > { %20556 = vmatprep.mubr.f32.mxu1 %v30881_v40 }
 0x444   : > { %21910 = vmatmul.mubr.f32.gmra.mrb[20].mxu0 %v27149_v28  ;;  %v30887_v28 = vld [vmem:[#allocation177_spill] sm:$0xff] }
 0x445   : > { %21912 = vmatprep.mubr.f32.mxu0 %v27151_v37  ;;  %v30888_v37 = vld [vmem:[#allocation186_spill] sm:$0xff] }
 0x446   : > { %20557 = vmatmul.mubr.f32.gmra.mrb[18].mxu1 %v30882_v38 }
 0x447   : > { %20559 = vmatprep.mubr.f32.mxu1 %v30883_v47 }
 0x448   : > { %21913 = vmatmul.mubr.f32.gmra.mrb[22].mxu0 %v27180_v59  ;;  %v30889_v59 = vld [vmem:[#allocation190_spill] sm:$0xff] }
 0x449   : > { %21915 = vmatprep.mubr.f32.mxu0 %v27187_v21  ;;  %v27406_v21 = vsub.f32 %v6072_v52, %v27349_v7 }
 0x44a   : > { %20560 = vmatmul.mubr.f32.gmra.mrb[20].mxu1 %v30884_v3 }
 0x44b   : > { %20562 = vmatprep.mubr.f32.mxu1 %v30885_v19 }
 0x44c   : > { %21916 = vmatmul.mubr.f32.gmra.mrb[24].mxu0 %v27212_v54  ;;  %v30891_v54 = vld [vmem:[#allocation204_spill] sm:$0xff] }
 0x44d   : > { %21918 = vmatprep.mubr.f32.mxu0 %v27217_v24  ;;  %v30890_v24 = vld [vmem:[#allocation201_spill] sm:$0xff] }
 0x44e   : > { %20563 = vmatmul.mubr.f32.gmra.mrb[22].mxu1 %v30886_v27 }
 0x44f   : > { %20565 = vmatprep.mubr.f32.mxu1 %v30887_v28 }
 0x450   : > { %21919 = vmatmul.mubr.f32.gmra.mrb[26].mxu0 %v27238_v30  ;;  %v27413_v30 = vand.u32 4294901760, %v27406_v21 }
 0x451   : > { %21921 = vmatprep.mubr.f32.mxu0 %v27243_v62  ;;  %v30893_v62 = vld [vmem:[#allocation232_spill] sm:$0xff] }
 0x452   : > { %20566 = vmatmul.mubr.f32.gmra.mrb[24].mxu1 %v30888_v37  ;;  %30892 = vst [vmem:[#allocation218_spill] sm:$0xff] %v27413_v30  ;;  %v6464_v52 = vsub.f32 %v27406_v21, %v27413_v30  ;;  %v30902_v30 = vld [vmem:[#allocation143_spill] sm:$0xff] }
 0x453   : > { %20568 = vmatprep.mubr.f32.mxu1 %v30889_v59 }
 0x454   : > { %21922 = vmatmul.mubr.f32.gmra.mrb[28].mxu0 %v27262_v2  ;;  %v30896_v2 = vld [vmem:[#allocation109_spill] sm:$0xff]  ;;  %v27427_v6 = vand.u32 4294901760, %v6464_v52 }
 0x455   : > { %21924 = vmatprep.mubr.f32.mxu0 %v27268_v49  ;;  %v30897_v49 = vld [vmem:[#allocation130_spill] sm:$0xff]  ;;  %v30907_v52 = vld [vmem:[#allocation185_spill] sm:$0xff] }
 0x456   : > { %20569 = vmatmul.mubr.f32.gmra.mrb[26].mxu1 %v30890_v24 }
 0x457   : > { %20571 = vmatprep.mubr.f32.mxu1 %v30891_v54 }
 0x458   : > { %21925 = vmatmul.mubr.f32.gmra.mrb[30].mxu0 %v27282_v56  ;;  %v30899_v56 = vld [vmem:[#allocation231_spill] sm:$0xff] }
 0x459   : > { %21929 = vmatprep.mubr.f32.mxu0 %v30893_v62 }
 0x45a   : > { %20572 = vmatmul.mubr.f32.gmra.mrb[28].mxu1 %v30894_v18 }
 0x45b   : > { %20574 = vmatprep.mubr.f32.mxu1 %v30895_v4 }
 0x45c   : > { %21930 = vmatmul.mubr.f32.vlgmr.msra.gmra.mrb[0].mxu0 %v30896_v2 }
 0x45d   : > { %21932 = vmatprep.mubr.f32.mxu0 %v30897_v49  ;;  %21978 = vmatpush3.msra.mxu0 %v30854_v5 }
 0x45e   : > { %20575 = vmatmul.mubr.f32.gmra.mrb[30].mxu1 %v30898_v61  ;;  %22027 = vmatprep.subr.mxu0 %v30899_v56 }
 0x45f   : > { %20579 = vmatprep.mubr.f32.mxu1 %v30855_v14  ;;  %v30904_v14 = vld [vmem:[#allocation40_spill] sm:$0xff] }
 0x460   : > { %21933 = vmatmul.mubr.f32.gmra.mrb[2].mxu0 %v30900_v63 }
 0x461   : > { %21935 = vmatprep.mubr.f32.mxu0 %v30901_v44 }
 0x462   : > { %20580 = vmatmul.mubr.f32.vlgmr.msra.gmra.mrb[0].mxu1 %v30859_v35  ;;  %v30905_v35 = vld [vmem:[#allocation173_spill] sm:$0xff] }
 0x463   : > { %20628 = vmatpush3.msra.mxu1 %v27349_v7  ;;  %20582 = vmatprep.mubr.f32.mxu1 %v30860_v51  ;;  %v30906_v51 = vld [vmem:[#allocation179_spill] sm:$0xff] }
 0x464   : > { %21936 = vmatmul.mubr.f32.gmra.mrb[4].mxu0 %v30902_v30  ;;  %20677 = vmatprep.subr.mxu1 %v27427_v6 }
 0x465   : > { %21938 = vmatprep.mubr.f32.mxu0 %v30903_v25 }
 0x466   : > { %20583 = vmatmul.mubr.f32.gmra.mrb[2].mxu1 %v30863_v53  ;;  %v30908_v53 = vld [vmem:[#allocation223_spill] sm:$0xff] }
 0x467   : > { %20585 = vmatprep.mubr.f32.mxu1 %v30864_v48  ;;  %v30909_v48 = vld [vmem:[#allocation226_spill] sm:$0xff] }
 0x468   : > { %21939 = vmatmul.mubr.f32.gmra.mrb[6].mxu0 %v26995_v11 }
 0x469   : > { %21941 = vmatprep.mubr.f32.mxu0 %v30904_v14 }
 0x46a   : > { %20586 = vmatmul.mubr.f32.gmra.mrb[4].mxu1 %v30865_v0  ;;  %v30910_v0 = vld [vmem:[#allocation228_spill] sm:$0xff] }
 0x46b   : > { %20588 = vmatprep.mubr.f32.mxu1 %v30866_v29  ;;  %v30911_v29 = vld [vmem:[#allocation141_spill] sm:$0xff] }
 0x46c   : > { %21942 = vmatmul.mubr.f32.gmra.mrb[8].mxu0 %v30905_v35 }
 0x46d   : > { %21944 = vmatprep.mubr.f32.mxu0 %v30906_v51 }
 0x46e   : > { %20589 = vmatmul.mubr.f32.gmra.mrb[6].mxu1 %v30869_v57  ;;  %v30912_v57 = vld [vmem:[#allocation132_spill] sm:$0xff] }
 0x46f   : > { %20591 = vmatprep.mubr.f32.mxu1 %v30870_v33  ;;  %v30913_v33 = vld [vmem:[#allocation151_spill] sm:$0xff] }
 0x470   : > { %21945 = vmatmul.mubr.f32.gmra.mrb[10].mxu0 %v30907_v52 }
 0x471   : > { %21947 = vmatprep.mubr.f32.mxu0 %v30908_v53 }
 0x472   : > { %20592 = vmatmul.mubr.f32.gmra.mrb[8].mxu1 %v30872_v22  ;;  %v30914_v22 = vld [vmem:[#allocation62_spill] sm:$0xff] }
 0x473   : > { %20594 = vmatprep.mubr.f32.mxu1 %v30873_v31  ;;  %v30917_v31 = vld [vmem:[#allocation175_spill] sm:$0xff] }
 0x474   : > { %21948 = vmatmul.mubr.f32.gmra.mrb[12].mxu0 %v30909_v48 }
 0x475   : > { %21950 = vmatprep.mubr.f32.mxu0 %v30910_v0 }
 0x476   : > { %20595 = vmatmul.mubr.f32.gmra.mrb[10].mxu1 %v30874_v39  ;;  %v17745_v39 = vld [vmem:[%s24195_s21 + $0x30] sm:$0xff] }
 0x477   : > { %20597 = vmatprep.mubr.f32.mxu1 %v30875_v12  ;;  %v30915_v12 = vld [vmem:[#allocation172_spill] sm:$0xff] }
 0x478   : > { %21951 = vmatmul.mubr.f32.gmra.mrb[14].mxu0 %v30911_v29 }
 0x479   : > { %21953 = vmatprep.mubr.f32.mxu0 %v30912_v57 }
 0x47a   : > { %20598 = vmatmul.mubr.f32.gmra.mrb[12].mxu1 %v30876_v34  ;;  %v30916_v34 = vld [vmem:[#allocation174_spill] sm:$0xff] }
 0x47b   : > { %20600 = vmatprep.mubr.f32.mxu1 %v30877_v55  ;;  %v17743_v55 = vld [vmem:[%s24195_s21 + $0x18] sm:$0xff] }
 0x47c   : > { %21954 = vmatmul.mubr.f32.gmra.mrb[16].mxu0 %v27131_v20 }
 0x47d   : > { %21956 = vmatprep.mubr.f32.mxu0 %v30913_v33 }
 0x47e   : > { %20601 = vmatmul.mubr.f32.gmra.mrb[14].mxu1 %v30878_v23  ;;  %v17744_v23 = vld [vmem:[%s24195_s21 + $0x20] sm:$0xff] }
 0x47f   : > { %20603 = vmatprep.mubr.f32.mxu1 %v30879_v60  ;;  %v5976_v60 = vsel %vm238_vm1, %v17743_v55, 0  ;;  %v17747_v55 = vld [vmem:[%s24195_s21 + $0x48] sm:$0xff] }
 0x480   : > { %21957 = vmatmul.mubr.f32.gmra.mrb[18].mxu0 %v30914_v22 }
 0x481   : > { %21959 = vmatprep.mubr.f32.mxu0 %v30915_v12 }
 0x482   : > { %20604 = vmatmul.mubr.f32.gmra.mrb[16].mxu1 %v30880_v26  ;;  %v5979_v26 = vsel %vm238_vm1, %v17744_v23, 0  ;;  %v5988_v23 = vsel %vm238_vm1, %v17747_v55, 0 }
 0x483   : > { %20606 = vmatprep.mubr.f32.mxu1 %v30881_v40  ;;  %v27477_v40 = vand.u32 4294901760, %v5976_v60  ;;  %v27486_v13 = vand.u32 4294901760, %v5979_v26  ;;  %v27511_v55 = vand.u32 4294901760, %v5988_v23 }
 0x484   : > { %21960 = vmatmul.mubr.f32.gmra.mrb[20].mxu0 %v30916_v34 }
 0x485   : > { %21962 = vmatprep.mubr.f32.mxu0 %v30917_v31  ;;  %30918 = vst [vmem:[#allocation220_spill] sm:$0xff] %v27477_v40  ;;  %30919 = vst [vmem:[#allocation222_spill] sm:$0xff] %v27486_v13  ;;  %v27501_v7 = vsub.f32 %v5979_v26, %v27486_v13 }
 0x486   : > { %20607 = vmatmul.mubr.f32.gmra.mrb[18].mxu1 %v30882_v38  ;;  %v5982_v38 = vsel %vm238_vm1, %v17745_v39, 0  ;;  %v17748_v39 = vld [vmem:[%s24195_s21 + $0x50] sm:$0xff]  ;;  %30925 = vst [vmem:[#allocation193_spill] sm:$0xff] %v27511_v55 }
 0x487   : > { %20609 = vmatprep.mubr.f32.mxu1 %v30883_v47  ;;  %v17746_v47 = vld [vmem:[%s24195_s21 + $0x38] sm:$0xff]  ;;  %v27492_v36 = vand.u32 4294901760, %v5982_v38  ;;  %30922 = vst [vmem:[#allocation229_spill] sm:$0xff] %v27501_v7  ;;  %v5991_v10 = vsel %vm238_vm1, %v17748_v39, 0 }
 0x488   : > { %21963 = vmatmul.mubr.f32.gmra.mrb[22].mxu0 %v27203_v43 }
 0x489   : > { %21965 = vmatprep.mubr.f32.mxu0 %v27210_v17  ;;  %30921 = vst [vmem:[#allocation227_spill] sm:$0xff] %v27492_v36 }
 0x48a   : > { %20610 = vmatmul.mubr.f32.gmra.mrb[20].mxu1 %v30884_v3  ;;  %v27490_v3 = vsub.f32 %v5976_v60, %v27477_v40  ;;  %v17749_v60 = vld [vmem:[%s24195_s21 + $0x60] sm:$0xff] }
 0x48b   : > { %20612 = vmatprep.mubr.f32.mxu1 %v30885_v19  ;;  %v5985_v19 = vsel %vm238_vm1, %v17746_v47, 0  ;;  %v5994_v26 = vsel %vm238_vm1, %v17749_v60, 0  ;;  %v27523_v47 = vand.u32 4294901760, %v5991_v10  ;;  %v27532_v60 = vsub.f32 %v5988_v23, %v27511_v55 }
 0x48c   : > { %21966 = vmatmul.mubr.f32.gmra.mrb[24].mxu0 %v27236_v46  ;;  %30920 = vst [vmem:[#allocation225_spill] sm:$0xff] %v27490_v3 }
 0x48d   : > { %21968 = vmatprep.mubr.f32.mxu0 %v27241_v1  ;;  %30927 = vst [vmem:[#allocation203_spill] sm:$0xff] %v27523_v47  ;;  %30929 = vst [vmem:[#allocation209_spill] sm:$0xff] %v27532_v60  ;;  %v27546_v23 = vsub.f32 %v5991_v10, %v27523_v47  ;;  %v17754_v47 = vld [vmem:[%s24195_s21 + $0x98] sm:$0xff] }
 0x48e   : > { %20613 = vmatmul.mubr.f32.gmra.mrb[22].mxu1 %v30886_v27  ;;  %v27503_v27 = vand.u32 4294901760, %v5985_v19 }
 0x48f   : > { %20615 = vmatprep.mubr.f32.mxu1 %v30887_v28  ;;  %v27509_v28 = vsub.f32 %v5982_v38, %v27492_v36  ;;  %v17751_v36 = vld [vmem:[%s24195_s21 + $0x78] sm:$0xff] }
 0x490   : > { %21969 = vmatmul.mubr.f32.gmra.mrb[26].mxu0 %v27260_v9  ;;  %30923 = vst [vmem:[#allocation230_spill] sm:$0xff] %v27503_v27  ;;  %v27521_v38 = vsub.f32 %v5985_v19, %v27503_v27  ;;  %v27536_v19 = vand.u32 4294901760, %v5994_v26  ;;  %v17753_v27 = vld [vmem:[%s24195_s21 + $0x90] sm:$0xff] }
 0x491   : > { %21971 = vmatprep.mubr.f32.mxu0 %v27266_v45  ;;  %30924 = vst [vmem:[#allocation192_spill] sm:$0xff] %v27509_v28  ;;  %v30934_v55 = vand.u32 4294901760, %v27509_v28 }
 0x492   : > { %20616 = vmatmul.mubr.f32.gmra.mrb[24].mxu1 %v30888_v37  ;;  %30926 = vst [vmem:[#allocation200_spill] sm:$0xff] %v27521_v38  ;;  %30930 = vst [vmem:[#allocation210_spill] sm:$0xff] %v27536_v19  ;;  %v6000_v37 = vsel %vm238_vm1, %v17751_v36, 0  ;;  %v27560_v10 = vsub.f32 %v5994_v26, %v27536_v19 }
 0x493   : > { %20618 = vmatprep.mubr.f32.mxu1 %v30889_v59  ;;  %v30928_v59 = vand.u32 4294901760, %v27490_v3  ;;  %v27562_v13 = vand.u32 4294901760, %v6000_v37 }
 0x494   : > { %21972 = vmatmul.mubr.f32.gmra.mrb[28].mxu0 %v27280_v50  ;;  %30935 = vst [vmem:[#allocation216_spill] sm:$0xff] %v27560_v10 }
 0x495   : > { %21974 = vmatprep.mubr.f32.mxu0 %v27289_v16  ;;  %v6143_v39 = vsub.f32 %v27490_v3, %v30928_v59  ;;  %v30931_v59 = vand.u32 4294901760, %v30893_v62  ;;  %v30933_v3 = vand.u32 4294901760, %v27501_v7  ;;  %v6163_v62 = vsub.f32 %v27509_v28, %v30934_v55  ;;  %30936 = vst [vmem:[#allocation219_spill] sm:$0xff] %v27562_v13 }
 0x496   : > { %20619 = vmatmul.mubr.f32.gmra.mrb[26].mxu1 %v30890_v24  ;;  %v17752_v24 = vld [vmem:[%s24195_s21 + $0x80] sm:$0xff]  ;;  %v27592_v26 = vsub.f32 %v6000_v37, %v27562_v13  ;;  %v30945_v28 = vand.u32 4294901760, %v30901_v44 }
 0x497   : > { %20621 = vmatprep.mubr.f32.mxu1 %v30891_v54  ;;  %v6144_v54 = vand.u32 4294901760, %v6143_v39  ;;  %v6153_v36 = vsub.f32 %v27501_v7, %v30933_v3  ;;  %v6006_v39 = vsel %vm238_vm1, %v17753_v27, 0  ;;  %v30937_v3 = vand.u32 4294901760, %v30896_v2  ;;  %v17755_v27 = vld [vmem:[%s24195_s21 + $0xa8] sm:$0xff] }
 0x498   : > { %21975 = vmatmul.mubr.f32.gmra.mrb[30].mxu0 %v27300_v15  ;;  %v30938_v7 = vand.u32 4294901760, %v30897_v49  ;;  %v27583_v49 = vand.u32 4294901760, %v6006_v39  ;;  %30943 = vst [vmem:[#allocation133_spill] sm:$0xff] %v27592_v26 }
 0x499   : > { %21979 = vmatprep.mubr.f32.mxu0 %v30931_v59  ;;  %v29754_v59 = vand.u32 4294901760, %v27532_v60  ;;  %v6154_v2 = vand.u32 4294901760, %v6153_v36  ;;  %v17757_v36 = vld [vmem:[%s24195_s21 + $0xc0] sm:$0xff] }
 0x49a   : > { %20622 = vmatmul.mubr.f32.gmra.mrb[28].mxu1 %v30894_v18  ;;  %v6003_v18 = vsel %vm238_vm1, %v17752_v24, 0  ;;  %v27577_v24 = vsub.f32 %v5997_v32, %v27548_v58  ;;  %30942 = vst [vmem:[#allocation131_spill] sm:$0xff] %v27583_v49 }
 0x49b   : > { %20624 = vmatprep.mubr.f32.mxu1 %v30895_v4  ;;  %v30939_v4 = vand.u32 4294901760, %v27521_v38 }
 0x49c   : > { %21980 = vmatmul.mubr.f32.vlgmr.msra.gmra.mrb[0].mxu0 %v30937_v3  ;;  %30940 = vst [vmem:[#allocation221_spill] sm:$0xff] %v27577_v24  ;;  %v27581_v3 = vand.u32 4294901760, %v6003_v18  ;;  %v29759_v32 = vand.u32 4294901760, %v27577_v24 }
 0x49d   : > { %21982 = vmatprep.mubr.f32.mxu0 %v30938_v7  ;;  %22028 = vmatpush3.msra.mxu0 %v30899_v56  ;;  %v6173_v55 = vsub.f32 %v27521_v38, %v30939_v4  ;;  %v6009_v56 = vsel %vm238_vm1, %v17754_v47, 0  ;;  %v6164_v7 = vand.u32 4294901760, %v6163_v62  ;;  %v6183_v4 = vsub.f32 %v27532_v60, %v29754_v59 }
 0x49e   : > { %20625 = vmatmul.mubr.f32.gmra.mrb[30].mxu1 %v30898_v61  ;;  %30941 = vst [vmem:[#allocation224_spill] sm:$0xff] %v27581_v3  ;;  %22077 = vmatprep.subr.mxu0 %v30854_v5  ;;  %v17756_v61 = vld [vmem:[%s24195_s21 + $0xb0] sm:$0xff]  ;;  %v30944_v38 = vand.u32 4294901760, %v30900_v63  ;;  %v6012_v47 = vsel %vm238_vm1, %v17755_v27, 0  ;;  %v30946_v62 = vand.u32 4294901760, %v27546_v23  ;;  %v27605_v37 = vand.u32 4294901760, %v6009_v56 }
 0x49f   : > { %20629 = vmatprep.mubr.f32.mxu1 %v6144_v54  ;;  %v6174_v54 = vand.u32 4294901760, %v6173_v55  ;;  %v27608_v60 = vsub.f32 %v6003_v18, %v27581_v3  ;;  %v27611_v63 = vsub.f32 %v6006_v39, %v27583_v49  ;;  %v6015_v44 = vsel %vm238_vm1, %v17756_v61, 0 }
 0x4a0   : > { %21983 = vmatmul.mubr.f32.gmra.mrb[2].mxu0 %v30944_v38  ;;  %v6193_v59 = vsub.f32 %v27546_v23, %v30946_v62  ;;  %30947 = vst [vmem:[#allocation135_spill] sm:$0xff] %v27605_v37  ;;  %v6184_v38 = vand.u32 4294901760, %v6183_v4  ;;  %v30950_v55 = vand.u32 4294901760, %v27560_v10  ;;  %v27620_v18 = vand.u32 4294901760, %v6012_v47  ;;  %v17758_v62 = vld [vmem:[%s24195_s21 + $0xc8] sm:$0xff] }
 0x4a1   : > { %21985 = vmatprep.mubr.f32.mxu0 %v30945_v28  ;;  %30948 = vst [vmem:[#allocation139_spill] sm:$0xff] %v27608_v60  ;;  %30949 = vst [vmem:[#allocation150_spill] sm:$0xff] %v27611_v63  ;;  %v6018_v28 = vsel %vm238_vm1, %v17757_v36, 0  ;;  %v30952_v39 = vand.u32 4294901760, %v30902_v30  ;;  %v30953_v61 = vand.u32 4294901760, %v30903_v25  ;;  %v27631_v4 = vand.u32 4294901760, %v6015_v44 }
 0x4a2   : > { %20630 = vmatmul.mubr.f32.vlgmr.msra.gmra.mrb[0].mxu1 %v6154_v2  ;;  %v6203_v27 = vsub.f32 %v27560_v10, %v30950_v55  ;;  %v29762_v2 = vand.u32 4294901760, %v27592_v26  ;;  %30951 = vst [vmem:[#allocation154_spill] sm:$0xff] %v27620_v18  ;;  %v27633_v36 = vand.u32 4294901760, %v6018_v28  ;;  %v17759_v55 = vld [vmem:[%s24195_s21 + $0xd8] sm:$0xff]  ;;  %v6213_v30 = vsub.f32 %v27577_v24, %v29759_v32  ;;  %v17760_v24 = vld [vmem:[%s24195_s21 + $0xe0] sm:$0xff] }
 0x4a3   : > { %20678 = vmatpush3.msra.mxu1 %v27427_v6  ;;  %20632 = vmatprep.mubr.f32.mxu1 %v6164_v7  ;;  %v6194_v6 = vand.u32 4294901760, %v6193_v59  ;;  %v27629_v7 = vsub.f32 %v6009_v56, %v27605_v37  ;;  %30955 = vst [vmem:[#allocation144_spill] sm:$0xff] %v27631_v4  ;;  %v29765_v25 = vand.u32 4294901760, %v27611_v63  ;;  %v6021_v59 = vsel %vm238_vm1, %v17758_v62, 0 }
 0x4a4   : > { %21986 = vmatmul.mubr.f32.gmra.mrb[4].mxu0 %v30952_v39  ;;  %20727 = vmatprep.subr.mxu1 %v27406_v21  ;;  %30956 = vst [vmem:[#allocation158_spill] sm:$0xff] %v27633_v36  ;;  %v6204_v56 = vand.u32 4294901760, %v6203_v27  ;;  %v27646_v10 = vsub.f32 %v6012_v47, %v27620_v18  ;;  %v6024_v32 = vsel %vm238_vm1, %v17759_v55, 0  ;;  %v30959_v39 = vand.u32 4294901760, %v30904_v14 }
 0x4a5   : > { %21988 = vmatprep.mubr.f32.mxu0 %v30953_v61  ;;  %30954 = vst [vmem:[#allocation156_spill] sm:$0xff] %v27629_v7  ;;  %v6223_v61 = vsub.f32 %v27592_v26, %v29762_v2  ;;  %v27659_v27 = vsub.f32 %v6018_v28, %v27633_v36  ;;  %v27661_v47 = vand.u32 4294901760, %v6021_v59  ;;  %v17761_v2 = vld [vmem:[%s24195_s21 + $0xf0] sm:$0xff]  ;;  %v30963_v55 = vand.u32 4294901760, %v27608_v60  ;;  %v17762_v26 = vld [vmem:[%s24195_s21 + $0xf8] sm:$0xff] }
 0x4a6   : > { %20633 = vmatmul.mubr.f32.gmra.mrb[2].mxu1 %v6174_v54  ;;  %30957 = vst [vmem:[#allocation31_spill] sm:$0xff] %v27646_v10  ;;  %v30958_v54 = vand.u32 4294901760, %v26995_v11  ;;  %v6214_v11 = vand.u32 4294901760, %v6213_v30  ;;  %v27671_v28 = vand.u32 4294901760, %v6024_v32  ;;  %v6027_v62 = vsel %vm238_vm1, %v17760_v24, 0 }
 0x4a7   : > { %20635 = vmatprep.mubr.f32.mxu1 %v6184_v38  ;;  %v27656_v38 = vsub.f32 %v6015_v44, %v27631_v4  ;;  %30961 = vst [vmem:[#allocation164_spill] sm:$0xff] %v27659_v27  ;;  %30962 = vst [vmem:[#allocation165_spill] sm:$0xff] %v27661_v47  ;;  %v6233_v14 = vsub.f32 %v27608_v60, %v30963_v55  ;;  %v6224_v44 = vand.u32 4294901760, %v6223_v61  ;;  %v6030_v30 = vsel %vm238_vm1, %v17761_v2, 0  ;;  %v17766_v60 = vld [vmem:[%s24195_s21 + $0x128] sm:$0xff] }
 0x4a8   : > { %21989 = vmatmul.mubr.f32.gmra.mrb[6].mxu0 %v30958_v54  ;;  %30964 = vst [vmem:[#allocation67_spill] sm:$0xff] %v27671_v28  ;;  %v30966_v55 = vand.u32 4294901760, %v30906_v51  ;;  %v27686_v24 = vsub.f32 %v6021_v59, %v27661_v47  ;;  %v30970_v51 = vand.u32 4294901760, %v27646_v10  ;;  %v27697_v61 = vand.u32 4294901760, %v6030_v30  ;;  %v17764_v59 = vld [vmem:[%s24195_s21 + $0x110] sm:$0xff] }
 0x4a9   : > { %21991 = vmatprep.mubr.f32.mxu0 %v30959_v39  ;;  %30960 = vst [vmem:[#allocation162_spill] sm:$0xff] %v27656_v38  ;;  %v6243_v39 = vsub.f32 %v27611_v63, %v29765_v25  ;;  %v30967_v25 = vand.u32 4294901760, %v27629_v7  ;;  %v6234_v2 = vand.u32 4294901760, %v6233_v14  ;;  %v27689_v63 = vand.u32 4294901760, %v6027_v62 }
 0x4aa   : > { %20636 = vmatmul.mubr.f32.gmra.mrb[4].mxu1 %v6194_v6  ;;  %v30965_v6 = vand.u32 4294901760, %v30905_v35  ;;  %30968 = vst [vmem:[#allocation94_spill] sm:$0xff] %v27686_v24  ;;  %v17763_v35 = vld [vmem:[%s24195_s21 + $0x108] sm:$0xff]  ;;  %30972 = vst [vmem:[#allocation140_spill] sm:$0xff] %v27697_v61  ;;  %v6033_v54 = vsel %vm238_vm1, %v17762_v26, 0 }
 0x4ab   : > { %20638 = vmatprep.mubr.f32.mxu1 %v6204_v56  ;;  %v6253_v56 = vsub.f32 %v27629_v7, %v30967_v25  ;;  %30969 = vst [vmem:[#allocation102_spill] sm:$0xff] %v27689_v63  ;;  %v27695_v25 = vsub.f32 %v6024_v32, %v27671_v28  ;;  %v17765_v7 = vld [vmem:[%s24195_s21 + $0x120] sm:$0xff]  ;;  %v6036_v14 = vsel %vm238_vm1, %v17763_v35, 0  ;;  %v27717_v35 = vand.u32 4294901760, %v6033_v54 }
 0x4ac   : > { %21992 = vmatmul.mubr.f32.gmra.mrb[8].mxu0 %v30965_v6  ;;  %v6244_v6 = vand.u32 4294901760, %v6243_v39  ;;  %v30974_v39 = vand.u32 4294901760, %v30908_v53  ;;  %v6039_v53 = vsel %vm238_vm1, %v17764_v59, 0 }
 0x4ad   : > { %21994 = vmatprep.mubr.f32.mxu0 %v30966_v55  ;;  %v6263_v55 = vsub.f32 %v27646_v10, %v30970_v51  ;;  %30971 = vst [vmem:[#allocation116_spill] sm:$0xff] %v27695_v25  ;;  %v30975_v51 = vand.u32 4294901760, %v27656_v38  ;;  %v30976_v10 = vand.u32 4294901760, %v27659_v27  ;;  %30977 = vst [vmem:[#allocation148_spill] sm:$0xff] %v27717_v35 }
 0x4ae   : > { %20639 = vmatmul.mubr.f32.gmra.mrb[6].mxu1 %v6214_v11  ;;  %v30973_v11 = vand.u32 4294901760, %v30907_v52  ;;  %v27715_v52 = vsub.f32 %v6027_v62, %v27689_v63  ;;  %v17767_v62 = vld [vmem:[%s24195_s21 + $0x138] sm:$0xff] }
 0x4af   : > { %20641 = vmatprep.mubr.f32.mxu1 %v6224_v44  ;;  %v6254_v44 = vand.u32 4294901760, %v6253_v56  ;;  %v6273_v32 = vsub.f32 %v27656_v38, %v30975_v51  ;;  %v6283_v26 = vsub.f32 %v27659_v27, %v30976_v10  ;;  %v6042_v56 = vsel %vm238_vm1, %v17765_v7, 0 }
 0x4b0   : > { %21995 = vmatmul.mubr.f32.gmra.mrb[10].mxu0 %v30973_v11  ;;  %v6264_v11 = vand.u32 4294901760, %v6263_v55  ;;  %v27723_v51 = vsub.f32 %v6030_v30, %v27697_v61  ;;  %v27725_v10 = vand.u32 4294901760, %v6036_v14  ;;  %v30981_v27 = vand.u32 4294901760, %v30910_v0 }
 0x4b1   : > { %21997 = vmatprep.mubr.f32.mxu0 %v30974_v39  ;;  %v6274_v59 = vand.u32 4294901760, %v6273_v32  ;;  %v6284_v7 = vand.u32 4294901760, %v6283_v26  ;;  %v27735_v55 = vand.u32 4294901760, %v6042_v56  ;;  %v30984_v30 = vand.u32 4294901760, %v27686_v24 }
 0x4b2   : > { %20642 = vmatmul.mubr.f32.gmra.mrb[8].mxu1 %v6234_v2  ;;  %30978 = vst [vmem:[#allocation152_spill] sm:$0xff] %v27723_v51  ;;  %30979 = vst [vmem:[#allocation167_spill] sm:$0xff] %v27725_v10  ;;  %v30980_v2 = vand.u32 4294901760, %v30909_v48  ;;  %v6045_v0 = vsel %vm238_vm1, %v17766_v60, 0  ;;  %v6048_v38 = vsel %vm238_vm1, %v17767_v62, 0  ;;  %v17768_v48 = vld [vmem:[%s24195_s21 + $0x140] sm:$0xff] }
 0x4b3   : > { %20644 = vmatprep.mubr.f32.mxu1 %v6244_v6  ;;  %v27733_v6 = vand.u32 4294901760, %v6039_v53  ;;  %30983 = vst [vmem:[#allocation184_spill] sm:$0xff] %v27735_v55  ;;  %v6293_v39 = vsub.f32 %v27686_v24, %v30984_v30  ;;  %v30988_v30 = vand.u32 4294901760, %v30911_v29  ;;  %v30993_v62 = vand.u32 4294901760, %v27715_v52 }
 0x4b4   : > { %21998 = vmatmul.mubr.f32.gmra.mrb[12].mxu0 %v30980_v2  ;;  %v27742_v2 = vsub.f32 %v6033_v54, %v27717_v35  ;;  %v30989_v54 = vand.u32 4294901760, %v30912_v57  ;;  %v30997_v57 = vand.u32 4294901760, %v30913_v33 }
 0x4b5   : > { %22000 = vmatprep.mubr.f32.mxu0 %v30981_v27  ;;  %30982 = vst [vmem:[#allocation176_spill] sm:$0xff] %v27733_v6  ;;  %v30986_v27 = vand.u32 4294901760, %v27695_v25  ;;  %v27759_v60 = vsub.f32 %v6039_v53, %v27733_v6  ;;  %v6294_v26 = vand.u32 4294901760, %v6293_v39  ;;  %v6313_v29 = vsub.f32 %v27715_v52, %v30993_v62  ;;  %v17770_v62 = vld [vmem:[%s24195_s21 + $0x158] sm:$0xff] }
 0x4b6   : > { %20645 = vmatmul.mubr.f32.gmra.mrb[10].mxu1 %v6254_v44  ;;  %30985 = vst [vmem:[#allocation195_spill] sm:$0xff] %v27742_v2  ;;  %v27750_v44 = vsub.f32 %v6036_v14, %v27725_v10  ;;  %v17769_v14 = vld [vmem:[%s24195_s21 + $0x150] sm:$0xff]  ;;  %v30996_v39 = vand.u32 4294901760, %v27131_v20  ;;  %v30998_v20 = vand.u32 4294901760, %v27742_v2 }
 0x4b7   : > { %20647 = vmatprep.mubr.f32.mxu1 %v6264_v11  ;;  %v6303_v32 = vsub.f32 %v27695_v25, %v30986_v27  ;;  %30990 = vst [vmem:[#allocation159_spill] sm:$0xff] %v27759_v60  ;;  %v27762_v11 = vsub.f32 %v6042_v56, %v27735_v55  ;;  %v27764_v27 = vand.u32 4294901760, %v6045_v0  ;;  %v6054_v24 = vsel %vm238_vm1, %v17769_v14, 0  ;;  %v17771_v25 = vld [vmem:[%s24195_s21 + $0x168] sm:$0xff] }
 0x4b8   : > { %30987 = vst [vmem:[#allocation155_spill] sm:$0xff] %v27750_v44  ;;  %22001 = vmatmul.mubr.f32.gmra.mrb[14].mxu0 %v30988_v30  ;;  %v27771_v30 = vand.u32 4294901760, %v6048_v38  ;;  %v6333_v14 = vsub.f32 %v27742_v2, %v30998_v20  ;;  %v6060_v20 = vsel %vm238_vm1, %v17771_v25, 0  ;;  %v17772_v2 = vld [vmem:[%s24195_s21 + $0x170] sm:$0xff] }
 0x4b9   : > { %22003 = vmatprep.mubr.f32.mxu0 %v30989_v54  ;;  %30991 = vst [vmem:[#allocation51_spill] sm:$0xff] %v27762_v11  ;;  %30992 = vst [vmem:[#allocation170_spill] sm:$0xff] %v27764_v27  ;;  %v6304_v53 = vand.u32 4294901760, %v6303_v32  ;;  %v30995_v54 = vand.u32 4294901760, %v27723_v51  ;;  %v31000_v32 = vand.u32 4294901760, %v27750_v44 }
 0x4ba   : > { %20648 = vmatmul.mubr.f32.gmra.mrb[12].mxu1 %v6274_v59  ;;  %30994 = vst [vmem:[#allocation178_spill] sm:$0xff] %v27771_v30  ;;  %v6051_v59 = vsel %vm238_vm1, %v17768_v48, 0  ;;  %v6314_v48 = vand.u32 4294901760, %v6313_v29  ;;  %v31002_v29 = vand.u32 4294901760, %v30914_v22  ;;  %v6334_v22 = vand.u32 4294901760, %v6333_v14  ;;  %v17774_v14 = vld [vmem:[%s24195_s21 + $0x188] sm:$0xff] }
 0x4bb   : > { %20650 = vmatprep.mubr.f32.mxu1 %v6284_v7  ;;  %v6323_v56 = vsub.f32 %v27723_v51, %v30995_v54  ;;  %v27787_v54 = vsub.f32 %v6045_v0, %v27764_v27  ;;  %v27796_v33 = vand.u32 4294901760, %v6051_v59  ;;  %v6343_v0 = vsub.f32 %v27750_v44, %v31000_v32  ;;  %v17773_v44 = vld [vmem:[%s24195_s21 + $0x180] sm:$0xff] }
 0x4bc   : > { %22004 = vmatmul.mubr.f32.gmra.mrb[16].mxu0 %v30996_v39  ;;  %v27794_v39 = vsub.f32 %v6048_v38, %v27771_v30  ;;  %v27801_v7 = vand.u32 4294901760, %v6054_v24  ;;  %v31003_v38 = vand.u32 4294901760, %v30915_v12  ;;  %v31005_v51 = vand.u32 4294901760, %v27762_v11 }
 0x4bd   : > { %22006 = vmatprep.mubr.f32.mxu0 %v30997_v57  ;;  %30999 = vst [vmem:[#allocation182_spill] sm:$0xff] %v27796_v33  ;;  %v6324_v57 = vand.u32 4294901760, %v6323_v56 }
 0x4be   : > { %20651 = vmatmul.mubr.f32.gmra.mrb[14].mxu1 %v6294_v26  ;;  %31001 = vst [vmem:[#allocation191_spill] sm:$0xff] %v27801_v7  ;;  %v6057_v26 = vsel %vm238_vm1, %v17770_v62, 0  ;;  %v6363_v32 = vsub.f32 %v27762_v11, %v31005_v51  ;;  %v6063_v51 = vsel %vm238_vm1, %v17772_v2, 0  ;;  %v31008_v62 = vand.u32 4294901760, %v30916_v34 }
 0x4bf   : > { %20653 = vmatprep.mubr.f32.mxu1 %v6304_v53  ;;  %v31004_v53 = vand.u32 4294901760, %v27759_v60  ;;  %v27822_v12 = vand.u32 4294901760, %v6057_v26 }
 0x4c0   : > { %22007 = vmatmul.mubr.f32.gmra.mrb[18].mxu0 %v31002_v29  ;;  %v27820_v29 = vsub.f32 %v6051_v59, %v27796_v33  ;;  %v31009_v59 = vand.u32 4294901760, %v30917_v31  ;;  %v6364_v11 = vand.u32 4294901760, %v6363_v32 }
 0x4c1   : > { %22009 = vmatprep.mubr.f32.mxu0 %v31003_v38  ;;  %v6353_v56 = vsub.f32 %v27759_v60, %v31004_v53  ;;  %31006 = vst [vmem:[#allocation233_spill] sm:$0xff] %v27822_v12  ;;  %v6344_v38 = vand.u32 4294901760, %v6343_v0  ;;  %v27825_v53 = vsub.f32 %v6054_v24, %v27801_v7  ;;  %v27827_v60 = vand.u32 4294901760, %v6060_v20 }
 0x4c2   : > { %20654 = vmatmul.mubr.f32.gmra.mrb[16].mxu1 %v6314_v48  ;;  %v6066_v48 = vsel %vm238_vm1, %v17773_v44, 0  ;;  %v31011_v0 = vand.u32 4294901760, %v27794_v39  ;;  %v29797_v34 = vand.u32 4294901760, %v27820_v29  ;;  %v27846_v44 = vand.u32 4294901760, %v6063_v51 }
 0x4c3   : > { %20656 = vmatprep.mubr.f32.mxu1 %v6324_v57  ;;  %31007 = vst [vmem:[#allocation217_spill] sm:$0xff] %v27827_v60  ;;  %v6354_v25 = vand.u32 4294901760, %v6353_v56  ;;  %v31010_v57 = vand.u32 4294901760, %v27787_v54  ;;  %v27850_v56 = vsub.f32 %v6060_v20, %v27827_v60  ;;  %v27852_v32 = vand.u32 4294901760, %v6066_v48 }
 0x4c4   : > { %22010 = vmatmul.mubr.f32.gmra.mrb[20].mxu0 %v31008_v62  ;;  %v6383_v2 = vsub.f32 %v27794_v39, %v31011_v0  ;;  %v27844_v62 = vsub.f32 %v6057_v26, %v27822_v12  ;;  %31012 = vst [vmem:[#allocation147_spill] sm:$0xff] %v27846_v44  ;;  %v27864_v20 = vsub.f32 %v6063_v51, %v27846_v44 }
 0x4c5   : > { %22012 = vmatprep.mubr.f32.mxu0 %v31009_v59  ;;  %v6373_v24 = vsub.f32 %v27787_v54, %v31010_v57  ;;  %31013 = vst [vmem:[#allocation149_spill] sm:$0xff] %v27852_v32  ;;  %v31014_v59 = vand.u32 4294901760, %v27203_v43  ;;  %v31015_v57 = vand.u32 4294901760, %v27210_v17  ;;  %v31017_v43 = vand.u32 4294901760, %v27825_v53 }
 0x4c6   : > { %20657 = vmatmul.mubr.f32.gmra.mrb[18].mxu1 %v6334_v22  ;;  %v6069_v22 = vsel %vm238_vm1, %v17774_v14, 0  ;;  %v29796_v0 = vand.u32 4294901760, %v27844_v62  ;;  %v6384_v14 = vand.u32 4294901760, %v6383_v2  ;;  %v29794_v2 = vand.u32 4294901760, %v27864_v20 }
 0x4c7   : > { %20659 = vmatprep.mubr.f32.mxu1 %v6344_v38  ;;  %v6374_v26 = vand.u32 4294901760, %v6373_v24  ;;  %v6393_v38 = vsub.f32 %v27820_v29, %v29797_v34  ;;  %v27866_v31 = vand.u32 4294901760, %v6069_v22  ;;  %v6403_v17 = vsub.f32 %v27825_v53, %v31017_v43  ;;  %v31046_v34 = vld [vmem:[#allocation142_spill] sm:$0xff] }
 0x4c8   : > { %22013 = vmatmul.mubr.f32.gmra.mrb[22].mxu0 %v31014_v59  ;;  %v29795_v24 = vand.u32 4294901760, %v27850_v56  ;;  %v31018_v59 = vand.u32 4294901760, %v27236_v46 }
 0x4c9   : > { %22015 = vmatprep.mubr.f32.mxu0 %v31015_v57  ;;  %31016 = vst [vmem:[#allocation153_spill] sm:$0xff] %v27866_v31  ;;  %v31019_v57 = vand.u32 4294901760, %v27241_v1  ;;  %v6394_v51 = vand.u32 4294901760, %v6393_v38  ;;  %v27884_v43 = vsub.f32 %v6069_v22, %v27866_v31  ;;  %v31021_v38 = vand.u32 4294901760, %v27266_v45  ;;  %v17940_v45 = vld [vmem:[%s28967_s1 + $0x20] sm:$0xf] }
 0x4ca   : > { %20660 = vmatmul.mubr.f32.gmra.mrb[20].mxu1 %v6354_v25  ;;  %v27873_v25 = vsub.f32 %v6066_v48, %v27852_v32  ;;  %v6404_v48 = vand.u32 4294901760, %v6403_v17  ;;  %v6423_v46 = vsub.f32 %v27850_v56, %v29795_v24  ;;  %v6433_v22 = vsub.f32 %v27864_v20, %v29794_v2  ;;  %v31043_v2 = vld [vmem:[#allocation129_spill] sm:$0xff]  ;;  %v31044_v24 = vld [vmem:[#allocation70_spill] sm:$0xff] }
 0x4cb   : > { %20662 = vmatprep.mubr.f32.mxu1 %v6364_v11  ;;  %v6413_v11 = vsub.f32 %v27844_v62, %v29796_v0  ;;  %v31045_v0 = vld [vmem:[#allocation137_spill] sm:$0xff] }
 0x4cc   : > { %22016 = vmatmul.mubr.f32.gmra.mrb[24].mxu0 %v31018_v59  ;;  %v29793_v1 = vand.u32 4294901760, %v27873_v25  ;;  %v6424_v17 = vand.u32 4294901760, %v6423_v46 }
 0x4cd   : > { %22018 = vmatprep.mubr.f32.mxu0 %v31019_v57  ;;  %v6414_v59 = vand.u32 4294901760, %v6413_v11  ;;  %v6434_v11 = vand.u32 4294901760, %v6433_v22  ;;  %v31029_v22 = vld [vmem:[#allocation227_spill] sm:$0xff] }
 0x4ce   : > { %20663 = vmatmul.mubr.f32.gmra.mrb[22].mxu1 %v6374_v26  ;;  %v31020_v26 = vand.u32 4294901760, %v27260_v9  ;;  %v6443_v57 = vsub.f32 %v27873_v25, %v29793_v1  ;;  %v31022_v9 = vand.u32 4294901760, %v27280_v50  ;;  %v31024_v50 = vand.u32 4294901760, %v27300_v15  ;;  %v31027_v15 = vld [vmem:[#allocation78_spill] sm:$0xff]  ;;  %v31042_v1 = vld [vmem:[#allocation189_spill] sm:$0xff] }
 0x4cf   : > { %20665 = vmatprep.mubr.f32.mxu1 %v6384_v14  ;;  %v29792_v14 = vand.u32 4294901760, %v27884_v43 }
 0x4d0   : > { %22019 = vmatmul.mubr.f32.gmra.mrb[26].mxu0 %v31020_v26  ;;  %v6444_v46 = vand.u32 4294901760, %v6443_v57  ;;  %v15793_v26 = vsel %vm335_vm0, %v17940_v45, 0  ;;  %v31031_v57 = vld [vmem:[#allocation213_spill] sm:$0xff]  ;;  %v31033_v45 = vld [vmem:[#allocation230_spill] sm:$0xff] }
 0x4d1   : > { %22021 = vmatprep.mubr.f32.mxu0 %v31021_v38 }
 0x4d2   : > { %20666 = vmatmul.mubr.f32.gmra.mrb[24].mxu1 %v6394_v51  ;;  %v31023_v51 = vand.u32 4294901760, %v27289_v16  ;;  %v31026_v16 = vld [vmem:[#allocation127_spill] sm:$0xff] }
 0x4d3   : > { %20668 = vmatprep.mubr.f32.mxu1 %v6404_v48  ;;  %v6453_v48 = vsub.f32 %v27884_v43, %v29792_v14  ;;  %v31041_v14 = vld [vmem:[#allocation181_spill] sm:$0xff] }
 0x4d4   : > { %22022 = vmatmul.mubr.f32.gmra.mrb[28].mxu0 %v31022_v9  ;;  %v27915_v9 = vand.u32 4294901760, %v15793_v26 }
 0x4d5   : > { %22024 = vmatprep.mubr.f32.mxu0 %v31023_v51  ;;  %v6454_v38 = vand.u32 4294901760, %v6453_v48  ;;  %v31034_v51 = vld [vmem:[#allocation193_spill] sm:$0xff]  ;;  %v31036_v48 = vld [vmem:[#allocation12_spill] sm:$0xff] }
 0x4d6   : > { %20669 = vmatmul.mubr.f32.gmra.mrb[26].mxu1 %v6414_v59  ;;  %31025 = vst [vmem:[#allocation18_spill] sm:$0xff] %v27915_v9  ;;  %v31028_v59 = vld [vmem:[#allocation222_spill] sm:$0xff] }
 0x4d7   : > { %20671 = vmatprep.mubr.f32.mxu1 %v6424_v17  ;;  %v31030_v17 = vld [vmem:[#allocation136_spill] sm:$0xff] }
 0x4d8   : > { %22025 = vmatmul.mubr.f32.gmra.mrb[30].mxu0 %v31024_v50  ;;  %v31039_v50 = vld [vmem:[#allocation34_spill] sm:$0xff] }
 0x4d9   : > { %22029 = vmatprep.mubr.f32.mxu0 %v26899_v42 }
 0x4da   : > { %20672 = vmatmul.mubr.f32.gmra.mrb[28].mxu1 %v6434_v11  ;;  %v31035_v11 = vld [vmem:[#allocation145_spill] sm:$0xff] }
 0x4db   : > { %20674 = vmatprep.mubr.f32.mxu1 %v6444_v46  ;;  %v31037_v46 = vld [vmem:[#allocation203_spill] sm:$0xff] }
 0x4dc   : > { %22030 = vmatmul.mubr.f32.vlgmr.msra.gmra.mrb[0].mxu0 %v26908_v8 }
 0x4dd   : > { %22032 = vmatprep.mubr.f32.mxu0 %v30852_v41  ;;  %22078 = vmatpush3.msra.mxu0 %v30854_v5  ;;  %v31032_v5 = vld [vmem:[#allocation91_spill] sm:$0xff] }
 0x4de   : > { %20675 = vmatmul.mubr.f32.gmra.mrb[30].mxu1 %v6454_v38  ;;  %22127 = vmatprep.subr.mxu0 %v27915_v9  ;;  %v31040_v38 = vld [vmem:[#allocation169_spill] sm:$0xff] }
 0x4df   : > { %20679 = vmatprep.mubr.f32.mxu1 %v27477_v40 }
 0x4e0   : > { %22033 = vmatmul.mubr.f32.gmra.mrb[2].mxu0 %v31026_v16 }
 0x4e1   : > { %22035 = vmatprep.mubr.f32.mxu0 %v31027_v15 }
 0x4e2   : > { %20680 = vmatmul.mubr.f32.vlgmr.msra.gmra.mrb[0].mxu1 %v31028_v59 }
 0x4e3   : > { %20728 = vmatpush3.msra.mxu1 %v27406_v21  ;;  %20682 = vmatprep.mubr.f32.mxu1 %v31029_v22  ;;  %v31038_v21 = vld [vmem:[#allocation157_spill] sm:$0xff] }
 0x4e4   : > { %22036 = vmatmul.mubr.f32.gmra.mrb[4].mxu0 %v31030_v17  ;;  %20777 = vmatprep.subr.mxu1 %v31031_v57  ;;  %v17916_v22 = vld [vmem:[%s24195_s21 + $0x92] sm:$0xff] }
 0x4e5   : > { %22038 = vmatprep.mubr.f32.mxu0 %v31032_v5 }
 0x4e6   : > { %20683 = vmatmul.mubr.f32.gmra.mrb[2].mxu1 %v31033_v45  ;;  %v17915_v45 = vld [vmem:[%s24195_s21 + $0x82] sm:$0xff] }
 0x4e7   : > { %20685 = vmatprep.mubr.f32.mxu1 %v31034_v51  ;;  %v15718_v40 = vsel %vm238_vm1, %v17915_v45, 0 }
 0x4e8   : > { %22039 = vmatmul.mubr.f32.gmra.mrb[6].mxu0 %v31035_v11  ;;  %v28113_v59 = vand.u32 4294901760, %v15718_v40 }
 0x4e9   : > { %22041 = vmatprep.mubr.f32.mxu0 %v31036_v48 }
 0x4ea   : > { %20686 = vmatmul.mubr.f32.gmra.mrb[4].mxu1 %v31037_v46 }
 0x4eb   : > { %20688 = vmatprep.mubr.f32.mxu1 %v27536_v19  ;;  %v31085_v19 = vld [vmem:[#allocation51_spill] sm:$0xff] }
 0x4ec   : > { %22042 = vmatmul.mubr.f32.gmra.mrb[8].mxu0 %v31038_v21 }
 0x4ed   : > { %22044 = vmatprep.mubr.f32.mxu0 %v31039_v50 }
 0x4ee   : > { %20689 = vmatmul.mubr.f32.gmra.mrb[6].mxu1 %v27548_v58  ;;  %v31084_v58 = vld [vmem:[#allocation159_spill] sm:$0xff] }
 0x4ef   : > { %20691 = vmatprep.mubr.f32.mxu1 %v27562_v13  ;;  %v31060_v13 = vld [vmem:[#allocation207_spill] sm:$0xff] }
 0x4f0   : > { %22045 = vmatmul.mubr.f32.gmra.mrb[10].mxu0 %v31040_v38 }
 0x4f1   : > { %22047 = vmatprep.mubr.f32.mxu0 %v31041_v14 }
 0x4f2   : > { %20692 = vmatmul.mubr.f32.gmra.mrb[8].mxu1 %v27581_v3  ;;  %v31047_v3 = vld [vmem:[#allocation138_spill] sm:$0xff] }
 0x4f3   : > { %20694 = vmatprep.mubr.f32.mxu1 %v27583_v49  ;;  %v31048_v49 = vld [vmem:[#allocation146_spill] sm:$0xff] }
 0x4f4   : > { %22048 = vmatmul.mubr.f32.gmra.mrb[12].mxu0 %v31042_v1 }
 0x4f5   : > { %22050 = vmatprep.mubr.f32.mxu0 %v31043_v2 }
 0x4f6   : > { %20695 = vmatmul.mubr.f32.gmra.mrb[10].mxu1 %v27605_v37  ;;  %v31049_v37 = vld [vmem:[#allocation19_spill] sm:$0xff] }
 0x4f7   : > { %20697 = vmatprep.mubr.f32.mxu1 %v27620_v18  ;;  %v31050_v18 = vld [vmem:[#allocation43_spill] sm:$0xff] }
 0x4f8   : > { %22051 = vmatmul.mubr.f32.gmra.mrb[14].mxu0 %v31044_v24 }
 0x4f9   : > { %22053 = vmatprep.mubr.f32.mxu0 %v31045_v0 }
 0x4fa   : > { %20698 = vmatmul.mubr.f32.gmra.mrb[12].mxu1 %v27631_v4  ;;  %v31051_v4 = vld [vmem:[#allocation46_spill] sm:$0xff] }
 0x4fb   : > { %20700 = vmatprep.mubr.f32.mxu1 %v27633_v36  ;;  %v31052_v36 = vld [vmem:[#allocation183_spill] sm:$0xff] }
 0x4fc   : > { %22054 = vmatmul.mubr.f32.gmra.mrb[16].mxu0 %v31046_v34 }
 0x4fd   : > { %22056 = vmatprep.mubr.f32.mxu0 %v31047_v3 }
 0x4fe   : > { %20701 = vmatmul.mubr.f32.gmra.mrb[14].mxu1 %v27661_v47  ;;  %v31053_v47 = vld [vmem:[#allocation187_spill] sm:$0xff] }
 0x4ff   : > { %20703 = vmatprep.mubr.f32.mxu1 %v27671_v28  ;;  %v31054_v28 = vld [vmem:[#allocation194_spill] sm:$0xff] }
 0x500   : > { %22057 = vmatmul.mubr.f32.gmra.mrb[18].mxu0 %v31048_v49 }
 0x501   : > { %22059 = vmatprep.mubr.f32.mxu0 %v31049_v37 }
 0x502   : > { %20704 = vmatmul.mubr.f32.gmra.mrb[16].mxu1 %v27689_v63  ;;  %v31055_v63 = vld [vmem:[#allocation196_spill] sm:$0xff] }
 0x503   : > { %20706 = vmatprep.mubr.f32.mxu1 %v27697_v61  ;;  %v27972_v61 = vsub.f32 %v15793_v26, %v27915_v9 }
 0x504   : > { %22060 = vmatmul.mubr.f32.gmra.mrb[20].mxu0 %v31050_v18 }
 0x505   : > { %22062 = vmatprep.mubr.f32.mxu0 %v31051_v4 }
 0x506   : > { %20707 = vmatmul.mubr.f32.gmra.mrb[18].mxu1 %v27717_v35  ;;  %v31057_v35 = vld [vmem:[#allocation205_spill] sm:$0xff] }
 0x507   : > { %20709 = vmatprep.mubr.f32.mxu1 %v27725_v10  ;;  %v31056_v10 = vld [vmem:[#allocation202_spill] sm:$0xff] }
 0x508   : > { %22063 = vmatmul.mubr.f32.gmra.mrb[22].mxu0 %v31052_v36 }
 0x509   : > { %22065 = vmatprep.mubr.f32.mxu0 %v31053_v47 }
 0x50a   : > { %20710 = vmatmul.mubr.f32.gmra.mrb[20].mxu1 %v27733_v6  ;;  %v27979_v6 = vand.u32 4294901760, %v27972_v61 }
 0x50b   : > { %20712 = vmatprep.mubr.f32.mxu1 %v27735_v55  ;;  %v31059_v55 = vld [vmem:[#allocation206_spill] sm:$0xff] }
 0x50c   : > { %22066 = vmatmul.mubr.f32.gmra.mrb[24].mxu0 %v31054_v28  ;;  %31058 = vst [vmem:[#allocation20_spill] sm:$0xff] %v27979_v6  ;;  %v16185_v26 = vsub.f32 %v27972_v61, %v27979_v6  ;;  %v31062_v6 = vld [vmem:[#allocation225_spill] sm:$0xff] }
 0x50d   : > { %22068 = vmatprep.mubr.f32.mxu0 %v31055_v63 }
 0x50e   : > { %20713 = vmatmul.mubr.f32.gmra.mrb[22].mxu1 %v27764_v27 }
 0x50f   : > { %20715 = vmatprep.mubr.f32.mxu1 %v27771_v30  ;;  %v31061_v30 = vld [vmem:[#allocation211_spill] sm:$0xff] }
 0x510   : > { %22069 = vmatmul.mubr.f32.gmra.mrb[26].mxu0 %v31056_v10 }
 0x511   : > { %22071 = vmatprep.mubr.f32.mxu0 %v31057_v35 }
 0x512   : > { %20716 = vmatmul.mubr.f32.gmra.mrb[24].mxu1 %v27796_v33  ;;  %v27991_v33 = vand.u32 4294901760, %v16185_v26  ;;  %v31064_v26 = vld [vmem:[#allocation192_spill] sm:$0xff] }
 0x513   : > { %20718 = vmatprep.mubr.f32.mxu1 %v27801_v7 }
 0x514   : > { %22072 = vmatmul.mubr.f32.gmra.mrb[28].mxu0 %v31059_v55 }
 0x515   : > { %22074 = vmatprep.mubr.f32.mxu0 %v31060_v13 }
 0x516   : > { %20719 = vmatmul.mubr.f32.gmra.mrb[26].mxu1 %v27822_v12  ;;  %v31081_v12 = vld [vmem:[#allocation155_spill] sm:$0xff] }
 0x517   : > { %20721 = vmatprep.mubr.f32.mxu1 %v27827_v60  ;;  %v31080_v60 = vld [vmem:[#allocation195_spill] sm:$0xff] }
 0x518   : > { %22075 = vmatmul.mubr.f32.gmra.mrb[30].mxu0 %v31061_v30 }
 0x519   : > { %22079 = vmatprep.mubr.f32.mxu0 %v26899_v42  ;;  %v31063_v42 = vld [vmem:[#allocation229_spill] sm:$0xff] }
 0x51a   : > { %20722 = vmatmul.mubr.f32.gmra.mrb[28].mxu1 %v27846_v44 }
 0x51b   : > { %20724 = vmatprep.mubr.f32.mxu1 %v27852_v32  ;;  %v17910_v32 = vld [vmem:[%s24195_s21 + $0x4a] sm:$0xff] }
 0x51c   : > { %22080 = vmatmul.mubr.f32.vlgmr.msra.gmra.mrb[0].mxu0 %v26908_v8  ;;  %v31065_v8 = vld [vmem:[#allocation218_spill] sm:$0xff] }
 0x51d   : > { %22082 = vmatprep.mubr.f32.mxu0 %v30852_v41  ;;  %22128 = vmatpush3.msra.mxu0 %v27915_v9  ;;  %v31066_v41 = vld [vmem:[#allocation200_spill] sm:$0xff]  ;;  %v17920_v9 = vld [vmem:[%s24195_s21 + $0xc2] sm:$0xff] }
 0x51e   : > { %20725 = vmatmul.mubr.f32.gmra.mrb[30].mxu1 %v27866_v31  ;;  %22177 = vmatprep.subr.mxu0 %v27991_v33  ;;  %v31067_v31 = vld [vmem:[#allocation209_spill] sm:$0xff] }
 0x51f   : > { %20729 = vmatprep.mubr.f32.mxu1 %v31062_v6 }
 0x520   : > { %22083 = vmatmul.mubr.f32.gmra.mrb[2].mxu0 %v31026_v16  ;;  %v31068_v16 = vld [vmem:[#allocation216_spill] sm:$0xff] }
 0x521   : > { %22085 = vmatprep.mubr.f32.mxu0 %v31027_v15  ;;  %v31069_v15 = vld [vmem:[#allocation221_spill] sm:$0xff] }
 0x522   : > { %20730 = vmatmul.mubr.f32.vlgmr.msra.gmra.mrb[0].mxu1 %v31063_v42 }
 0x523   : > { %20778 = vmatpush3.msra.mxu1 %v31031_v57  ;;  %20732 = vmatprep.mubr.f32.mxu1 %v31064_v26 }
 0x524   : > { %22086 = vmatmul.mubr.f32.gmra.mrb[4].mxu0 %v31030_v17  ;;  %20827 = vmatprep.subr.mxu1 %v31065_v8  ;;  %v31070_v17 = vld [vmem:[#allocation133_spill] sm:$0xff] }
 0x525   : > { %22088 = vmatprep.mubr.f32.mxu0 %v31032_v5  ;;  %v31071_v5 = vld [vmem:[#allocation139_spill] sm:$0xff] }
 0x526   : > { %20733 = vmatmul.mubr.f32.gmra.mrb[2].mxu1 %v31066_v41 }
 0x527   : > { %20735 = vmatprep.mubr.f32.mxu1 %v31067_v31 }
 0x528   : > { %22089 = vmatmul.mubr.f32.gmra.mrb[6].mxu0 %v31035_v11  ;;  %v31072_v11 = vld [vmem:[#allocation150_spill] sm:$0xff] }
 0x529   : > { %22091 = vmatprep.mubr.f32.mxu0 %v31036_v48  ;;  %v31073_v48 = vld [vmem:[#allocation156_spill] sm:$0xff] }
 0x52a   : > { %20736 = vmatmul.mubr.f32.gmra.mrb[4].mxu1 %v27546_v23 }
 0x52b   : > { %20738 = vmatprep.mubr.f32.mxu1 %v31068_v16 }
 0x52c   : > { %22092 = vmatmul.mubr.f32.gmra.mrb[8].mxu0 %v31038_v21  ;;  %v31074_v21 = vld [vmem:[#allocation31_spill] sm:$0xff] }
 0x52d   : > { %22094 = vmatprep.mubr.f32.mxu0 %v31039_v50  ;;  %v31075_v50 = vld [vmem:[#allocation162_spill] sm:$0xff] }
 0x52e   : > { %20739 = vmatmul.mubr.f32.gmra.mrb[6].mxu1 %v31069_v15 }
 0x52f   : > { %20741 = vmatprep.mubr.f32.mxu1 %v31070_v17 }
 0x530   : > { %22095 = vmatmul.mubr.f32.gmra.mrb[10].mxu0 %v31040_v38  ;;  %v31078_v38 = vld [vmem:[#allocation116_spill] sm:$0xff] }
 0x531   : > { %22097 = vmatprep.mubr.f32.mxu0 %v31041_v14  ;;  %v31076_v14 = vld [vmem:[#allocation164_spill] sm:$0xff] }
 0x532   : > { %20742 = vmatmul.mubr.f32.gmra.mrb[8].mxu1 %v31071_v5 }
 0x533   : > { %20744 = vmatprep.mubr.f32.mxu1 %v31072_v11 }
 0x534   : > { %22098 = vmatmul.mubr.f32.gmra.mrb[12].mxu0 %v31042_v1  ;;  %v31077_v1 = vld [vmem:[#allocation94_spill] sm:$0xff] }
 0x535   : > { %22100 = vmatprep.mubr.f32.mxu0 %v31043_v2  ;;  %v17908_v2 = vld [vmem:[%s24195_s21 + $0x32] sm:$0xff] }
 0x536   : > { %20745 = vmatmul.mubr.f32.gmra.mrb[10].mxu1 %v31073_v48 }
 0x537   : > { %20747 = vmatprep.mubr.f32.mxu1 %v31074_v21 }
 0x538   : > { %22101 = vmatmul.mubr.f32.gmra.mrb[14].mxu0 %v31044_v24  ;;  %v17909_v24 = vld [vmem:[%s24195_s21 + $0x3a] sm:$0xff] }
 0x539   : > { %22103 = vmatprep.mubr.f32.mxu0 %v31045_v0  ;;  %v15697_v0 = vsel %vm238_vm1, %v17908_v2, 0  ;;  %v15700_v44 = vsel %vm238_vm1, %v17909_v24, 0  ;;  %v17912_v2 = vld [vmem:[%s24195_s21 + $0x62] sm:$0xff]  ;;  %v17913_v24 = vld [vmem:[%s24195_s21 + $0x6a] sm:$0xff] }
 0x53a   : > { %20748 = vmatmul.mubr.f32.gmra.mrb[12].mxu1 %v31075_v50  ;;  %v28052_v7 = vand.u32 4294901760, %v15700_v44  ;;  %v15712_v51 = vsel %vm238_vm1, %v17913_v24, 0 }
 0x53b   : > { %20750 = vmatprep.mubr.f32.mxu1 %v31076_v14 }
 0x53c   : > { %22104 = vmatmul.mubr.f32.gmra.mrb[16].mxu0 %v31046_v34  ;;  %v31079_v34 = vld [vmem:[#allocation152_spill] sm:$0xff]  ;;  %v28067_v46 = vsub.f32 %v15700_v44, %v28052_v7 }
 0x53d   : > { %22106 = vmatprep.mubr.f32.mxu0 %v31047_v3  ;;  %v28043_v3 = vand.u32 4294901760, %v15697_v0 }
 0x53e   : > { %20751 = vmatmul.mubr.f32.gmra.mrb[14].mxu1 %v31077_v1  ;;  %31086 = vst [vmem:[#allocation163_spill] sm:$0xff] %v28067_v46  ;;  %v31096_v45 = vand.u32 4294901760, %v28067_v46 }
 0x53f   : > { %20753 = vmatprep.mubr.f32.mxu1 %v31078_v38 }
 0x540   : > { %22107 = vmatmul.mubr.f32.gmra.mrb[18].mxu0 %v31048_v49  ;;  %v15703_v49 = vsel %vm238_vm1, %v17910_v32, 0  ;;  %v15709_v32 = vsel %vm238_vm1, %v17912_v2, 0 }
 0x541   : > { %22109 = vmatprep.mubr.f32.mxu0 %v31049_v37  ;;  %v17911_v37 = vld [vmem:[%s24195_s21 + $0x52] sm:$0xff]  ;;  %v28058_v27 = vand.u32 4294901760, %v15703_v49  ;;  %v28077_v2 = vand.u32 4294901760, %v15709_v32 }
 0x542   : > { %20754 = vmatmul.mubr.f32.gmra.mrb[16].mxu1 %v27715_v52 }
 0x543   : > { %20756 = vmatprep.mubr.f32.mxu1 %v31079_v34  ;;  %31083 = vst [vmem:[#allocation161_spill] sm:$0xff] %v28058_v27  ;;  %31089 = vst [vmem:[#allocation166_spill] sm:$0xff] %v28077_v2 }
 0x544   : > { %22110 = vmatmul.mubr.f32.gmra.mrb[20].mxu0 %v31050_v18  ;;  %v28056_v18 = vsub.f32 %v15697_v0, %v28043_v3  ;;  %v17914_v0 = vld [vmem:[%s24195_s21 + $0x7a] sm:$0xff] }
 0x545   : > { %22112 = vmatprep.mubr.f32.mxu0 %v31051_v4  ;;  %v15706_v4 = vsel %vm238_vm1, %v17911_v37, 0  ;;  %v15715_v44 = vsel %vm238_vm1, %v17914_v0, 0  ;;  %v28089_v37 = vand.u32 4294901760, %v15712_v51  ;;  %v28098_v0 = vsub.f32 %v15709_v32, %v28077_v2 }
 0x546   : > { %20757 = vmatmul.mubr.f32.gmra.mrb[18].mxu1 %v31080_v60  ;;  %31082 = vst [vmem:[#allocation25_spill] sm:$0xff] %v28056_v18 }
 0x547   : > { %20759 = vmatprep.mubr.f32.mxu1 %v31081_v12  ;;  %31091 = vst [vmem:[#allocation75_spill] sm:$0xff] %v28089_v37  ;;  %31093 = vst [vmem:[#allocation128_spill] sm:$0xff] %v28098_v0  ;;  %v28111_v32 = vsub.f32 %v15712_v51, %v28089_v37  ;;  %v17919_v37 = vld [vmem:[%s24195_s21 + $0xb2] sm:$0xff] }
 0x548   : > { %22113 = vmatmul.mubr.f32.gmra.mrb[22].mxu0 %v31052_v36  ;;  %v28069_v36 = vand.u32 4294901760, %v15706_v4 }
 0x549   : > { %22115 = vmatprep.mubr.f32.mxu0 %v31053_v47  ;;  %v28075_v47 = vsub.f32 %v15703_v49, %v28058_v27  ;;  %31095 = vst [vmem:[#allocation13_spill] sm:$0xff] %v28111_v32  ;;  %v31103_v27 = vand.u32 4294901760, %v28098_v0 }
 0x54a   : > { %20760 = vmatmul.mubr.f32.gmra.mrb[20].mxu1 %v31084_v58  ;;  %31087 = vst [vmem:[#allocation54_spill] sm:$0xff] %v28069_v36  ;;  %v28087_v49 = vsub.f32 %v15706_v4, %v28069_v36  ;;  %v28102_v4 = vand.u32 4294901760, %v15715_v44  ;;  %v17918_v36 = vld [vmem:[%s24195_s21 + $0xaa] sm:$0xff] }
 0x54b   : > { %20762 = vmatprep.mubr.f32.mxu1 %v31085_v19  ;;  %31088 = vst [vmem:[#allocation59_spill] sm:$0xff] %v28075_v47 }
 0x54c   : > { %22116 = vmatmul.mubr.f32.gmra.mrb[24].mxu0 %v31054_v28  ;;  %31090 = vst [vmem:[#allocation86_spill] sm:$0xff] %v28087_v49  ;;  %31094 = vst [vmem:[#allocation134_spill] sm:$0xff] %v28102_v4  ;;  %v15721_v28 = vsel %vm238_vm1, %v17916_v22, 0  ;;  %v15874_v22 = vsub.f32 %v28067_v46, %v31096_v45  ;;  %v28125_v51 = vsub.f32 %v15715_v44, %v28102_v4  ;;  %v15730_v46 = vsel %vm238_vm1, %v17919_v37, 0 }
 0x54d   : > { %22118 = vmatprep.mubr.f32.mxu0 %v31055_v63  ;;  %v31092_v63 = vand.u32 4294901760, %v28056_v18  ;;  %v28139_v45 = vsub.f32 %v15718_v40, %v28113_v59  ;;  %v28164_v44 = vand.u32 4294901760, %v15730_v46 }
 0x54e   : > { %20763 = vmatmul.mubr.f32.gmra.mrb[22].mxu1 %v27787_v54  ;;  %31098 = vst [vmem:[#allocation160_spill] sm:$0xff] %v28125_v51 }
 0x54f   : > { %20765 = vmatprep.mubr.f32.mxu1 %v27794_v39  ;;  %v15864_v24 = vsub.f32 %v28056_v18, %v31092_v63  ;;  %v31097_v18 = vand.u32 4294901760, %v28075_v47  ;;  %v28127_v63 = vand.u32 4294901760, %v15721_v28  ;;  %31106 = vst [vmem:[#allocation198_spill] sm:$0xff] %v28164_v44 }
 0x550   : > { %22119 = vmatmul.mubr.f32.gmra.mrb[26].mxu0 %v31056_v10  ;;  %v17917_v10 = vld [vmem:[%s24195_s21 + $0x9a] sm:$0xff] }
 0x551   : > { %22121 = vmatprep.mubr.f32.mxu0 %v31057_v35  ;;  %v15865_v35 = vand.u32 4294901760, %v15864_v24  ;;  %v15884_v2 = vsub.f32 %v28075_v47, %v31097_v18  ;;  %31099 = vst [vmem:[#allocation168_spill] sm:$0xff] %v28127_v63  ;;  %v15727_v24 = vsel %vm238_vm1, %v17918_v36, 0  ;;  %v31100_v18 = vand.u32 4294901760, %v28087_v49 }
 0x552   : > { %20766 = vmatmul.mubr.f32.gmra.mrb[24].mxu1 %v27820_v29  ;;  %v15875_v36 = vand.u32 4294901760, %v15874_v22  ;;  %v28145_v47 = vand.u32 4294901760, %v15727_v24  ;;  %v28153_v40 = vsub.f32 %v15721_v28, %v28127_v63  ;;  %v15733_v22 = vsel %vm238_vm1, %v17920_v9, 0 }
 0x553   : > { %20768 = vmatprep.mubr.f32.mxu1 %v27825_v53  ;;  %v15885_v4 = vand.u32 4294901760, %v15884_v2  ;;  %v31105_v2 = vand.u32 4294901760, %v28111_v32 }
 0x554   : > { %22122 = vmatmul.mubr.f32.gmra.mrb[28].mxu0 %v31059_v55  ;;  %v15724_v55 = vsel %vm238_vm1, %v17917_v10, 0  ;;  %31102 = vst [vmem:[#allocation188_spill] sm:$0xff] %v28145_v47  ;;  %31104 = vst [vmem:[#allocation197_spill] sm:$0xff] %v28153_v40 }
 0x555   : > { %22124 = vmatprep.mubr.f32.mxu0 %v31060_v13  ;;  %v15894_v13 = vsub.f32 %v28087_v49, %v31100_v18  ;;  %v28143_v10 = vand.u32 4294901760, %v15724_v55  ;;  %v15904_v18 = vsub.f32 %v28098_v0, %v31103_v27  ;;  %v17921_v49 = vld [vmem:[%s24195_s21 + $0xca] sm:$0xff]  ;;  %v28170_v0 = vsub.f32 %v15727_v24, %v28145_v47 }
 0x556   : > { %20769 = vmatmul.mubr.f32.gmra.mrb[26].mxu1 %v27844_v62  ;;  %v15736_v9 = vsel %vm238_vm1, %v17921_v49, 0  ;;  %v31109_v27 = vand.u32 4294901760, %v28125_v51  ;;  %v31111_v49 = vand.u32 4294901760, %v31062_v6  ;;  %v31119_v6 = vand.u32 4294901760, %v31064_v26 }
 0x557   : > { %20771 = vmatprep.mubr.f32.mxu1 %v27850_v56  ;;  %31101 = vst [vmem:[#allocation180_spill] sm:$0xff] %v28143_v10  ;;  %v15895_v37 = vand.u32 4294901760, %v15894_v13  ;;  %v28167_v28 = vsub.f32 %v15724_v55, %v28143_v10  ;;  %31108 = vst [vmem:[#allocation171_spill] sm:$0xff] %v28170_v0  ;;  %v28179_v55 = vand.u32 4294901760, %v15733_v22  ;;  %v17923_v10 = vld [vmem:[%s24195_s21 + $0xe2] sm:$0xff]  ;;  %v28189_v24 = vand.u32 4294901760, %v15736_v9 }
 0x558   : > { %22125 = vmatmul.mubr.f32.gmra.mrb[30].mxu0 %v31061_v30  ;;  %v17922_v30 = vld [vmem:[%s24195_s21 + $0xda] sm:$0xff]  ;;  %v31124_v26 = vand.u32 4294901760, %v28170_v0 }
 0x559   : > { %22129 = vmatprep.mubr.f32.mxu0 %v15865_v35  ;;  %v15914_v35 = vsub.f32 %v28111_v32, %v31105_v2  ;;  %31107 = vst [vmem:[#allocation199_spill] sm:$0xff] %v28167_v28  ;;  %v15739_v13 = vsel %vm238_vm1, %v17922_v30, 0  ;;  %v15905_v2 = vand.u32 4294901760, %v15904_v18  ;;  %v15924_v32 = vsub.f32 %v28125_v51, %v31109_v27  ;;  %31110 = vst [vmem:[#allocation177_spill] sm:$0xff] %v28179_v55  ;;  %v17924_v30 = vld [vmem:[%s24195_s21 + $0xf2] sm:$0xff]  ;;  %v17925_v51 = vld [vmem:[%s24195_s21 + $0xfa] sm:$0xff] }
 0x55a   : > { %20772 = vmatmul.mubr.f32.gmra.mrb[28].mxu1 %v27864_v20  ;;  %31113 = vst [vmem:[#allocation190_spill] sm:$0xff] %v28189_v24  ;;  %v28191_v18 = vand.u32 4294901760, %v15739_v13  ;;  %v31115_v27 = vand.u32 4294901760, %v28139_v45  ;;  %v28204_v47 = vsub.f32 %v15733_v22, %v28179_v55 }
 0x55b   : > { %20774 = vmatprep.mubr.f32.mxu1 %v27873_v25 }
 0x55c   : > { %22130 = vmatmul.mubr.f32.vlgmr.msra.gmra.mrb[0].mxu0 %v15875_v36  ;;  %31114 = vst [vmem:[#allocation201_spill] sm:$0xff] %v28191_v18  ;;  %v15934_v36 = vsub.f32 %v28139_v45, %v31115_v27  ;;  %31117 = vst [vmem:[#allocation204_spill] sm:$0xff] %v28204_v47  ;;  %v15745_v27 = vsel %vm238_vm1, %v17924_v30, 0  ;;  %v28218_v22 = vsub.f32 %v15739_v13, %v28191_v18 }
 0x55d   : > { %22132 = vmatprep.mubr.f32.mxu0 %v15885_v4  ;;  %22178 = vmatpush3.msra.mxu0 %v27991_v33  ;;  %v15915_v4 = vand.u32 4294901760, %v15914_v35  ;;  %v28187_v33 = vsub.f32 %v15730_v46, %v28164_v44  ;;  %v15742_v35 = vsel %vm238_vm1, %v17923_v10, 0  ;;  %v15925_v46 = vand.u32 4294901760, %v15924_v32  ;;  %v17927_v32 = vld [vmem:[%s24195_s21 + $0x112] sm:$0xff] }
 0x55e   : > { %20775 = vmatmul.mubr.f32.gmra.mrb[30].mxu1 %v27884_v43  ;;  %22227 = vmatprep.subr.mxu0 %v27972_v61  ;;  %v28215_v10 = vsub.f32 %v15736_v9, %v28189_v24  ;;  %31121 = vst [vmem:[#allocation208_spill] sm:$0xff] %v28218_v22  ;;  %v15935_v30 = vand.u32 4294901760, %v15934_v36  ;;  %v31126_v36 = vand.u32 4294901760, %v31066_v41  ;;  %v17928_v41 = vld [vmem:[%s24195_s21 + $0x122] sm:$0xff]  ;;  %v15754_v13 = vsel %vm238_vm1, %v17927_v32, 0 }
 0x55f   : > { %20779 = vmatprep.mubr.f32.mxu1 %v31111_v49  ;;  %31112 = vst [vmem:[#allocation186_spill] sm:$0xff] %v28187_v33  ;;  %v31116_v49 = vand.u32 4294901760, %v28153_v40 }
 0x560   : > { %22133 = vmatmul.mubr.f32.gmra.mrb[2].mxu0 %v15895_v37  ;;  %v31118_v37 = vand.u32 4294901760, %v31063_v42  ;;  %31120 = vst [vmem:[#allocation232_spill] sm:$0xff] %v28215_v10  ;;  %v17926_v42 = vld [vmem:[%s24195_s21 + $0x10a] sm:$0xff] }
 0x561   : > { %22135 = vmatprep.mubr.f32.mxu0 %v15905_v2  ;;  %v15944_v44 = vsub.f32 %v28153_v40, %v31116_v49  ;;  %v28220_v2 = vand.u32 4294901760, %v15742_v35  ;;  %v31123_v49 = vand.u32 4294901760, %v28167_v28  ;;  %v17931_v40 = vld [vmem:[%s24195_s21 + $0x142] sm:$0xff] }
 0x562   : > { %20780 = vmatmul.mubr.f32.vlgmr.msra.gmra.mrb[0].mxu1 %v31118_v37  ;;  %v28231_v37 = vand.u32 4294901760, %v15745_v27 }
 0x563   : > { %20828 = vmatpush3.msra.mxu1 %v31065_v8  ;;  %20782 = vmatprep.mubr.f32.mxu1 %v31119_v6  ;;  %31122 = vst [vmem:[#allocation212_spill] sm:$0xff] %v28220_v2  ;;  %v15954_v8 = vsub.f32 %v28167_v28, %v31123_v49  ;;  %v15964_v6 = vsub.f32 %v28170_v0, %v31124_v26  ;;  %v15945_v9 = vand.u32 4294901760, %v15944_v44  ;;  %v15751_v49 = vsel %vm238_vm1, %v17926_v42, 0 }
 0x564   : > { %22136 = vmatmul.mubr.f32.gmra.mrb[4].mxu0 %v15915_v4  ;;  %20877 = vmatprep.subr.mxu1 %v31031_v57  ;;  %31125 = vst [vmem:[#allocation109_spill] sm:$0xff] %v28231_v37  ;;  %v15748_v4 = vsel %vm238_vm1, %v17925_v51, 0  ;;  %v31127_v28 = vand.u32 4294901760, %v31067_v31  ;;  %v31128_v26 = vand.u32 4294901760, %v28187_v33  ;;  %v28246_v51 = vsub.f32 %v15742_v35, %v28220_v2  ;;  %v17929_v35 = vld [vmem:[%s24195_s21 + $0x12a] sm:$0xff] }
 0x565   : > { %22138 = vmatprep.mubr.f32.mxu0 %v15925_v46  ;;  %v15955_v42 = vand.u32 4294901760, %v15954_v8  ;;  %v28249_v0 = vand.u32 4294901760, %v15748_v4  ;;  %v31131_v31 = vand.u32 4294901760, %v28204_v47  ;;  %v28257_v46 = vand.u32 4294901760, %v15751_v49 }
 0x566   : > { %20783 = vmatmul.mubr.f32.gmra.mrb[2].mxu1 %v31126_v36  ;;  %v15974_v44 = vsub.f32 %v28187_v33, %v31128_v26  ;;  %31129 = vst [vmem:[#allocation130_spill] sm:$0xff] %v28246_v51  ;;  %v15965_v36 = vand.u32 4294901760, %v15964_v6  ;;  %v28255_v26 = vsub.f32 %v15745_v27, %v28231_v37  ;;  %v17930_v33 = vld [vmem:[%s24195_s21 + $0x13a] sm:$0xff]  ;;  %v15757_v8 = vsel %vm238_vm1, %v17928_v41, 0 }
 0x567   : > { %20785 = vmatprep.mubr.f32.mxu1 %v31127_v28  ;;  %31130 = vst [vmem:[#allocation215_spill] sm:$0xff] %v28249_v0  ;;  %v15984_v28 = vsub.f32 %v28204_v47, %v31131_v31  ;;  %31133 = vst [vmem:[#allocation126_spill] sm:$0xff] %v28257_v46  ;;  %v31135_v6 = vand.u32 4294901760, %v31068_v16  ;;  %v31136_v31 = vand.u32 4294901760, %v28215_v10  ;;  %v31137_v47 = vand.u32 4294901760, %v28218_v22 }
 0x568   : > { %22139 = vmatmul.mubr.f32.gmra.mrb[6].mxu0 %v15935_v30  ;;  %31132 = vst [vmem:[#allocation231_spill] sm:$0xff] %v28255_v26  ;;  %v31134_v30 = vand.u32 4294901760, %v27546_v23  ;;  %v28275_v23 = vsub.f32 %v15748_v4, %v28249_v0  ;;  %v28277_v41 = vand.u32 4294901760, %v15754_v13  ;;  %v15760_v16 = vsel %vm238_vm1, %v17929_v35, 0  ;;  %v17932_v4 = vld [vmem:[%s24195_s21 + $0x152] sm:$0xff] }
 0x569   : > { %22141 = vmatprep.mubr.f32.mxu0 %v15945_v9  ;;  %v15975_v9 = vand.u32 4294901760, %v15974_v44  ;;  %v15994_v27 = vsub.f32 %v28215_v10, %v31136_v31  ;;  %v16004_v32 = vsub.f32 %v28218_v22, %v31137_v47  ;;  %v15763_v44 = vsel %vm238_vm1, %v17930_v33, 0 }
 0x56a   : > { %20786 = vmatmul.mubr.f32.gmra.mrb[4].mxu1 %v31134_v30  ;;  %31138 = vst [vmem:[#allocation83_spill] sm:$0xff] %v28277_v41  ;;  %v15985_v30 = vand.u32 4294901760, %v15984_v28  ;;  %v28283_v31 = vsub.f32 %v15751_v49, %v28257_v46  ;;  %v28285_v47 = vand.u32 4294901760, %v15757_v8  ;;  %v31142_v22 = vand.u32 4294901760, %v31070_v17 }
 0x56b   : > { %20788 = vmatprep.mubr.f32.mxu1 %v31135_v6  ;;  %v15995_v35 = vand.u32 4294901760, %v15994_v27  ;;  %v16005_v33 = vand.u32 4294901760, %v16004_v32  ;;  %v28295_v28 = vand.u32 4294901760, %v15763_v44  ;;  %v31145_v49 = vand.u32 4294901760, %v28246_v51 }
 0x56c   : > { %22142 = vmatmul.mubr.f32.gmra.mrb[8].mxu0 %v15955_v42  ;;  %31139 = vst [vmem:[#allocation143_spill] sm:$0xff] %v28283_v31  ;;  %31140 = vst [vmem:[#allocation99_spill] sm:$0xff] %v28285_v47  ;;  %v31141_v42 = vand.u32 4294901760, %v31069_v15  ;;  %v15766_v17 = vsel %vm238_vm1, %v17931_v40, 0  ;;  %v15769_v10 = vsel %vm238_vm1, %v17932_v4, 0  ;;  %v17933_v15 = vld [vmem:[%s24195_s21 + $0x15a] sm:$0xff] }
 0x56d   : > { %22144 = vmatprep.mubr.f32.mxu0 %v15965_v36  ;;  %v28293_v36 = vand.u32 4294901760, %v15760_v16  ;;  %31144 = vst [vmem:[#allocation173_spill] sm:$0xff] %v28295_v28  ;;  %v16014_v6 = vsub.f32 %v28246_v51, %v31145_v49  ;;  %v31149_v49 = vand.u32 4294901760, %v31071_v5  ;;  %v31154_v4 = vand.u32 4294901760, %v28275_v23 }
 0x56e   : > { %20789 = vmatmul.mubr.f32.gmra.mrb[6].mxu1 %v31141_v42  ;;  %v28302_v42 = vsub.f32 %v15754_v13, %v28277_v41  ;;  %v31150_v13 = vand.u32 4294901760, %v31072_v11  ;;  %v31158_v11 = vand.u32 4294901760, %v31074_v21 }
 0x56f   : > { %20791 = vmatprep.mubr.f32.mxu1 %v31142_v22  ;;  %31143 = vst [vmem:[#allocation40_spill] sm:$0xff] %v28293_v36  ;;  %v31147_v22 = vand.u32 4294901760, %v28255_v26  ;;  %v28319_v40 = vsub.f32 %v15760_v16, %v28293_v36  ;;  %v16015_v32 = vand.u32 4294901760, %v16014_v6  ;;  %v16034_v5 = vsub.f32 %v28275_v23, %v31154_v4  ;;  %v17935_v4 = vld [vmem:[%s24195_s21 + $0x172] sm:$0xff] }
 0x570   : > { %22145 = vmatmul.mubr.f32.gmra.mrb[10].mxu0 %v15975_v9  ;;  %31146 = vst [vmem:[#allocation179_spill] sm:$0xff] %v28302_v42  ;;  %v28310_v9 = vsub.f32 %v15757_v8, %v28285_v47  ;;  %v17934_v8 = vld [vmem:[%s24195_s21 + $0x16a] sm:$0xff]  ;;  %v31157_v6 = vand.u32 4294901760, %v31073_v48  ;;  %v31159_v48 = vand.u32 4294901760, %v28302_v42 }
 0x571   : > { %22147 = vmatprep.mubr.f32.mxu0 %v15985_v30  ;;  %v16024_v27 = vsub.f32 %v28255_v26, %v31147_v22  ;;  %31151 = vst [vmem:[#allocation223_spill] sm:$0xff] %v28319_v40  ;;  %v28322_v30 = vsub.f32 %v15763_v44, %v28295_v28  ;;  %v28324_v22 = vand.u32 4294901760, %v15766_v17  ;;  %v15775_v51 = vsel %vm238_vm1, %v17934_v8, 0  ;;  %v17936_v26 = vld [vmem:[%s24195_s21 + $0x182] sm:$0xff] }
 0x572   : > { %31148 = vst [vmem:[#allocation185_spill] sm:$0xff] %v28310_v9  ;;  %20792 = vmatmul.mubr.f32.gmra.mrb[8].mxu1 %v31149_v49  ;;  %v28331_v49 = vand.u32 4294901760, %v15769_v10  ;;  %v16054_v8 = vsub.f32 %v28302_v42, %v31159_v48  ;;  %v15781_v48 = vsel %vm238_vm1, %v17936_v26, 0  ;;  %v17937_v42 = vld [vmem:[%s24195_s21 + $0x18a] sm:$0xff] }
 0x573   : > { %20794 = vmatprep.mubr.f32.mxu1 %v31150_v13  ;;  %31152 = vst [vmem:[#allocation226_spill] sm:$0xff] %v28322_v30  ;;  %31153 = vst [vmem:[#allocation228_spill] sm:$0xff] %v28324_v22  ;;  %v16025_v16 = vand.u32 4294901760, %v16024_v27  ;;  %v31156_v13 = vand.u32 4294901760, %v28283_v31  ;;  %v31161_v27 = vand.u32 4294901760, %v28310_v9 }
 0x574   : > { %22148 = vmatmul.mubr.f32.gmra.mrb[12].mxu0 %v15995_v35  ;;  %31155 = vst [vmem:[#allocation141_spill] sm:$0xff] %v28331_v49  ;;  %v15772_v35 = vsel %vm238_vm1, %v17933_v15, 0  ;;  %v16035_v15 = vand.u32 4294901760, %v16034_v5  ;;  %v31163_v5 = vand.u32 4294901760, %v31075_v50  ;;  %v16055_v50 = vand.u32 4294901760, %v16054_v8  ;;  %v17939_v8 = vld [vmem:[%s24195_s21 + $0x1a2] sm:$0xff] }
 0x575   : > { %22150 = vmatprep.mubr.f32.mxu0 %v16005_v33  ;;  %v16044_v44 = vsub.f32 %v28283_v31, %v31156_v13  ;;  %v28347_v13 = vsub.f32 %v15766_v17, %v28324_v22  ;;  %v28356_v21 = vand.u32 4294901760, %v15772_v35  ;;  %v16064_v17 = vsub.f32 %v28310_v9, %v31161_v27  ;;  %v17938_v9 = vld [vmem:[%s24195_s21 + $0x19a] sm:$0xff] }
 0x576   : > { %20795 = vmatmul.mubr.f32.gmra.mrb[10].mxu1 %v31157_v6  ;;  %v28354_v6 = vsub.f32 %v15769_v10, %v28331_v49  ;;  %v28361_v33 = vand.u32 4294901760, %v15775_v51  ;;  %v31164_v10 = vand.u32 4294901760, %v31076_v14  ;;  %v31166_v31 = vand.u32 4294901760, %v28322_v30 }
 0x577   : > { %20797 = vmatprep.mubr.f32.mxu1 %v31158_v11  ;;  %31160 = vst [vmem:[#allocation132_spill] sm:$0xff] %v28356_v21  ;;  %v16045_v11 = vand.u32 4294901760, %v16044_v44 }
 0x578   : > { %22151 = vmatmul.mubr.f32.gmra.mrb[14].mxu0 %v16015_v32  ;;  %31162 = vst [vmem:[#allocation151_spill] sm:$0xff] %v28361_v33  ;;  %v15778_v32 = vsel %vm238_vm1, %v17935_v4, 0  ;;  %v16084_v27 = vsub.f32 %v28322_v30, %v31166_v31  ;;  %v15784_v31 = vsel %vm238_vm1, %v17937_v42, 0  ;;  %v31169_v4 = vand.u32 4294901760, %v31077_v1 }
 0x579   : > { %22153 = vmatprep.mubr.f32.mxu0 %v16025_v16  ;;  %v31165_v16 = vand.u32 4294901760, %v28319_v40  ;;  %v28382_v14 = vand.u32 4294901760, %v15778_v32 }
 0x57a   : > { %20798 = vmatmul.mubr.f32.gmra.mrb[12].mxu1 %v31163_v5  ;;  %v28380_v5 = vsub.f32 %v15772_v35, %v28356_v21  ;;  %v31170_v35 = vand.u32 4294901760, %v31078_v38  ;;  %v16085_v30 = vand.u32 4294901760, %v16084_v27 }
 0x57b   : > { %20800 = vmatprep.mubr.f32.mxu1 %v31164_v10  ;;  %v16074_v44 = vsub.f32 %v28319_v40, %v31165_v16  ;;  %31167 = vst [vmem:[#allocation62_spill] sm:$0xff] %v28382_v14  ;;  %v16065_v10 = vand.u32 4294901760, %v16064_v17  ;;  %v28385_v16 = vsub.f32 %v15775_v51, %v28361_v33  ;;  %v28387_v40 = vand.u32 4294901760, %v15781_v48 }
 0x57c   : > { %22154 = vmatmul.mubr.f32.gmra.mrb[16].mxu0 %v16035_v15  ;;  %v15787_v15 = vsel %vm238_vm1, %v17938_v9, 0  ;;  %v31172_v17 = vand.u32 4294901760, %v28354_v6  ;;  %v29919_v1 = vand.u32 4294901760, %v28380_v5  ;;  %v28406_v9 = vand.u32 4294901760, %v15784_v31 }
 0x57d   : > { %22156 = vmatprep.mubr.f32.mxu0 %v16045_v11  ;;  %31168 = vst [vmem:[#allocation172_spill] sm:$0xff] %v28387_v40  ;;  %v16075_v26 = vand.u32 4294901760, %v16074_v44  ;;  %v31171_v11 = vand.u32 4294901760, %v28347_v13  ;;  %v28410_v44 = vsub.f32 %v15781_v48, %v28387_v40  ;;  %v28412_v27 = vand.u32 4294901760, %v15787_v15 }
 0x57e   : > { %20801 = vmatmul.mubr.f32.gmra.mrb[14].mxu1 %v31169_v4  ;;  %v16104_v42 = vsub.f32 %v28354_v6, %v31172_v17  ;;  %v28404_v4 = vsub.f32 %v15778_v32, %v28382_v14  ;;  %31173 = vst [vmem:[#allocation174_spill] sm:$0xff] %v28406_v9  ;;  %v28424_v48 = vsub.f32 %v15784_v31, %v28406_v9 }
 0x57f   : > { %20803 = vmatprep.mubr.f32.mxu1 %v31170_v35  ;;  %v16094_v51 = vsub.f32 %v28347_v13, %v31171_v11  ;;  %31174 = vst [vmem:[#allocation175_spill] sm:$0xff] %v28412_v27  ;;  %v31175_v35 = vand.u32 4294901760, %v27715_v52  ;;  %v31176_v11 = vand.u32 4294901760, %v31079_v34  ;;  %v31178_v52 = vand.u32 4294901760, %v28385_v16 }
 0x580   : > { %22157 = vmatmul.mubr.f32.gmra.mrb[18].mxu0 %v16055_v50  ;;  %v15790_v50 = vsel %vm238_vm1, %v17939_v8, 0  ;;  %v29918_v17 = vand.u32 4294901760, %v28404_v4  ;;  %v16105_v8 = vand.u32 4294901760, %v16104_v42  ;;  %v29916_v42 = vand.u32 4294901760, %v28424_v48 }
 0x581   : > { %22159 = vmatprep.mubr.f32.mxu0 %v16065_v10  ;;  %v16095_v32 = vand.u32 4294901760, %v16094_v51  ;;  %v16114_v10 = vsub.f32 %v28380_v5, %v29919_v1  ;;  %v28426_v38 = vand.u32 4294901760, %v15790_v50  ;;  %v16124_v34 = vsub.f32 %v28385_v16, %v31178_v52  ;;  %v31220_v1 = vld [vmem:[#allocation140_spill] sm:$0xff] }
 0x582   : > { %20804 = vmatmul.mubr.f32.gmra.mrb[16].mxu1 %v31175_v35  ;;  %v29917_v51 = vand.u32 4294901760, %v28410_v44  ;;  %v31179_v35 = vand.u32 4294901760, %v31080_v60 }
 0x583   : > { %20806 = vmatprep.mubr.f32.mxu1 %v31176_v11  ;;  %31177 = vst [vmem:[#allocation127_spill] sm:$0xff] %v28426_v38  ;;  %v31180_v11 = vand.u32 4294901760, %v31081_v12  ;;  %v16115_v31 = vand.u32 4294901760, %v16114_v10  ;;  %v28444_v52 = vsub.f32 %v15790_v50, %v28426_v38  ;;  %v31182_v10 = vand.u32 4294901760, %v31085_v19 }
 0x584   : > { %22160 = vmatmul.mubr.f32.gmra.mrb[20].mxu0 %v16075_v26  ;;  %v28433_v26 = vsub.f32 %v15787_v15, %v28412_v27  ;;  %v16125_v15 = vand.u32 4294901760, %v16124_v34  ;;  %v16144_v60 = vsub.f32 %v28410_v44, %v29917_v51  ;;  %v16154_v50 = vsub.f32 %v28424_v48, %v29916_v42  ;;  %v31217_v42 = vld [vmem:[#allocation165_spill] sm:$0xff]  ;;  %v31218_v51 = vld [vmem:[#allocation67_spill] sm:$0xff] }
 0x585   : > { %22162 = vmatprep.mubr.f32.mxu0 %v16085_v30  ;;  %v16134_v30 = vsub.f32 %v28404_v4, %v29918_v17  ;;  %v31184_v19 = vand.u32 4294901760, %v27794_v39  ;;  %v31187_v39 = vand.u32 4294901760, %v27844_v62  ;;  %v31192_v62 = vand.u32 4294901760, %v27884_v43  ;;  %v31201_v43 = vld [vmem:[#allocation134_spill] sm:$0xff] }
 0x586   : > { %20807 = vmatmul.mubr.f32.gmra.mrb[18].mxu1 %v31179_v35  ;;  %v29915_v12 = vand.u32 4294901760, %v28433_v26  ;;  %v16145_v34 = vand.u32 4294901760, %v16144_v60  ;;  %v31186_v60 = vand.u32 4294901760, %v27825_v53  ;;  %v31191_v53 = vld [vmem:[#allocation161_spill] sm:$0xff]  ;;  %v31219_v17 = vld [vmem:[#allocation102_spill] sm:$0xff] }
 0x587   : > { %20809 = vmatprep.mubr.f32.mxu1 %v31180_v11  ;;  %v16135_v35 = vand.u32 4294901760, %v16134_v30 }
 0x588   : > { %22163 = vmatmul.mubr.f32.gmra.mrb[22].mxu0 %v16095_v32  ;;  %v31181_v32 = vand.u32 4294901760, %v31084_v58  ;;  %v16164_v11 = vsub.f32 %v28433_v26, %v29915_v12  ;;  %v31183_v58 = vand.u32 4294901760, %v27787_v54  ;;  %v31216_v12 = vld [vmem:[#allocation158_spill] sm:$0xff] }
 0x589   : > { %22165 = vmatprep.mubr.f32.mxu0 %v16105_v8  ;;  %v29914_v8 = vand.u32 4294901760, %v28444_v52 }
 0x58a   : > { %20810 = vmatmul.mubr.f32.gmra.mrb[20].mxu1 %v31181_v32  ;;  %v16165_v32 = vand.u32 4294901760, %v16164_v11  ;;  %v31197_v11 = vld [vmem:[#allocation222_spill] sm:$0xff] }
 0x58b   : > { %20812 = vmatprep.mubr.f32.mxu1 %v31182_v10  ;;  %v16174_v30 = vsub.f32 %v28444_v52, %v29914_v8  ;;  %v31188_v10 = vand.u32 4294901760, %v27850_v56  ;;  %v31193_v56 = vld [vmem:[#allocation18_spill] sm:$0xff]  ;;  %v31215_v8 = vld [vmem:[#allocation144_spill] sm:$0xff] }
 0x58c   : > { %22166 = vmatmul.mubr.f32.gmra.mrb[24].mxu0 %v16115_v31  ;;  %v16155_v31 = vand.u32 4294901760, %v16154_v50  ;;  %v31194_v50 = vld [vmem:[#allocation220_spill] sm:$0xff] }
 0x58d   : > { %22168 = vmatprep.mubr.f32.mxu0 %v16125_v15  ;;  %v31185_v15 = vand.u32 4294901760, %v27820_v29  ;;  %v16175_v54 = vand.u32 4294901760, %v16174_v30  ;;  %v31190_v29 = vand.u32 4294901760, %v27873_v25  ;;  %v31198_v25 = vld [vmem:[#allocation227_spill] sm:$0xff] }
 0x58e   : > { %20813 = vmatmul.mubr.f32.gmra.mrb[22].mxu1 %v31183_v58  ;;  %v31199_v58 = vld [vmem:[#allocation75_spill] sm:$0xff] }
 0x58f   : > { %20815 = vmatprep.mubr.f32.mxu1 %v31184_v19  ;;  %v31202_v19 = vld [vmem:[#allocation230_spill] sm:$0xff]  ;;  %v31204_v30 = vld [vmem:[#allocation203_spill] sm:$0xff] }
 0x590   : > { %22169 = vmatmul.mubr.f32.gmra.mrb[26].mxu0 %v16135_v35  ;;  %v31189_v35 = vand.u32 4294901760, %v27864_v20  ;;  %v31196_v20 = vld [vmem:[#allocation166_spill] sm:$0xff] }
 0x591   : > { %22171 = vmatprep.mubr.f32.mxu0 %v16145_v34  ;;  %v31195_v34 = vld [vmem:[#allocation54_spill] sm:$0xff] }
 0x592   : > { %20816 = vmatmul.mubr.f32.gmra.mrb[24].mxu1 %v31185_v15  ;;  %v31207_v15 = vld [vmem:[#allocation188_spill] sm:$0xff] }
 0x593   : > { %20818 = vmatprep.mubr.f32.mxu1 %v31186_v60  ;;  %v31208_v60 = vld [vmem:[#allocation214_spill] sm:$0xff] }
 0x594   : > { %22172 = vmatmul.mubr.f32.gmra.mrb[28].mxu0 %v16155_v31  ;;  %v31203_v31 = vld [vmem:[#allocation193_spill] sm:$0xff] }
 0x595   : > { %22174 = vmatprep.mubr.f32.mxu0 %v16165_v32  ;;  %v31205_v32 = vld [vmem:[#allocation210_spill] sm:$0xff] }
 0x596   : > { %20819 = vmatmul.mubr.f32.gmra.mrb[26].mxu1 %v31187_v39  ;;  %v31210_v39 = vld [vmem:[#allocation198_spill] sm:$0xff] }
 0x597   : > { %20821 = vmatprep.mubr.f32.mxu1 %v31188_v10  ;;  %v31211_v10 = vld [vmem:[#allocation224_spill] sm:$0xff] }
 0x598   : > { %22175 = vmatmul.mubr.f32.gmra.mrb[30].mxu0 %v16175_v54  ;;  %v31209_v54 = vld [vmem:[#allocation219_spill] sm:$0xff] }
 0x599   : > { %22179 = vmatprep.mubr.f32.mxu0 %v28043_v3 }
 0x59a   : > { %20822 = vmatmul.mubr.f32.gmra.mrb[28].mxu1 %v31189_v35  ;;  %v31212_v35 = vld [vmem:[#allocation131_spill] sm:$0xff] }
 0x59b   : > { %20824 = vmatprep.mubr.f32.mxu1 %v31190_v29  ;;  %v31213_v29 = vld [vmem:[#allocation135_spill] sm:$0xff] }
 0x59c   : > { %22180 = vmatmul.mubr.f32.vlgmr.msra.gmra.mrb[0].mxu0 %v28052_v7 }
 0x59d   : > { %22182 = vmatprep.mubr.f32.mxu0 %v31191_v53  ;;  %22228 = vmatpush3.msra.mxu0 %v27972_v61  ;;  %v31200_v61 = vld [vmem:[#allocation2_spill] sm:$0xff] }
 0x59e   : > { %20825 = vmatmul.mubr.f32.gmra.mrb[30].mxu1 %v31192_v62  ;;  %22277 = vmatprep.subr.mxu0 %v31193_v56  ;;  %v31214_v62 = vld [vmem:[#allocation154_spill] sm:$0xff] }
 0x59f   : > { %20829 = vmatprep.mubr.f32.mxu1 %v31194_v50 }
 0x5a0   : > { %22183 = vmatmul.mubr.f32.gmra.mrb[2].mxu0 %v31195_v34 }
 0x5a1   : > { %22185 = vmatprep.mubr.f32.mxu0 %v31196_v20 }
 0x5a2   : > { %20830 = vmatmul.mubr.f32.vlgmr.msra.gmra.mrb[0].mxu1 %v31197_v11 }
 0x5a3   : > { %20878 = vmatpush3.msra.mxu1 %v31031_v57  ;;  %20832 = vmatprep.mubr.f32.mxu1 %v31198_v25  ;;  %v31206_v57 = vld [vmem:[#allocation180_spill] sm:$0xff] }
 0x5a4   : > { %22186 = vmatmul.mubr.f32.gmra.mrb[4].mxu0 %v31199_v58  ;;  %20927 = vmatprep.subr.mxu1 %v31200_v61 }
 0x5a5   : > { %22188 = vmatprep.mubr.f32.mxu0 %v31201_v43 }
 0x5a6   : > { %20833 = vmatmul.mubr.f32.gmra.mrb[2].mxu1 %v31202_v19 }
 0x5a7   : > { %20835 = vmatprep.mubr.f32.mxu1 %v31203_v31 }
 0x5a8   : > { %22189 = vmatmul.mubr.f32.gmra.mrb[6].mxu0 %v28113_v59 }
 0x5a9   : > { %22191 = vmatprep.mubr.f32.mxu0 %v28127_v63  ;;  %v31243_v63 = vld [vmem:[#allocation160_spill] sm:$0xff] }
 0x5aa   : > { %20836 = vmatmul.mubr.f32.gmra.mrb[4].mxu1 %v31204_v30 }
 0x5ab   : > { %20838 = vmatprep.mubr.f32.mxu1 %v31205_v32 }
 0x5ac   : > { %22192 = vmatmul.mubr.f32.gmra.mrb[8].mxu0 %v31206_v57  ;;  %v31241_v57 = vld [vmem:[#allocation128_spill] sm:$0xff] }
 0x5ad   : > { %22194 = vmatprep.mubr.f32.mxu0 %v31207_v15 }
 0x5ae   : > { %20839 = vmatmul.mubr.f32.gmra.mrb[6].mxu1 %v31208_v60 }
 0x5af   : > { %20841 = vmatprep.mubr.f32.mxu1 %v31209_v54 }
 0x5b0   : > { %22195 = vmatmul.mubr.f32.gmra.mrb[10].mxu0 %v31210_v39  ;;  %v31239_v39 = vld [vmem:[#allocation20_spill] sm:$0xff] }
 0x5b1   : > { %22197 = vmatprep.mubr.f32.mxu0 %v28179_v55 }
 0x5b2   : > { %20842 = vmatmul.mubr.f32.gmra.mrb[8].mxu1 %v31211_v10 }
 0x5b3   : > { %20844 = vmatprep.mubr.f32.mxu1 %v31212_v35 }
 0x5b4   : > { %22198 = vmatmul.mubr.f32.gmra.mrb[12].mxu0 %v28189_v24  ;;  %v31236_v24 = vld [vmem:[#allocation3_spill] sm:$0xff] }
 0x5b5   : > { %22200 = vmatprep.mubr.f32.mxu0 %v28191_v18  ;;  %v31235_v18 = vld [vmem:[#allocation4_spill] sm:$0xff] }
 0x5b6   : > { %20845 = vmatmul.mubr.f32.gmra.mrb[10].mxu1 %v31213_v29  ;;  %v8408_v55 = vsub.f32 %v31236_v24, %v31235_v18  ;;  %v31242_v18 = vld [vmem:[#allocation13_spill] sm:$0xff] }
 0x5b7   : > { %20847 = vmatprep.mubr.f32.mxu1 %v31214_v62 }
 0x5b8   : > { %22201 = vmatmul.mubr.f32.gmra.mrb[14].mxu0 %v28220_v2  ;;  %v31232_v2 = vld [vmem:[#allocation147_spill] sm:$0xff]  ;;  %v28559_v15 = vand.u32 4294901760, %v8408_v55  ;;  %v31244_v55 = vld [vmem:[#allocation197_spill] sm:$0xff] }
 0x5b9   : > { %22203 = vmatprep.mubr.f32.mxu0 %v28231_v37  ;;  %v31221_v37 = vld [vmem:[#allocation148_spill] sm:$0xff] }
 0x5ba   : > { %20848 = vmatmul.mubr.f32.gmra.mrb[12].mxu1 %v31215_v8 }
 0x5bb   : > { %20850 = vmatprep.mubr.f32.mxu1 %v31216_v12 }
 0x5bc   : > { %22204 = vmatmul.mubr.f32.gmra.mrb[16].mxu0 %v28249_v0  ;;  %v31222_v0 = vld [vmem:[#allocation167_spill] sm:$0xff] }
 0x5bd   : > { %22206 = vmatprep.mubr.f32.mxu0 %v28257_v46  ;;  %v31223_v46 = vld [vmem:[#allocation176_spill] sm:$0xff] }
 0x5be   : > { %20851 = vmatmul.mubr.f32.gmra.mrb[14].mxu1 %v31217_v42 }
 0x5bf   : > { %20853 = vmatprep.mubr.f32.mxu1 %v31218_v51 }
 0x5c0   : > { %22207 = vmatmul.mubr.f32.gmra.mrb[18].mxu0 %v28277_v41  ;;  %v31224_v41 = vld [vmem:[#allocation184_spill] sm:$0xff] }
 0x5c1   : > { %22209 = vmatprep.mubr.f32.mxu0 %v28285_v47  ;;  %v31225_v47 = vld [vmem:[#allocation170_spill] sm:$0xff] }
 0x5c2   : > { %20854 = vmatmul.mubr.f32.gmra.mrb[16].mxu1 %v31219_v17 }
 0x5c3   : > { %20856 = vmatprep.mubr.f32.mxu1 %v31220_v1 }
 0x5c4   : > { %22210 = vmatmul.mubr.f32.gmra.mrb[20].mxu0 %v28293_v36  ;;  %v31226_v36 = vld [vmem:[#allocation178_spill] sm:$0xff] }
 0x5c5   : > { %22212 = vmatprep.mubr.f32.mxu0 %v28295_v28  ;;  %v31227_v28 = vld [vmem:[#allocation182_spill] sm:$0xff] }
 0x5c6   : > { %20857 = vmatmul.mubr.f32.gmra.mrb[18].mxu1 %v31221_v37 }
 0x5c7   : > { %20859 = vmatprep.mubr.f32.mxu1 %v31222_v0 }
 0x5c8   : > { %22213 = vmatmul.mubr.f32.gmra.mrb[22].mxu0 %v28324_v22  ;;  %v31228_v22 = vld [vmem:[#allocation191_spill] sm:$0xff] }
 0x5c9   : > { %22215 = vmatprep.mubr.f32.mxu0 %v28331_v49  ;;  %v31229_v49 = vld [vmem:[#allocation233_spill] sm:$0xff] }
 0x5ca   : > { %20860 = vmatmul.mubr.f32.gmra.mrb[20].mxu1 %v31223_v46 }
 0x5cb   : > { %20862 = vmatprep.mubr.f32.mxu1 %v31224_v41 }
 0x5cc   : > { %22216 = vmatmul.mubr.f32.gmra.mrb[24].mxu0 %v28356_v21  ;;  %v31230_v21 = vld [vmem:[#allocation217_spill] sm:$0xff] }
 0x5cd   : > { %22218 = vmatprep.mubr.f32.mxu0 %v28361_v33  ;;  %v31231_v33 = vld [vmem:[#allocation25_spill] sm:$0xff] }
 0x5ce   : > { %20863 = vmatmul.mubr.f32.gmra.mrb[22].mxu1 %v31225_v47 }
 0x5cf   : > { %20865 = vmatprep.mubr.f32.mxu1 %v31226_v36 }
 0x5d0   : > { %22219 = vmatmul.mubr.f32.gmra.mrb[26].mxu0 %v28382_v14  ;;  %v31233_v14 = vld [vmem:[#allocation149_spill] sm:$0xff] }
 0x5d1   : > { %22221 = vmatprep.mubr.f32.mxu0 %v28387_v40  ;;  %v31234_v40 = vld [vmem:[#allocation163_spill] sm:$0xff] }
 0x5d2   : > { %20866 = vmatmul.mubr.f32.gmra.mrb[24].mxu1 %v31227_v28 }
 0x5d3   : > { %20868 = vmatprep.mubr.f32.mxu1 %v31228_v22 }
 0x5d4   : > { %22222 = vmatmul.mubr.f32.gmra.mrb[28].mxu0 %v28406_v9  ;;  %v31237_v9 = vld [vmem:[#allocation59_spill] sm:$0xff] }
 0x5d5   : > { %22224 = vmatprep.mubr.f32.mxu0 %v28412_v27  ;;  %v31238_v27 = vld [vmem:[#allocation153_spill] sm:$0xff] }
 0x5d6   : > { %20869 = vmatmul.mubr.f32.gmra.mrb[26].mxu1 %v31229_v49 }
 0x5d7   : > { %20871 = vmatprep.mubr.f32.mxu1 %v31230_v21 }
 0x5d8   : > { %22225 = vmatmul.mubr.f32.gmra.mrb[30].mxu0 %v28426_v38  ;;  %v31240_v38 = vld [vmem:[#allocation86_spill] sm:$0xff] }
 0x5d9   : > { %22229 = vmatprep.mubr.f32.mxu0 %v31231_v33 }
 0x5da   : > { %20872 = vmatmul.mubr.f32.gmra.mrb[28].mxu1 %v31232_v2 }
 0x5db   : > { %20874 = vmatprep.mubr.f32.mxu1 %v31233_v14 }
 0x5dc   : > { %22230 = vmatmul.mubr.f32.vlgmr.msra.gmra.mrb[0].mxu0 %v31234_v40 }
 0x5dd   : > { %22232 = vmatprep.mubr.f32.mxu0 %v31237_v9  ;;  %22278 = vmatpush3.msra.mxu0 %v31193_v56 }
 0x5de   : > { %20875 = vmatmul.mubr.f32.gmra.mrb[30].mxu1 %v31238_v27  ;;  %22327 = vmatprep.subr.mxu0 %v31239_v39 }
 0x5df   : > { %20879 = vmatprep.mubr.f32.mxu1 %v31194_v50  ;;  %v31245_v50 = vld [vmem:[#allocation199_spill] sm:$0xff] }
 0x5e0   : > { %22233 = vmatmul.mubr.f32.gmra.mrb[2].mxu0 %v31240_v38 }
 0x5e1   : > { %22235 = vmatprep.mubr.f32.mxu0 %v31241_v57 }
 0x5e2   : > { %20880 = vmatmul.mubr.f32.vlgmr.msra.gmra.mrb[0].mxu1 %v31197_v11  ;;  %v31246_v11 = vld [vmem:[#allocation171_spill] sm:$0xff] }
 0x5e3   : > { %20928 = vmatpush3.msra.mxu1 %v31200_v61  ;;  %20882 = vmatprep.mubr.f32.mxu1 %v31198_v25  ;;  %v31247_v25 = vld [vmem:[#allocation186_spill] sm:$0xff]  ;;  %v31248_v61 = vld [vmem:[#allocation204_spill] sm:$0xff] }
 0x5e4   : > { %22236 = vmatmul.mubr.f32.gmra.mrb[4].mxu0 %v31242_v18  ;;  %20977 = vmatprep.subr.mxu1 %v28559_v15 }
 0x5e5   : > { %22238 = vmatprep.mubr.f32.mxu0 %v31243_v63 }
 0x5e6   : > { %20883 = vmatmul.mubr.f32.gmra.mrb[2].mxu1 %v31202_v19  ;;  %v31249_v19 = vld [vmem:[#allocation232_spill] sm:$0xff] }
 0x5e7   : > { %20885 = vmatprep.mubr.f32.mxu1 %v31203_v31  ;;  %v31250_v31 = vld [vmem:[#allocation208_spill] sm:$0xff] }
 0x5e8   : > { %22239 = vmatmul.mubr.f32.gmra.mrb[6].mxu0 %v28139_v45 }
 0x5e9   : > { %22241 = vmatprep.mubr.f32.mxu0 %v31244_v55 }
 0x5ea   : > { %20886 = vmatmul.mubr.f32.gmra.mrb[4].mxu1 %v31204_v30  ;;  %v31251_v30 = vld [vmem:[#allocation130_spill] sm:$0xff] }
 0x5eb   : > { %20888 = vmatprep.mubr.f32.mxu1 %v31205_v32  ;;  %v31252_v32 = vld [vmem:[#allocation231_spill] sm:$0xff] }
 0x5ec   : > { %22242 = vmatmul.mubr.f32.gmra.mrb[8].mxu0 %v31245_v50 }
 0x5ed   : > { %22244 = vmatprep.mubr.f32.mxu0 %v31246_v11 }
 0x5ee   : > { %20889 = vmatmul.mubr.f32.gmra.mrb[6].mxu1 %v31208_v60  ;;  %v31253_v60 = vld [vmem:[#allocation143_spill] sm:$0xff] }
 0x5ef   : > { %20891 = vmatprep.mubr.f32.mxu1 %v31209_v54  ;;  %v31254_v54 = vld [vmem:[#allocation179_spill] sm:$0xff] }
 0x5f0   : > { %22245 = vmatmul.mubr.f32.gmra.mrb[10].mxu0 %v31247_v25 }
 0x5f1   : > { %22247 = vmatprep.mubr.f32.mxu0 %v31248_v61 }
 0x5f2   : > { %20892 = vmatmul.mubr.f32.gmra.mrb[8].mxu1 %v31211_v10  ;;  %v31255_v10 = vld [vmem:[#allocation185_spill] sm:$0xff] }
 0x5f3   : > { %20894 = vmatprep.mubr.f32.mxu1 %v31212_v35  ;;  %v31256_v35 = vld [vmem:[#allocation223_spill] sm:$0xff] }
 0x5f4   : > { %22248 = vmatmul.mubr.f32.gmra.mrb[12].mxu0 %v31249_v19 }
 0x5f5   : > { %22250 = vmatprep.mubr.f32.mxu0 %v31250_v31 }
 0x5f6   : > { %20895 = vmatmul.mubr.f32.gmra.mrb[10].mxu1 %v31213_v29  ;;  %v31285_v29 = vld [vmem:[#allocation74_spill] sm:$0xff] }
 0x5f7   : > { %20897 = vmatprep.mubr.f32.mxu1 %v31214_v62  ;;  %v31286_v62 = vand.u32 4294901760, %v31251_v30 }
 0x5f8   : > { %22251 = vmatmul.mubr.f32.gmra.mrb[14].mxu0 %v31251_v30  ;;  %v31295_v30 = vand.u32 4294901760, %v31255_v10 }
 0x5f9   : > { %22253 = vmatprep.mubr.f32.mxu0 %v31252_v32 }
 0x5fa   : > { %20898 = vmatmul.mubr.f32.gmra.mrb[12].mxu1 %v31215_v8  ;;  %v31257_v8 = vld [vmem:[#allocation226_spill] sm:$0xff] }
 0x5fb   : > { %20900 = vmatprep.mubr.f32.mxu1 %v31216_v12  ;;  %v31281_v12 = vld [vmem:[#allocation66_spill] sm:$0xff] }
 0x5fc   : > { %22254 = vmatmul.mubr.f32.gmra.mrb[16].mxu0 %v28275_v23 }
 0x5fd   : > { %22256 = vmatprep.mubr.f32.mxu0 %v31253_v60 }
 0x5fe   : > { %20901 = vmatmul.mubr.f32.gmra.mrb[14].mxu1 %v31217_v42  ;;  %v31280_v42 = vld [vmem:[#allocation65_spill] sm:$0xff] }
 0x5ff   : > { %20903 = vmatprep.mubr.f32.mxu1 %v31218_v51  ;;  %v31279_v51 = vand.u32 4294901760, %v31248_v61  ;;  %v31292_v61 = vld [vmem:[#allocation89_spill] sm:$0xff] }
 0x600   : > { %22257 = vmatmul.mubr.f32.gmra.mrb[18].mxu0 %v31254_v54 }
 0x601   : > { %22259 = vmatprep.mubr.f32.mxu0 %v31255_v10  ;;  %v31303_v10 = vand.u32 4294901760, %v28354_v6 }
 0x602   : > { %20904 = vmatmul.mubr.f32.gmra.mrb[16].mxu1 %v31219_v17  ;;  %v31277_v17 = vld [vmem:[#allocation58_spill] sm:$0xff] }
 0x603   : > { %20906 = vmatprep.mubr.f32.mxu1 %v31220_v1  ;;  %v31272_v1 = vld [vmem:[#allocation48_spill] sm:$0xff] }
 0x604   : > { %22260 = vmatmul.mubr.f32.gmra.mrb[20].mxu0 %v31256_v35 }
 0x605   : > { %22262 = vmatprep.mubr.f32.mxu0 %v31257_v8 }
 0x606   : > { %20907 = vmatmul.mubr.f32.gmra.mrb[18].mxu1 %v31221_v37  ;;  %v31259_v37 = vand.u32 4294901760, %v31234_v40  ;;  %v31266_v40 = vand.u32 4294901760, %v31242_v18  ;;  %v31287_v18 = vand.u32 4294901760, %v31252_v32  ;;  %v31296_v32 = vld [vmem:[#allocation97_spill] sm:$0xff] }
 0x607   : > { %20909 = vmatprep.mubr.f32.mxu1 %v31222_v0  ;;  %v31258_v0 = vand.u32 4294901760, %v31231_v33  ;;  %v31269_v33 = vld [vmem:[#allocation42_spill] sm:$0xff] }
 0x608   : > { %22263 = vmatmul.mubr.f32.gmra.mrb[22].mxu0 %v28347_v13 }
 0x609   : > { %22265 = vmatprep.mubr.f32.mxu0 %v28354_v6  ;;  %v31311_v6 = vand.u32 4294901760, %v28410_v44 }
 0x60a   : > { %20910 = vmatmul.mubr.f32.gmra.mrb[20].mxu1 %v31223_v46  ;;  %v31260_v46 = vand.u32 4294901760, %v31237_v9  ;;  %v31273_v9 = vld [vmem:[#allocation50_spill] sm:$0xff] }
 0x60b   : > { %20912 = vmatprep.mubr.f32.mxu1 %v31224_v41  ;;  %v31261_v41 = vld [vmem:[#allocation22_spill] sm:$0xff] }
 0x60c   : > { %22266 = vmatmul.mubr.f32.gmra.mrb[24].mxu0 %v28380_v5 }
 0x60d   : > { %22268 = vmatprep.mubr.f32.mxu0 %v28385_v16 }
 0x60e   : > { %20913 = vmatmul.mubr.f32.gmra.mrb[22].mxu1 %v31225_v47  ;;  %v31262_v47 = vand.u32 4294901760, %v31240_v38  ;;  %v31274_v38 = vand.u32 4294901760, %v31245_v50  ;;  %v31289_v50 = vld [vmem:[#allocation82_spill] sm:$0xff] }
 0x60f   : > { %20915 = vmatprep.mubr.f32.mxu1 %v31226_v36  ;;  %v31264_v36 = vld [vmem:[#allocation24_spill] sm:$0xff] }
 0x610   : > { %22269 = vmatmul.mubr.f32.gmra.mrb[26].mxu0 %v28404_v4 }
 0x611   : > { %22271 = vmatprep.mubr.f32.mxu0 %v28410_v44 }
 0x612   : > { %20916 = vmatmul.mubr.f32.gmra.mrb[24].mxu1 %v31227_v28  ;;  %v31265_v28 = vld [vmem:[#allocation30_spill] sm:$0xff] }
 0x613   : > { %20918 = vmatprep.mubr.f32.mxu1 %v31228_v22  ;;  %v31267_v22 = vand.u32 4294901760, %v31243_v63  ;;  %v31275_v63 = vand.u32 4294901760, %v31246_v11  ;;  %v31290_v11 = vand.u32 4294901760, %v28275_v23  ;;  %v31298_v23 = vand.u32 4294901760, %v31256_v35 }
 0x614   : > { %22272 = vmatmul.mubr.f32.gmra.mrb[28].mxu0 %v28424_v48  ;;  %v31306_v35 = vand.u32 4294901760, %v28380_v5 }
 0x615   : > { %22274 = vmatprep.mubr.f32.mxu0 %v28433_v26 }
 0x616   : > { %20919 = vmatmul.mubr.f32.gmra.mrb[26].mxu1 %v31229_v49  ;;  %v31268_v49 = vld [vmem:[#allocation36_spill] sm:$0xff] }
 0x617   : > { %20921 = vmatprep.mubr.f32.mxu1 %v31230_v21  ;;  %v31270_v21 = vand.u32 4294901760, %v28139_v45  ;;  %v31278_v45 = vand.u32 4294901760, %v31247_v25  ;;  %v31291_v25 = vand.u32 4294901760, %v31253_v60  ;;  %v31299_v60 = vand.u32 4294901760, %v31257_v8 }
 0x618   : > { %22275 = vmatmul.mubr.f32.gmra.mrb[30].mxu0 %v28444_v52  ;;  %v31307_v8 = vand.u32 4294901760, %v28385_v16  ;;  %v31316_v16 = vand.u32 4294901760, %v28424_v48 }
 0x619   : > { %22279 = vmatprep.mubr.f32.mxu0 %v31258_v0  ;;  %v31297_v0 = vld [vmem:[#allocation98_spill] sm:$0xff] }
 0x61a   : > { %20922 = vmatmul.mubr.f32.gmra.mrb[28].mxu1 %v31232_v2  ;;  %v31263_v2 = vand.u32 4294901760, %v31241_v57  ;;  %v31282_v57 = vand.u32 4294901760, %v31249_v19  ;;  %v31293_v19 = vld [vmem:[#allocation90_spill] sm:$0xff] }
 0x61b   : > { %20924 = vmatprep.mubr.f32.mxu1 %v31233_v14  ;;  %v31271_v14 = vand.u32 4294901760, %v31244_v55  ;;  %v31288_v55 = vld [vmem:[#allocation81_spill] sm:$0xff] }
 0x61c   : > { %22280 = vmatmul.mubr.f32.vlgmr.msra.gmra.mrb[0].mxu0 %v31259_v37  ;;  %v31300_v37 = vld [vmem:[#allocation105_spill] sm:$0xff] }
 0x61d   : > { %22282 = vmatprep.mubr.f32.mxu0 %v31260_v46  ;;  %22328 = vmatpush3.msra.mxu0 %v31239_v39  ;;  %v31284_v39 = vld [vmem:[#allocation73_spill] sm:$0xff]  ;;  %v31301_v46 = vld [vmem:[#allocation106_spill] sm:$0xff] }
 0x61e   : > { %20925 = vmatmul.mubr.f32.gmra.mrb[30].mxu1 %v31238_v27  ;;  %22377 = vmatprep.subr.mxu0 %v31193_v56  ;;  %v31276_v27 = vld [vmem:[#allocation56_spill] sm:$0xff] }
 0x61f   : > { %20929 = vmatprep.mubr.f32.mxu1 %v31261_v41  ;;  %v31304_v41 = vld [vmem:[#allocation112_spill] sm:$0xff] }
 0x620   : > { %22283 = vmatmul.mubr.f32.gmra.mrb[2].mxu0 %v31262_v47  ;;  %v31305_v47 = vld [vmem:[#allocation113_spill] sm:$0xff] }
 0x621   : > { %22285 = vmatprep.mubr.f32.mxu0 %v31263_v2  ;;  %v31308_v2 = vld [vmem:[#allocation118_spill] sm:$0xff] }
 0x622   : > { %20930 = vmatmul.mubr.f32.vlgmr.msra.gmra.mrb[0].mxu1 %v31264_v36  ;;  %v31309_v36 = vld [vmem:[#allocation119_spill] sm:$0xff] }
 0x623   : > { %20978 = vmatpush3.msra.mxu1 %v28559_v15  ;;  %20932 = vmatprep.mubr.f32.mxu1 %v31265_v28  ;;  %v31283_v15 = vand.u32 4294901760, %v31250_v31  ;;  %v31294_v31 = vand.u32 4294901760, %v31254_v54  ;;  %v31302_v54 = vand.u32 4294901760, %v28347_v13  ;;  %v31310_v13 = vand.u32 4294901760, %v28404_v4  ;;  %v31312_v28 = vld [vmem:[#allocation121_spill] sm:$0xff]  ;;  %v31319_v4 = vld [vmem:[#allocation120_spill] sm:$0xff] }
 0x624   : > { %22286 = vmatmul.mubr.f32.gmra.mrb[4].mxu0 %v31266_v40  ;;  %21027 = vmatprep.subr.mxu1 %v31236_v24  ;;  %v31313_v40 = vld [vmem:[#allocation122_spill] sm:$0xff] }
 0x625   : > { %22288 = vmatprep.mubr.f32.mxu0 %v31267_v22  ;;  %v31314_v22 = vld [vmem:[#allocation117_spill] sm:$0xff] }
 0x626   : > { %20933 = vmatmul.mubr.f32.gmra.mrb[2].mxu1 %v31268_v49  ;;  %v31315_v5 = vand.u32 4294901760, %v31314_v22 }
 0x627   : > { %20935 = vmatprep.mubr.f32.mxu1 %v31269_v33  ;;  %v31317_v33 = vand.u32 4294901760, %v28433_v26  ;;  %v31324_v26 = vld [vmem:[#allocation5_spill] sm:$0xff] }
 0x628   : > { %22289 = vmatmul.mubr.f32.gmra.mrb[6].mxu0 %v31270_v21  ;;  %v8387_v49 = vsub.f32 %v31314_v22, %v31315_v5  ;;  %v31318_v21 = vld [vmem:[#allocation123_spill] sm:$0xff]  ;;  %v31366_v5 = vld [vmem:[#allocation85_spill] sm:$0xff] }
 0x629   : > { %22291 = vmatprep.mubr.f32.mxu0 %v31271_v14  ;;  %v31320_v14 = vand.u32 4294901760, %v31319_v4 }
 0x62a   : > { %20936 = vmatmul.mubr.f32.gmra.mrb[4].mxu1 %v31272_v1  ;;  %v31321_v1 = vld [vmem:[#allocation124_spill] sm:$0xff] }
 0x62b   : > { %20938 = vmatprep.mubr.f32.mxu1 %v31273_v9  ;;  %v8397_v44 = vsub.f32 %v31319_v4, %v31320_v14  ;;  %v8388_v9 = vand.u32 4294901760, %v8387_v49  ;;  %v31367_v49 = vld [vmem:[#allocation88_spill] sm:$0xff] }
 0x62c   : > { %22292 = vmatmul.mubr.f32.gmra.mrb[8].mxu0 %v31274_v38  ;;  %v31322_v38 = vand.u32 4294901760, %v28444_v52  ;;  %v31325_v52 = vld [vmem:[#allocation6_spill] sm:$0xff]  ;;  %v31371_v14 = vld [vmem:[#allocation96_spill] sm:$0xff] }
 0x62d   : > { %22294 = vmatprep.mubr.f32.mxu0 %v31275_v63  ;;  %v31323_v63 = vld [vmem:[#allocation125_spill] sm:$0xff]  ;;  %v8398_v48 = vand.u32 4294901760, %v8397_v44  ;;  %v31372_v44 = vld [vmem:[#allocation174_spill] sm:$0xff] }
 0x62e   : > { %20939 = vmatmul.mubr.f32.gmra.mrb[6].mxu1 %v31276_v27  ;;  %v31326_v27 = vld [vmem:[#allocation9_spill] sm:$0xff] }
 0x62f   : > { %20941 = vmatprep.mubr.f32.mxu1 %v31277_v17  ;;  %v31327_v17 = vld [vmem:[#allocation10_spill] sm:$0xff] }
 0x630   : > { %22295 = vmatmul.mubr.f32.gmra.mrb[10].mxu0 %v31278_v45  ;;  %v31329_v45 = vld [vmem:[#allocation168_spill] sm:$0xff] }
 0x631   : > { %22297 = vmatprep.mubr.f32.mxu0 %v31279_v51  ;;  %v31330_v51 = vld [vmem:[#allocation17_spill] sm:$0xff] }
 0x632   : > { %20942 = vmatmul.mubr.f32.gmra.mrb[8].mxu1 %v31280_v42  ;;  %v31331_v42 = vld [vmem:[#allocation23_spill] sm:$0xff] }
 0x633   : > { %20944 = vmatprep.mubr.f32.mxu1 %v31281_v12  ;;  %v31332_v12 = vld [vmem:[#allocation180_spill] sm:$0xff] }
 0x634   : > { %22298 = vmatmul.mubr.f32.gmra.mrb[12].mxu0 %v31282_v57  ;;  %v31334_v57 = vld [vmem:[#allocation26_spill] sm:$0xff] }
 0x635   : > { %22300 = vmatprep.mubr.f32.mxu0 %v31283_v15  ;;  %v31335_v15 = vld [vmem:[#allocation29_spill] sm:$0xff] }
 0x636   : > { %20945 = vmatmul.mubr.f32.gmra.mrb[10].mxu1 %v31284_v39  ;;  %v31336_v39 = vld [vmem:[#allocation198_spill] sm:$0xff] }
 0x637   : > { %20947 = vmatprep.mubr.f32.mxu1 %v31285_v29  ;;  %v31337_v29 = vld [vmem:[#allocation177_spill] sm:$0xff] }
 0x638   : > { %22301 = vmatmul.mubr.f32.gmra.mrb[14].mxu0 %v31286_v62  ;;  %v31338_v62 = vld [vmem:[#allocation32_spill] sm:$0xff] }
 0x639   : > { %22303 = vmatprep.mubr.f32.mxu0 %v31287_v18  ;;  %v31339_v18 = vld [vmem:[#allocation33_spill] sm:$0xff] }
 0x63a   : > { %20948 = vmatmul.mubr.f32.gmra.mrb[12].mxu1 %v31288_v55  ;;  %v31340_v55 = vld [vmem:[#allocation190_spill] sm:$0xff] }
 0x63b   : > { %20950 = vmatprep.mubr.f32.mxu1 %v31289_v50  ;;  %v31341_v50 = vld [vmem:[#allocation201_spill] sm:$0xff] }
 0x63c   : > { %22304 = vmatmul.mubr.f32.gmra.mrb[16].mxu0 %v31290_v11  ;;  %v31342_v11 = vld [vmem:[#allocation39_spill] sm:$0xff] }
 0x63d   : > { %22306 = vmatprep.mubr.f32.mxu0 %v31291_v25  ;;  %v31343_v25 = vld [vmem:[#allocation41_spill] sm:$0xff] }
 0x63e   : > { %20951 = vmatmul.mubr.f32.gmra.mrb[14].mxu1 %v31292_v61  ;;  %v31344_v61 = vld [vmem:[#allocation212_spill] sm:$0xff] }
 0x63f   : > { %20953 = vmatprep.mubr.f32.mxu1 %v31293_v19  ;;  %v31345_v19 = vld [vmem:[#allocation109_spill] sm:$0xff] }
 0x640   : > { %22307 = vmatmul.mubr.f32.gmra.mrb[18].mxu0 %v31294_v31  ;;  %v31346_v31 = vld [vmem:[#allocation45_spill] sm:$0xff] }
 0x641   : > { %22309 = vmatprep.mubr.f32.mxu0 %v31295_v30  ;;  %v31347_v30 = vld [vmem:[#allocation49_spill] sm:$0xff] }
 0x642   : > { %20954 = vmatmul.mubr.f32.gmra.mrb[16].mxu1 %v31296_v32  ;;  %v31348_v32 = vld [vmem:[#allocation215_spill] sm:$0xff] }
 0x643   : > { %20956 = vmatprep.mubr.f32.mxu1 %v31297_v0  ;;  %v31349_v0 = vld [vmem:[#allocation126_spill] sm:$0xff] }
 0x644   : > { %22310 = vmatmul.mubr.f32.gmra.mrb[20].mxu0 %v31298_v23  ;;  %v31350_v23 = vld [vmem:[#allocation53_spill] sm:$0xff] }
 0x645   : > { %22312 = vmatprep.mubr.f32.mxu0 %v31299_v60  ;;  %v31351_v60 = vld [vmem:[#allocation57_spill] sm:$0xff] }
 0x646   : > { %20957 = vmatmul.mubr.f32.gmra.mrb[18].mxu1 %v31300_v37  ;;  %v31352_v37 = vld [vmem:[#allocation83_spill] sm:$0xff] }
 0x647   : > { %20959 = vmatprep.mubr.f32.mxu1 %v31301_v46  ;;  %v31353_v46 = vld [vmem:[#allocation99_spill] sm:$0xff] }
 0x648   : > { %22313 = vmatmul.mubr.f32.gmra.mrb[22].mxu0 %v31302_v54  ;;  %v31354_v54 = vld [vmem:[#allocation61_spill] sm:$0xff] }
 0x649   : > { %22315 = vmatprep.mubr.f32.mxu0 %v31303_v10  ;;  %v31355_v10 = vld [vmem:[#allocation64_spill] sm:$0xff] }
 0x64a   : > { %20960 = vmatmul.mubr.f32.gmra.mrb[20].mxu1 %v31304_v41  ;;  %v31356_v41 = vld [vmem:[#allocation40_spill] sm:$0xff] }
 0x64b   : > { %20962 = vmatprep.mubr.f32.mxu1 %v31305_v47  ;;  %v31357_v47 = vld [vmem:[#allocation173_spill] sm:$0xff] }
 0x64c   : > { %22316 = vmatmul.mubr.f32.gmra.mrb[24].mxu0 %v31306_v35  ;;  %v31358_v35 = vld [vmem:[#allocation69_spill] sm:$0xff] }
 0x64d   : > { %22318 = vmatprep.mubr.f32.mxu0 %v31307_v8  ;;  %v31359_v8 = vld [vmem:[#allocation72_spill] sm:$0xff] }
 0x64e   : > { %20963 = vmatmul.mubr.f32.gmra.mrb[22].mxu1 %v31308_v2  ;;  %v31360_v2 = vld [vmem:[#allocation228_spill] sm:$0xff] }
 0x64f   : > { %20965 = vmatprep.mubr.f32.mxu1 %v31309_v36  ;;  %v31361_v36 = vld [vmem:[#allocation141_spill] sm:$0xff] }
 0x650   : > { %22319 = vmatmul.mubr.f32.gmra.mrb[26].mxu0 %v31310_v13  ;;  %v31362_v13 = vld [vmem:[#allocation77_spill] sm:$0xff] }
 0x651   : > { %22321 = vmatprep.mubr.f32.mxu0 %v31311_v6  ;;  %v31363_v6 = vld [vmem:[#allocation80_spill] sm:$0xff] }
 0x652   : > { %20966 = vmatmul.mubr.f32.gmra.mrb[24].mxu1 %v31312_v28  ;;  %v31364_v28 = vld [vmem:[#allocation132_spill] sm:$0xff] }
 0x653   : > { %20968 = vmatprep.mubr.f32.mxu1 %v31313_v40  ;;  %v31365_v40 = vld [vmem:[#allocation151_spill] sm:$0xff] }
 0x654   : > { %22322 = vmatmul.mubr.f32.gmra.mrb[28].mxu0 %v31316_v16  ;;  %v31368_v16 = vld [vmem:[#allocation62_spill] sm:$0xff] }
 0x655   : > { %22324 = vmatprep.mubr.f32.mxu0 %v31317_v33  ;;  %v31369_v33 = vld [vmem:[#allocation172_spill] sm:$0xff] }
 0x656   : > { %20969 = vmatmul.mubr.f32.gmra.mrb[26].mxu1 %v31318_v21  ;;  %v31370_v21 = vld [vmem:[#allocation93_spill] sm:$0xff] }
 0x657   : > { %20971 = vmatprep.mubr.f32.mxu1 %v31321_v1  ;;  %v31373_v1 = vld [vmem:[#allocation175_spill] sm:$0xff] }
 0x658   : > { %22325 = vmatmul.mubr.f32.gmra.mrb[30].mxu0 %v31322_v38  ;;  %v31375_v38 = vld [vmem:[#allocation104_spill] sm:$0xff] }
 0x659   : > { %22329 = vmatprep.mubr.f32.mxu0 %v28043_v3 }
 0x65a   : > { %20972 = vmatmul.mubr.f32.gmra.mrb[28].mxu1 %v31323_v63  ;;  %v31376_v63 = vld [vmem:[#allocation127_spill] sm:$0xff] }
 0x65b   : > { %20974 = vmatprep.mubr.f32.mxu1 %v8388_v9  ;;  %v31374_v9 = vld [vmem:[#allocation101_spill] sm:$0xff] }
 0x65c   : > { %22330 = vmatmul.mubr.f32.vlgmr.msra.gmra.mrb[0].mxu0 %v28052_v7 }
 0x65d   : > { %22332 = vmatprep.mubr.f32.mxu0 %v31191_v53  ;;  %22378 = vmatpush3.msra.mxu0 %v31193_v56  ;;  %v31328_v56 = vld [vmem:[#allocation11_spill] sm:$0xff] }
 0x65e   : > { %20975 = vmatmul.mubr.f32.gmra.mrb[30].mxu1 %v8398_v48  ;;  %v31377_v48 = vld [vmem:[#allocation108_spill] sm:$0xff] }
 0x65f   : > { %20979 = vmatprep.mubr.f32.mxu1 %v31324_v26  ;;  %v31378_v26 = vld [vmem:[#allocation111_spill] sm:$0xff] }
 0x660   : > { %22333 = vmatmul.mubr.f32.gmra.mrb[2].mxu0 %v31195_v34 }
 0x661   : > { %22335 = vmatprep.mubr.f32.mxu0 %v31196_v20 }
 0x662   : > { %20980 = vmatmul.mubr.f32.vlgmr.msra.gmra.mrb[0].mxu1 %v31325_v52  ;;  %v31379_v52 = vld [vmem:[#allocation115_spill] sm:$0xff] }
 0x663   : > { %21028 = vmatpush3.msra.mxu1 %v31236_v24  ;;  %20982 = vmatprep.mubr.f32.mxu1 %v31326_v27  ;;  %v31333_v24 = vld [vmem:[#allocation188_spill] sm:$0xff]  ;;  %v31380_v27 = vld [vmem:[#allocation7_spill] sm:$0xff] }
 0x664   : > { %22336 = vmatmul.mubr.f32.gmra.mrb[4].mxu0 %v31199_v58 }
 0x665   : > { %22338 = vmatprep.mubr.f32.mxu0 %v31201_v43 }
 0x666   : > { %20983 = vmatmul.mubr.f32.gmra.mrb[2].mxu1 %v31327_v17  ;;  %v31381_v17 = vld [vmem:[#allocation8_spill] sm:$0xff] }
 0x667   : > { %20985 = vmatprep.mubr.f32.mxu1 %v31328_v56  ;;  %v31382_v56 = vld [vmem:[#allocation14_spill] sm:$0xff] }
 0x668   : > { %22339 = vmatmul.mubr.f32.gmra.mrb[6].mxu0 %v28113_v59 }
 0x669   : > { %22341 = vmatprep.mubr.f32.mxu0 %v31329_v45 }
 0x66a   : > { %20986 = vmatmul.mubr.f32.gmra.mrb[4].mxu1 %v31330_v51  ;;  %v31392_v51 = vld [vmem:[#allocation47_spill] sm:$0xff] }
 0x66b   : > { %20988 = vmatprep.mubr.f32.mxu1 %v31331_v42  ;;  %v31393_v42 = vld [vmem:[#allocation52_spill] sm:$0xff] }
 0x66c   : > { %22342 = vmatmul.mubr.f32.gmra.mrb[8].mxu0 %v31332_v12 }
 0x66d   : > { %22344 = vmatprep.mubr.f32.mxu0 %v31333_v24 }
 0x66e   : > { %20989 = vmatmul.mubr.f32.gmra.mrb[6].mxu1 %v31334_v57  ;;  %v31396_v57 = vld [vmem:[#allocation63_spill] sm:$0xff] }
 0x66f   : > { %20991 = vmatprep.mubr.f32.mxu1 %v31335_v15  ;;  %v31397_v15 = vld [vmem:[#allocation68_spill] sm:$0xff] }
 0x670   : > { %22345 = vmatmul.mubr.f32.gmra.mrb[10].mxu0 %v31336_v39 }
 0x671   : > { %22347 = vmatprep.mubr.f32.mxu0 %v31337_v29 }
 0x672   : > { %20992 = vmatmul.mubr.f32.gmra.mrb[8].mxu1 %v31338_v62  ;;  %v31400_v62 = vld [vmem:[#allocation79_spill] sm:$0xff] }
 0x673   : > { %20994 = vmatprep.mubr.f32.mxu1 %v31339_v18  ;;  %v31401_v18 = vld [vmem:[#allocation84_spill] sm:$0xff] }
 0x674   : > { %22348 = vmatmul.mubr.f32.gmra.mrb[12].mxu0 %v31340_v55 }
 0x675   : > { %22350 = vmatprep.mubr.f32.mxu0 %v31341_v50 }
 0x676   : > { %20995 = vmatmul.mubr.f32.gmra.mrb[10].mxu1 %v31342_v11  ;;  %v31404_v11 = vld [vmem:[#allocation95_spill] sm:$0xff] }
 0x677   : > { %20997 = vmatprep.mubr.f32.mxu1 %v31343_v25  ;;  %v31405_v25 = vld [vmem:[#allocation100_spill] sm:$0xff] }
 0x678   : > { %22351 = vmatmul.mubr.f32.gmra.mrb[14].mxu0 %v31344_v61 }
 0x679   : > { %22353 = vmatprep.mubr.f32.mxu0 %v31345_v19 }
 0x67a   : > { %20998 = vmatmul.mubr.f32.gmra.mrb[12].mxu1 %v31346_v31  ;;  %v31408_v31 = vld [vmem:[#allocation110_spill] sm:$0xff] }
 0x67b   : > { %21000 = vmatprep.mubr.f32.mxu1 %v31347_v30  ;;  %v31409_v30 = vld [vmem:[#allocation114_spill] sm:$0xff] }
 0x67c   : > { %22354 = vmatmul.mubr.f32.gmra.mrb[16].mxu0 %v31348_v32 }
 0x67d   : > { %22356 = vmatprep.mubr.f32.mxu0 %v31349_v0 }
 0x67e   : > { %21001 = vmatmul.mubr.f32.gmra.mrb[14].mxu1 %v31350_v23 }
 0x67f   : > { %21003 = vmatprep.mubr.f32.mxu1 %v31351_v60 }
 0x680   : > { %22357 = vmatmul.mubr.f32.gmra.mrb[18].mxu0 %v31352_v37 }
 0x681   : > { %22359 = vmatprep.mubr.f32.mxu0 %v31353_v46 }
 0x682   : > { %21004 = vmatmul.mubr.f32.gmra.mrb[16].mxu1 %v31354_v54 }
 0x683   : > { %21006 = vmatprep.mubr.f32.mxu1 %v31355_v10 }
 0x684   : > { %22360 = vmatmul.mubr.f32.gmra.mrb[20].mxu0 %v31356_v41 }
 0x685   : > { %22362 = vmatprep.mubr.f32.mxu0 %v31357_v47 }
 0x686   : > { %21007 = vmatmul.mubr.f32.gmra.mrb[18].mxu1 %v31358_v35 }
 0x687   : > { %21009 = vmatprep.mubr.f32.mxu1 %v31359_v8 }
 0x688   : > { %22363 = vmatmul.mubr.f32.gmra.mrb[22].mxu0 %v31360_v2 }
 0x689   : > { %22365 = vmatprep.mubr.f32.mxu0 %v31361_v36 }
 0x68a   : > { %21010 = vmatmul.mubr.f32.gmra.mrb[20].mxu1 %v31362_v13 }
 0x68b   : > { %21012 = vmatprep.mubr.f32.mxu1 %v31363_v6 }
 0x68c   : > { %22366 = vmatmul.mubr.f32.gmra.mrb[24].mxu0 %v31364_v28 }
 0x68d   : > { %22368 = vmatprep.mubr.f32.mxu0 %v31365_v40 }
 0x68e   : > { %21013 = vmatmul.mubr.f32.gmra.mrb[22].mxu1 %v31366_v5 }
 0x68f   : > { %21015 = vmatprep.mubr.f32.mxu1 %v31367_v49 }
 0x690   : > { %22369 = vmatmul.mubr.f32.gmra.mrb[26].mxu0 %v31368_v16 }
 0x691   : > { %22371 = vmatprep.mubr.f32.mxu0 %v31369_v33 }
 0x692   : > { %21016 = vmatmul.mubr.f32.gmra.mrb[24].mxu1 %v31370_v21 }
 0x693   : > { %21018 = vmatprep.mubr.f32.mxu1 %v31371_v14 }
 0x694   : > { %22372 = vmatmul.mubr.f32.gmra.mrb[28].mxu0 %v31372_v44 }
 0x695   : > { %22374 = vmatprep.mubr.f32.mxu0 %v31373_v1 }
 0x696   : > { %21019 = vmatmul.mubr.f32.gmra.mrb[26].mxu1 %v31374_v9 }
 0x697   : > { %21021 = vmatprep.mubr.f32.mxu1 %v31375_v38 }
 0x698   : > { %22375 = vmatmul.mubr.f32.gmra.mrb[30].mxu0 %v31376_v63 }
 0x699   : > { %22379 = vmatprep.mubr.f32.mxu0 %v28043_v3  ;;  %v31383_v3 = vld [vmem:[#allocation15_spill] sm:$0xff] }
 0x69a   : > { %21022 = vmatmul.mubr.f32.gmra.mrb[28].mxu1 %v31377_v48 }
 0x69b   : > { %21024 = vmatprep.mubr.f32.mxu1 %v31378_v26 }
 0x69c   : > { %22380 = vmatmul.mubr.f32.vlgmr.msra.gmra.mrb[0].mxu0 %v28052_v7  ;;  %v31384_v7 = vld [vmem:[#allocation16_spill] sm:$0xff] }
 0x69d   : > { %22382 = vmatprep.mubr.f32.mxu0 %v31191_v53  ;;  %v31385_v53 = vld [vmem:[#allocation21_spill] sm:$0xff] }
 0x69e   : > { %21025 = vmatmul.mubr.f32.gmra.mrb[30].mxu1 %v31379_v52 }
 0x69f   : > { %21029 = vmatprep.mubr.f32.mxu1 %v31380_v27 }
 0x6a0   : > { %22383 = vmatmul.mubr.f32.gmra.mrb[2].mxu0 %v31195_v34  ;;  %v31386_v34 = vld [vmem:[#allocation27_spill] sm:$0xff] }
 0x6a1   : > { %22385 = vmatprep.mubr.f32.mxu0 %v31196_v20  ;;  %v31387_v20 = vld [vmem:[#allocation28_spill] sm:$0xff] }
 0x6a2   : > { %21030 = vmatmul.mubr.f32.vlgmr.msra.gmra.mrb[0].mxu1 %v31381_v17 }
 0x6a3   : > { %21032 = vmatprep.mubr.f32.mxu1 %v31382_v56 }
 0x6a4   : > { %22386 = vmatmul.mubr.f32.gmra.mrb[4].mxu0 %v31199_v58  ;;  %v31388_v58 = vld [vmem:[#allocation35_spill] sm:$0xff] }
 0x6a5   : > { %22388 = vmatprep.mubr.f32.mxu0 %v31201_v43  ;;  %v31389_v43 = vld [vmem:[#allocation37_spill] sm:$0xff] }
 0x6a6   : > { %21033 = vmatmul.mubr.f32.gmra.mrb[2].mxu1 %v31383_v3 }
 0x6a7   : > { %21035 = vmatprep.mubr.f32.mxu1 %v31384_v7 }
 0x6a8   : > { %22389 = vmatmul.mubr.f32.gmra.mrb[6].mxu0 %v28113_v59  ;;  %v31390_v59 = vld [vmem:[#allocation38_spill] sm:$0xff] }
 0x6a9   : > { %22391 = vmatprep.mubr.f32.mxu0 %v31329_v45  ;;  %v31391_v45 = vld [vmem:[#allocation44_spill] sm:$0xff] }
 0x6aa   : > { %21036 = vmatmul.mubr.f32.gmra.mrb[4].mxu1 %v31385_v53 }
 0x6ab   : > { %21038 = vmatprep.mubr.f32.mxu1 %v31386_v34 }
 0x6ac   : > { %22392 = vmatmul.mubr.f32.gmra.mrb[8].mxu0 %v31332_v12  ;;  %v31394_v12 = vld [vmem:[#allocation55_spill] sm:$0xff] }
 0x6ad   : > { %22394 = vmatprep.mubr.f32.mxu0 %v31333_v24  ;;  %v31395_v24 = vld [vmem:[#allocation60_spill] sm:$0xff] }
 0x6ae   : > { %21039 = vmatmul.mubr.f32.gmra.mrb[6].mxu1 %v31387_v20 }
 0x6af   : > { %21041 = vmatprep.mubr.f32.mxu1 %v31388_v58 }
 0x6b0   : > { %22395 = vmatmul.mubr.f32.gmra.mrb[10].mxu0 %v31336_v39  ;;  %v31398_v39 = vld [vmem:[#allocation71_spill] sm:$0xff] }
 0x6b1   : > { %22397 = vmatprep.mubr.f32.mxu0 %v31337_v29  ;;  %v31399_v29 = vld [vmem:[#allocation76_spill] sm:$0xff] }
 0x6b2   : > { %21042 = vmatmul.mubr.f32.gmra.mrb[8].mxu1 %v31389_v43 }
 0x6b3   : > { %21044 = vmatprep.mubr.f32.mxu1 %v31390_v59 }
 0x6b4   : > { %22398 = vmatmul.mubr.f32.gmra.mrb[12].mxu0 %v31340_v55  ;;  %v31402_v55 = vld [vmem:[#allocation87_spill] sm:$0xff] }
 0x6b5   : > { %22400 = vmatprep.mubr.f32.mxu0 %v31341_v50  ;;  %v31403_v50 = vld [vmem:[#allocation92_spill] sm:$0xff] }
 0x6b6   : > { %21045 = vmatmul.mubr.f32.gmra.mrb[10].mxu1 %v31391_v45 }
 0x6b7   : > { %21047 = vmatprep.mubr.f32.mxu1 %v31392_v51 }
 0x6b8   : > { %22401 = vmatmul.mubr.f32.gmra.mrb[14].mxu0 %v31344_v61  ;;  %v31406_v61 = vld [vmem:[#allocation103_spill] sm:$0xff] }
 0x6b9   : > { %22403 = vmatprep.mubr.f32.mxu0 %v31345_v19  ;;  %v31407_v19 = vld [vmem:[#allocation107_spill] sm:$0xff] }
 0x6ba   : > { %21048 = vmatmul.mubr.f32.gmra.mrb[12].mxu1 %v31393_v42 }
 0x6bb   : > { %21050 = vmatprep.mubr.f32.mxu1 %v31394_v12 }
 0x6bc   : > { %22404 = vmatmul.mubr.f32.gmra.mrb[16].mxu0 %v31348_v32 }
 0x6bd   : > { %22406 = vmatprep.mubr.f32.mxu0 %v31349_v0 }
 0x6be   : > { %21051 = vmatmul.mubr.f32.gmra.mrb[14].mxu1 %v31395_v24 }
 0x6bf   : > { %21053 = vmatprep.mubr.f32.mxu1 %v31396_v57 }
 0x6c0   : > { %22407 = vmatmul.mubr.f32.gmra.mrb[18].mxu0 %v31352_v37 }
 0x6c1   : > { %22409 = vmatprep.mubr.f32.mxu0 %v31353_v46  ;;  %v28860_v46 = vld [vmem:[%s28968_s2] ss:$0 sm:$0xff] }
 0x6c2   : > { %21054 = vmatmul.mubr.f32.gmra.mrb[16].mxu1 %v31397_v15 }
 0x6c3   : > { %21056 = vmatprep.mubr.f32.mxu1 %v31398_v39 }
 0x6c4   : > { %22410 = vmatmul.mubr.f32.gmra.mrb[20].mxu0 %v31356_v41 }
 0x6c5   : > { %22412 = vmatprep.mubr.f32.mxu0 %v31357_v47 }
 0x6c6   : > { %21057 = vmatmul.mubr.f32.gmra.mrb[18].mxu1 %v31399_v29 }
 0x6c7   : > { %21059 = vmatprep.mubr.f32.mxu1 %v31400_v62 }
 0x6c8   : > { %22413 = vmatmul.mubr.f32.gmra.mrb[22].mxu0 %v31360_v2 }
 0x6c9   : > { %22415 = vmatprep.mubr.f32.mxu0 %v31361_v36 }
 0x6ca   : > { %21060 = vmatmul.mubr.f32.gmra.mrb[20].mxu1 %v31401_v18 }
 0x6cb   : > { %21062 = vmatprep.mubr.f32.mxu1 %v31402_v55 }
 0x6cc   : > { %22416 = vmatmul.mubr.f32.gmra.mrb[24].mxu0 %v31364_v28 }
 0x6cd   : > { %22418 = vmatprep.mubr.f32.mxu0 %v31365_v40 }
 0x6ce   : > { %21063 = vmatmul.mubr.f32.gmra.mrb[22].mxu1 %v31403_v50 }
 0x6cf   : > { %21065 = vmatprep.mubr.f32.mxu1 %v31404_v11 }
 0x6d0   : > { %22419 = vmatmul.mubr.f32.gmra.mrb[26].mxu0 %v31368_v16 }
 0x6d1   : > { %22421 = vmatprep.mubr.f32.mxu0 %v31369_v33 }
 0x6d2   : > { %21066 = vmatmul.mubr.f32.gmra.mrb[24].mxu1 %v31405_v25 }
 0x6d3   : > { %21068 = vmatprep.mubr.f32.mxu1 %v31406_v61 }
 0x6d4   : > { %22422 = vmatmul.mubr.f32.gmra.mrb[28].mxu0 %v31372_v44 }
 0x6d5   : > { %22424 = vmatprep.mubr.f32.mxu0 %v31373_v1 }
 0x6d6   : > { %21069 = vmatmul.mubr.f32.gmra.mrb[26].mxu1 %v31407_v19 }
 0x6d7   : > { %21071 = vmatprep.mubr.f32.mxu1 %v31408_v31 }
 0x6d8   : > { %22425 = vmatmul.mubr.f32.gmra.mrb[30].mxu0 %v31376_v63 }
 0x6da   : > { %21072 = vmatmul.mubr.f32.gmra.mrb[28].mxu1 %v31409_v30 }
 0x6db   : > { %21074 = vmatprep.mubr.f32.mxu1 %v31314_v22 }
 0x6de   : > { %21075 = vmatmul.mubr.f32.gmra.mrb[30].mxu1 %v31319_v4 }
 0x76f   : > { %v22381_v32 = vpop.f32.mrb[0].mxu0 }
 0x770   : > { %v17384_v0 = vpop.f32.mrb[1].mxu0 }
 0x773   : > { %v22384_v23 = vpop.f32.mrb[2].mxu0 }
 0x774   : > { %v17396_v60 = vpop.f32.mrb[3].mxu0 }
 0x775   : > { %v21031_v37 = vpop.f32.mrb[0].mxu1 }
 0x776   : > { %v22427_v54 = vadd.f32 %v22381_v32, %v21031_v37  ;;  %v8736_v10 = vpop.f32.mrb[1].mxu1 }
 0x777   : > { %v22428_v22 = vadd.f32 %v17384_v0, %v8736_v10  ;;  %v22387_v4 = vpop.f32.mrb[4].mxu0 }
 0x778   : > { %v17614_v41 = vadd.f32 %v22427_v54, %v28860_v46  ;;  %v17408_v47 = vpop.f32.mrb[5].mxu0 }
 0x779   : > { %v17613_v35 = vadd.f32 %v22428_v22, %v28860_v46  ;;  %v21034_v8 = vpop.f32.mrb[2].mxu1 }
 0x77a   : > { %17647 = vst.msk [vmem:[%s28865_s16 + $0x8] sm:$0xff] %vm17645_vm2, %v17614_v41  ;;  %v22429_v2 = vadd.f32 %v22384_v23, %v21034_v8  ;;  %v8750_v36 = vpop.f32.mrb[3].mxu1 }
 0x77b   : > { %17646 = vst.msk [vmem:[%s28865_s16] sm:$0xff] %vm17645_vm2, %v17613_v35  ;;  %v22430_v13 = vadd.f32 %v17396_v60, %v8750_v36  ;;  %v22390_v6 = vpop.f32.mrb[6].mxu0 }
 0x77c   : > { %v17616_v28 = vadd.f32 %v22429_v2, %v28860_v46  ;;  %v17420_v40 = vpop.f32.mrb[7].mxu0 }
 0x77d   : > { %v17615_v5 = vadd.f32 %v22430_v13, %v28860_v46  ;;  %v21037_v49 = vpop.f32.mrb[4].mxu1 }
 0x77e   : > { %17649 = vst.msk [vmem:[%s28865_s16 + $0x18] sm:$0xff] %vm17645_vm2, %v17616_v28  ;;  %v22431_v16 = vadd.f32 %v22387_v4, %v21037_v49  ;;  %v8764_v33 = vpop.f32.mrb[5].mxu1 }
 0x77f   : > { %17648 = vst.msk [vmem:[%s28865_s16 + $0x10] sm:$0xff] %vm17645_vm2, %v17615_v5  ;;  %v22432_v21 = vadd.f32 %v17408_v47, %v8764_v33  ;;  %v22393_v14 = vpop.f32.mrb[8].mxu0 }
 0x780   : > { %v17618_v44 = vadd.f32 %v22431_v16, %v28860_v46  ;;  %v17432_v1 = vpop.f32.mrb[9].mxu0 }
 0x781   : > { %v17617_v9 = vadd.f32 %v22432_v21, %v28860_v46  ;;  %v21040_v38 = vpop.f32.mrb[6].mxu1 }
 0x782   : > { %17651 = vst.msk [vmem:[%s28865_s16 + $0x28] sm:$0xff] %vm17645_vm2, %v17618_v44  ;;  %v22433_v63 = vadd.f32 %v22390_v6, %v21040_v38  ;;  %v8778_v48 = vpop.f32.mrb[7].mxu1 }
 0x783   : > { %17650 = vst.msk [vmem:[%s28865_s16 + $0x20] sm:$0xff] %vm17645_vm2, %v17617_v9  ;;  %v22434_v26 = vadd.f32 %v17420_v40, %v8778_v48  ;;  %v22396_v52 = vpop.f32.mrb[10].mxu0 }
 0x784   : > { %v17620_v27 = vadd.f32 %v22433_v63, %v28860_v46  ;;  %v17444_v17 = vpop.f32.mrb[11].mxu0 }
 0x785   : > { %v17619_v56 = vadd.f32 %v22434_v26, %v28860_v46  ;;  %v21043_v3 = vpop.f32.mrb[8].mxu1 }
 0x786   : > { %17653 = vst.msk [vmem:[%s28865_s16 + $0x38] sm:$0xff] %vm17645_vm2, %v17620_v27  ;;  %v22435_v7 = vadd.f32 %v22393_v14, %v21043_v3  ;;  %v8792_v53 = vpop.f32.mrb[9].mxu1 }
 0x787   : > { %17652 = vst.msk [vmem:[%s28865_s16 + $0x30] sm:$0xff] %vm17645_vm2, %v17619_v56  ;;  %v22436_v34 = vadd.f32 %v17432_v1, %v8792_v53  ;;  %v22399_v20 = vpop.f32.mrb[12].mxu0 }
 0x788   : > { %v17622_v58 = vadd.f32 %v22435_v7, %v28860_v46  ;;  %v17456_v43 = vpop.f32.mrb[13].mxu0 }
 0x789   : > { %v17621_v59 = vadd.f32 %v22436_v34, %v28860_v46  ;;  %v21046_v45 = vpop.f32.mrb[10].mxu1 }
 0x78a   : > { %17655 = vst.msk [vmem:[%s28865_s16 + $0x48] sm:$0xff] %vm17645_vm2, %v17622_v58  ;;  %v22437_v51 = vadd.f32 %v22396_v52, %v21046_v45  ;;  %v8806_v42 = vpop.f32.mrb[11].mxu1 }
 0x78b   : > { %17654 = vst.msk [vmem:[%s28865_s16 + $0x40] sm:$0xff] %vm17645_vm2, %v17621_v59  ;;  %v22438_v12 = vadd.f32 %v17444_v17, %v8806_v42  ;;  %v22402_v24 = vpop.f32.mrb[14].mxu0 }
 0x78c   : > { %v17624_v57 = vadd.f32 %v22437_v51, %v28860_v46  ;;  %v17468_v15 = vpop.f32.mrb[15].mxu0 }
 0x78d   : > { %v17623_v39 = vadd.f32 %v22438_v12, %v28860_v46  ;;  %v21049_v29 = vpop.f32.mrb[12].mxu1 }
 0x78e   : > { %17657 = vst.msk [vmem:[%s28865_s16 + $0x58] sm:$0xff] %vm17645_vm2, %v17624_v57  ;;  %v22439_v62 = vadd.f32 %v22399_v20, %v21049_v29  ;;  %v8820_v18 = vpop.f32.mrb[13].mxu1 }
 0x78f   : > { %17656 = vst.msk [vmem:[%s28865_s16 + $0x50] sm:$0xff] %vm17645_vm2, %v17623_v39  ;;  %v22440_v55 = vadd.f32 %v17456_v43, %v8820_v18  ;;  %v22405_v50 = vpop.f32.mrb[16].mxu0 }
 0x790   : > { %v17626_v11 = vadd.f32 %v22439_v62, %v28860_v46  ;;  %v17480_v25 = vpop.f32.mrb[17].mxu0 }
 0x791   : > { %v17625_v61 = vadd.f32 %v22440_v55, %v28860_v46  ;;  %v21052_v19 = vpop.f32.mrb[14].mxu1 }
 0x792   : > { %17659 = vst.msk [vmem:[%s28865_s16 + $0x68] sm:$0xff] %vm17645_vm2, %v17626_v11  ;;  %v22441_v31 = vadd.f32 %v22402_v24, %v21052_v19  ;;  %v8834_v30 = vpop.f32.mrb[15].mxu1 }
 0x793   : > { %17658 = vst.msk [vmem:[%s28865_s16 + $0x60] sm:$0xff] %vm17645_vm2, %v17625_v61  ;;  %v22442_v32 = vadd.f32 %v17468_v15, %v8834_v30  ;;  %v22408_v0 = vpop.f32.mrb[18].mxu0 }
 0x794   : > { %v17628_v23 = vadd.f32 %v22441_v31, %v28860_v46  ;;  %v17492_v60 = vpop.f32.mrb[19].mxu0 }
 0x795   : > { %v17627_v37 = vadd.f32 %v22442_v32, %v28860_v46  ;;  %v21055_v54 = vpop.f32.mrb[16].mxu1 }
 0x796   : > { %17661 = vst.msk [vmem:[%s28865_s16 + $0x78] sm:$0xff] %vm17645_vm2, %v17628_v23  ;;  %v22443_v10 = vadd.f32 %v22405_v50, %v21055_v54  ;;  %v8848_v22 = vpop.f32.mrb[17].mxu1 }
 0x797   : > { %17660 = vst.msk [vmem:[%s28865_s16 + $0x70] sm:$0xff] %vm17645_vm2, %v17627_v37  ;;  %v22444_v4 = vadd.f32 %v17480_v25, %v8848_v22  ;;  %v22411_v41 = vpop.f32.mrb[20].mxu0 }
 0x798   : > { %v17630_v47 = vadd.f32 %v22443_v10, %v28860_v46  ;;  %v17504_v35 = vpop.f32.mrb[21].mxu0 }
 0x799   : > { %v17629_v8 = vadd.f32 %v22444_v4, %v28860_v46  ;;  %v21058_v2 = vpop.f32.mrb[18].mxu1 }
 0x79a   : > { %17663 = vst.msk [vmem:[%s28865_s16 + $0x88] sm:$0xff] %vm17645_vm2, %v17630_v47  ;;  %v22445_v36 = vadd.f32 %v22408_v0, %v21058_v2  ;;  %v8862_v13 = vpop.f32.mrb[19].mxu1 }
 0x79b   : > { %17662 = vst.msk [vmem:[%s28865_s16 + $0x80] sm:$0xff] %vm17645_vm2, %v17629_v8  ;;  %v22446_v6 = vadd.f32 %v17492_v60, %v8862_v13  ;;  %v22414_v28 = vpop.f32.mrb[22].mxu0 }
 0x79c   : > { %v17632_v40 = vadd.f32 %v22445_v36, %v28860_v46  ;;  %v17516_v5 = vpop.f32.mrb[23].mxu0 }
 0x79d   : > { %v17631_v49 = vadd.f32 %v22446_v6, %v28860_v46  ;;  %v21061_v16 = vpop.f32.mrb[20].mxu1 }
 0x79e   : > { %17665 = vst.msk [vmem:[%s28865_s16 + $0x98] sm:$0xff] %vm17645_vm2, %v17632_v40  ;;  %v22447_v33 = vadd.f32 %v22411_v41, %v21061_v16  ;;  %v8876_v21 = vpop.f32.mrb[21].mxu1 }
 0x79f   : > { %17664 = vst.msk [vmem:[%s28865_s16 + $0x90] sm:$0xff] %vm17645_vm2, %v17631_v49  ;;  %v22448_v14 = vadd.f32 %v17504_v35, %v8876_v21  ;;  %v22417_v44 = vpop.f32.mrb[24].mxu0 }
 0x7a0   : > { %v17634_v1 = vadd.f32 %v22447_v33, %v28860_v46  ;;  %v17528_v9 = vpop.f32.mrb[25].mxu0 }
 0x7a1   : > { %v17633_v38 = vadd.f32 %v22448_v14, %v28860_v46  ;;  %v21064_v63 = vpop.f32.mrb[22].mxu1 }
 0x7a2   : > { %17667 = vst.msk [vmem:[%s28865_s16 + $0xa8] sm:$0xff] %vm17645_vm2, %v17634_v1  ;;  %v22449_v48 = vadd.f32 %v22414_v28, %v21064_v63  ;;  %v8890_v26 = vpop.f32.mrb[23].mxu1 }
 0x7a3   : > { %17666 = vst.msk [vmem:[%s28865_s16 + $0xa0] sm:$0xff] %vm17645_vm2, %v17633_v38  ;;  %v22450_v52 = vadd.f32 %v17516_v5, %v8890_v26  ;;  %v22420_v27 = vpop.f32.mrb[26].mxu0 }
 0x7a4   : > { %v17636_v17 = vadd.f32 %v22449_v48, %v28860_v46  ;;  %v17540_v56 = vpop.f32.mrb[27].mxu0 }
 0x7a5   : > { %v17635_v3 = vadd.f32 %v22450_v52, %v28860_v46  ;;  %v21067_v7 = vpop.f32.mrb[24].mxu1 }
 0x7a6   : > { %17669 = vst.msk [vmem:[%s28865_s16 + $0xb8] sm:$0xff] %vm17645_vm2, %v17636_v17  ;;  %v22451_v53 = vadd.f32 %v22417_v44, %v21067_v7  ;;  %v8904_v34 = vpop.f32.mrb[25].mxu1 }
 0x7a7   : > { %17668 = vst.msk [vmem:[%s28865_s16 + $0xb0] sm:$0xff] %vm17645_vm2, %v17635_v3  ;;  %v22452_v20 = vadd.f32 %v17528_v9, %v8904_v34  ;;  %v22423_v58 = vpop.f32.mrb[28].mxu0 }
 0x7a8   : > { %v17638_v43 = vadd.f32 %v22451_v53, %v28860_v46  ;;  %v17552_v59 = vpop.f32.mrb[29].mxu0 }
 0x7a9   : > { %v17637_v45 = vadd.f32 %v22452_v20, %v28860_v46  ;;  %v21070_v51 = vpop.f32.mrb[26].mxu1 }
 0x7aa   : > { %17671 = vst.msk [vmem:[%s28865_s16 + $0xc8] sm:$0xff] %vm17645_vm2, %v17638_v43  ;;  %v22453_v42 = vadd.f32 %v22420_v27, %v21070_v51  ;;  %v8918_v12 = vpop.f32.mrb[27].mxu1 }
 0x7ab   : > { %17670 = vst.msk [vmem:[%s28865_s16 + $0xc0] sm:$0xff] %vm17645_vm2, %v17637_v45  ;;  %v22454_v24 = vadd.f32 %v17540_v56, %v8918_v12  ;;  %v22426_v57 = vpop.f32.mrb[30].mxu0 }
 0x7ac   : > { %v17640_v15 = vadd.f32 %v22453_v42, %v28860_v46  ;;  %v17564_v39 = vpop.f32.mrb[31].mxu0 }
 0x7ad   : > { %v17639_v29 = vadd.f32 %v22454_v24, %v28860_v46  ;;  %v21073_v62 = vpop.f32.mrb[28].mxu1 }
 0x7ae   : > { %17673 = vst.msk [vmem:[%s28865_s16 + $0xd8] sm:$0xff] %vm17645_vm2, %v17640_v15  ;;  %v22455_v18 = vadd.f32 %v22423_v58, %v21073_v62  ;;  %v8932_v55 = vpop.f32.mrb[29].mxu1 }
 0x7af   : > { %17672 = vst.msk [vmem:[%s28865_s16 + $0xd0] sm:$0xff] %vm17645_vm2, %v17639_v29  ;;  %v22456_v50 = vadd.f32 %v17552_v59, %v8932_v55 }
 0x7b0   : > { %v17642_v11 = vadd.f32 %v22455_v18, %v28860_v46 }
 0x7b1   : > { %v17641_v25 = vadd.f32 %v22456_v50, %v28860_v46  ;;  %v21076_v61 = vpop.f32.mrb[30].mxu1 }
 0x7b2   : > { %17675 = vst.msk [vmem:[%s28865_s16 + $0xe8] sm:$0xff] %vm17645_vm2, %v17642_v11  ;;  %v22457_v19 = vadd.f32 %v22426_v57, %v21076_v61  ;;  %v8946_v31 = vpop.f32.mrb[31].mxu1 }
 0x7b3   : > { %17674 = vst.msk [vmem:[%s28865_s16 + $0xe0] sm:$0xff] %vm17645_vm2, %v17641_v25  ;;  %v22458_v30 = vadd.f32 %v17564_v39, %v8946_v31 }
 0x7b4   : > { %v17644_v32 = vadd.f32 %v22457_v19, %v28860_v46 }
 0x7b5   : > { %v17643_v0 = vadd.f32 %v22458_v30, %v28860_v46 }
 0x7b6   : > { %17677 = vst.msk [vmem:[%s28865_s16 + $0xf8] sm:$0xff] %vm17645_vm2, %v17644_v32 }
 0x7b7   : > { %17676 = vst.msk [vmem:[%s28865_s16 + $0xf0] sm:$0xff] %vm17645_vm2, %v17643_v0 }
 0x7b8 PF: > { %s13_s12 = sadd.s32 1, %s24138_s12  }
 0x7b9   : > { %p10_p4 = scmp.ge.s32.totalorder %s13_s12, 4  }
 0x7bb   :  { %12 = sbr.rel (!%p10_p4) target bundleno = 1 (0x1), region = 72 }

</bundles_post_ra>
